<compile_context>
chip_gen: v6e
topology: v6e:2x2x1
jax: 0.10.0
libtpu: 0.0.40
codegen_flags: <defaults>
</compile_context>

<pallas_src>
import functools
import math

import jax
import jax.numpy as jnp
from jax import lax
from jax.experimental import pallas as pl
from jax.experimental.pallas import tpu as pltpu

_LN_EPS = 1e-5


def _layer_norm(x, gamma, beta, eps=_LN_EPS):
    mu = jnp.mean(x, axis=-1, keepdims=True)
    xc = x - mu
    var = jnp.mean(xc * xc, axis=-1, keepdims=True)
    return xc * lax.rsqrt(var + eps) * gamma + beta


def _encoder_kernel(x_ref, vec_ref, b1_ref, w_in_ref, w_out_ref, o_ref, *, n_heads):
    """One grid step = one (batch tile, layer).  Residual stream is carried in the
    revisited output block across the layer (inner, 'arbitrary') grid axis."""
    layer = pl.program_id(1)
    Bb, T, D = x_ref.shape
    FF = b1_ref.shape[-1]
    M = Bb * T
    hd = D // n_heads
    scale = 1.0 / math.sqrt(hd)

    # --- layer 0: seed the residual stream (PE already added in the wrapper) -----
    @pl.when(layer == 0)
    def _():
        o_ref[...] = x_ref[...]

    h = o_ref[...].reshape(M, D).astype(jnp.float32)     # (M, D) residual stream, f32
    vec = vec_ref[0]                                      # (16, D) packed per-layer vectors
    # rows: 0 ln1_g, 1 ln1_b, 2 ln2_g, 3 ln2_b, 4 b_q, 5 b_k, 6 b_v, 7 b_out, 8 b_ff2
    w_in = w_in_ref[0]                                    # (D, 4D + FF) = [Wq|Wk|Wv|Wo|Wff1]

    # --- pre-LN multi-head self-attention -----------------------------------------
    x1 = _layer_norm(h, vec[0:1], vec[1:2]).astype(jnp.bfloat16)
    q = (jnp.dot(x1, w_in[:, 0:D], preferred_element_type=jnp.float32)
         + vec[4:5]).reshape(Bb, T, D).astype(jnp.bfloat16)
    k = (jnp.dot(x1, w_in[:, D:2 * D], preferred_element_type=jnp.float32)
         + vec[5:6]).reshape(Bb, T, D).astype(jnp.bfloat16)
    v = (jnp.dot(x1, w_in[:, 2 * D:3 * D], preferred_element_type=jnp.float32)
         + vec[6:7]).reshape(Bb, T, D).astype(jnp.bfloat16)

    # TODO(synk): src_key_padding_mask not wired (forward is called with mask=None);
    #             add an additive (Bb, 1, T) key bias to the scores if needed.
    # TODO(synk): for production T (>=128) replace the materialized (T, T) scores
    #             with a flash-style online-softmax KV loop / T-tile grid axis.
    sa = jnp.zeros((M, D), jnp.float32)
    for hi in range(n_heads):                 # static unroll; attention stays per batch elem
        sl = slice(hi * hd, (hi + 1) * hd)
        s = jnp.einsum('bqd,bkd->bqk', q[:, :, sl], k[:, :, sl],
                       preferred_element_type=jnp.float32) * scale        # (Bb, T, T)
        s = s - jnp.max(s, axis=-1, keepdims=True)
        p = jnp.exp(s)
        p = p * pl.reciprocal(jnp.sum(p, axis=-1, keepdims=True), approx=True)
        oh = jnp.einsum('bqk,bkd->bqd', p.astype(jnp.bfloat16), v[:, :, sl],
                        preferred_element_type=jnp.float32)               # (Bb, T, hd)
        # fold this head straight into the output projection: sublane-sliced W_o view
        sa = sa + jnp.dot(oh.reshape(M, hd).astype(jnp.bfloat16),
                          w_in[sl, 3 * D:4 * D],
                          preferred_element_type=jnp.float32)
    h = h + sa + vec[7:8]

    # --- pre-LN feed-forward (ReLU) -------------------------------------------------
    x2 = _layer_norm(h, vec[2:3], vec[3:4]).astype(jnp.bfloat16)
    f = jnp.dot(x2, w_in[:, 4 * D:4 * D + FF],
                preferred_element_type=jnp.float32) + b1_ref[0]
    f = jnp.maximum(f, 0.0).astype(jnp.bfloat16)
    h = h + jnp.dot(f, w_out_ref[0], preferred_element_type=jnp.float32) + vec[8:9]

    o_ref[...] = h.reshape(Bb, T, D).astype(o_ref.dtype)


def transformer_encoder(x, pe, kparams, n_heads, *, batch_tile=None):
    """x: (B, T, d_model) f32.  Returns (B, T, d_model) f32."""
    B, T, D = x.shape
    L = kparams["vecs"].shape[0]
    FF = kparams["b1"].shape[-1]

    # batch tile chosen so the MXU M dimension is >= 256 (v6e/v7x) when possible
    if batch_tile is None:
        batch_tile = min(B, max(1, 256 // T))
    while B % batch_tile:
        batch_tile -= 1
    Bb = batch_tile
    nb = B // Bb

    # fuse the positional-encoding add in the wrapper (XLA fuses it; drops one input)
    x = (x + pe[None]).astype(jnp.float32)

    # VMEM budget from the actual blocks: double-buffered inputs + resident output
    # block + f32 temporaries.  TODO(synk): for v7x (64 MiB VMEM) at large D/FF,
    # split [Wqkv|Wo] from Wff1 and add an FF-chunk grid axis before scaling up.
    x_blk = Bb * T * D * 4
    w_in_blk = D * (4 * D + FF) * 2
    w_out_blk = FF * D * 2
    small_blk = 16 * D * 4 + FF * 4
    temps = Bb * T * (FF + 6 * D) * 4
    vmem_limit = 2 * (x_blk + w_in_blk + w_out_blk + small_blk) + x_blk + temps + (4 << 20)
    vmem_limit = int(min(max(vmem_limit, 32 << 20), 64 << 20))

    flops = 2 * B * L * T * (4 * D * D + 2 * D * FF + 2 * T * D)
    cost = pl.CostEstimate(
        flops=int(flops),
        transcendentals=int(B * L * n_heads * T * T),
        bytes_accessed=int(2 * x.size * 4
                           + nb * (kparams["w_in"].size * 2 + kparams["w_out"].size * 2
                                   + kparams["vecs"].size * 4 + kparams["b1"].size * 4)))

    kernel = functools.partial(_encoder_kernel, n_heads=n_heads)
    return pl.pallas_call(
        kernel,
        out_shape=jax.ShapeDtypeStruct((B, T, D), jnp.float32),
        grid=(nb, L),
        in_specs=[
            pl.BlockSpec((Bb, T, D), lambda b, l: (b, 0, 0)),             # x (+PE), fetched once / tile
            pl.BlockSpec((1, 16, D), lambda b, l: (l, 0, 0)),             # packed LN/bias vectors
            pl.BlockSpec((1, 1, FF), lambda b, l: (l, 0, 0)),             # ffn bias 1
            pl.BlockSpec((1, D, 4 * D + FF), lambda b, l: (l, 0, 0)),     # [Wq|Wk|Wv|Wo|Wff1] bf16
            pl.BlockSpec((1, FF, D), lambda b, l: (l, 0, 0)),             # Wff2 bf16
        ],
        out_specs=pl.BlockSpec((Bb, T, D), lambda b, l: (b, 0, 0)),       # resident across l
        compiler_params=pltpu.CompilerParams(
            dimension_semantics=("parallel", "arbitrary"),
            vmem_limit_bytes=vmem_limit),
        cost_estimate=cost,
    )(x, kparams["vecs"], kparams["b1"], kparams["w_in"], kparams["w_out"])


# ------------------------------------------------------------------ params / packing

def sinusoidal_pe(T, D):
    # TODO(synk): PositionalEncoding class body not given in the spec; standard
    #             sinusoidal PE (added to x) is assumed.
    pos = jnp.arange(T, dtype=jnp.float32)[:, None]
    i = jnp.arange(0, D, 2, dtype=jnp.float32)[None, :]
    ang = pos * jnp.exp(-math.log(10000.0) * i / D)
    pe = jnp.zeros((T, D), jnp.float32)
    pe = pe.at[:, 0::2].set(jnp.sin(ang))
    pe = pe.at[:, 1::2].set(jnp.cos(ang))
    return pe


def init_params(key, d_model, n_layers, dim_ff):
    D, FF = d_model, dim_ff
    layers = []
    for lk in jax.random.split(key, n_layers):
        k = jax.random.split(lk, 12)
        layers.append(dict(
            w_qkv=0.02 * jax.random.normal(k[0], (D, 3 * D), jnp.float32),
            b_qkv=0.02 * jax.random.normal(k[1], (3 * D,), jnp.float32),
            w_o=0.02 * jax.random.normal(k[2], (D, D), jnp.float32),
            b_o=0.02 * jax.random.normal(k[3], (D,), jnp.float32),
            w_ff1=0.02 * jax.random.normal(k[4], (D, FF), jnp.float32),
            b_ff1=0.02 * jax.random.normal(k[5], (FF,), jnp.float32),
            w_ff2=0.02 * jax.random.normal(k[6], (FF, D), jnp.float32),
            b_ff2=0.02 * jax.random.normal(k[7], (D,), jnp.float32),
            ln1_g=jax.random.uniform(k[8], (D,), jnp.float32, 0.9, 1.1),
            ln1_b=0.02 * jax.random.normal(k[9], (D,), jnp.float32),
            ln2_g=jax.random.uniform(k[10], (D,), jnp.float32, 0.9, 1.1),
            ln2_b=0.02 * jax.random.normal(k[11], (D,), jnp.float32),
        ))
    return layers


def pack_kernel_params(layers):
    D = layers[0]["w_o"].shape[0]
    vecs, b1s, w_ins, w_outs = [], [], [], []
    for p in layers:
        rows = [p["ln1_g"], p["ln1_b"], p["ln2_g"], p["ln2_b"],
                p["b_qkv"][0:D], p["b_qkv"][D:2 * D], p["b_qkv"][2 * D:3 * D],
                p["b_o"], p["b_ff2"]]
        rows += [jnp.zeros((D,), jnp.float32)] * (16 - len(rows))
        vecs.append(jnp.stack(rows))
        b1s.append(p["b_ff1"][None, :])
        w_ins.append(jnp.concatenate([p["w_qkv"], p["w_o"], p["w_ff1"]],
                                     axis=-1).astype(jnp.bfloat16))
        w_outs.append(p["w_ff2"].astype(jnp.bfloat16))
    return dict(vecs=jnp.stack(vecs), b1=jnp.stack(b1s),
                w_in=jnp.stack(w_ins), w_out=jnp.stack(w_outs))


# ------------------------------------------------------------------ pure-JAX reference

def _ln_ref(x, g, b, eps=_LN_EPS):
    mu = x.mean(-1, keepdims=True)
    var = ((x - mu) ** 2).mean(-1, keepdims=True)
    return (x - mu) / jnp.sqrt(var + eps) * g + b


def reference_forward(x, pe, layers, n_heads):
    B, T, D = x.shape
    hd = D // n_heads
    h = x + pe[None]
    for p in layers:
        x1 = _ln_ref(h, p["ln1_g"], p["ln1_b"])
        qkv = jnp.einsum("btd,de->bte", x1, p["w_qkv"], precision="highest") + p["b_qkv"]
        q, k, v = qkv[..., :D], qkv[..., D:2 * D], qkv[..., 2 * D:]
        q = q.reshape(B, T, n_heads, hd).transpose(0, 2, 1, 3)
        k = k.reshape(B, T, n_heads, hd).transpose(0, 2, 1, 3)
        v = v.reshape(B, T, n_heads, hd).transpose(0, 2, 1, 3)
        s = jnp.einsum("bhqd,bhkd->bhqk", q, k, precision="highest") / math.sqrt(hd)
        a = jax.nn.softmax(s, axis=-1)
        o = jnp.einsum("bhqk,bhkd->bhqd", a, v, precision="highest")
        o = o.transpose(0, 2, 1, 3).reshape(B, T, D)
        h = h + jnp.einsum("btd,de->bte", o, p["w_o"], precision="highest") + p["b_o"]
        x2 = _ln_ref(h, p["ln2_g"], p["ln2_b"])
        f = jnp.maximum(jnp.einsum("btd,df->btf", x2, p["w_ff1"],
                                   precision="highest") + p["b_ff1"], 0.0)
        h = h + jnp.einsum("btf,fd->btd", f, p["w_ff2"],
                           precision="highest") + p["b_ff2"]
    return h


if __name__ == "__main__":
    # small but MXU-meaningful: Bb*T = 256 per batch tile, 2 batch tiles, 2 layers
    B, T, D, H, L = 32, 16, 128, 4, 2
    FF = 4 * D

    key = jax.random.PRNGKey(0)
    kx, kp = jax.random.split(key)
    x = jax.random.normal(kx, (B, T, D), jnp.float32)

    layers = init_params(kp, D, L, FF)
    kparams = pack_kernel_params(layers)
    pe = sinusoidal_pe(T, D)

    out = transformer_encoder(x, pe, kparams, n_heads=H)
    out = jax.block_until_ready(out)
    assert out.shape == (B, T, D), out.shape

    ref = reference_forward(x, pe, layers, H)
    err = float(jnp.max(jnp.abs(out - ref)))
    assert err < 2e-2, f"max abs err {err}"
    print("KERNEL_OK")
</pallas_src>

<mosaic_0001>
module attributes {stable_mosaic.version = 11 : i64} {
  func.func @_encoder_kernel(%arg0: i32, %arg1: i32, %arg2: memref<16x16x128xf32, #tpu.memory_space<vmem>>, %arg3: memref<1x16x128xf32, #tpu.memory_space<vmem>>, %arg4: memref<1x1x512xf32, #tpu.memory_space<vmem>>, %arg5: memref<1x128x1024xbf16, #tpu.memory_space<vmem>>, %arg6: memref<1x512x128xbf16, #tpu.memory_space<vmem>>, %arg7: memref<16x16x128xf32, #tpu.memory_space<vmem>>) attributes {dimension_semantics = [#tpu.dimension_semantics<parallel>, #tpu.dimension_semantics<arbitrary>], iteration_bounds = array<i64: 2, 2>, scalar_prefetch = 0 : i64, scratch_operands = 0 : i64, tpu.core_type = #tpu.core_type<tc>, window_params = [{transform_indices = @transform_0, window_bounds = array<i64: 16, 16, 128>}, {transform_indices = @transform_1, window_bounds = array<i64: 1, 16, 128>}, {transform_indices = @transform_2, window_bounds = array<i64: 1, 1, 512>}, {transform_indices = @transform_3, window_bounds = array<i64: 1, 128, 1024>}, {transform_indices = @transform_4, window_bounds = array<i64: 1, 512, 128>}, {transform_indices = @transform_5, window_bounds = array<i64: 16, 16, 128>}]} {
    %c0_i32 = arith.constant 0 : i32
    %0 = arith.cmpi eq, %arg1, %c0_i32 : i32
    %1 = arith.extui %0 : i1 to i32
    %c0_i32_0 = arith.constant 0 : i32
    %2 = arith.cmpi ne, %1, %c0_i32_0 : i32
    scf.if %2 {
      %c0_58 = arith.constant 0 : index
      %c0_59 = arith.constant 0 : index
      %c0_60 = arith.constant 0 : index
      %191 = vector.load %arg2[%c0_58, %c0_59, %c0_60] : memref<16x16x128xf32, #tpu.memory_space<vmem>>, vector<16x16x128xf32>
      %c0_61 = arith.constant 0 : index
      %c0_62 = arith.constant 0 : index
      %c0_63 = arith.constant 0 : index
      %192 = vector.load %arg7[%c0_61, %c0_62, %c0_63] : memref<16x16x128xf32, #tpu.memory_space<vmem>>, vector<16x16x128xf32>
      tpu.vector_store %arg7[%c0_61, %c0_62, %c0_63], %191 {strides = array<i32>} : memref<16x16x128xf32, #tpu.memory_space<vmem>>, vector<16x16x128xf32>,
    } else {
    }
    %c0 = arith.constant 0 : index
    %c0_1 = arith.constant 0 : index
    %c0_2 = arith.constant 0 : index
    %3 = vector.load %arg7[%c0, %c0_1, %c0_2] : memref<16x16x128xf32, #tpu.memory_space<vmem>>, vector<16x16x128xf32>
    %4 = vector.shape_cast %3 : vector<16x16x128xf32> to vector<256x128xf32>
    %c0_3 = arith.constant 0 : index
    %c0_4 = arith.constant 0 : index
    %c0_5 = arith.constant 0 : index
    %5 = vector.load %arg3[%c0_3, %c0_4, %c0_5] : memref<1x16x128xf32, #tpu.memory_space<vmem>>, vector<1x16x128xf32>
    %6 = vector.shape_cast %5 : vector<1x16x128xf32> to vector<16x128xf32>
    %c0_6 = arith.constant 0 : index
    %c0_7 = arith.constant 0 : index
    %c0_8 = arith.constant 0 : index
    %7 = vector.load %arg5[%c0_6, %c0_7, %c0_8] : memref<1x128x1024xbf16, #tpu.memory_space<vmem>>, vector<1x128x1024xbf16>
    %8 = vector.shape_cast %7 : vector<1x128x1024xbf16> to vector<128x1024xbf16>
    %9 = vector.extract_strided_slice %6 {offsets = [0, 0], sizes = [1, 128], strides = [1, 1]} : vector<16x128xf32> to vector<1x128xf32>
    %10 = vector.extract_strided_slice %6 {offsets = [1, 0], sizes = [1, 128], strides = [1, 1]} : vector<16x128xf32> to vector<1x128xf32>
    %cst = arith.constant dense<0.000000e+00> : vector<256xf32>
    %11 = vector.multi_reduction <add>, %4, %cst [1] : vector<256x128xf32> to vector<256xf32>
    %12 = vector.shape_cast %11 : vector<256xf32> to vector<256x1xf32>
    %cst_9 = arith.constant 1.280000e+02 : f32
    %13 = vector.broadcast %cst_9 : f32 to vector<256x1xf32>
    %14 = arith.divf %12, %13 : vector<256x1xf32>
    %15 = vector.broadcast %14 : vector<256x1xf32> to vector<256x128xf32>
    %16 = arith.subf %4, %15 : vector<256x128xf32>
    %17 = arith.mulf %16, %16 : vector<256x128xf32>
    %cst_10 = arith.constant dense<0.000000e+00> : vector<256xf32>
    %18 = vector.multi_reduction <add>, %17, %cst_10 [1] : vector<256x128xf32> to vector<256xf32>
    %19 = vector.shape_cast %18 : vector<256xf32> to vector<256x1xf32>
    %cst_11 = arith.constant 1.280000e+02 : f32
    %20 = vector.broadcast %cst_11 : f32 to vector<256x1xf32>
    %21 = arith.divf %19, %20 : vector<256x1xf32>
    %cst_12 = arith.constant 9.99999974E-6 : f32
    %22 = vector.broadcast %cst_12 : f32 to vector<256x1xf32>
    %23 = arith.addf %21, %22 : vector<256x1xf32>
    %24 = math.rsqrt %23 : vector<256x1xf32>
    %25 = vector.broadcast %24 : vector<256x1xf32> to vector<256x128xf32>
    %26 = arith.mulf %16, %25 : vector<256x128xf32>
    %27 = vector.broadcast %9 : vector<1x128xf32> to vector<256x128xf32>
    %28 = arith.mulf %26, %27 : vector<256x128xf32>
    %29 = vector.broadcast %10 : vector<1x128xf32> to vector<256x128xf32>
    %30 = arith.addf %28, %29 : vector<256x128xf32>
    %31 = arith.truncf %30 : vector<256x128xf32> to vector<256x128xbf16>
    %32 = vector.extract_strided_slice %8 {offsets = [0, 0], sizes = [128, 128], strides = [1, 1]} : vector<128x1024xbf16> to vector<128x128xbf16>
    %cst_13 = arith.constant dense<0.000000e+00> : vector<256x128xf32>
    %33 = tpu.matmul %31, %32, %cst_13 {dimension_numbers = #tpu.dot_dimension_numbers<[1], [0], [0], [1], [0, 0, 1, 1], [], []>} : vector<256x128xbf16>, vector<128x128xbf16>, vector<256x128xf32> -> vector<256x128xf32>
    %34 = vector.extract_strided_slice %6 {offsets = [4, 0], sizes = [1, 128], strides = [1, 1]} : vector<16x128xf32> to vector<1x128xf32>
    %35 = vector.broadcast %34 : vector<1x128xf32> to vector<256x128xf32>
    %36 = arith.addf %33, %35 : vector<256x128xf32>
    %37 = vector.shape_cast %36 : vector<256x128xf32> to vector<16x16x128xf32>
    %38 = arith.truncf %37 : vector<16x16x128xf32> to vector<16x16x128xbf16>
    %39 = vector.extract_strided_slice %8 {offsets = [0, 128], sizes = [128, 128], strides = [1, 1]} : vector<128x1024xbf16> to vector<128x128xbf16>
    %cst_14 = arith.constant dense<0.000000e+00> : vector<256x128xf32>
    %40 = tpu.matmul %31, %39, %cst_14 {dimension_numbers = #tpu.dot_dimension_numbers<[1], [0], [0], [1], [0, 0, 1, 1], [], []>} : vector<256x128xbf16>, vector<128x128xbf16>, vector<256x128xf32> -> vector<256x128xf32>
    %41 = vector.extract_strided_slice %6 {offsets = [5, 0], sizes = [1, 128], strides = [1, 1]} : vector<16x128xf32> to vector<1x128xf32>
    %42 = vector.broadcast %41 : vector<1x128xf32> to vector<256x128xf32>
    %43 = arith.addf %40, %42 : vector<256x128xf32>
    %44 = vector.shape_cast %43 : vector<256x128xf32> to vector<16x16x128xf32>
    %45 = arith.truncf %44 : vector<16x16x128xf32> to vector<16x16x128xbf16>
    %46 = vector.extract_strided_slice %8 {offsets = [0, 256], sizes = [128, 128], strides = [1, 1]} : vector<128x1024xbf16> to vector<128x128xbf16>
    %cst_15 = arith.constant dense<0.000000e+00> : vector<256x128xf32>
    %47 = tpu.matmul %31, %46, %cst_15 {dimension_numbers = #tpu.dot_dimension_numbers<[1], [0], [0], [1], [0, 0, 1, 1], [], []>} : vector<256x128xbf16>, vector<128x128xbf16>, vector<256x128xf32> -> vector<256x128xf32>
    %48 = vector.extract_strided_slice %6 {offsets = [6, 0], sizes = [1, 128], strides = [1, 1]} : vector<16x128xf32> to vector<1x128xf32>
    %49 = vector.broadcast %48 : vector<1x128xf32> to vector<256x128xf32>
    %50 = arith.addf %47, %49 : vector<256x128xf32>
    %51 = vector.shape_cast %50 : vector<256x128xf32> to vector<16x16x128xf32>
    %52 = arith.truncf %51 : vector<16x16x128xf32> to vector<16x16x128xbf16>
    %cst_16 = arith.constant 0.000000e+00 : f32
    %53 = vector.broadcast %cst_16 : f32 to vector<256x128xf32>
    %54 = vector.extract_strided_slice %38 {offsets = [0, 0, 0], sizes = [16, 16, 32], strides = [1, 1, 1]} : vector<16x16x128xbf16> to vector<16x16x32xbf16>
    %55 = vector.extract_strided_slice %45 {offsets = [0, 0, 0], sizes = [16, 16, 32], strides = [1, 1, 1]} : vector<16x16x128xbf16> to vector<16x16x32xbf16>
    "tpu.trace_start"() <{level = 10 : i32, message = "bqd,bkd->bqk"}> : () -> ()
    %cst_17 = arith.constant dense<0.000000e+00> : vector<16x16x16xf32>
    %56 = tpu.matmul %54, %55, %cst_17 {dimension_numbers = #tpu.dot_dimension_numbers<[2], [2], [1], [1], [0, 0, 0, 1, 1, 1], [0], [0]>} : vector<16x16x32xbf16>, vector<16x16x32xbf16>, vector<16x16x16xf32> -> vector<16x16x16xf32>
    "tpu.trace_stop"() : () -> ()
    %cst_18 = arith.constant 0.176776692 : f32
    %57 = vector.broadcast %cst_18 : f32 to vector<16x16x16xf32>
    %58 = arith.mulf %56, %57 : vector<16x16x16xf32>
    %cst_19 = arith.constant dense<0xFF800000> : vector<16x16xf32>
    %59 = vector.multi_reduction <maximumf>, %58, %cst_19 [2] : vector<16x16x16xf32> to vector<16x16xf32>
    %60 = vector.shape_cast %59 : vector<16x16xf32> to vector<16x16x1xf32>
    %61 = vector.broadcast %60 : vector<16x16x1xf32> to vector<16x16x16xf32>
    %62 = arith.subf %58, %61 : vector<16x16x16xf32>
    %63 = math.exp %62 : vector<16x16x16xf32>
    %cst_20 = arith.constant dense<0.000000e+00> : vector<16x16xf32>
    %64 = vector.multi_reduction <add>, %63, %cst_20 [2] : vector<16x16x16xf32> to vector<16x16xf32>
    %65 = vector.shape_cast %64 : vector<16x16xf32> to vector<16x16x1xf32>
    %66 = tpu.reciprocal %65 {approx = true} : vector<16x16x1xf32> -> vector<16x16x1xf32>
    %67 = vector.broadcast %66 : vector<16x16x1xf32> to vector<16x16x16xf32>
    %68 = arith.mulf %63, %67 : vector<16x16x16xf32>
    %69 = arith.truncf %68 : vector<16x16x16xf32> to vector<16x16x16xbf16>
    %70 = vector.extract_strided_slice %52 {offsets = [0, 0, 0], sizes = [16, 16, 32], strides = [1, 1, 1]} : vector<16x16x128xbf16> to vector<16x16x32xbf16>
    "tpu.trace_start"() <{level = 10 : i32, message = "bqk,bkd->bqd"}> : () -> ()
    %cst_21 = arith.constant dense<0.000000e+00> : vector<16x16x32xf32>
    %71 = tpu.matmul %69, %70, %cst_21 {dimension_numbers = #tpu.dot_dimension_numbers<[2], [1], [1], [2], [0, 0, 0, 1, 1, 2], [0], [0]>} : vector<16x16x16xbf16>, vector<16x16x32xbf16>, vector<16x16x32xf32> -> vector<16x16x32xf32>
    "tpu.trace_stop"() : () -> ()
    %72 = vector.shape_cast %71 : vector<16x16x32xf32> to vector<256x32xf32>
    %73 = arith.truncf %72 : vector<256x32xf32> to vector<256x32xbf16>
    %74 = vector.extract_strided_slice %8 {offsets = [0, 384], sizes = [32, 128], strides = [1, 1]} : vector<128x1024xbf16> to vector<32x128xbf16>
    %cst_22 = arith.constant dense<0.000000e+00> : vector<256x128xf32>
    %75 = tpu.matmul %73, %74, %cst_22 {dimension_numbers = #tpu.dot_dimension_numbers<[1], [0], [0], [1], [0, 0, 1, 1], [], []>} : vector<256x32xbf16>, vector<32x128xbf16>, vector<256x128xf32> -> vector<256x128xf32>
    %76 = arith.addf %53, %75 : vector<256x128xf32>
    %77 = vector.extract_strided_slice %38 {offsets = [0, 0, 32], sizes = [16, 16, 32], strides = [1, 1, 1]} : vector<16x16x128xbf16> to vector<16x16x32xbf16>
    %78 = vector.extract_strided_slice %45 {offsets = [0, 0, 32], sizes = [16, 16, 32], strides = [1, 1, 1]} : vector<16x16x128xbf16> to vector<16x16x32xbf16>
    "tpu.trace_start"() <{level = 10 : i32, message = "bqd,bkd->bqk"}> : () -> ()
    %cst_23 = arith.constant dense<0.000000e+00> : vector<16x16x16xf32>
    %79 = tpu.matmul %77, %78, %cst_23 {dimension_numbers = #tpu.dot_dimension_numbers<[2], [2], [1], [1], [0, 0, 0, 1, 1, 1], [0], [0]>} : vector<16x16x32xbf16>, vector<16x16x32xbf16>, vector<16x16x16xf32> -> vector<16x16x16xf32>
    "tpu.trace_stop"() : () -> ()
    %cst_24 = arith.constant 0.176776692 : f32
    %80 = vector.broadcast %cst_24 : f32 to vector<16x16x16xf32>
    %81 = arith.mulf %79, %80 : vector<16x16x16xf32>
    %cst_25 = arith.constant dense<0xFF800000> : vector<16x16xf32>
    %82 = vector.multi_reduction <maximumf>, %81, %cst_25 [2] : vector<16x16x16xf32> to vector<16x16xf32>
    %83 = vector.shape_cast %82 : vector<16x16xf32> to vector<16x16x1xf32>
    %84 = vector.broadcast %83 : vector<16x16x1xf32> to vector<16x16x16xf32>
    %85 = arith.subf %81, %84 : vector<16x16x16xf32>
    %86 = math.exp %85 : vector<16x16x16xf32>
    %cst_26 = arith.constant dense<0.000000e+00> : vector<16x16xf32>
    %87 = vector.multi_reduction <add>, %86, %cst_26 [2] : vector<16x16x16xf32> to vector<16x16xf32>
    %88 = vector.shape_cast %87 : vector<16x16xf32> to vector<16x16x1xf32>
    %89 = tpu.reciprocal %88 {approx = true} : vector<16x16x1xf32> -> vector<16x16x1xf32>
    %90 = vector.broadcast %89 : vector<16x16x1xf32> to vector<16x16x16xf32>
    %91 = arith.mulf %86, %90 : vector<16x16x16xf32>
    %92 = arith.truncf %91 : vector<16x16x16xf32> to vector<16x16x16xbf16>
    %93 = vector.extract_strided_slice %52 {offsets = [0, 0, 32], sizes = [16, 16, 32], strides = [1, 1, 1]} : vector<16x16x128xbf16> to vector<16x16x32xbf16>
    "tpu.trace_start"() <{level = 10 : i32, message = "bqk,bkd->bqd"}> : () -> ()
    %cst_27 = arith.constant dense<0.000000e+00> : vector<16x16x32xf32>
    %94 = tpu.matmul %92, %93, %cst_27 {dimension_numbers = #tpu.dot_dimension_numbers<[2], [1], [1], [2], [0, 0, 0, 1, 1, 2], [0], [0]>} : vector<16x16x16xbf16>, vector<16x16x32xbf16>, vector<16x16x32xf32> -> vector<16x16x32xf32>
    "tpu.trace_stop"() : () -> ()
    %95 = vector.shape_cast %94 : vector<16x16x32xf32> to vector<256x32xf32>
    %96 = arith.truncf %95 : vector<256x32xf32> to vector<256x32xbf16>
    %97 = vector.extract_strided_slice %8 {offsets = [32, 384], sizes = [32, 128], strides = [1, 1]} : vector<128x1024xbf16> to vector<32x128xbf16>
    %cst_28 = arith.constant dense<0.000000e+00> : vector<256x128xf32>
    %98 = tpu.matmul %96, %97, %cst_28 {dimension_numbers = #tpu.dot_dimension_numbers<[1], [0], [0], [1], [0, 0, 1, 1], [], []>} : vector<256x32xbf16>, vector<32x128xbf16>, vector<256x128xf32> -> vector<256x128xf32>
    %99 = arith.addf %76, %98 : vector<256x128xf32>
    %100 = vector.extract_strided_slice %38 {offsets = [0, 0, 64], sizes = [16, 16, 32], strides = [1, 1, 1]} : vector<16x16x128xbf16> to vector<16x16x32xbf16>
    %101 = vector.extract_strided_slice %45 {offsets = [0, 0, 64], sizes = [16, 16, 32], strides = [1, 1, 1]} : vector<16x16x128xbf16> to vector<16x16x32xbf16>
    "tpu.trace_start"() <{level = 10 : i32, message = "bqd,bkd->bqk"}> : () -> ()
    %cst_29 = arith.constant dense<0.000000e+00> : vector<16x16x16xf32>
    %102 = tpu.matmul %100, %101, %cst_29 {dimension_numbers = #tpu.dot_dimension_numbers<[2], [2], [1], [1], [0, 0, 0, 1, 1, 1], [0], [0]>} : vector<16x16x32xbf16>, vector<16x16x32xbf16>, vector<16x16x16xf32> -> vector<16x16x16xf32>
    "tpu.trace_stop"() : () -> ()
    %cst_30 = arith.constant 0.176776692 : f32
    %103 = vector.broadcast %cst_30 : f32 to vector<16x16x16xf32>
    %104 = arith.mulf %102, %103 : vector<16x16x16xf32>
    %cst_31 = arith.constant dense<0xFF800000> : vector<16x16xf32>
    %105 = vector.multi_reduction <maximumf>, %104, %cst_31 [2] : vector<16x16x16xf32> to vector<16x16xf32>
    %106 = vector.shape_cast %105 : vector<16x16xf32> to vector<16x16x1xf32>
    %107 = vector.broadcast %106 : vector<16x16x1xf32> to vector<16x16x16xf32>
    %108 = arith.subf %104, %107 : vector<16x16x16xf32>
    %109 = math.exp %108 : vector<16x16x16xf32>
    %cst_32 = arith.constant dense<0.000000e+00> : vector<16x16xf32>
    %110 = vector.multi_reduction <add>, %109, %cst_32 [2] : vector<16x16x16xf32> to vector<16x16xf32>
    %111 = vector.shape_cast %110 : vector<16x16xf32> to vector<16x16x1xf32>
    %112 = tpu.reciprocal %111 {approx = true} : vector<16x16x1xf32> -> vector<16x16x1xf32>
    %113 = vector.broadcast %112 : vector<16x16x1xf32> to vector<16x16x16xf32>
    %114 = arith.mulf %109, %113 : vector<16x16x16xf32>
    %115 = arith.truncf %114 : vector<16x16x16xf32> to vector<16x16x16xbf16>
    %116 = vector.extract_strided_slice %52 {offsets = [0, 0, 64], sizes = [16, 16, 32], strides = [1, 1, 1]} : vector<16x16x128xbf16> to vector<16x16x32xbf16>
    "tpu.trace_start"() <{level = 10 : i32, message = "bqk,bkd->bqd"}> : () -> ()
    %cst_33 = arith.constant dense<0.000000e+00> : vector<16x16x32xf32>
    %117 = tpu.matmul %115, %116, %cst_33 {dimension_numbers = #tpu.dot_dimension_numbers<[2], [1], [1], [2], [0, 0, 0, 1, 1, 2], [0], [0]>} : vector<16x16x16xbf16>, vector<16x16x32xbf16>, vector<16x16x32xf32> -> vector<16x16x32xf32>
    "tpu.trace_stop"() : () -> ()
    %118 = vector.shape_cast %117 : vector<16x16x32xf32> to vector<256x32xf32>
    %119 = arith.truncf %118 : vector<256x32xf32> to vector<256x32xbf16>
    %120 = vector.extract_strided_slice %8 {offsets = [64, 384], sizes = [32, 128], strides = [1, 1]} : vector<128x1024xbf16> to vector<32x128xbf16>
    %cst_34 = arith.constant dense<0.000000e+00> : vector<256x128xf32>
    %121 = tpu.matmul %119, %120, %cst_34 {dimension_numbers = #tpu.dot_dimension_numbers<[1], [0], [0], [1], [0, 0, 1, 1], [], []>} : vector<256x32xbf16>, vector<32x128xbf16>, vector<256x128xf32> -> vector<256x128xf32>
    %122 = arith.addf %99, %121 : vector<256x128xf32>
    %123 = vector.extract_strided_slice %38 {offsets = [0, 0, 96], sizes = [16, 16, 32], strides = [1, 1, 1]} : vector<16x16x128xbf16> to vector<16x16x32xbf16>
    %124 = vector.extract_strided_slice %45 {offsets = [0, 0, 96], sizes = [16, 16, 32], strides = [1, 1, 1]} : vector<16x16x128xbf16> to vector<16x16x32xbf16>
    "tpu.trace_start"() <{level = 10 : i32, message = "bqd,bkd->bqk"}> : () -> ()
    %cst_35 = arith.constant dense<0.000000e+00> : vector<16x16x16xf32>
    %125 = tpu.matmul %123, %124, %cst_35 {dimension_numbers = #tpu.dot_dimension_numbers<[2], [2], [1], [1], [0, 0, 0, 1, 1, 1], [0], [0]>} : vector<16x16x32xbf16>, vector<16x16x32xbf16>, vector<16x16x16xf32> -> vector<16x16x16xf32>
    "tpu.trace_stop"() : () -> ()
    %cst_36 = arith.constant 0.176776692 : f32
    %126 = vector.broadcast %cst_36 : f32 to vector<16x16x16xf32>
    %127 = arith.mulf %125, %126 : vector<16x16x16xf32>
    %cst_37 = arith.constant dense<0xFF800000> : vector<16x16xf32>
    %128 = vector.multi_reduction <maximumf>, %127, %cst_37 [2] : vector<16x16x16xf32> to vector<16x16xf32>
    %129 = vector.shape_cast %128 : vector<16x16xf32> to vector<16x16x1xf32>
    %130 = vector.broadcast %129 : vector<16x16x1xf32> to vector<16x16x16xf32>
    %131 = arith.subf %127, %130 : vector<16x16x16xf32>
    %132 = math.exp %131 : vector<16x16x16xf32>
    %cst_38 = arith.constant dense<0.000000e+00> : vector<16x16xf32>
    %133 = vector.multi_reduction <add>, %132, %cst_38 [2] : vector<16x16x16xf32> to vector<16x16xf32>
    %134 = vector.shape_cast %133 : vector<16x16xf32> to vector<16x16x1xf32>
    %135 = tpu.reciprocal %134 {approx = true} : vector<16x16x1xf32> -> vector<16x16x1xf32>
    %136 = vector.broadcast %135 : vector<16x16x1xf32> to vector<16x16x16xf32>
    %137 = arith.mulf %132, %136 : vector<16x16x16xf32>
    %138 = arith.truncf %137 : vector<16x16x16xf32> to vector<16x16x16xbf16>
    %139 = vector.extract_strided_slice %52 {offsets = [0, 0, 96], sizes = [16, 16, 32], strides = [1, 1, 1]} : vector<16x16x128xbf16> to vector<16x16x32xbf16>
    "tpu.trace_start"() <{level = 10 : i32, message = "bqk,bkd->bqd"}> : () -> ()
    %cst_39 = arith.constant dense<0.000000e+00> : vector<16x16x32xf32>
    %140 = tpu.matmul %138, %139, %cst_39 {dimension_numbers = #tpu.dot_dimension_numbers<[2], [1], [1], [2], [0, 0, 0, 1, 1, 2], [0], [0]>} : vector<16x16x16xbf16>, vector<16x16x32xbf16>, vector<16x16x32xf32> -> vector<16x16x32xf32>
    "tpu.trace_stop"() : () -> ()
    %141 = vector.shape_cast %140 : vector<16x16x32xf32> to vector<256x32xf32>
    %142 = arith.truncf %141 : vector<256x32xf32> to vector<256x32xbf16>
    %143 = vector.extract_strided_slice %8 {offsets = [96, 384], sizes = [32, 128], strides = [1, 1]} : vector<128x1024xbf16> to vector<32x128xbf16>
    %cst_40 = arith.constant dense<0.000000e+00> : vector<256x128xf32>
    %144 = tpu.matmul %142, %143, %cst_40 {dimension_numbers = #tpu.dot_dimension_numbers<[1], [0], [0], [1], [0, 0, 1, 1], [], []>} : vector<256x32xbf16>, vector<32x128xbf16>, vector<256x128xf32> -> vector<256x128xf32>
    %145 = arith.addf %122, %144 : vector<256x128xf32>
    %146 = arith.addf %4, %145 : vector<256x128xf32>
    %147 = vector.extract_strided_slice %6 {offsets = [7, 0], sizes = [1, 128], strides = [1, 1]} : vector<16x128xf32> to vector<1x128xf32>
    %148 = vector.broadcast %147 : vector<1x128xf32> to vector<256x128xf32>
    %149 = arith.addf %146, %148 : vector<256x128xf32>
    %150 = vector.extract_strided_slice %6 {offsets = [2, 0], sizes = [1, 128], strides = [1, 1]} : vector<16x128xf32> to vector<1x128xf32>
    %151 = vector.extract_strided_slice %6 {offsets = [3, 0], sizes = [1, 128], strides = [1, 1]} : vector<16x128xf32> to vector<1x128xf32>
    %cst_41 = arith.constant dense<0.000000e+00> : vector<256xf32>
    %152 = vector.multi_reduction <add>, %149, %cst_41 [1] : vector<256x128xf32> to vector<256xf32>
    %153 = vector.shape_cast %152 : vector<256xf32> to vector<256x1xf32>
    %cst_42 = arith.constant 1.280000e+02 : f32
    %154 = vector.broadcast %cst_42 : f32 to vector<256x1xf32>
    %155 = arith.divf %153, %154 : vector<256x1xf32>
    %156 = vector.broadcast %155 : vector<256x1xf32> to vector<256x128xf32>
    %157 = arith.subf %149, %156 : vector<256x128xf32>
    %158 = arith.mulf %157, %157 : vector<256x128xf32>
    %cst_43 = arith.constant dense<0.000000e+00> : vector<256xf32>
    %159 = vector.multi_reduction <add>, %158, %cst_43 [1] : vector<256x128xf32> to vector<256xf32>
    %160 = vector.shape_cast %159 : vector<256xf32> to vector<256x1xf32>
    %cst_44 = arith.constant 1.280000e+02 : f32
    %161 = vector.broadcast %cst_44 : f32 to vector<256x1xf32>
    %162 = arith.divf %160, %161 : vector<256x1xf32>
    %cst_45 = arith.constant 9.99999974E-6 : f32
    %163 = vector.broadcast %cst_45 : f32 to vector<256x1xf32>
    %164 = arith.addf %162, %163 : vector<256x1xf32>
    %165 = math.rsqrt %164 : vector<256x1xf32>
    %166 = vector.broadcast %165 : vector<256x1xf32> to vector<256x128xf32>
    %167 = arith.mulf %157, %166 : vector<256x128xf32>
    %168 = vector.broadcast %150 : vector<1x128xf32> to vector<256x128xf32>
    %169 = arith.mulf %167, %168 : vector<256x128xf32>
    %170 = vector.broadcast %151 : vector<1x128xf32> to vector<256x128xf32>
    %171 = arith.addf %169, %170 : vector<256x128xf32>
    %172 = arith.truncf %171 : vector<256x128xf32> to vector<256x128xbf16>
    %173 = vector.extract_strided_slice %8 {offsets = [0, 512], sizes = [128, 512], strides = [1, 1]} : vector<128x1024xbf16> to vector<128x512xbf16>
    %cst_46 = arith.constant dense<0.000000e+00> : vector<256x512xf32>
    %174 = tpu.matmul %172, %173, %cst_46 {dimension_numbers = #tpu.dot_dimension_numbers<[1], [0], [0], [1], [0, 0, 1, 1], [], []>} : vector<256x128xbf16>, vector<128x512xbf16>, vector<256x512xf32> -> vector<256x512xf32>
    %c0_47 = arith.constant 0 : index
    %c0_48 = arith.constant 0 : index
    %c0_49 = arith.constant 0 : index
    %175 = vector.load %arg4[%c0_47, %c0_48, %c0_49] : memref<1x1x512xf32, #tpu.memory_space<vmem>>, vector<1x1x512xf32>
    %176 = vector.shape_cast %175 : vector<1x1x512xf32> to vector<1x512xf32>
    %177 = vector.broadcast %176 : vector<1x512xf32> to vector<256x512xf32>
    %178 = arith.addf %174, %177 : vector<256x512xf32>
    %cst_50 = arith.constant 0.000000e+00 : f32
    %179 = vector.broadcast %cst_50 : f32 to vector<256x512xf32>
    %180 = arith.maximumf %178, %179 : vector<256x512xf32>
    %181 = arith.truncf %180 : vector<256x512xf32> to vector<256x512xbf16>
    %c0_51 = arith.constant 0 : index
    %c0_52 = arith.constant 0 : index
    %c0_53 = arith.constant 0 : index
    %182 = vector.load %arg6[%c0_51, %c0_52, %c0_53] : memref<1x512x128xbf16, #tpu.memory_space<vmem>>, vector<1x512x128xbf16>
    %183 = vector.shape_cast %182 : vector<1x512x128xbf16> to vector<512x128xbf16>
    %cst_54 = arith.constant dense<0.000000e+00> : vector<256x128xf32>
    %184 = tpu.matmul %181, %183, %cst_54 {dimension_numbers = #tpu.dot_dimension_numbers<[1], [0], [0], [1], [0, 0, 1, 1], [], []>} : vector<256x512xbf16>, vector<512x128xbf16>, vector<256x128xf32> -> vector<256x128xf32>
    %185 = arith.addf %149, %184 : vector<256x128xf32>
    %186 = vector.extract_strided_slice %6 {offsets = [8, 0], sizes = [1, 128], strides = [1, 1]} : vector<16x128xf32> to vector<1x128xf32>
    %187 = vector.broadcast %186 : vector<1x128xf32> to vector<256x128xf32>
    %188 = arith.addf %185, %187 : vector<256x128xf32>
    %189 = vector.shape_cast %188 : vector<256x128xf32> to vector<16x16x128xf32>
    %c0_55 = arith.constant 0 : index
    %c0_56 = arith.constant 0 : index
    %c0_57 = arith.constant 0 : index
    %190 = vector.load %arg7[%c0_55, %c0_56, %c0_57] : memref<16x16x128xf32, #tpu.memory_space<vmem>>, vector<16x16x128xf32>
    tpu.vector_store %arg7[%c0_55, %c0_56, %c0_57], %189 {strides = array<i32>} : memref<16x16x128xf32, #tpu.memory_space<vmem>>, vector<16x16x128xf32>,
    return
  }
  func.func @transform_0(%arg0: i32, %arg1: i32) -> (i32, i32, i32) {
    %c0_i32 = arith.constant 0 : i32
    %c0_i32_0 = arith.constant 0 : i32
    %c0_i32_1 = arith.constant 0 : i32
    return %arg0, %c0_i32, %c0_i32_0 : i32, i32, i32
  }
  func.func @transform_1(%arg0: i32, %arg1: i32) -> (i32, i32, i32) {
    %c0_i32 = arith.constant 0 : i32
    %c0_i32_0 = arith.constant 0 : i32
    %c0_i32_1 = arith.constant 0 : i32
    return %arg1, %c0_i32, %c0_i32_0 : i32, i32, i32
  }
  func.func @transform_2(%arg0: i32, %arg1: i32) -> (i32, i32, i32) {
    %c0_i32 = arith.constant 0 : i32
    %c0_i32_0 = arith.constant 0 : i32
    %c0_i32_1 = arith.constant 0 : i32
    return %arg1, %c0_i32, %c0_i32_0 : i32, i32, i32
  }
  func.func @transform_3(%arg0: i32, %arg1: i32) -> (i32, i32, i32) {
    %c0_i32 = arith.constant 0 : i32
    %c0_i32_0 = arith.constant 0 : i32
    %c0_i32_1 = arith.constant 0 : i32
    return %arg1, %c0_i32, %c0_i32_0 : i32, i32, i32
  }
  func.func @transform_4(%arg0: i32, %arg1: i32) -> (i32, i32, i32) {
    %c0_i32 = arith.constant 0 : i32
    %c0_i32_0 = arith.constant 0 : i32
    %c0_i32_1 = arith.constant 0 : i32
    return %arg1, %c0_i32, %c0_i32_0 : i32, i32, i32
  }
  func.func @transform_5(%arg0: i32, %arg1: i32) -> (i32, i32, i32) {
    %c0_i32 = arith.constant 0 : i32
    %c0_i32_0 = arith.constant 0 : i32
    %c0_i32_1 = arith.constant 0 : i32
    return %arg0, %c0_i32, %c0_i32_0 : i32, i32, i32
  }
}

</mosaic_0001>

<bundles_post_ra>
// kernel: tpu_custom_call.1
= control target key start
LH: loop header
LB: loop body
LE: loop exit
PB: predicated region body
PF: predicated region fallthrough
CT: control target
= control target key end

     0   :  { %s20771_s0 = inlined_call_operand.hbm [shape: f32[32,16,128], index: 0, kind: input, shape index: {}]   ;;  %s20772_s1 = inlined_call_operand.hbm [shape: f32[2,16,128], index: 1, kind: input, shape index: {}]   ;;  %s20773_s2 = inlined_call_operand.hbm [shape: f32[2,1,512], index: 2, kind: input, shape index: {}]   ;;  %s20774_s3 = inlined_call_operand.hbm [shape: bf16[2,128,1024], index: 3, kind: input, shape index: {}]   ;;  %s20775_s4 = inlined_call_operand.hbm [shape: bf16[2,512,128], index: 4, kind: input, shape index: {}]   ;;  %s20776_s5 = inlined_call_operand.hbm [shape: f32[32,16,128], index: 5, kind: output, shape index: {}]  }
   0x1   :  { %20940 = sst [smem:[#allocation136_spill]] %s20771_s0 }
   0x2   :  { %20941 = sst [smem:[#allocation137_spill]] %s20772_s1 }
   0x3   :  { %20942 = sst [smem:[#allocation138_spill]] %s20774_s3 }
   0x4   :  { %20943 = sst [smem:[#allocation139_spill]] %s20776_s5 }
   0x5   :  { %10 = vsyncpa [#allocation3], 0 }
   0x6   :  { %12 = vsyncpa [#allocation3 + $0x1], 0 }
   0x7   :  { %13 = vsyncpa [#allocation6], 0 }
   0x8   :  { %15 = vsyncpa [#allocation6 + $0x1], 0 }
   0x9   :  { %16 = vsyncpa [#allocation9], 0 }
   0xa   :  { %18 = vsyncpa [#allocation9 + $0x1], 0 }
   0xb   :  { %19 = vsyncpa [#allocation4], 0 }
   0xc   :  { %21 = vsyncpa [#allocation4 + $0x1], 0  ;;  %s15814_s18 = smov 0   ;;  %s15816_s19 = smov 0  }
   0xd   :  { %s15818_s20 = smov 0   ;;  %s15820_s21 = smov 0  }
   0xe   :  { %s15822_s22 = smov 0   ;;  %s15824_s23 = smov 0  }
   0xf   :  { %s15826_s24 = smov 0   ;;  %s15828_s25 = smov 0  }
  0x10   :  { %s15830_s26 = smov 0   ;;  %s15832_s27 = smov 0  }
  0x11   :  { %s15834_s28 = smov 0  }
  0x12 LB: > { %20944 = sst [smem:[#allocation16_spill]] %s15730_s20  ;;  %s36_s29 = sadd.s32 1, %s15754_s26  ;;  %s15762_s28 = sphi %s15834_s28, %s27_s28   ;;  %s15758_s27 = sphi %s15832_s27, %s21456_s27   ;;  %s15754_s26 = sphi %s15830_s26, %s21462_s26   ;;  %s15750_s25 = sphi %s15828_s25, %s21454_s25   ;;  %s15746_s24 = sphi %s15826_s24, %s21461_s24   ;;  %s15742_s23 = sphi %s15824_s23, %s21453_s23   ;;  %s15738_s22 = sphi %s15822_s22, %s21460_s22   ;;  %s15734_s21 = sphi %s15820_s21, %s21459_s21   ;;  %s15730_s20 = sphi %s15818_s20, %s21451_s20   ;;  %s15726_s19 = sphi %s15816_s19, %s21458_s19   ;;  %s15722_s18 = sphi %s15814_s18, %s21457_s18  }
  0x13   : > { %20945 = sst [smem:[#allocation17_spill]] %s15734_s21  ;;  %p54_p0 = scmp.eq.s32.totalorder %s15762_s28, 0 }
  0x14   : > { %20946 = sst [smem:[#allocation18_spill]] %s15742_s23  ;;  %p15871_p1 = scmp.ge.s32.totalorder %s36_s29, 2 }
  0x15   : > { %20947 = sst [smem:[#allocation19_spill]] %s15746_s24  ;;  %s72_s6 = sadd.s32 1, %s15730_s20 }
  0x16   : > { %20948 = sst [smem:[#allocation20_spill]] %s15750_s25  ;;  %p79_p2 = scmp.ne.s32.totalorder %s15730_s20, %s15726_s19 }
  0x17   : > { %20949 = sst [smem:[#allocation21_spill]] %s15758_s27  ;;  %p85_p3 = scmp.ne.s32.totalorder %s15726_s19, %s15722_s18 }
  0x18   : > { %s21464_s29 = smov (%p15871_p1, %s36_s29), 0  ;;  %p81_p4 = por %p79_p2, %p54_p0 }
  0x19   : > { %20951 = sst [smem:[#allocation22_spill]] %s21464_s29  ;;  %s69_s7 = ssub.s32 %s15754_s26, %s21464_s29 }
  0x1a   : > { %p20778_p5 = scmp.lt.s32.totalorder %s15762_s28, 4  ;;  %p70_p6 = scmp.eq.s32.totalorder %s69_s7, 0 }
  0x1b   : > { %s20779_s8 = sand.u32 1, %s15762_s28   ;;  %s15894_s10 = sand.u32 1, %s15730_s20  }
  0x1c   : > { %s15891_s9 = scalar_select %p70_p6, %s15730_s20, %s72_s6  }
  0x1d   : > { %s12634_s11 = sshll.u32 %s15894_s10, 4  ;;  %s12950_s12 = sshll.u32 %s15754_s26, 8 }
  0x1e   : > { %20952 = sst [smem:[#allocation23_spill]] %s15891_s9  ;;  %s239_s16 = scalar_lea.vmem [#allocation5], %s12634_s11 }
  0x1f   : > { %s20953_s1 = sld [smem:[#allocation137_spill]]  ;;  %s246_s17 = sshll.u32 %s239_s16, 4  ;;  %s247_s17 = int_to_ptr.vmem [resolvable:$true] %s246_s17 }
  0x20   : > { %p15903_p7 = pnand %p20778_p5, %p81_p4  ;;  %p12646_p8 = scmp.ge.s32.totalorder %s15762_s28, 1 }
  0x21   : > { %p315_p9 = scmp.lt.s32.totalorder %s15762_s28, 5  ;;  %s15911_s6 = scalar_lea.sflag [#allocation6], %s20779_s8 }
  0x22   : > { %p20783_p10 = pneg %p15903_p7  ;;  %s15507_s7 = scalar_lea.vmem %s247_s17, 256 }
  0x23   : > { %p15508_p11 = scmp.ne.s32.totalorder %s247_s17, %s15507_s7  ;;  %s15764_s11 = smov [#allocation5]  }
  0x25   : > { %s245_s15 = scalar_lea.hbm %s20953_s1, %s12950_s12  ;;  %p15510_p12 = pnand %p15508_p11, %p20783_p10 }
  0x26   : > { %s15512_s12 = sshll.u32 %s15764_s11, 4  ;;  %s15513_s12 = int_to_ptr.vmem [resolvable:$false] %s15512_s12 }
  0x27   : > { %p15511_p13 = pneg %p15510_p12  ;;  %s15514_s13 = scalar_lea.vmem %s15513_s12, 512 }
  0x28   : > { %p15515_p2 = scmp.lt.s32.totalorder %s247_s17, %s15513_s12  ;;  %p15516_p4 = scmp.lt.s32.totalorder %s15514_s13, %s15507_s7 }
  0x2a   : > { %p15517_p6 = por %p15516_p4, %p15515_p2 }
  0x2c   : > { %p15518_p5 = pnand %p15517_p6, %p15511_p13 }
  0x2e   : > { %15521 = shalt.err (!%p15518_p5)
}
  0x2f   : > { %s20782_s14 = smov 128   ;;  %s20784_s16 = smov 8  }
  0x30   : > { %14658 = dma.hbm_to_vmem [thread:$0]  (!%p15903_p7), %s245_s15, 256, %s247_s17, %s15911_s6, %s20782_s14, %s20782_s14, %s20784_s16  }
  0x31   : > { %p15928_p11 = pnand %p12646_p8, %p315_p9  ;;  %s12640_s11 = sshll.u32 %s15894_s10, 9 }
  0x32   : > { %s12952_s12 = sshll.u32 %s15754_s26, 13  ;;  %s20956_s3 = sld [smem:[#allocation138_spill]] }
  0x33   : > { %s279_s29 = scalar_lea.vmem [#allocation8], %s12640_s11  ;;  %s20957_s20 = sand.u32 1, %s15762_s28  }
  0x34   : > { %s286_s9 = sshll.u32 %s279_s29, 4  ;;  %s15939_s25 = scalar_lea.sflag [#allocation9], %s20957_s20  ;;  %s287_s9 = int_to_ptr.vmem [resolvable:$true] %s286_s9 }
  0x35   : > { %s15535_s24 = scalar_lea.vmem %s287_s9, 8192  ;;  %s15767_s15 = smov [#allocation8]  }
  0x36   : > { %p15536_p5 = scmp.ne.s32.totalorder %s287_s9, %s15535_s24  ;;  %s15540_s17 = sshll.u32 %s15767_s15, 4  ;;  %s15541_s17 = int_to_ptr.vmem [resolvable:$false] %s15540_s17 }
  0x37   : > { %s15542_s14 = scalar_lea.vmem %s15541_s17, 16384  ;;  %p15543_p12 = scmp.lt.s32.totalorder %s287_s9, %s15541_s17 }
  0x38   : > { %s285_s1 = scalar_lea.hbm %s20956_s3, %s12952_s12  ;;  %p15538_p8 = pnand %p15536_p5, %p20783_p10 }
  0x39   : > { %p15544_p13 = scmp.lt.s32.totalorder %s15542_s14, %s15535_s24 }
  0x3a   : > { %p15539_p9 = pneg %p15538_p8 }
  0x3b   : > { %p15545_p2 = por %p15544_p13, %p15543_p12 }
  0x3d   : > { %p15546_p4 = pnand %p15545_p2, %p15539_p9 }
  0x3f   : > { %15549 = shalt.err (!%p15546_p4)
}
  0x40   : > { %s15768_s29 = smov 512   ;;  %s15769_s20 = smov 32  }
  0x41   : > { %14664 = dma.hbm_to_vmem [thread:$0]  (!%p15903_p7), %s285_s1, 8192, %s287_s9, %s15939_s25, %s15768_s29, %s15768_s29, %s15769_s20  }
  0x42   : > { %s15948_s24 = sadd.s32 4294967295, %s15762_s28   ;;  %s12627_s8 = sadd.s32 4294967294, %s15762_s28  }
  0x43   : > { %s39_s14 = sadd.s32 1, %s15758_s27  ;;  %s46_s11 = sadd.s32 1, %s15742_s23 }
  0x44   : > { %s21466_s14 = smov (!%p15871_p1, %s39_s14), %s15758_s27  ;;  %p53_p6 = scmp.ne.s32.totalorder %s15742_s23, %s15738_s22 }
  0x45   : > { %p59_p5 = scmp.ne.s32.totalorder %s15738_s22, %s15734_s21  ;;  %p41_p8 = scmp.ge.s32.totalorder %s21466_s14, 2 }
  0x46   : > { %p60_p9 = scmp.eq.s32.totalorder %s15948_s24, 0  ;;  %p15963_p12 = por %p54_p0, %p53_p6 }
  0x47   : > { %p187_p13 = scmp.eq.s32.totalorder %s15948_s24, 3  ;;  %s21468_s14 = smov (%p41_p8, %s21466_s14), 0 }
  0x48   : > { %20959 = sst [smem:[#allocation24_spill]] %s21468_s14  ;;  %p15973_p1 = por %p60_p9, %p59_p5 }
  0x49   : > { %p15980_p2 = por %p85_p3, %p60_p9  ;;  %s43_s12 = ssub.s32 %s15758_s27, %s21468_s14 }
  0x4a   : > { %p15986_p0 = por %p187_p13, %p53_p6  ;;  %p44_p4 = scmp.eq.s32.totalorder %s43_s12, 0 }
  0x4b   : > { %p193_p8 = scmp.eq.s32.totalorder %s12627_s8, 3  ;;  %s213_s15 = sand.u32 1, %s15742_s23  }
  0x4c   : > { %s20962_s13 = scalar_select %p15986_p0, 1, 0 }
  0x4d   : > { %s12949_s17 = sshll.u32 %s15758_s27, 12  ;;  %p15998_p10 = por %p193_p8, %p59_p5 }
  0x4e   : > { %20963 = sst [smem:[#allocation25_spill]] %s20962_s13  ;;  %s12630_s18 = sshll.u32 %s213_s15, 8 }
  0x4f   : > { %s15993_s29 = scalar_select %p44_p4, %s15742_s23, %s46_s11  }
  0x50   : > { %s20965_s20 = scalar_select %p15998_p10, 1, 0 }
  0x51   : > { %20964 = sst [smem:[#allocation26_spill]] %s15993_s29  ;;  %p20968_p3 = scmp.lt.s32.totalorder %s15762_s28, 4 }
  0x52   : > { %20966 = sst [smem:[#allocation27_spill]] %s20965_s20  ;;  %s217_s8 = scalar_lea.vmem [#allocation2], %s12630_s18 }
  0x53   : > { %s20967_s0 = sld [smem:[#allocation136_spill]]  ;;  %p16009_p6 = pnand %p20968_p3, %p15963_p12 }
  0x54   : > { %s225_s11 = sshll.u32 %s217_s8, 4  ;;  %s12637_s12 = sshll.u32 %s15894_s10, 2  ;;  %s226_s11 = int_to_ptr.vmem [resolvable:$true] %s225_s11 }
  0x55   : > { %s214_s27 = scalar_lea.sflag [#allocation3], %s213_s15  ;;  %p15552_p5 = pneg %p16009_p6 }
  0x56   : > { %s15563_s29 = scalar_lea.vmem %s226_s11, 4096  ;;  %s15770_s3 = smov [#allocation2]  }
  0x57   : > { %p15564_p9 = scmp.ne.s32.totalorder %s226_s11, %s15563_s29  ;;  %s15568_s16 = sshll.u32 %s15770_s3, 4  ;;  %s15569_s16 = int_to_ptr.vmem [resolvable:$false] %s15568_s16 }
  0x58   : > { %s15570_s1 = scalar_lea.vmem %s15569_s16, 8192  ;;  %p15571_p12 = scmp.lt.s32.totalorder %s226_s11, %s15569_s16 }
  0x59   : > { %s224_s14 = scalar_lea.hbm %s20967_s0, %s12949_s17  ;;  %p15566_p13 = pnand %p15564_p9, %p15552_p5 }
  0x5a   : > { %p15572_p8 = scmp.lt.s32.totalorder %s15570_s1, %s15563_s29 }
  0x5b   : > { %p15567_p4 = pneg %p15566_p13 }
  0x5c   : > { %p15573_p3 = por %p15572_p8, %p15571_p12 }
  0x5e   : > { %p15574_p10 = pnand %p15573_p3, %p15567_p4 }
  0x60   : > { %15577 = shalt.err (!%p15574_p10)
}
  0x61   : > { %s20970_s17 = smov 8   ;;  %s20971_s18 = smov 128  }
  0x62   : > { %14655 = dma.hbm_to_vmem [thread:$0]  (!%p16009_p6), %s224_s14, 4096, %s226_s11, %s214_s27, %s20971_s18, %s20971_s18, %s20970_s17  }
  0x63   : > { %s12951_s15 = sshll.u32 %s15754_s26, 6  ;;  %s260_s23 = scalar_lea.vmem [#allocation7], %s12637_s12 }
  0x64   : > { %s266_s3 = scalar_lea.hbm %s20773_s2, %s12951_s15  ;;  %s268_s16 = sshll.u32 %s260_s23, 4  ;;  %s269_s16 = int_to_ptr.vmem [resolvable:$true] %s268_s16 }
  0x65   : > { %s12643_s29 = sshll.u32 %s15894_s10, 8  ;;  %s15591_s1 = scalar_lea.vmem %s269_s16, 64 }
  0x66   : > { %p15592_p10 = scmp.ne.s32.totalorder %s269_s16, %s15591_s1  ;;  %p20972_p5 = pneg %p15903_p7 }
  0x67   : > { %s15771_s13 = smov [#allocation7]  }
  0x68   : > { %p15594_p9 = pnand %p15592_p10, %p20972_p5  ;;  %s15596_s20 = sshll.u32 %s15771_s13, 4  ;;  %s15597_s20 = int_to_ptr.vmem [resolvable:$false] %s15596_s20 }
  0x69   : > { %s15598_s21 = scalar_lea.vmem %s15597_s20, 128  ;;  %p15599_p6 = scmp.lt.s32.totalorder %s269_s16, %s15597_s20 }
  0x6a   : > { %p15595_p13 = pneg %p15594_p9  ;;  %p15600_p4 = scmp.lt.s32.totalorder %s15598_s21, %s15591_s1 }
  0x6c   : > { %p15601_p12 = por %p15600_p4, %p15599_p6 }
  0x6e   : > { %p15602_p8 = pnand %p15601_p12, %p15595_p13 }
  0x70   : > { %15605 = shalt.err (!%p15602_p8)
}
  0x71   : > { %14661 = dma.hbm_to_vmem [thread:$0]  (!%p15903_p7), %s266_s3, 64, %s269_s16, %s15911_s6  }
  0x72   : > { %s12953_s0 = sshll.u32 %s15754_s26, 12  ;;  %s300_s14 = scalar_lea.vmem [#allocation10], %s12643_s29 }
  0x73   : > { %s306_s10 = scalar_lea.hbm %s20775_s4, %s12953_s0  ;;  %s307_s11 = sshll.u32 %s300_s14, 4  ;;  %s308_s11 = int_to_ptr.vmem [resolvable:$true] %s307_s11 }
  0x74   : > { %s15619_s12 = scalar_lea.vmem %s308_s11, 4096  ;;  %p20973_p10 = pmov %p20972_p5 }
  0x75   : > { %p15620_p3 = scmp.ne.s32.totalorder %s308_s11, %s15619_s12  ;;  %s15772_s21 = smov [#allocation10]  }
  0x76   : > { %s15624_s20 = sshll.u32 %s15772_s21, 4  ;;  %s15625_s20 = int_to_ptr.vmem [resolvable:$false] %s15624_s20 }
  0x77   : > { %p15622_p5 = pnand %p15620_p3, %p20973_p10  ;;  %s15626_s17 = scalar_lea.vmem %s15625_s20, 8192 }
  0x78   : > { %p15627_p13 = scmp.lt.s32.totalorder %s308_s11, %s15625_s20  ;;  %p15628_p6 = scmp.lt.s32.totalorder %s15626_s17, %s15619_s12 }
  0x79   : > { %p15623_p9 = pneg %p15622_p5 }
  0x7a   : > { %p15629_p4 = por %p15628_p6, %p15627_p13 }
  0x7c   : > { %p15630_p12 = pnand %p15629_p4, %p15623_p9 }
  0x7e   : > { %15633 = shalt.err (!%p15630_p12)
}
  0x7f   : > { %s15773_s6 = smov 64   ;;  %s15774_s18 = smov 4  }
  0x80   : > { %14667 = dma.hbm_to_vmem [thread:$0]  (!%p15903_p7), %s306_s10, 4096, %s308_s11, %s15939_s25, %s15773_s6, %s15773_s6, %s15774_s18  }
  0x81   : > { %319 = sbr.rel (%p15928_p11) target bundleno = 4814 (0x12ce), region = 40 }
  0x86   : > { %s16045_s15 = sand.u32 1, %s15738_s22  }
  0x87   : > { %s12647_s8 = sshll.u32 %s16045_s15, 8  ;;  %s322_s3 = scalar_lea.sflag [#allocation3], %s16045_s15 }
  0x88   : > { %s16049_s16 = scalar_lea.vmem [#allocation2], %s12647_s8 }
  0x89   : > { %15705 = dma.done.wait (%p15973_p1), %s322_s3, 4096  }
  0x8a   : > { %15707 = vsyncadd (%p15973_p1), %s322_s3, 4294963200  ;;  %s330_s5 = sand.u32 1, %s15948_s24   ;;  %s332_s25 = sand.u32 1, %s15726_s19  }
  0x8b   : > { %s12648_s7 = sshll.u32 %s332_s25, 4  ;;  %s331_s29 = scalar_lea.sflag [#allocation6], %s330_s5 }
  0x8c   : > { %s16057_s1 = scalar_lea.vmem [#allocation5], %s12648_s7 }
  0x8d   : > { %15709 = dma.done.wait (%p15980_p2), %s331_s29, 320  }
  0x8e   : > { %15711 = vsyncadd (%p15980_p2), %s331_s29, 4294966976  ;;  %s12649_s13 = sshll.u32 %s332_s25, 2  ;;  %s12650_s0 = sshll.u32 %s332_s25, 9 }
  0x8f   : > { %s16063_s23 = scalar_lea.vmem [#allocation7], %s12649_s13  ;;  %s349_s30 = scalar_lea.sflag [#allocation9], %s330_s5 }
  0x90   : > { %s16065_s27 = scalar_lea.vmem [#allocation8], %s12650_s0 }
  0x91   : > { %15713 = dma.done.wait (%p15980_p2), %s349_s30, 12288  }
  0x92   : > { %15715 = vsyncadd (%p15980_p2), %s349_s30, 4294955008  ;;  %s12651_s24 = sshll.u32 %s332_s25, 8  ;;  %s16073_s14 = scalar_lea.vmem [#allocation11], %s12647_s8 }
  0x93   : > { %s16071_s10 = scalar_lea.vmem [#allocation10], %s12651_s24  ;;  %s20974_s11 = sld [smem:[#allocation19_spill]] }
  0x99   : > { %p12653_p7 = scmp.ne.s32.totalorder %s20974_s11, 0 }
  0x9b   : > { %414 = sbr.rel (%p12653_p7) target bundleno = 177 (0xb1), region = 64 }
  0xa0   : > { %v415_v0 = vld [vmem:[%s16049_s16] sm:$0xff]  ;;  %v416_v1 = vld [vmem:[%s16049_s16 + $0x8] sm:$0xff]  ;;  %v417_v2 = vld [vmem:[%s16049_s16 + $0x10] sm:$0xff] }
  0xa1   : > { %447 = vst [vmem:[%s16073_s14] sm:$0xff] %v415_v0  ;;  %448 = vst [vmem:[%s16073_s14 + $0x8] sm:$0xff] %v416_v1  ;;  %v418_v3 = vld [vmem:[%s16049_s16 + $0x18] sm:$0xff]  ;;  %v419_v4 = vld [vmem:[%s16049_s16 + $0x20] sm:$0xff] }
  0xa2   : > { %449 = vst [vmem:[%s16073_s14 + $0x10] sm:$0xff] %v417_v2  ;;  %v420_v5 = vld [vmem:[%s16049_s16 + $0x28] sm:$0xff]  ;;  %450 = vst [vmem:[%s16073_s14 + $0x18] sm:$0xff] %v418_v3  ;;  %v421_v6 = vld [vmem:[%s16049_s16 + $0x30] sm:$0xff] }
  0xa3   : > { %451 = vst [vmem:[%s16073_s14 + $0x20] sm:$0xff] %v419_v4  ;;  %452 = vst [vmem:[%s16073_s14 + $0x28] sm:$0xff] %v420_v5  ;;  %v422_v7 = vld [vmem:[%s16049_s16 + $0x38] sm:$0xff]  ;;  %v423_v8 = vld [vmem:[%s16049_s16 + $0x40] sm:$0xff] }
  0xa4   : > { %453 = vst [vmem:[%s16073_s14 + $0x30] sm:$0xff] %v421_v6  ;;  %454 = vst [vmem:[%s16073_s14 + $0x38] sm:$0xff] %v422_v7  ;;  %v424_v9 = vld [vmem:[%s16049_s16 + $0x48] sm:$0xff]  ;;  %v425_v10 = vld [vmem:[%s16049_s16 + $0x50] sm:$0xff] }
  0xa5   : > { %455 = vst [vmem:[%s16073_s14 + $0x40] sm:$0xff] %v423_v8  ;;  %v426_v11 = vld [vmem:[%s16049_s16 + $0x58] sm:$0xff]  ;;  %456 = vst [vmem:[%s16073_s14 + $0x48] sm:$0xff] %v424_v9  ;;  %v427_v12 = vld [vmem:[%s16049_s16 + $0x60] sm:$0xff] }
  0xa6   : > { %457 = vst [vmem:[%s16073_s14 + $0x50] sm:$0xff] %v425_v10  ;;  %458 = vst [vmem:[%s16073_s14 + $0x58] sm:$0xff] %v426_v11  ;;  %v428_v13 = vld [vmem:[%s16049_s16 + $0x68] sm:$0xff]  ;;  %v429_v14 = vld [vmem:[%s16049_s16 + $0x70] sm:$0xff] }
  0xa7   : > { %459 = vst [vmem:[%s16073_s14 + $0x60] sm:$0xff] %v427_v12  ;;  %460 = vst [vmem:[%s16073_s14 + $0x68] sm:$0xff] %v428_v13  ;;  %v430_v15 = vld [vmem:[%s16049_s16 + $0x78] sm:$0xff]  ;;  %v431_v16 = vld [vmem:[%s16049_s16 + $0x80] sm:$0xff] }
  0xa8   : > { %461 = vst [vmem:[%s16073_s14 + $0x70] sm:$0xff] %v429_v14  ;;  %v432_v17 = vld [vmem:[%s16049_s16 + $0x88] sm:$0xff]  ;;  %462 = vst [vmem:[%s16073_s14 + $0x78] sm:$0xff] %v430_v15  ;;  %v433_v18 = vld [vmem:[%s16049_s16 + $0x90] sm:$0xff] }
  0xa9   : > { %463 = vst [vmem:[%s16073_s14 + $0x80] sm:$0xff] %v431_v16  ;;  %464 = vst [vmem:[%s16073_s14 + $0x88] sm:$0xff] %v432_v17  ;;  %v434_v19 = vld [vmem:[%s16049_s16 + $0x98] sm:$0xff]  ;;  %v435_v20 = vld [vmem:[%s16049_s16 + $0xa0] sm:$0xff] }
  0xaa   : > { %465 = vst [vmem:[%s16073_s14 + $0x90] sm:$0xff] %v433_v18  ;;  %466 = vst [vmem:[%s16073_s14 + $0x98] sm:$0xff] %v434_v19  ;;  %v436_v21 = vld [vmem:[%s16049_s16 + $0xa8] sm:$0xff]  ;;  %v437_v22 = vld [vmem:[%s16049_s16 + $0xb0] sm:$0xff] }
  0xab   : > { %467 = vst [vmem:[%s16073_s14 + $0xa0] sm:$0xff] %v435_v20  ;;  %v438_v23 = vld [vmem:[%s16049_s16 + $0xb8] sm:$0xff]  ;;  %468 = vst [vmem:[%s16073_s14 + $0xa8] sm:$0xff] %v436_v21  ;;  %v439_v24 = vld [vmem:[%s16049_s16 + $0xc0] sm:$0xff] }
  0xac   : > { %469 = vst [vmem:[%s16073_s14 + $0xb0] sm:$0xff] %v437_v22  ;;  %470 = vst [vmem:[%s16073_s14 + $0xb8] sm:$0xff] %v438_v23  ;;  %v440_v25 = vld [vmem:[%s16049_s16 + $0xc8] sm:$0xff]  ;;  %v441_v26 = vld [vmem:[%s16049_s16 + $0xd0] sm:$0xff] }
  0xad   : > { %471 = vst [vmem:[%s16073_s14 + $0xc0] sm:$0xff] %v439_v24  ;;  %472 = vst [vmem:[%s16073_s14 + $0xc8] sm:$0xff] %v440_v25  ;;  %v442_v27 = vld [vmem:[%s16049_s16 + $0xd8] sm:$0xff]  ;;  %v443_v28 = vld [vmem:[%s16049_s16 + $0xe0] sm:$0xff] }
  0xae   : > { %473 = vst [vmem:[%s16073_s14 + $0xd0] sm:$0xff] %v441_v26  ;;  %v444_v29 = vld [vmem:[%s16049_s16 + $0xe8] sm:$0xff]  ;;  %474 = vst [vmem:[%s16073_s14 + $0xd8] sm:$0xff] %v442_v27  ;;  %v445_v30 = vld [vmem:[%s16049_s16 + $0xf0] sm:$0xff] }
  0xaf   : > { %475 = vst [vmem:[%s16073_s14 + $0xe0] sm:$0xff] %v443_v28  ;;  %476 = vst [vmem:[%s16073_s14 + $0xe8] sm:$0xff] %v444_v29  ;;  %v446_v31 = vld [vmem:[%s16049_s16 + $0xf8] sm:$0xff] }
  0xb0   : > { %477 = vst [vmem:[%s16073_s14 + $0xf0] sm:$0xff] %v445_v30  ;;  %478 = vst [vmem:[%s16073_s14 + $0xf8] sm:$0xff] %v446_v31 }
  0xb1 PF: > { %v479_v32 = vld [vmem:[%s16073_s14] sm:$0xff]  ;;  %v481_v33 = vld [vmem:[%s16073_s14 + $0x10] sm:$0xff]  ;;  %v16143_v34 = vld [vmem:[%s16073_s14 + $0x8] sm:$0xff]  ;;  %vm15776_vm0 = vmmov 0   ;;  %vm1689_vm1 = vcmask 261120   ;;  %vm2474_vm2 = vcmask 130048  }
  0xb2   : > { %577 = vadd.xlane.f32.xlu0 %v479_v32  ;;  %581 = vadd.xlane.f32.xlu1 %v481_v33  ;;  %v16146_v35 = vld [vmem:[%s16073_s14 + $0x18] sm:$0xff]  ;;  %v16151_v36 = vld [vmem:[%s16073_s14 + $0x20] sm:$0xff]  ;;  %v16154_v37 = vld [vmem:[%s16073_s14 + $0x28] sm:$0xff]  ;;  %s15777_s9 = smov 96   ;;  %s15778_s12 = smov 64  }
  0xb3   : > { %v16157_v38 = vld [vmem:[%s16073_s14 + $0x30] sm:$0xff]  ;;  %v16162_v39 = vld [vmem:[%s16073_s14 + $0x38] sm:$0xff]  ;;  %v16165_v40 = vld [vmem:[%s16073_s14 + $0x40] sm:$0xff]  ;;  %s15779_s21 = smov 32   ;;  %s21443_s20 = sld [smem:[#allocation20_spill]] }
  0xb4   : > { %v16168_v41 = vld [vmem:[%s16073_s14 + $0x48] sm:$0xff]  ;;  %v16173_v42 = vld [vmem:[%s16073_s14 + $0x50] sm:$0xff]  ;;  %v16176_v43 = vld [vmem:[%s16073_s14 + $0x58] sm:$0xff]  ;;  %s12456_s18 = sshll.u32 %s16073_s14, 4  ;;  %s21446_s16 = sld [smem:[#allocation139_spill]]  ;;  %s20707_s18 = int_to_ptr.vmem [resolvable:$true] %s12456_s18 }
  0xb5   : > { %v16181_v44 = vld [vmem:[%s16073_s14 + $0x60] sm:$0xff]  ;;  %v16186_v45 = vld [vmem:[%s16073_s14 + $0x68] sm:$0xff]  ;;  %v16189_v46 = vld [vmem:[%s16073_s14 + $0x70] sm:$0xff]  ;;  %s12442_s25 = scalar_lea.sflag [#allocation4], %s16045_s15  ;;  %s15634_s7 = scalar_lea.vmem %s20707_s18, 4096 }
  0xb6   : > { %579 = vadd.xlane.f32.xlu0 %v16143_v34  ;;  %583 = vadd.xlane.f32.xlu1 %v16146_v35  ;;  %v16194_v47 = vld [vmem:[%s16073_s14 + $0x78] sm:$0xff]  ;;  %v16197_v48 = vld [vmem:[%s16073_s14 + $0x80] sm:$0xff]  ;;  %v16202_v49 = vld [vmem:[%s16073_s14 + $0x88] sm:$0xff]  ;;  %p15635_p11 = scmp.ne.s32.totalorder %s20707_s18, %s15634_s7  ;;  %s15781_s29 = smov [#allocation11]  }
  0xb7   : > { %v16207_v50 = vld [vmem:[%s16073_s14 + $0x90] sm:$0xff]  ;;  %v16210_v51 = vld [vmem:[%s16073_s14 + $0x98] sm:$0xff]  ;;  %v16215_v52 = vld [vmem:[%s16073_s14 + $0xa0] sm:$0xff] }
  0xb8   : > { %v16218_v53 = vld [vmem:[%s16073_s14 + $0xa8] sm:$0xff]  ;;  %v16223_v54 = vld [vmem:[%s16073_s14 + $0xb0] sm:$0xff]  ;;  %v16226_v55 = vld [vmem:[%s16073_s14 + $0xb8] sm:$0xff]  ;;  %p15636_p1 = pnand %p15635_p11, %p15986_p0 }
  0xb9   : > { %v16231_v56 = vld [vmem:[%s16073_s14 + $0xc0] sm:$0xff]  ;;  %v16234_v57 = vld [vmem:[%s16073_s14 + $0xc8] sm:$0xff]  ;;  %v16239_v58 = vld [vmem:[%s16073_s14 + $0xd0] sm:$0xff]  ;;  %s12955_s6 = sshll.u32 %s21443_s20, 12 }
  0xba   : > { %585 = vadd.xlane.f32.xlu0 %v16151_v36  ;;  %587 = vadd.xlane.f32.xlu1 %v16154_v37  ;;  %v16242_v59 = vld [vmem:[%s16073_s14 + $0xd8] sm:$0xff]  ;;  %v16265_v15 = vld [vmem:[%s16073_s14 + $0xe0] sm:$0xff]  ;;  %v16269_v19 = vld [vmem:[%s16073_s14 + $0xf0] sm:$0xff]  ;;  %s20705_s5 = scalar_lea.hbm %s21446_s16, %s12955_s6  ;;  %p15637_p2 = pneg %p15636_p1 }
  0xbb   : > { %v16275_v22 = vld [vmem:[%s16073_s14 + $0xe8] sm:$0xff]  ;;  %v569_v25 = vld [vmem:[%s16065_s27 + $0x1c0] sm:$0xff] }
  0xbc   : > { %v573_v26 = vld [vmem:[%s16065_s27 + $0x1e0] sm:$0xff] }
  0xbd   : > { %v12661_v28 = vcombine.low %v569_v25, %v573_v26  ;;  %v12669_v29 = vcombine.high %v569_v25, %v573_v26 }
  0xbe   : > { %589 = vadd.xlane.f32.xlu0 %v16157_v38  ;;  %591 = vadd.xlane.f32.xlu1 %v16162_v39 }
  0xbf   : > { %13580 = vmatprep.subr.bf16.mxu0 %v12661_v28  ;;  %13628 = vmatprep.subr.bf16.mxu1 %v12669_v29 }
  0xc0   : > { %13581 = vmatpush3.bf16.msra.mxu0 %v12661_v28  ;;  %13629 = vmatpush3.bf16.msra.mxu1 %v12669_v29 }
  0xc2   : > { %593 = vadd.xlane.f32.xlu0 %v16165_v40  ;;  %595 = vadd.xlane.f32.xlu1 %v16168_v41 }
  0xc6   : > { %597 = vadd.xlane.f32.xlu0 %v16173_v42  ;;  %599 = vadd.xlane.f32.xlu1 %v16176_v43 }
  0xca   : > { %601 = vadd.xlane.f32.xlu0 %v16181_v44  ;;  %603 = vadd.xlane.f32.xlu1 %v16186_v45 }
  0xce   : > { %605 = vadd.xlane.f32.xlu0 %v16189_v46  ;;  %607 = vadd.xlane.f32.xlu1 %v16194_v47 }
  0xd2   : > { %609 = vadd.xlane.f32.xlu0 %v16197_v48  ;;  %611 = vadd.xlane.f32.xlu1 %v16202_v49 }
  0xd6   : > { %613 = vadd.xlane.f32.xlu0 %v16207_v50  ;;  %615 = vadd.xlane.f32.xlu1 %v16210_v51 }
  0xda   : > { %617 = vadd.xlane.f32.xlu0 %v16215_v52  ;;  %619 = vadd.xlane.f32.xlu1 %v16218_v53 }
  0xde   : > { %621 = vadd.xlane.f32.xlu0 %v16223_v54  ;;  %623 = vadd.xlane.f32.xlu1 %v16226_v55 }
  0xe2   : > { %625 = vadd.xlane.f32.xlu0 %v16231_v56  ;;  %627 = vadd.xlane.f32.xlu1 %v16234_v57 }
  0xe6   : > { %629 = vadd.xlane.f32.xlu0 %v16239_v58  ;;  %631 = vadd.xlane.f32.xlu1 %v16242_v59 }
 0x13b   : > { %v578_v60 = vpop.xlane.xlu0 %577  ;;  %v582_v61 = vpop.xlane.xlu1 %581 }
 0x13c   : > { %v642_v62 = vmul.f32 0.0078125, %v578_v60  ;;  %v644_v63 = vmul.f32 0.0078125, %v582_v61  ;;  %v565_v60 = vld [vmem:[%s16065_s27 + $0x1a0] sm:$0xff] }
 0x13e   : > { %v16246_v0 = vsub.f32 %v479_v32, %v642_v62  ;;  %v16248_v1 = vsub.f32 %v481_v33, %v644_v63 }
 0x13f   : > { %v580_v2 = vpop.xlane.xlu0 %579  ;;  %v584_v3 = vpop.xlane.xlu1 %583 }
 0x140   : > { %v643_v4 = vmul.f32 0.0078125, %v580_v2  ;;  %v706_v5 = vmul.f32 %v16246_v0, %v16246_v0  ;;  %v645_v6 = vmul.f32 0.0078125, %v584_v3  ;;  %v708_v7 = vmul.f32 %v16248_v1, %v16248_v1 }
 0x142   : > { %738 = vadd.xlane.f32.xlu0 %v706_v5  ;;  %v16255_v8 = vsub.f32 %v16143_v34, %v643_v4  ;;  %v16258_v9 = vsub.f32 %v16146_v35, %v645_v6  ;;  %v16290_v34 = vld [vmem:[%s16073_s14 + $0xf8] sm:$0xff] }
 0x143   : > { %v586_v10 = vpop.xlane.xlu0 %585  ;;  %v588_v11 = vpop.xlane.xlu1 %587 }
 0x144   : > { %v707_v12 = vmul.f32 %v16255_v8, %v16255_v8  ;;  %v709_v13 = vmul.f32 %v16258_v9, %v16258_v9  ;;  %v646_v14 = vmul.f32 0.0078125, %v586_v10  ;;  %v647_v18 = vmul.f32 0.0078125, %v588_v11  ;;  %v553_v10 = vld [vmem:[%s16065_s27 + $0x140] sm:$0xff] }
 0x145   : > { %v557_v11 = vld [vmem:[%s16065_s27 + $0x160] sm:$0xff] }
 0x146   : > { %742 = vadd.xlane.f32.xlu0 %v708_v7  ;;  %740 = vadd.xlane.f32.xlu1 %v707_v12  ;;  %v16272_v21 = vsub.f32 %v16151_v36, %v646_v14  ;;  %v16280_v27 = vsub.f32 %v16154_v37, %v647_v18  ;;  %v561_v37 = vld [vmem:[%s16065_s27 + $0x180] sm:$0xff]  ;;  %v12659_v14 = vcombine.low %v553_v10, %v557_v11 }
 0x147   : > { %v590_v16 = vpop.xlane.xlu0 %589  ;;  %v592_v17 = vpop.xlane.xlu1 %591  ;;  %v12660_v63 = vcombine.low %v561_v37, %v565_v60  ;;  %v12668_v2 = vcombine.high %v561_v37, %v565_v60  ;;  %v541_v37 = vld [vmem:[%s16065_s27 + $0xe0] sm:$0xff] }
 0x148   : > { %v648_v20 = vmul.f32 0.0078125, %v590_v16  ;;  %v710_v30 = vmul.f32 %v16272_v21, %v16272_v21  ;;  %v649_v31 = vmul.f32 0.0078125, %v592_v17  ;;  %v711_v61 = vmul.f32 %v16280_v27, %v16280_v27 }
 0x149   : > { %13582 = vmatprep.subr.bf16.mxu0 %v12660_v63  ;;  %13630 = vmatprep.subr.bf16.mxu1 %v12668_v2 }
 0x14a   : > { %633 = vadd.xlane.f32.xlu0 %v16265_v15  ;;  %744 = vadd.xlane.f32.xlu1 %v709_v13  ;;  %v16287_v33 = vsub.f32 %v16157_v38, %v648_v20  ;;  %v16300_v4 = vsub.f32 %v16162_v39, %v649_v31  ;;  %v12667_v39 = vcombine.high %v553_v10, %v557_v11  ;;  %v529_v10 = vld [vmem:[%s16065_s27 + $0x80] sm:$0xff] }
 0x14b   : > { %v594_v23 = vpop.xlane.xlu0 %593  ;;  %v596_v24 = vpop.xlane.xlu1 %595  ;;  %13583 = vmatpush3.bf16.msra.mxu0 %v12660_v63  ;;  %13631 = vmatpush3.bf16.msra.mxu1 %v12668_v2  ;;  %v533_v11 = vld [vmem:[%s16065_s27 + $0xa0] sm:$0xff] }
 0x14c   : > { %v650_v32 = vmul.f32 0.0078125, %v594_v23  ;;  %v651_v62 = vmul.f32 0.0078125, %v596_v24  ;;  %v712_v38 = vmul.f32 %v16287_v33, %v16287_v33  ;;  %13584 = vmatprep.subr.bf16.mxu0 %v12659_v14  ;;  %13632 = vmatprep.subr.bf16.mxu1 %v12667_v39  ;;  %v549_v24 = vld [vmem:[%s16065_s27 + $0x120] sm:$0xff] }
 0x14e   : > { %637 = vadd.xlane.f32.xlu0 %v16269_v19  ;;  %635 = vadd.xlane.f32.xlu1 %v16275_v22  ;;  %v16303_v5 = vsub.f32 %v16165_v40, %v650_v32  ;;  %v16308_v13 = vsub.f32 %v16168_v41, %v651_v62  ;;  %v713_v40 = vmul.f32 %v16300_v4, %v16300_v4  ;;  %v545_v41 = vld [vmem:[%s16065_s27 + $0x100] sm:$0xff] }
 0x14f   : > { %v598_v35 = vpop.xlane.xlu0 %597  ;;  %v600_v36 = vpop.xlane.xlu1 %599  ;;  %13585 = vmatpush3.bf16.msra.mxu0 %v12659_v14  ;;  %13633 = vmatpush3.bf16.msra.mxu1 %v12667_v39  ;;  %v12658_v28 = vcombine.low %v545_v41, %v549_v24  ;;  %v12666_v29 = vcombine.high %v545_v41, %v549_v24  ;;  %v12656_v39 = vcombine.low %v529_v10, %v533_v11  ;;  %v525_v41 = vld [vmem:[%s16065_s27 + $0x60] sm:$0xff] }
 0x150   : > { %v652_v3 = vmul.f32 0.0078125, %v598_v35  ;;  %v653_v12 = vmul.f32 0.0078125, %v600_v36  ;;  %v714_v16 = vmul.f32 %v16303_v5, %v16303_v5  ;;  %v715_v25 = vmul.f32 %v16308_v13, %v16308_v13 }
 0x151   : > { %13586 = vmatprep.subr.bf16.mxu0 %v12658_v28  ;;  %13634 = vmatprep.subr.bf16.mxu1 %v12666_v29 }
 0x152   : > { %639 = vadd.xlane.f32.xlu1 %v16290_v34  ;;  %746 = vadd.xlane.f32.xlu0 %v710_v30  ;;  %v16315_v18 = vsub.f32 %v16173_v42, %v652_v3  ;;  %v16322_v26 = vsub.f32 %v16176_v43, %v653_v12  ;;  %v537_v43 = vld [vmem:[%s16065_s27 + $0xc0] sm:$0xff] }
 0x153   : > { %v602_v6 = vpop.xlane.xlu0 %601  ;;  %v604_v7 = vpop.xlane.xlu1 %603  ;;  %13587 = vmatpush3.bf16.msra.mxu0 %v12658_v28  ;;  %13635 = vmatpush3.bf16.msra.mxu1 %v12666_v29  ;;  %v12657_v62 = vcombine.low %v537_v43, %v541_v37  ;;  %v12665_v63 = vcombine.high %v537_v43, %v541_v37  ;;  %v517_v43 = vld [vmem:[%s16065_s27 + $0x20] sm:$0xff] }
 0x154   : > { %v654_v17 = vmul.f32 0.0078125, %v602_v6  ;;  %v716_v42 = vmul.f32 %v16315_v18, %v16315_v18  ;;  %v655_v30 = vmul.f32 0.0078125, %v604_v7  ;;  %v717_v60 = vmul.f32 %v16322_v26, %v16322_v26 }
 0x155   : > { %13588 = vmatprep.subr.bf16.mxu0 %v12657_v62  ;;  %13636 = vmatprep.subr.bf16.mxu1 %v12665_v63 }
 0x156   : > { %748 = vadd.xlane.f32.xlu1 %v711_v61  ;;  %750 = vadd.xlane.f32.xlu0 %v712_v38  ;;  %v16327_v32 = vsub.f32 %v16181_v44, %v654_v17  ;;  %v16336_v38 = vsub.f32 %v16186_v45, %v655_v30  ;;  %v12664_v45 = vcombine.high %v529_v10, %v533_v11 }
 0x157   : > { %v606_v20 = vpop.xlane.xlu0 %605  ;;  %v608_v23 = vpop.xlane.xlu1 %607  ;;  %13589 = vmatpush3.bf16.msra.mxu0 %v12657_v62  ;;  %13637 = vmatpush3.bf16.msra.mxu1 %v12665_v63 }
 0x158   : > { %v656_v31 = vmul.f32 0.0078125, %v606_v20  ;;  %v657_v61 = vmul.f32 0.0078125, %v608_v23  ;;  %v718_v44 = vmul.f32 %v16327_v32, %v16327_v32  ;;  %13590 = vmatprep.subr.bf16.mxu0 %v12656_v39  ;;  %13638 = vmatprep.subr.bf16.mxu1 %v12664_v45 }
 0x15a   : > { %752 = vadd.xlane.f32.xlu1 %v713_v40  ;;  %754 = vadd.xlane.f32.xlu0 %v714_v16  ;;  %v16339_v3 = vsub.f32 %v16189_v46, %v656_v31  ;;  %v16344_v14 = vsub.f32 %v16194_v47, %v657_v61  ;;  %v719_v46 = vmul.f32 %v16336_v38, %v16336_v38  ;;  %v521_v47 = vld [vmem:[%s16065_s27 + $0x40] sm:$0xff] }
 0x15b   : > { %v610_v35 = vpop.xlane.xlu0 %609  ;;  %v612_v36 = vpop.xlane.xlu1 %611  ;;  %13591 = vmatpush3.bf16.msra.mxu0 %v12656_v39  ;;  %13639 = vmatpush3.bf16.msra.mxu1 %v12664_v45  ;;  %v12655_v28 = vcombine.low %v521_v47, %v525_v41  ;;  %v12663_v29 = vcombine.high %v521_v47, %v525_v41 }
 0x15c   : > { %v658_v2 = vmul.f32 0.0078125, %v610_v35  ;;  %v659_v12 = vmul.f32 0.0078125, %v612_v36  ;;  %v720_v40 = vmul.f32 %v16339_v3, %v16339_v3  ;;  %v721_v24 = vmul.f32 %v16344_v14, %v16344_v14 }
 0x15d   : > { %13592 = vmatprep.subr.bf16.mxu0 %v12655_v28  ;;  %13640 = vmatprep.subr.bf16.mxu1 %v12663_v29 }
 0x15e   : > { %756 = vadd.xlane.f32.xlu1 %v715_v25  ;;  %758 = vadd.xlane.f32.xlu0 %v716_v42  ;;  %v16351_v17 = vsub.f32 %v16197_v48, %v658_v2  ;;  %v16358_v25 = vsub.f32 %v16202_v49, %v659_v12  ;;  %v513_v49 = vld [vmem:[%s16065_s27] sm:$0xff] }
 0x15f   : > { %v614_v6 = vpop.xlane.xlu0 %613  ;;  %v616_v7 = vpop.xlane.xlu1 %615  ;;  %13593 = vmatpush3.bf16.msra.mxu0 %v12655_v28  ;;  %13641 = vmatpush3.bf16.msra.mxu1 %v12663_v29  ;;  %v12654_v61 = vcombine.low %v513_v49, %v517_v43  ;;  %v12662_v62 = vcombine.high %v513_v49, %v517_v43 }
 0x160   : > { %v660_v16 = vmul.f32 0.0078125, %v614_v6  ;;  %v722_v48 = vmul.f32 %v16351_v17, %v16351_v17  ;;  %v661_v42 = vmul.f32 0.0078125, %v616_v7  ;;  %v723_v37 = vmul.f32 %v16358_v25, %v16358_v25 }
 0x161   : > { %13594 = vmatprep.subr.bf16.mxu0 %v12654_v61  ;;  %13642 = vmatprep.subr.bf16.mxu1 %v12662_v62 }
 0x162   : > { %760 = vadd.xlane.f32.xlu1 %v717_v60  ;;  %762 = vadd.xlane.f32.xlu0 %v718_v44  ;;  %v16363_v31 = vsub.f32 %v16207_v50, %v660_v16  ;;  %v16372_v44 = vsub.f32 %v16210_v51, %v661_v42 }
 0x163   : > { %v618_v20 = vpop.xlane.xlu0 %617  ;;  %v620_v23 = vpop.xlane.xlu1 %619  ;;  %13595 = vmatpush3.bf16.msra.mxu0 %v12654_v61  ;;  %13643 = vmatpush3.bf16.msra.mxu1 %v12662_v62 }
 0x164   : > { %v662_v30 = vmul.f32 0.0078125, %v618_v20  ;;  %v663_v60 = vmul.f32 0.0078125, %v620_v23  ;;  %v724_v50 = vmul.f32 %v16363_v31, %v16363_v31  ;;  %v725_v12 = vmul.f32 %v16372_v44, %v16372_v44 }
 0x166   : > { %764 = vadd.xlane.f32.xlu1 %v719_v46  ;;  %766 = vadd.xlane.f32.xlu0 %v720_v40  ;;  %v16375_v2 = vsub.f32 %v16215_v52, %v662_v30  ;;  %v16378_v10 = vsub.f32 %v16218_v53, %v663_v60 }
 0x167   : > { %v622_v35 = vpop.xlane.xlu0 %621  ;;  %v624_v36 = vpop.xlane.xlu1 %623 }
 0x168   : > { %v664_v63 = vmul.f32 0.0078125, %v622_v35  ;;  %v665_v7 = vmul.f32 0.0078125, %v624_v36  ;;  %v726_v51 = vmul.f32 %v16375_v2, %v16375_v2  ;;  %v727_v46 = vmul.f32 %v16378_v10, %v16378_v10 }
 0x16a   : > { %768 = vadd.xlane.f32.xlu1 %v721_v24  ;;  %770 = vadd.xlane.f32.xlu0 %v722_v48  ;;  %v16385_v39 = vsub.f32 %v16223_v54, %v664_v63  ;;  %v16390_v53 = vsub.f32 %v16226_v55, %v665_v7 }
 0x16b   : > { %v626_v6 = vpop.xlane.xlu0 %625  ;;  %v628_v11 = vpop.xlane.xlu1 %627 }
 0x16c   : > { %v666_v52 = vmul.f32 0.0078125, %v626_v6  ;;  %v728_v40 = vmul.f32 %v16385_v39, %v16385_v39  ;;  %v667_v16 = vmul.f32 0.0078125, %v628_v11  ;;  %v729_v54 = vmul.f32 %v16390_v53, %v16390_v53 }
 0x16e   : > { %772 = vadd.xlane.f32.xlu1 %v723_v37  ;;  %774 = vadd.xlane.f32.xlu0 %v724_v50  ;;  %v16395_v23 = vsub.f32 %v16231_v56, %v666_v52  ;;  %v16402_v24 = vsub.f32 %v16234_v57, %v667_v16  ;;  %v930_v37 = vlaneseq }
 0x16f   : > { %v630_v45 = vpop.xlane.xlu0 %629  ;;  %v632_v47 = vpop.xlane.xlu1 %631 }
 0x170   : > { %v668_v20 = vmul.f32 0.0078125, %v630_v45  ;;  %v730_v55 = vmul.f32 %v16395_v23, %v16395_v23  ;;  %v669_v41 = vmul.f32 0.0078125, %v632_v47  ;;  %v731_v56 = vmul.f32 %v16402_v24, %v16402_v24 }
 0x171   : > { %v16416_v6 = vshrl.u32 %v930_v37, 7 }
 0x172   : > { %776 = vadd.xlane.f32.xlu1 %v725_v12  ;;  %778 = vadd.xlane.f32.xlu0 %v726_v51  ;;  %v16405_v28 = vsub.f32 %v16239_v58, %v668_v20  ;;  %v16412_v48 = vsub.f32 %v16242_v59, %v669_v41 }
 0x173   : > { %20975 = vst [vmem:[#allocation28_spill] sm:$0xff] %v16416_v6 }
 0x174   : > { %v732_v29 = vmul.f32 %v16405_v28, %v16405_v28  ;;  %v733_v57 = vmul.f32 %v16412_v48, %v16412_v48 }
 0x176   : > { %780 = vadd.xlane.f32.xlu1 %v727_v46  ;;  %782 = vadd.xlane.f32.xlu0 %v728_v40  ;;  %v16424_v40 = vsub.s32 0, %v16416_v6 }
 0x178   : > { %20976 = vst [vmem:[#allocation29_spill] sm:$0xff] %v16424_v40 }
 0x17a   : > { %784 = vadd.xlane.f32.xlu1 %v729_v54  ;;  %786 = vadd.xlane.f32.xlu0 %v730_v55 }
 0x17e   : > { %788 = vadd.xlane.f32.xlu1 %v731_v56  ;;  %790 = vadd.xlane.f32.xlu0 %v732_v29 }
 0x182   : > { %792 = vadd.xlane.f32.xlu1 %v733_v57 }
 0x1cb   : > { %v739_v42 = vpop.xlane.xlu0 %738 }
 0x1cc   : > { %v802_v58 = vmul.f32 0.0078125, %v739_v42 }
 0x1ce   : > { %v834_v30 = vadd.f32 1e-05, %v802_v58 }
 0x1cf   : > { %v741_v35 = vpop.xlane.xlu1 %740  ;;  %v743_v36 = vpop.xlane.xlu0 %742 }
 0x1d0   : > { %14808 = vrsqrt.f32 %v834_v30  ;;  %v803_v49 = vmul.f32 0.0078125, %v741_v35  ;;  %v804_v43 = vmul.f32 0.0078125, %v743_v36 }
 0x1d2   : > { %v835_v60 = vadd.f32 1e-05, %v803_v49  ;;  %v836_v61 = vadd.f32 1e-05, %v804_v43 }
 0x1d3   : > { %v745_v62 = vpop.xlane.xlu1 %744  ;;  %v634_v59 = vpop.xlane.xlu0 %633 }
 0x1d4   : > { %14810 = vrsqrt.f32 %v835_v60  ;;  %v805_v50 = vmul.f32 0.0078125, %v745_v62  ;;  %v670_v63 = vmul.f32 0.0078125, %v634_v59 }
 0x1d5   : > { %14812 = vrsqrt.f32 %v836_v61 }
 0x1d6   : > { %v837_v7 = vadd.f32 1e-05, %v805_v50  ;;  %v16419_v11 = vsub.f32 %v16265_v15, %v670_v63  ;;  %v16433_v15 = vld [vmem:[%s16057_s1] sm:$0xff] }
 0x1d7   : > { %v636_v12 = vpop.xlane.xlu1 %635  ;;  %v638_v51 = vpop.xlane.xlu0 %637 }
 0x1d8   : > { %14814 = vrsqrt.f32 %v837_v7  ;;  %v671_v52 = vmul.f32 0.0078125, %v636_v12  ;;  %v672_v45 = vmul.f32 0.0078125, %v638_v51  ;;  %v734_v46 = vmul.f32 %v16419_v11, %v16419_v11 }
 0x1da   : > { %794 = vadd.xlane.f32.xlu0 %v734_v46  ;;  %v16427_v16 = vsub.f32 %v16275_v22, %v671_v52  ;;  %v16430_v20 = vsub.f32 %v16269_v19, %v672_v45  ;;  %v16441_v22 = vrot.slane %v16433_v15, %v16424_v40  ;;  %v20792_v19 = vsub.s32 1, %v16416_v6 }
 0x1db   : > { %v640_v47 = vpop.xlane.xlu1 %639  ;;  %v747_v54 = vpop.xlane.xlu0 %746 }
 0x1dc   : > { %v673_v55 = vmul.f32 0.0078125, %v640_v47  ;;  %v806_v41 = vmul.f32 0.0078125, %v747_v54  ;;  %v735_v56 = vmul.f32 %v16427_v16, %v16427_v16  ;;  %v736_v29 = vmul.f32 %v16430_v20, %v16430_v20 }
 0x1dd   : > { %v14809_v57 = vpop.eup %14808  ;;  %v16454_v62 = vrot.slane %v16433_v15, %v20792_v19 }
 0x1de   : > { %v838_v42 = vadd.f32 1e-05, %v806_v41  ;;  %796 = vadd.xlane.f32.xlu1 %v735_v56  ;;  %798 = vadd.xlane.f32.xlu0 %v736_v29  ;;  %v16445_v58 = vsub.f32 %v16290_v34, %v673_v55  ;;  %v898_v30 = vmul.f32 %v14809_v57, %v16246_v0 }
 0x1df   : > { %v749_v35 = vpop.xlane.xlu1 %748  ;;  %v751_v36 = vpop.xlane.xlu0 %750 }
 0x1e0   : > { %14816 = vrsqrt.f32 %v838_v42  ;;  %v807_v49 = vmul.f32 0.0078125, %v749_v35  ;;  %v808_v43 = vmul.f32 0.0078125, %v751_v36  ;;  %v737_v37 = vmul.f32 %v16445_v58, %v16445_v58 }
 0x1e1   : > { %v14811_v60 = vpop.eup %14810  ;;  %v934_v61 = vmul.f32 %v16441_v22, %v898_v30 }
 0x1e2   : > { %v14813_v34 = vpop.eup %14812  ;;  %v839_v59 = vadd.f32 1e-05, %v807_v49  ;;  %v840_v50 = vadd.f32 1e-05, %v808_v43  ;;  %800 = vadd.xlane.f32.xlu1 %v737_v37  ;;  %v899_v0 = vmul.f32 %v14811_v60, %v16255_v8 }
 0x1e3   : > { %v753_v63 = vpop.xlane.xlu1 %752  ;;  %v755_v7 = vpop.xlane.xlu0 %754  ;;  %v900_v12 = vmul.f32 %v14813_v34, %v16248_v1  ;;  %v970_v47 = vadd.f32 %v16454_v62, %v934_v61 }
 0x1e4   : > { %14818 = vrsqrt.f32 %v839_v59  ;;  %v809_v51 = vmul.f32 0.0078125, %v753_v63  ;;  %v810_v52 = vmul.f32 0.0078125, %v755_v7  ;;  %v935_v45 = vmul.f32 %v16441_v22, %v899_v0  ;;  %v570_v59 = vld [vmem:[%s16065_s27 + $0x1c8] sm:$0xff] }
 0x1e5   : > { %v14815_v46 = vpop.eup %14814  ;;  %14820 = vrsqrt.f32 %v840_v50  ;;  %v936_v57 = vmul.f32 %v16441_v22, %v900_v12  ;;  %v574_v50 = vld [vmem:[%s16065_s27 + $0x1e8] sm:$0xff] }
 0x1e6   : > { %v841_v54 = vadd.f32 1e-05, %v809_v51  ;;  %v842_v55 = vadd.f32 1e-05, %v810_v52  ;;  %v971_v41 = vadd.f32 %v16454_v62, %v935_v45  ;;  %v901_v56 = vmul.f32 %v14815_v46, %v16258_v9 }
 0x1e7   : > { %v757_v8 = vpop.xlane.xlu1 %756  ;;  %v759_v29 = vpop.xlane.xlu0 %758  ;;  %v972_v37 = vadd.f32 %v16454_v62, %v936_v57  ;;  %v12677_v7 = vcombine.low %v570_v59, %v574_v50  ;;  %v16481_v57 = vcombine.high %v570_v59, %v574_v50 }
 0x1e8   : > { %14822 = vrsqrt.f32 %v841_v54  ;;  %v811_v1 = vmul.f32 0.0078125, %v757_v8  ;;  %v812_v42 = vmul.f32 0.0078125, %v759_v29  ;;  %v16463_v30 = vpack.c.bf16 %v971_v41, %v970_v47  ;;  %v562_v41 = vld [vmem:[%s16065_s27 + $0x188] sm:$0xff] }
 0x1e9   : > { %14824 = vrsqrt.f32 %v842_v55  ;;  %v937_v35 = vmul.f32 %v16441_v22, %v901_v56  ;;  %13676 = vmatprep.subr.bf16.mxu0 %v12677_v7  ;;  %v566_v56 = vld [vmem:[%s16065_s27 + $0x1a8] sm:$0xff]  ;;  %20977 = vst [vmem:[#allocation30_spill] sm:$0xff] %v16481_v57 }
 0x1ea   : > { %v843_v36 = vadd.f32 1e-05, %v811_v1  ;;  %v844_v49 = vadd.f32 1e-05, %v812_v42  ;;  %13596 = vmatprep.mubr.bf16.mxu0 %v16463_v30  ;;  %13644 = vmatprep.mubr.bf16.mxu1 %v16463_v30  ;;  %v554_v8 = vld [vmem:[%s16065_s27 + $0x148] sm:$0xff]  ;;  %v16483_v1 = vcombine.high %v562_v41, %v566_v56 }
 0x1eb   : > { %v761_v9 = vpop.xlane.xlu1 %760  ;;  %v763_v43 = vpop.xlane.xlu0 %762  ;;  %v973_v60 = vadd.f32 %v16454_v62, %v937_v35  ;;  %v558_v42 = vld [vmem:[%s16065_s27 + $0x168] sm:$0xff] }
 0x1ec   : > { %14826 = vrsqrt.f32 %v843_v36  ;;  %v813_v61 = vmul.f32 0.0078125, %v761_v9  ;;  %v814_v34 = vmul.f32 0.0078125, %v763_v43  ;;  %20978 = vst [vmem:[#allocation31_spill] sm:$0xff] %v16483_v1 }
 0x1ed   : > { %v14817_v0 = vpop.eup %14816  ;;  %14828 = vrsqrt.f32 %v844_v49  ;;  %v16472_v63 = vpack.c.bf16 %v973_v60, %v972_v37 }
 0x1ee   : > { %v845_v12 = vadd.f32 1e-05, %v813_v61  ;;  %v846_v51 = vadd.f32 1e-05, %v814_v34  ;;  %v902_v52 = vmul.f32 %v14817_v0, %v16272_v21  ;;  %v12676_v21 = vcombine.low %v562_v41, %v566_v56  ;;  %v546_v0 = vld [vmem:[%s16065_s27 + $0x108] sm:$0xff] }
 0x1ef   : > { %13597 = vmatmul.mubr.bf16.vlgmr.msra.gmra.mxu0 %v16472_v63  ;;  %13645 = vmatmul.mubr.bf16.vlgmr.msra.gmra.mxu1 %v16472_v63  ;;  %v765_v45 = vpop.xlane.xlu1 %764  ;;  %v767_v46 = vpop.xlane.xlu0 %766  ;;  %v12675_v61 = vcombine.low %v554_v8, %v558_v42  ;;  %v542_v42 = vld [vmem:[%s16065_s27 + $0xe8] sm:$0xff] }
 0x1f0   : > { %14830 = vrsqrt.f32 %v845_v12  ;;  %v815_v47 = vmul.f32 0.0078125, %v765_v45  ;;  %v816_v54 = vmul.f32 0.0078125, %v767_v46  ;;  %v938_v55 = vmul.f32 %v16441_v22, %v902_v52  ;;  %13677 = vmatpush3.bf16.msra.mxu0 %v12677_v7  ;;  %v550_v7 = vld [vmem:[%s16065_s27 + $0x128] sm:$0xff] }
 0x1f1   : > { %v14819_v29 = vpop.eup %14818  ;;  %14832 = vrsqrt.f32 %v846_v51  ;;  %13678 = vmatprep.subr.bf16.mxu0 %v12676_v21  ;;  %v12674_v8 = vcombine.low %v546_v0, %v550_v7 }
 0x1f2   : > { %v14821_v35 = vpop.eup %14820  ;;  %v847_v36 = vadd.f32 1e-05, %v815_v47  ;;  %v848_v49 = vadd.f32 1e-05, %v816_v54  ;;  %v903_v9 = vmul.f32 %v14819_v29, %v16280_v27  ;;  %v974_v51 = vadd.f32 %v16454_v62, %v938_v55  ;;  %v538_v29 = vld [vmem:[%s16065_s27 + $0xc8] sm:$0xff] }
 0x1f3   : > { %v769_v43 = vpop.xlane.xlu1 %768  ;;  %v771_v37 = vpop.xlane.xlu0 %770  ;;  %v904_v60 = vmul.f32 %v14821_v35, %v16287_v33 }
 0x1f4   : > { %14834 = vrsqrt.f32 %v847_v36  ;;  %v817_v34 = vmul.f32 0.0078125, %v769_v43  ;;  %v818_v59 = vmul.f32 0.0078125, %v771_v37  ;;  %v939_v50 = vmul.f32 %v16441_v22, %v903_v9  ;;  %13679 = vmatpush3.bf16.msra.mxu0 %v12676_v21 }
 0x1f5   : > { %v14823_v12 = vpop.eup %14822  ;;  %14836 = vrsqrt.f32 %v848_v49  ;;  %13680 = vmatprep.subr.bf16.mxu0 %v12675_v61  ;;  %v940_v41 = vmul.f32 %v16441_v22, %v904_v60  ;;  %v12673_v60 = vcombine.low %v538_v29, %v542_v42 }
 0x1f6   : > { %v14825_v27 = vpop.eup %14824  ;;  %v849_v52 = vadd.f32 1e-05, %v817_v34  ;;  %v850_v45 = vadd.f32 1e-05, %v818_v59  ;;  %v975_v33 = vadd.f32 %v16454_v62, %v939_v50  ;;  %v905_v46 = vmul.f32 %v14823_v12, %v16300_v4 }
 0x1f7   : > { %v773_v47 = vpop.xlane.xlu1 %772  ;;  %v775_v54 = vpop.xlane.xlu0 %774  ;;  %v906_v56 = vmul.f32 %v14825_v27, %v16303_v5  ;;  %v976_v50 = vadd.f32 %v16454_v62, %v940_v41 }
 0x1f8   : > { %14838 = vrsqrt.f32 %v849_v52  ;;  %v819_v55 = vmul.f32 0.0078125, %v773_v47  ;;  %v820_v21 = vmul.f32 0.0078125, %v775_v54  ;;  %v16498_v35 = vpack.c.bf16 %v975_v33, %v974_v51  ;;  %13681 = vmatpush3.bf16.msra.mxu0 %v12675_v61 }
 0x1f9   : > { %v14827_v36 = vpop.eup %14826  ;;  %14840 = vrsqrt.f32 %v850_v45  ;;  %v941_v49 = vmul.f32 %v16441_v22, %v905_v46  ;;  %v942_v4 = vmul.f32 %v16441_v22, %v906_v56  ;;  %13682 = vmatprep.subr.bf16.mxu0 %v12674_v8 }
 0x1fa   : > { %v14829_v9 = vpop.eup %14828  ;;  %v851_v43 = vadd.f32 1e-05, %v819_v55  ;;  %v852_v37 = vadd.f32 1e-05, %v820_v21  ;;  %13600 = vmatprep.mubr.bf16.mxu0 %v16498_v35  ;;  %13648 = vmatprep.mubr.bf16.mxu1 %v16498_v35  ;;  %v907_v5 = vmul.f32 %v14827_v36, %v16308_v13  ;;  %v530_v21 = vld [vmem:[%s16065_s27 + $0x88] sm:$0xff] }
 0x1fb   : > { %v777_v34 = vpop.xlane.xlu1 %776  ;;  %v779_v59 = vpop.xlane.xlu0 %778  ;;  %v977_v0 = vadd.f32 %v16454_v62, %v941_v49  ;;  %v908_v7 = vmul.f32 %v14829_v9, %v16315_v18  ;;  %v978_v13 = vadd.f32 %v16454_v62, %v942_v4  ;;  %v534_v36 = vld [vmem:[%s16065_s27 + $0xa8] sm:$0xff] }
 0x1fc   : > { %14842 = vrsqrt.f32 %v851_v43  ;;  %v821_v61 = vmul.f32 0.0078125, %v777_v34  ;;  %v822_v12 = vmul.f32 0.0078125, %v779_v59  ;;  %v943_v51 = vmul.f32 %v16441_v22, %v907_v5  ;;  %13683 = vmatpush3.bf16.msra.mxu0 %v12674_v8 }
 0x1fd   : > { %v14831_v27 = vpop.eup %14830  ;;  %14844 = vrsqrt.f32 %v852_v37  ;;  %v16509_v52 = vpack.c.bf16 %v977_v0, %v976_v50  ;;  %13684 = vmatprep.subr.bf16.mxu0 %v12673_v60  ;;  %v944_v56 = vmul.f32 %v16441_v22, %v908_v7  ;;  %v12672_v9 = vcombine.low %v530_v21, %v534_v36  ;;  %v518_v21 = vld [vmem:[%s16065_s27 + $0x28] sm:$0xff] }
 0x1fe   : > { %v14833_v45 = vpop.eup %14832  ;;  %v853_v33 = vadd.f32 1e-05, %v821_v61  ;;  %v854_v46 = vadd.f32 1e-05, %v822_v12  ;;  %v979_v18 = vadd.f32 %v16454_v62, %v943_v51  ;;  %v909_v47 = vmul.f32 %v14831_v27, %v16322_v26  ;;  %v522_v51 = vld [vmem:[%s16065_s27 + $0x48] sm:$0xff] }
 0x1ff   : > { %13601 = vmatmul.mubr.bf16.gmra.mxu0 %v16509_v52  ;;  %13649 = vmatmul.mubr.bf16.gmra.mxu1 %v16509_v52  ;;  %v781_v54 = vpop.xlane.xlu1 %780  ;;  %v783_v41 = vpop.xlane.xlu0 %782  ;;  %v910_v8 = vmul.f32 %v14833_v45, %v16327_v32  ;;  %v980_v50 = vadd.f32 %v16454_v62, %v944_v56  ;;  %v526_v27 = vld [vmem:[%s16065_s27 + $0x68] sm:$0xff] }
 0x200   : > { %14846 = vrsqrt.f32 %v853_v33  ;;  %v823_v29 = vmul.f32 0.0078125, %v781_v54  ;;  %v824_v42 = vmul.f32 0.0078125, %v783_v41  ;;  %v16518_v55 = vpack.c.bf16 %v979_v18, %v978_v13  ;;  %13685 = vmatpush3.bf16.msra.mxu0 %v12673_v60 }
 0x201   : > { %v14835_v49 = vpop.eup %14834  ;;  %14848 = vrsqrt.f32 %v854_v46  ;;  %v945_v26 = vmul.f32 %v16441_v22, %v909_v47  ;;  %v946_v4 = vmul.f32 %v16441_v22, %v910_v8  ;;  %13686 = vmatprep.subr.bf16.mxu0 %v12672_v9  ;;  %v12671_v33 = vcombine.low %v522_v51, %v526_v27 }
 0x202   : > { %v14837_v43 = vpop.eup %14836  ;;  %v855_v37 = vadd.f32 1e-05, %v823_v29  ;;  %v856_v32 = vadd.f32 1e-05, %v824_v42  ;;  %13604 = vmatprep.mubr.bf16.mxu0 %v16518_v55  ;;  %13652 = vmatprep.mubr.bf16.mxu1 %v16518_v55  ;;  %v911_v5 = vmul.f32 %v14835_v49, %v16336_v38  ;;  %v514_v42 = vld [vmem:[%s16065_s27 + $0x8] sm:$0xff] }
 0x203   : > { %v785_v34 = vpop.xlane.xlu1 %784  ;;  %v787_v59 = vpop.xlane.xlu0 %786  ;;  %v981_v0 = vadd.f32 %v16454_v62, %v945_v26  ;;  %v912_v60 = vmul.f32 %v14837_v43, %v16339_v3  ;;  %v982_v45 = vadd.f32 %v16454_v62, %v946_v4 }
 0x204   : > { %14850 = vrsqrt.f32 %v855_v37  ;;  %v825_v7 = vmul.f32 0.0078125, %v785_v34  ;;  %v826_v61 = vmul.f32 0.0078125, %v787_v59  ;;  %v947_v12 = vmul.f32 %v16441_v22, %v911_v5  ;;  %13687 = vmatpush3.bf16.msra.mxu0 %v12672_v9 }
 0x205   : > { %v14839_v13 = vpop.eup %14838  ;;  %14852 = vrsqrt.f32 %v856_v32  ;;  %v16533_v38 = vpack.c.bf16 %v981_v0, %v980_v50  ;;  %v948_v8 = vmul.f32 %v16441_v22, %v912_v60  ;;  %13688 = vmatprep.subr.bf16.mxu0 %v12671_v33  ;;  %v12670_v9 = vcombine.low %v514_v42, %v518_v21 }
 0x206   : > { %v14841_v46 = vpop.eup %14840  ;;  %v857_v3 = vadd.f32 1e-05, %v825_v7  ;;  %v858_v18 = vadd.f32 1e-05, %v826_v61  ;;  %v983_v47 = vadd.f32 %v16454_v62, %v947_v12  ;;  %v913_v54 = vmul.f32 %v14839_v13, %v16344_v14 }
 0x207   : > { %13605 = vmatmul.mubr.bf16.gmra.mxu0 %v16533_v38  ;;  %13653 = vmatmul.mubr.bf16.gmra.mxu1 %v16533_v38  ;;  %v789_v41 = vpop.xlane.xlu1 %788  ;;  %v791_v56 = vpop.xlane.xlu0 %790  ;;  %v914_v29 = vmul.f32 %v14841_v46, %v16351_v17  ;;  %v984_v59 = vadd.f32 %v16454_v62, %v948_v8 }
 0x208   : > { %14854 = vrsqrt.f32 %v857_v3  ;;  %v827_v36 = vmul.f32 0.0078125, %v789_v41  ;;  %v828_v49 = vmul.f32 0.0078125, %v791_v56  ;;  %v16544_v26 = vpack.c.bf16 %v983_v47, %v982_v45  ;;  %13689 = vmatpush3.bf16.msra.mxu0 %v12671_v33 }
 0x209   : > { %v14843_v4 = vpop.eup %14842  ;;  %14856 = vrsqrt.f32 %v858_v18  ;;  %v949_v14 = vmul.f32 %v16441_v22, %v913_v54  ;;  %v950_v5 = vmul.f32 %v16441_v22, %v914_v29  ;;  %13690 = vmatprep.subr.bf16.mxu0 %v12670_v9 }
 0x20a   : > { %v14845_v43 = vpop.eup %14844  ;;  %v859_v37 = vadd.f32 1e-05, %v827_v36  ;;  %v860_v32 = vadd.f32 1e-05, %v828_v49  ;;  %13608 = vmatprep.mubr.bf16.mxu0 %v16544_v26  ;;  %13656 = vmatprep.mubr.bf16.mxu1 %v16544_v26  ;;  %v915_v17 = vmul.f32 %v14843_v4, %v16358_v25 }
 0x20b   : > { %v793_v34 = vpop.xlane.xlu1 %792  ;;  %v985_v50 = vadd.f32 %v16454_v62, %v949_v14  ;;  %v916_v0 = vmul.f32 %v14845_v43, %v16363_v31  ;;  %v986_v13 = vadd.f32 %v16454_v62, %v950_v5 }
 0x20c   : > { %14858 = vrsqrt.f32 %v859_v37  ;;  %v829_v60 = vmul.f32 0.0078125, %v793_v34  ;;  %v951_v7 = vmul.f32 %v16441_v22, %v915_v17  ;;  %13691 = vmatpush3.bf16.msra.mxu0 %v12670_v9 }
 0x20d   : > { %v14847_v61 = vpop.eup %14846  ;;  %14860 = vrsqrt.f32 %v860_v32  ;;  %v16555_v12 = vpack.c.bf16 %v985_v50, %v984_v59  ;;  %v952_v25 = vmul.f32 %v16441_v22, %v916_v0 }
 0x20e   : > { %v14849_v51 = vpop.eup %14848  ;;  %v861_v27 = vadd.f32 1e-05, %v829_v60  ;;  %v987_v45 = vadd.f32 %v16454_v62, %v951_v7  ;;  %v917_v31 = vmul.f32 %v14847_v61, %v16372_v44 }
 0x20f   : > { %13609 = vmatmul.mubr.bf16.gmra.mxu0 %v16555_v12  ;;  %13657 = vmatmul.mubr.bf16.gmra.mxu1 %v16555_v12  ;;  %v918_v33 = vmul.f32 %v14849_v51, %v16375_v2  ;;  %v988_v47 = vadd.f32 %v16454_v62, %v952_v25 }
 0x210   : > { %14862 = vrsqrt.f32 %v861_v27  ;;  %v16564_v46 = vpack.c.bf16 %v987_v45, %v986_v13  ;;  %v953_v3 = vmul.f32 %v16441_v22, %v917_v31 }
 0x211   : > { %v14851_v18 = vpop.eup %14850  ;;  %v954_v56 = vmul.f32 %v16441_v22, %v918_v33 }
 0x212   : > { %v14853_v54 = vpop.eup %14852  ;;  %13612 = vmatprep.mubr.bf16.mxu0 %v16564_v46  ;;  %13660 = vmatprep.mubr.bf16.mxu1 %v16564_v46  ;;  %v989_v44 = vadd.f32 %v16454_v62, %v953_v3  ;;  %v919_v41 = vmul.f32 %v14851_v18, %v16378_v10 }
 0x213   : > { %v920_v2 = vmul.f32 %v14853_v54, %v16385_v39  ;;  %v990_v49 = vadd.f32 %v16454_v62, %v954_v56 }
 0x214   : > { %v16574_v8 = vpack.c.bf16 %v989_v44, %v988_v47  ;;  %v955_v29 = vmul.f32 %v16441_v22, %v919_v41 }
 0x215   : > { %v14855_v42 = vpop.eup %14854  ;;  %v956_v21 = vmul.f32 %v16441_v22, %v920_v2 }
 0x216   : > { %v14857_v36 = vpop.eup %14856  ;;  %v991_v4 = vadd.f32 %v16454_v62, %v955_v29  ;;  %v921_v14 = vmul.f32 %v14855_v42, %v16390_v53 }
 0x217   : > { %13613 = vmatmul.mubr.bf16.gmra.mxu0 %v16574_v8  ;;  %13661 = vmatmul.mubr.bf16.gmra.mxu1 %v16574_v8  ;;  %v922_v10 = vmul.f32 %v14857_v36, %v16395_v23  ;;  %v992_v37 = vadd.f32 %v16454_v62, %v956_v21 }
 0x218   : > { %v16584_v39 = vpack.c.bf16 %v991_v4, %v990_v49  ;;  %v957_v9 = vmul.f32 %v16441_v22, %v921_v14 }
 0x219   : > { %v14859_v43 = vpop.eup %14858  ;;  %v958_v5 = vmul.f32 %v16441_v22, %v922_v10 }
 0x21a   : > { %v14861_v32 = vpop.eup %14860  ;;  %13616 = vmatprep.mubr.bf16.mxu0 %v16584_v39  ;;  %13664 = vmatprep.mubr.bf16.mxu1 %v16584_v39  ;;  %v993_v53 = vadd.f32 %v16454_v62, %v957_v9  ;;  %v923_v17 = vmul.f32 %v14859_v43, %v16402_v24 }
 0x21b   : > { %v924_v23 = vmul.f32 %v14861_v32, %v16405_v28  ;;  %v994_v0 = vadd.f32 %v16454_v62, %v958_v5 }
 0x21c   : > { %v16594_v34 = vpack.c.bf16 %v993_v53, %v992_v37  ;;  %v959_v59 = vmul.f32 %v16441_v22, %v923_v17 }
 0x21d   : > { %v14863_v50 = vpop.eup %14862  ;;  %v960_v61 = vmul.f32 %v16441_v22, %v924_v23 }
 0x21e   : > { %v995_v60 = vadd.f32 %v16454_v62, %v959_v59  ;;  %v925_v7 = vmul.f32 %v14863_v50, %v16412_v48  ;;  %v20793_v48 = vmov 0.0  }
 0x21f   : > { %13617 = vmatmul.mubr.bf16.gmra.mxu0 %v16594_v34  ;;  %13665 = vmatmul.mubr.bf16.gmra.mxu1 %v16594_v34  ;;  %v996_v25 = vadd.f32 %v16454_v62, %v960_v61 }
 0x220   : > { %v16603_v24 = vpack.c.bf16 %v995_v60, %v994_v0  ;;  %v961_v28 = vmul.f32 %v16441_v22, %v925_v7  ;;  %13724 = vmatprep.subr.bf16.mxu1 %v20793_v48  ;;  %13772 = vmatprep.subr.bf16.mxu0 %v20793_v48 }
 0x222   : > { %13620 = vmatprep.mubr.bf16.mxu0 %v16603_v24  ;;  %13668 = vmatprep.mubr.bf16.mxu1 %v16603_v24  ;;  %v997_v51 = vadd.f32 %v16454_v62, %v961_v28 }
 0x224   : > { %v16610_v27 = vpack.c.bf16 %v997_v51, %v996_v25 }
 0x227   : > { %13621 = vmatmul.mubr.bf16.gmra.mxu0 %v16610_v27  ;;  %13669 = vmatmul.mubr.bf16.gmra.mxu1 %v16610_v27 }
 0x263   : > { %v795_v13 = vpop.xlane.xlu0 %794 }
 0x264   : > { %v830_v45 = vmul.f32 0.0078125, %v795_v13 }
 0x266   : > { %v862_v31 = vadd.f32 1e-05, %v830_v45 }
 0x267   : > { %v797_v33 = vpop.xlane.xlu1 %796  ;;  %v799_v3 = vpop.xlane.xlu0 %798 }
 0x268   : > { %14864 = vrsqrt.f32 %v862_v31  ;;  %v831_v18 = vmul.f32 0.0078125, %v797_v33  ;;  %v832_v47 = vmul.f32 0.0078125, %v799_v3 }
 0x26a   : > { %v863_v54 = vadd.f32 1e-05, %v831_v18  ;;  %v864_v44 = vadd.f32 1e-05, %v832_v47 }
 0x26b   : > { %v801_v41 = vpop.xlane.xlu1 %800 }
 0x26c   : > { %14866 = vrsqrt.f32 %v863_v54  ;;  %v833_v56 = vmul.f32 0.0078125, %v801_v41 }
 0x26d   : > { %14868 = vrsqrt.f32 %v864_v44 }
 0x26e   : > { %v865_v2 = vadd.f32 1e-05, %v833_v56 }
 0x270   : > { %14870 = vrsqrt.f32 %v865_v2 }
 0x275   : > { %v14865_v29 = vpop.eup %14864 }
 0x276   : > { %v926_v42 = vmul.f32 %v14865_v29, %v16419_v11 }
 0x278   : > { %v962_v4 = vmul.f32 %v16441_v22, %v926_v42 }
 0x279   : > { %v14867_v21 = vpop.eup %14866 }
 0x27a   : > { %v14869_v36 = vpop.eup %14868  ;;  %v927_v49 = vmul.f32 %v14867_v21, %v16427_v16  ;;  %v998_v43 = vadd.f32 %v16454_v62, %v962_v4 }
 0x27b   : > { %v928_v14 = vmul.f32 %v14869_v36, %v16430_v20 }
 0x27c   : > { %v963_v10 = vmul.f32 %v16441_v22, %v927_v49 }
 0x27d   : > { %v14871_v9 = vpop.eup %14870  ;;  %v964_v53 = vmul.f32 %v16441_v22, %v928_v14 }
 0x27e   : > { %v999_v37 = vadd.f32 %v16454_v62, %v963_v10  ;;  %v929_v32 = vmul.f32 %v14871_v9, %v16445_v58 }
 0x27f   : > { %v1000_v16 = vadd.f32 %v16454_v62, %v964_v53 }
 0x280   : > { %v1016_v11 = vpack.c.bf16 %v999_v37, %v998_v43  ;;  %v965_v17 = vmul.f32 %v16441_v22, %v929_v32 }
 0x282   : > { %13624 = vmatprep.mubr.bf16.mxu0 %v1016_v11  ;;  %13672 = vmatprep.mubr.bf16.mxu1 %v1016_v11  ;;  %v1001_v20 = vadd.f32 %v16454_v62, %v965_v17  ;;  %v1249_v62 = vsub.s32 5, %v16416_v6 }
 0x284   : > { %v1017_v5 = vpack.c.bf16 %v1001_v20, %v1000_v16 }
 0x286   : > { %13625 = vmatmul.mubr.bf16.gmra.mxu0 %v1017_v5  ;;  %13673 = vmatmul.mubr.bf16.gmra.mxu1 %v1017_v5 }
 0x287   : > { %13692 = vmatprep.mubr.bf16.mxu0 %v16463_v30  ;;  %13726 = vmatprep.mubr.msk.bf16.mxu1 %vm15776_vm0, %v20793_v48 }
 0x28e   : > { %13693 = vmatmul.mubr.bf16.vlgmr.msra.gmra.mxu0 %v16472_v63 }
 0x28f   : > { %13696 = vmatprep.mubr.bf16.mxu0 %v16498_v35 }
 0x296   : > { %13697 = vmatmul.mubr.bf16.gmra.mxu0 %v16509_v52  ;;  %v16643_v52 = vrot.slane %v16433_v15, %v1249_v62 }
 0x297   : > { %13700 = vmatprep.mubr.bf16.mxu0 %v16518_v55 }
 0x29e   : > { %13701 = vmatmul.mubr.bf16.gmra.mxu0 %v16533_v38 }
 0x29f   : > { %13704 = vmatprep.mubr.bf16.mxu0 %v16544_v26  ;;  %v1020_v26 = vsub.s32 4, %v16416_v6 }
 0x2a1   : > { %v16653_v23 = vrot.slane %v16433_v15, %v1020_v26 }
 0x2a6   : > { %13705 = vmatmul.mubr.bf16.gmra.mxu0 %v16555_v12 }
 0x2a7   : > { %13708 = vmatprep.mubr.bf16.mxu0 %v16564_v46 }
 0x2ae   : > { %13709 = vmatmul.mubr.bf16.gmra.mxu0 %v16574_v8 }
 0x2af   : > { %v13598_v22 = vpop.f32.mrf.mxu0  ;;  %v13646_v58 = vpop.f32.mrf.mxu1  ;;  %13712 = vmatprep.mubr.bf16.mxu0 %v16584_v39 }
 0x2b0   : > { %v1326_v0 = vadd.f32 %v13646_v58, %v16643_v52  ;;  %v1113_v3 = vadd.f32 %v13598_v22, %v16653_v23 }
 0x2b1   : > { %v1104_v30 = vpop.f32.mrf.mxu0  ;;  %v1317_v63 = vpop.f32.mrf.mxu1 }
 0x2b2   : > { %v1318_v12 = vadd.f32 %v1317_v63, %v16643_v52 }
 0x2b3   : > { %v13647_v35 = vpop.f32.mrf.mxu1  ;;  %v13599_v55 = vpop.f32.mrf.mxu0 }
 0x2b4   : > { %v1329_v59 = vadd.f32 %v13647_v35, %v16643_v52 }
 0x2b5   : > { %v1320_v38 = vpop.f32.mrf.mxu1  ;;  %v1107_v39 = vpop.f32.mrf.mxu0 }
 0x2b6   : > { %v1321_v46 = vadd.f32 %v1320_v38, %v16643_v52  ;;  %13713 = vmatmul.mubr.bf16.gmra.mxu0 %v16594_v34  ;;  %v1108_v60 = vadd.f32 %v1107_v39, %v16653_v23  ;;  %v1105_v34 = vadd.f32 %v1104_v30, %v16653_v23  ;;  %v16662_v7 = vpack.c.bf16 %v1329_v59, %v1326_v0 }
 0x2b7   : > { %13716 = vmatprep.mubr.bf16.mxu0 %v16603_v24 }
 0x2b8   : > { %v16650_v8 = vpack.c.bf16 %v1321_v46, %v1318_v12  ;;  %v16665_v24 = vpack.c.bf16 %v1108_v60, %v1105_v34  ;;  %v1741_v51 = vsel %vm1689_vm1, %v16662_v7, 0 }
 0x2ba   : > { %v1694_v50 = vsel %vm1689_vm1, %v16650_v8, 0 }
 0x2bb   : > { %13725 = vmatpush3.bf16.xpose.msra.mxu1 %v1694_v50 }
 0x2bc   : > { %13730 = vmatprep.subr.bf16.mxu1 %v20793_v48 }
 0x2be   : > { %13717 = vmatmul.mubr.bf16.gmra.mxu0 %v16610_v27  ;;  %v1116_v27 = vadd.f32 %v13599_v55, %v16653_v23 }
 0x2bf   : > { %v13602_v15 = vpop.f32.mrf.mxu0  ;;  %v13650_v61 = vpop.f32.mrf.mxu1  ;;  %13720 = vmatprep.mubr.bf16.mxu0 %v1016_v11 }
 0x2c0   : > { %v16682_v41 = vpack.c.bf16 %v1116_v27, %v1113_v3  ;;  %v1342_v4 = vadd.f32 %v13650_v61, %v16643_v52  ;;  %v1129_v55 = vadd.f32 %v13602_v15, %v16653_v23 }
 0x2c1   : > { %v1120_v28 = vpop.f32.mrf.mxu0  ;;  %v1333_v25 = vpop.f32.mrf.mxu1 }
 0x2c2   : > { %13727 = vmatmul.mubr.msk.bf16.vlgmr.msra.gmra.mxu1 %vm1689_vm1, %v16665_v24  ;;  %v1334_v18 = vadd.f32 %v1333_v25, %v16643_v52  ;;  %v1121_v43 = vadd.f32 %v1120_v28, %v16653_v23 }
 0x2c3   : > { %v13603_v13 = vpop.f32.mrf.mxu0  ;;  %v13651_v45 = vpop.f32.mrf.mxu1  ;;  %13731 = vmatpush3.bf16.xpose.msra.mxu1 %v1741_v51  ;;  %13732 = vmatprep.mubr.msk.bf16.mxu1 %vm15776_vm0, %v20793_v48 }
 0x2c4   : > { %13736 = vmatprep.subr.bf16.mxu1 %v20793_v48  ;;  %v1345_v42 = vadd.f32 %v13651_v45, %v16643_v52  ;;  %v1132_v62 = vadd.f32 %v13603_v13, %v16653_v23 }
 0x2c5   : > { %v1123_v31 = vpop.f32.mrf.mxu0  ;;  %v1336_v33 = vpop.f32.mrf.mxu1 }
 0x2c6   : > { %v1337_v47 = vadd.f32 %v1336_v33, %v16643_v52  ;;  %13721 = vmatmul.mubr.bf16.gmra.mxu0 %v1017_v5  ;;  %v1124_v14 = vadd.f32 %v1123_v31, %v16653_v23  ;;  %v16699_v37 = vpack.c.bf16 %v1345_v42, %v1342_v4  ;;  %v16732_v46 = vpack.c.bf16 %v1132_v62, %v1129_v55 }
 0x2c7   : > { %v16678_v54 = vpop.f32.mrf.mxu0  ;;  %v13654_v44 = vpop.f32.mrf.mxu1  ;;  %13774 = vmatprep.mubr.msk.bf16.mxu0 %vm15776_vm0, %v20793_v48 }
 0x2c8   : > { %v16684_v56 = vpack.c.bf16 %v1337_v47, %v1334_v18  ;;  %20980 = vst [vmem:[#allocation33_spill] sm:$0xff] %v16699_v37  ;;  %v16705_v11 = vpack.c.bf16 %v1124_v14, %v1121_v43  ;;  %v1835_v5 = vsel %vm1689_vm1, %v16699_v37, 0  ;;  %v1358_v15 = vadd.f32 %v13654_v44, %v16643_v52 }
 0x2c9   : > { %v1136_v2 = vpop.f32.mrf.mxu0  ;;  %v1349_v29 = vpop.f32.mrf.mxu1 }
 0x2ca   : > { %20979 = vst [vmem:[#allocation32_spill] sm:$0xff] %v16684_v56  ;;  %13733 = vmatmul.mubr.msk.bf16.vlgmr.msra.gmra.mxu1 %vm1689_vm1, %v16682_v41  ;;  %v1788_v21 = vsel %vm1689_vm1, %v16684_v56, 0  ;;  %v1350_v30 = vadd.f32 %v1349_v29, %v16643_v52  ;;  %v1137_v51 = vadd.f32 %v1136_v2, %v16653_v23 }
 0x2cb   : > { %v16691_v36 = vpop.f32.mrf.mxu0  ;;  %v13655_v49 = vpop.f32.mrf.mxu1  ;;  %13737 = vmatpush3.bf16.xpose.msra.mxu1 %v1788_v21  ;;  %13738 = vmatprep.mubr.msk.bf16.mxu1 %vm15776_vm0, %v20793_v48 }
 0x2cc   : > { %13742 = vmatprep.subr.bf16.mxu1 %v20793_v48  ;;  %v1361_v50 = vadd.f32 %v13655_v49, %v16643_v52  ;;  %v1148_v4 = vadd.f32 %v16691_v36, %v16653_v23 }
 0x2cd   : > { %v1139_v10 = vpop.f32.mrf.mxu0  ;;  %v1352_v9 = vpop.f32.mrf.mxu1 }
 0x2ce   : > { %v1353_v20 = vadd.f32 %v1352_v9, %v16643_v52  ;;  %v1140_v61 = vadd.f32 %v1139_v10, %v16653_v23  ;;  %v16749_v13 = vpack.c.bf16 %v1361_v50, %v1358_v15  ;;  %v1145_v9 = vadd.f32 %v16678_v54, %v16653_v23 }
 0x2cf   : > { %v16701_v32 = vpop.f32.mrf.mxu0  ;;  %v16703_v53 = vpop.f32.mrf.mxu1 }
 0x2d0   : > { %v16726_v38 = vpack.c.bf16 %v1353_v20, %v1350_v30  ;;  %20982 = vst [vmem:[#allocation35_spill] sm:$0xff] %v16749_v13  ;;  %v16757_v3 = vpack.c.bf16 %v1140_v61, %v1137_v51  ;;  %v1929_v2 = vsel %vm1689_vm1, %v16749_v13, 0  ;;  %v16791_v55 = vpack.c.bf16 %v1148_v4, %v1145_v9 }
 0x2d1   : > { %v16707_v17 = vpop.f32.mrf.mxu0  ;;  %v1365_v16 = vpop.f32.mrf.mxu1 }
 0x2d2   : > { %13739 = vmatmul.mubr.msk.bf16.vlgmr.msra.gmra.mxu1 %vm1689_vm1, %v16705_v11  ;;  %20981 = vst [vmem:[#allocation34_spill] sm:$0xff] %v16726_v38  ;;  %v1882_v0 = vsel %vm1689_vm1, %v16726_v38, 0  ;;  %v1366_v14 = vadd.f32 %v1365_v16, %v16643_v52 }
 0x2d3   : > { %v16714_v22 = vpop.f32.mrf.mxu0  ;;  %v16716_v58 = vpop.f32.mrf.mxu1  ;;  %13743 = vmatpush3.bf16.xpose.msra.mxu1 %v1835_v5  ;;  %13744 = vmatprep.mubr.msk.bf16.mxu1 %vm15776_vm0, %v20793_v48 }
 0x2d4   : > { %13748 = vmatprep.subr.bf16.mxu1 %v20793_v48  ;;  %v1377_v15 = vadd.f32 %v16716_v58, %v16643_v52 }
 0x2d5   : > { %v16723_v63 = vpop.f32.mrf.mxu0  ;;  %v1368_v35 = vpop.f32.mrf.mxu1 }
 0x2d6   : > { %v1369_v29 = vadd.f32 %v1368_v35, %v16643_v52  ;;  %v1156_v58 = vadd.f32 %v16723_v63, %v16653_v23 }
 0x2d7   : > { %v16728_v26 = vpop.f32.mrf.mxu0  ;;  %v16730_v12 = vpop.f32.mrf.mxu1 }
 0x2d8   : > { %v16782_v5 = vpack.c.bf16 %v1369_v29, %v1366_v14 }
 0x2d9   : > { %v1168_v39 = vpop.f32.mrf.mxu0  ;;  %v1381_v59 = vpop.f32.mrf.mxu1 }
 0x2da   : > { %13745 = vmatmul.mubr.msk.bf16.vlgmr.msra.gmra.mxu1 %vm1689_vm1, %v16732_v46  ;;  %v1382_v45 = vadd.f32 %v1381_v59, %v16643_v52  ;;  %20984 = vst [vmem:[#allocation37_spill] sm:$0xff] %v16782_v5  ;;  %v1169_v36 = vadd.f32 %v1168_v39, %v16653_v23  ;;  %v1976_v39 = vsel %vm1689_vm1, %v16782_v5, 0 }
 0x2db   : > { %v16739_v60 = vpop.f32.mrf.mxu0  ;;  %v16741_v34 = vpop.f32.mrf.mxu1  ;;  %13749 = vmatpush3.bf16.xpose.msra.mxu1 %v1882_v0  ;;  %13750 = vmatprep.mubr.msk.bf16.mxu1 %vm15776_vm0, %v20793_v48 }
 0x2dc   : > { %13754 = vmatprep.subr.bf16.mxu1 %v20793_v48 }
 0x2dd   : > { %v1171_v28 = vpop.f32.mrf.mxu0  ;;  %v1384_v25 = vpop.f32.mrf.mxu1 }
 0x2de   : > { %v1385_v27 = vadd.f32 %v1384_v25, %v16643_v52  ;;  %v1172_v10 = vadd.f32 %v1171_v28, %v16653_v23  ;;  %v1374_v25 = vadd.f32 %v16703_v53, %v16643_v52 }
 0x2df   : > { %v16753_v31 = vpop.f32.mrf.mxu0  ;;  %v16755_v33 = vpop.f32.mrf.mxu1 }
 0x2e0   : > { %v16759_v18 = vpack.c.bf16 %v1385_v27, %v1382_v45  ;;  %v16793_v59 = vpack.c.bf16 %v1172_v10, %v1169_v36  ;;  %v1153_v45 = vadd.f32 %v16707_v17, %v16653_v23  ;;  %v16820_v53 = vpack.c.bf16 %v1377_v15, %v1374_v25 }
 0x2e1   : > { %v1184_v47 = vpop.f32.mrf.mxu0  ;;  %v1397_v44 = vpop.f32.mrf.mxu1  ;;  %v1393_v10 = vadd.f32 %v16741_v34, %v16643_v52  ;;  %v1390_v34 = vadd.f32 %v16730_v12, %v16643_v52  ;;  %v1161_v36 = vadd.f32 %v16701_v32, %v16653_v23  ;;  %v1406_v15 = vadd.f32 %v16755_v33, %v16643_v52 }
 0x2e2   : > { %20983 = vst [vmem:[#allocation36_spill] sm:$0xff] %v16759_v18  ;;  %13751 = vmatmul.mubr.msk.bf16.vlgmr.msra.gmra.mxu1 %vm1689_vm1, %v16757_v3  ;;  %v2070_v42 = vsel %vm1689_vm1, %v16759_v18, 0  ;;  %v1398_v16 = vadd.f32 %v1397_v44, %v16643_v52  ;;  %20985 = vst [vmem:[#allocation38_spill] sm:$0xff] %v16793_v59  ;;  %v1185_v63 = vadd.f32 %v1184_v47, %v16653_v23  ;;  %v2023_v47 = vsel %vm1689_vm1, %v16820_v53, 0 }
 0x2e3   : > { %v16768_v21 = vpop.f32.mrf.mxu0  ;;  %v16770_v49 = vpop.f32.mrf.mxu1  ;;  %13755 = vmatpush3.bf16.xpose.msra.mxu1 %v1929_v2  ;;  %13773 = vmatpush3.bf16.xpose.msra.mxu0 %v2070_v42  ;;  %20987 = vst [vmem:[#allocation40_spill] sm:$0xff] %v16820_v53  ;;  %v16825_v42 = vpack.c.bf16 %v1156_v58, %v1153_v45 }
 0x2e4   : > { %13756 = vmatprep.mubr.msk.bf16.mxu1 %vm15776_vm0, %v20793_v48  ;;  %13760 = vmatprep.subr.bf16.mxu1 %v20793_v48  ;;  %v1196_v33 = vadd.f32 %v16768_v21, %v16653_v23 }
 0x2e5   : > { %v1187_v43 = vpop.f32.mrf.mxu0  ;;  %v1400_v20 = vpop.f32.mrf.mxu1  ;;  %13784 = vmatprep.subr.bf16.mxu0 %v20793_v48  ;;  %20988 = vst [vmem:[#allocation41_spill] sm:$0xff] %v16825_v42 }
 0x2e6   : > { %v1401_v62 = vadd.f32 %v1400_v20, %v16643_v52  ;;  %v1188_v51 = vadd.f32 %v1187_v43, %v16653_v23  ;;  %v1164_v43 = vadd.f32 %v16714_v22, %v16653_v23 }
 0x2e7   : > { %v16787_v30 = vpop.f32.mrf.mxu0  ;;  %v16789_v35 = vpop.f32.mrf.mxu1 }
 0x2e8   : > { %v16795_v54 = vpack.c.bf16 %v1401_v62, %v1398_v16  ;;  %v16827_v4 = vpack.c.bf16 %v1188_v51, %v1185_v63  ;;  %v16854_v16 = vpack.c.bf16 %v1393_v10, %v1390_v34  ;;  %v16857_v12 = vpack.c.bf16 %v1164_v43, %v1161_v36 }
 0x2e9   : > { %v1200_v50 = vpop.f32.mrf.mxu0  ;;  %v1413_v0 = vpop.f32.mrf.mxu1 }
 0x2ea   : > { %20986 = vst [vmem:[#allocation39_spill] sm:$0xff] %v16795_v54  ;;  %13757 = vmatmul.mubr.msk.bf16.vlgmr.msra.gmra.mxu1 %vm1689_vm1, %v16791_v55  ;;  %13775 = vmatmul.mubr.msk.bf16.vlgmr.msra.gmra.mxu0 %vm1689_vm1, %v16793_v59  ;;  %v2164_v61 = vsel %vm1689_vm1, %v16795_v54, 0  ;;  %v1414_v29 = vadd.f32 %v1413_v0, %v16643_v52  ;;  %20989 = vst [vmem:[#allocation42_spill] sm:$0xff] %v16827_v4  ;;  %v1201_v22 = vadd.f32 %v1200_v50, %v16653_v23 }
 0x2eb   : > { %v13671_v28 = vpop.f32.mrf.mxu1  ;;  %13761 = vmatpush3.bf16.xpose.msra.mxu1 %v1976_v39  ;;  %13785 = vmatpush3.bf16.xpose.msra.mxu0 %v2164_v61  ;;  %v13623_v27 = vpop.f32.mrf.mxu0  ;;  %20991 = vst [vmem:[#allocation44_spill] sm:$0xff] %v16854_v16  ;;  %20992 = vst [vmem:[#allocation45_spill] sm:$0xff] %v16857_v12  ;;  %v1409_v0 = vadd.f32 %v16770_v49, %v16643_v52  ;;  %v2117_v32 = vsel %vm1689_vm1, %v16854_v16, 0  ;;  %v1180_v50 = vadd.f32 %v16739_v60, %v16653_v23 }
 0x2ec   : > { %13762 = vmatprep.mubr.msk.bf16.mxu1 %vm15776_vm0, %v20793_v48  ;;  %13786 = vmatprep.mubr.msk.bf16.mxu0 %vm15776_vm0, %v20793_v48  ;;  %v1177_v49 = vadd.f32 %v16728_v26, %v16653_v23  ;;  %v1425_v25 = vadd.f32 %v13671_v28, %v16643_v52  ;;  %v1422_v26 = vadd.f32 %v16789_v35, %v16643_v52 }
 0x2ed   : > { %v1416_v44 = vpop.f32.mrf.mxu1  ;;  %13766 = vmatprep.subr.bf16.mxu1 %v20793_v48  ;;  %13796 = vmatprep.subr.bf16.mxu0 %v20793_v48  ;;  %v1203_v17 = vpop.f32.mrf.mxu0  ;;  %v16880_v39 = vpack.c.bf16 %v1409_v0, %v1406_v15  ;;  %v1193_v28 = vadd.f32 %v16753_v31, %v16653_v23  ;;  %v1212_v21 = vadd.f32 %v13623_v27, %v16653_v23 }
 0x2ee   : > { %v1417_v2 = vadd.f32 %v1416_v44, %v16643_v52  ;;  %v1204_v20 = vadd.f32 %v1203_v17, %v16653_v23  ;;  %v16882_v61 = vpack.c.bf16 %v1180_v50, %v1177_v49  ;;  %v16898_v58 = vpack.c.bf16 %v1425_v25, %v1422_v26 }
 0x2ef   : > { %20994 = vst [vmem:[#allocation47_spill] sm:$0xff] %v16880_v39  ;;  %v2211_v60 = vsel %vm1689_vm1, %v16880_v39, 0  ;;  %v16900_v51 = vpack.c.bf16 %v1196_v33, %v1193_v28  ;;  %v1209_v31 = vadd.f32 %v16787_v30, %v16653_v23  ;;  %v1462_v30 = vsub.s32 6, %v16416_v6 }
 0x2f0   : > { %v16829_v14 = vpack.c.bf16 %v1417_v2, %v1414_v29  ;;  %v16859_v62 = vpack.c.bf16 %v1204_v20, %v1201_v22  ;;  %20995 = vst [vmem:[#allocation48_spill] sm:$0xff] %v16882_v61  ;;  %20996 = vst [vmem:[#allocation49_spill] sm:$0xff] %v16898_v58  ;;  %v2305_v45 = vsel %vm1689_vm1, %v16898_v58, 0 }
 0x2f1   : > { %20997 = vst [vmem:[#allocation50_spill] sm:$0xff] %v16900_v51  ;;  %v16912_v35 = vpack.c.bf16 %v1212_v21, %v1209_v31 }
 0x2f2   : > { %20990 = vst [vmem:[#allocation43_spill] sm:$0xff] %v16829_v14  ;;  %13763 = vmatmul.mubr.msk.bf16.vlgmr.msra.gmra.mxu1 %vm1689_vm1, %v16825_v42  ;;  %13787 = vmatmul.mubr.msk.bf16.vlgmr.msra.gmra.mxu0 %vm1689_vm1, %v16827_v4  ;;  %v2258_v9 = vsel %vm1689_vm1, %v16829_v14, 0  ;;  %20993 = vst [vmem:[#allocation46_spill] sm:$0xff] %v16859_v62 }
 0x2f3   : > { %13767 = vmatpush3.bf16.xpose.msra.mxu1 %v2023_v47  ;;  %13797 = vmatpush3.bf16.xpose.msra.mxu0 %v2258_v9  ;;  %20998 = vst [vmem:[#allocation51_spill] sm:$0xff] %v16912_v35 }
 0x2f4   : > { %13768 = vmatprep.mubr.msk.bf16.mxu1 %vm15776_vm0, %v20793_v48  ;;  %13798 = vmatprep.mubr.msk.bf16.mxu0 %vm15776_vm0, %v20793_v48 }
 0x2f5   : > { %13778 = vmatprep.subr.bf16.mxu1 %v20793_v48  ;;  %13808 = vmatprep.subr.bf16.mxu0 %v20793_v48 }
 0x2fa   : > { %13769 = vmatmul.mubr.msk.bf16.vlgmr.msra.gmra.mxu1 %vm1689_vm1, %v16857_v12  ;;  %13799 = vmatmul.mubr.msk.bf16.vlgmr.msra.gmra.mxu0 %vm1689_vm1, %v16859_v62 }
 0x2fb   : > { %13779 = vmatpush3.bf16.xpose.msra.mxu1 %v2117_v32  ;;  %13780 = vmatprep.mubr.msk.bf16.mxu1 %vm15776_vm0, %v20793_v48  ;;  %v15448_v32 = vld [vmem:[%s16057_s1] sm:$0xff] }
 0x2fc   : > { %13790 = vmatprep.subr.bf16.mxu1 %v20793_v48  ;;  %13810 = vmatprep.mubr.msk.bf16.mxu0 %vm15776_vm0, %v20793_v48  ;;  %v16928_v50 = vrot.slane %v15448_v32, %v1462_v30 }
 0x302   : > { %13781 = vmatmul.mubr.msk.bf16.vlgmr.msra.gmra.mxu1 %vm1689_vm1, %v16882_v61 }
 0x303   : > { %13791 = vmatpush3.bf16.xpose.msra.mxu1 %v2211_v60  ;;  %13792 = vmatprep.mubr.msk.bf16.mxu1 %vm15776_vm0, %v20793_v48 }
 0x304   : > { %13802 = vmatprep.subr.bf16.mxu1 %v20793_v48 }
 0x30a   : > { %13793 = vmatmul.mubr.msk.bf16.vlgmr.msra.gmra.mxu1 %vm1689_vm1, %v16900_v51 }
 0x30b   : > { %13803 = vmatpush3.bf16.xpose.msra.mxu1 %v2305_v45  ;;  %13804 = vmatprep.mubr.msk.bf16.mxu1 %vm15776_vm0, %v20793_v48 }
 0x30c   : > { %13814 = vmatprep.subr.bf16.mxu1 %v20793_v48 }
 0x312   : > { %13805 = vmatmul.mubr.msk.bf16.vlgmr.msra.gmra.mxu1 %vm1689_vm1, %v16912_v35 }
 0x313   : > { %13816 = vmatprep.mubr.msk.bf16.mxu1 %vm15776_vm0, %v20793_v48 }
 0x346   : > { %v13626_v44 = vpop.f32.mrf.mxu0  ;;  %v13674_v63 = vpop.f32.mrf.mxu1 }
 0x347   : > { %v1438_v10 = vadd.f32 %v13674_v63, %v16643_v52 }
 0x348   : > { %v1216_v29 = vpop.f32.mrf.mxu0  ;;  %v1429_v2 = vpop.f32.mrf.mxu1 }
 0x349   : > { %v1430_v34 = vadd.f32 %v1429_v2, %v16643_v52  ;;  %v1217_v21 = vadd.f32 %v1216_v29, %v16653_v23 }
 0x34a   : > { %v13627_v17 = vpop.f32.mrf.mxu0  ;;  %v13675_v27 = vpop.f32.mrf.mxu1 }
 0x34b   : > { %v1441_v47 = vadd.f32 %v13675_v27, %v16643_v52  ;;  %v1228_v25 = vadd.f32 %v13627_v17, %v16653_v23 }
 0x34c   : > { %v1219_v9 = vpop.f32.mrf.mxu0  ;;  %v1432_v43 = vpop.f32.mrf.mxu1 }
 0x34d   : > { %v16922_v20 = vpack.c.bf16 %v1441_v47, %v1438_v10  ;;  %v1433_v36 = vadd.f32 %v1432_v43, %v16643_v52  ;;  %v1225_v52 = vadd.f32 %v13626_v44, %v16653_v23  ;;  %v1220_v26 = vadd.f32 %v1219_v9, %v16653_v23 }
 0x34e   : > { %v13694_v22 = vpop.f32.mrf.mxu0 }
 0x34f   : > { %20999 = vst [vmem:[#allocation52_spill] sm:$0xff] %v16922_v20  ;;  %v16925_v0 = vpack.c.bf16 %v1433_v36, %v1430_v34  ;;  %v2399_v15 = vsel %vm1689_vm1, %v16922_v20, 0  ;;  %v1555_v28 = vadd.f32 %v13694_v22, %v16928_v50  ;;  %v16942_v63 = vpack.c.bf16 %v1228_v25, %v1225_v52 }
 0x350   : > { %v1546_v49 = vpop.f32.mrf.mxu0  ;;  %13815 = vmatpush3.bf16.xpose.msra.mxu1 %v2399_v15  ;;  %v16948_v10 = vpack.c.bf16 %v1220_v26, %v1217_v21 }
 0x351   : > { %21000 = vst [vmem:[#allocation53_spill] sm:$0xff] %v16925_v0  ;;  %v2352_v60 = vsel %vm1689_vm1, %v16925_v0, 0  ;;  %13826 = vmatprep.subr.bf16.mxu1 %v20793_v48  ;;  %21001 = vst [vmem:[#allocation54_spill] sm:$0xff] %v16942_v63  ;;  %v1547_v2 = vadd.f32 %v1546_v49, %v16928_v50 }
 0x352   : > { %v13695_v33 = vpop.f32.mrf.mxu0  ;;  %13809 = vmatpush3.bf16.xpose.msra.mxu0 %v2352_v60  ;;  %21003 = vst [vmem:[#allocation56_spill] sm:$0xff] %v16948_v10 }
 0x353   : > { %v1558_v45 = vadd.f32 %v13695_v33, %v16928_v50  ;;  %13820 = vmatprep.subr.bf16.mxu0 %v20793_v48 }
 0x354   : > { %v1549_v31 = vpop.f32.mrf.mxu0 }
 0x355   : > { %v16945_v17 = vpack.c.bf16 %v1558_v45, %v1555_v28  ;;  %v1550_v27 = vadd.f32 %v1549_v31, %v16928_v50 }
 0x356   : > { %v13698_v44 = vpop.f32.mrf.mxu0 }
 0x357   : > { %21002 = vst [vmem:[#allocation55_spill] sm:$0xff] %v16945_v17  ;;  %v16950_v47 = vpack.c.bf16 %v1550_v27, %v1547_v2  ;;  %v1571_v30 = vadd.f32 %v13698_v44, %v16928_v50  ;;  %13817 = vmatmul.mubr.msk.bf16.vlgmr.msra.gmra.mxu1 %vm1689_vm1, %v16942_v63 }
 0x358   : > { %v1562_v23 = vpop.f32.mrf.mxu0  ;;  %13827 = vmatpush3.bf16.msra.mxu1 %v16945_v17  ;;  %13828 = vmatprep.mubr.msk.bf16.mxu1 %vm15776_vm0, %v20793_v48 }
 0x359   : > { %21004 = vst [vmem:[#allocation57_spill] sm:$0xff] %v16950_v47  ;;  %v1563_v29 = vadd.f32 %v1562_v23, %v16928_v50  ;;  %13811 = vmatmul.mubr.msk.bf16.vlgmr.msra.gmra.mxu0 %vm1689_vm1, %v16948_v10  ;;  %13838 = vmatprep.subr.bf16.mxu1 %v20793_v48 }
 0x35a   : > { %v13699_v9 = vpop.f32.mrf.mxu0  ;;  %13821 = vmatpush3.bf16.msra.mxu0 %v16950_v47  ;;  %13822 = vmatprep.mubr.msk.bf16.mxu0 %vm15776_vm0, %v20793_v48 }
 0x35b   : > { %v1574_v43 = vadd.f32 %v13699_v9, %v16928_v50  ;;  %13832 = vmatprep.subr.bf16.mxu0 %v20793_v48 }
 0x35c   : > { %v1565_v34 = vpop.f32.mrf.mxu0 }
 0x35d   : > { %v16967_v36 = vpack.c.bf16 %v1574_v43, %v1571_v30  ;;  %v1566_v22 = vadd.f32 %v1565_v34, %v16928_v50 }
 0x35e   : > { %v13702_v32 = vpop.f32.mrf.mxu0 }
 0x35f   : > { %21005 = vst [vmem:[#allocation58_spill] sm:$0xff] %v16967_v36  ;;  %v16970_v15 = vpack.c.bf16 %v1566_v22, %v1563_v29  ;;  %v1587_v49 = vadd.f32 %v13702_v32, %v16928_v50 }
 0x360   : > { %v1578_v25 = vpop.f32.mrf.mxu0 }
 0x361   : > { %21006 = vst [vmem:[#allocation59_spill] sm:$0xff] %v16970_v15  ;;  %v1579_v60 = vadd.f32 %v1578_v25, %v16928_v50 }
 0x362   : > { %v13703_v33 = vpop.f32.mrf.mxu0 }
 0x363   : > { %v1590_v52 = vadd.f32 %v13703_v33, %v16928_v50 }
 0x364   : > { %v1581_v26 = vpop.f32.mrf.mxu0 }
 0x365   : > { %v16975_v28 = vpack.c.bf16 %v1590_v52, %v1587_v49  ;;  %v1582_v45 = vadd.f32 %v1581_v26, %v16928_v50 }
 0x366   : > { %v13706_v21 = vpop.f32.mrf.mxu0 }
 0x367   : > { %21007 = vst [vmem:[#allocation60_spill] sm:$0xff] %v16975_v28  ;;  %v16978_v31 = vpack.c.bf16 %v1582_v45, %v1579_v60  ;;  %v1603_v2 = vadd.f32 %v13706_v21, %v16928_v50 }
 0x368   : > { %v1594_v27 = vpop.f32.mrf.mxu0 }
 0x369   : > { %21008 = vst [vmem:[#allocation61_spill] sm:$0xff] %v16978_v31  ;;  %v1595_v44 = vadd.f32 %v1594_v27, %v16928_v50 }
 0x36a   : > { %v13707_v30 = vpop.f32.mrf.mxu0 }
 0x36b   : > { %v1606_v23 = vadd.f32 %v13707_v30, %v16928_v50 }
 0x36c   : > { %v1597_v29 = vpop.f32.mrf.mxu0 }
 0x36d   : > { %v16983_v9 = vpack.c.bf16 %v1606_v23, %v1603_v2  ;;  %v1598_v43 = vadd.f32 %v1597_v29, %v16928_v50 }
 0x36e   : > { %v13710_v34 = vpop.f32.mrf.mxu0 }
 0x36f   : > { %21009 = vst [vmem:[#allocation62_spill] sm:$0xff] %v16983_v9  ;;  %v16986_v22 = vpack.c.bf16 %v1598_v43, %v1595_v44  ;;  %v1619_v32 = vadd.f32 %v13710_v34, %v16928_v50 }
 0x370   : > { %v1610_v49 = vpop.f32.mrf.mxu0 }
 0x371   : > { %21010 = vst [vmem:[#allocation63_spill] sm:$0xff] %v16986_v22  ;;  %v1611_v25 = vadd.f32 %v1610_v49, %v16928_v50 }
 0x372   : > { %v13711_v60 = vpop.f32.mrf.mxu0 }
 0x373   : > { %v1622_v33 = vadd.f32 %v13711_v60, %v16928_v50 }
 0x374   : > { %v1613_v52 = vpop.f32.mrf.mxu0 }
 0x375   : > { %v16991_v26 = vpack.c.bf16 %v1622_v33, %v1619_v32  ;;  %v1614_v45 = vadd.f32 %v1613_v52, %v16928_v50 }
 0x376   : > { %v13714_v21 = vpop.f32.mrf.mxu0 }
 0x377   : > { %21011 = vst [vmem:[#allocation64_spill] sm:$0xff] %v16991_v26  ;;  %v16994_v2 = vpack.c.bf16 %v1614_v45, %v1611_v25  ;;  %v1635_v27 = vadd.f32 %v13714_v21, %v16928_v50 }
 0x378   : > { %v1626_v44 = vpop.f32.mrf.mxu0 }
 0x379   : > { %21012 = vst [vmem:[#allocation65_spill] sm:$0xff] %v16994_v2  ;;  %v1627_v30 = vadd.f32 %v1626_v44, %v16928_v50 }
 0x37a   : > { %v13715_v23 = vpop.f32.mrf.mxu0 }
 0x37b   : > { %v1638_v29 = vadd.f32 %v13715_v23, %v16928_v50 }
 0x37c   : > { %v1629_v43 = vpop.f32.mrf.mxu0 }
 0x37d   : > { %v16999_v34 = vpack.c.bf16 %v1638_v29, %v1635_v27  ;;  %v1630_v49 = vadd.f32 %v1629_v43, %v16928_v50 }
 0x37e   : > { %v13718_v32 = vpop.f32.mrf.mxu0 }
 0x37f   : > { %21013 = vst [vmem:[#allocation66_spill] sm:$0xff] %v16999_v34  ;;  %v17002_v60 = vpack.c.bf16 %v1630_v49, %v1627_v30  ;;  %v1651_v33 = vadd.f32 %v13718_v32, %v16928_v50 }
 0x380   : > { %v1642_v25 = vpop.f32.mrf.mxu0 }
 0x381   : > { %21014 = vst [vmem:[#allocation67_spill] sm:$0xff] %v17002_v60  ;;  %v1643_v52 = vadd.f32 %v1642_v25, %v16928_v50 }
 0x382   : > { %v1730_v45 = vpop.f32.mrf.mxu1  ;;  %v13719_v21 = vpop.f32.mrf.mxu0 }
 0x383   : > { %v17006_v44 = vmul.f32 0.17677669, %v1730_v45  ;;  %v1654_v23 = vadd.f32 %v13719_v21, %v16928_v50 }
 0x384   : > { %v13728_v19 = vpop.f32.mrf.mxu1  ;;  %v1645_v27 = vpop.f32.mrf.mxu0 }
 0x385   : > { %v17009_v29 = vpack.c.bf16 %v1654_v23, %v1651_v33  ;;  %v1646_v43 = vadd.f32 %v1645_v27, %v16928_v50  ;;  %v2475_v30 = vsel %vm2474_vm2, %v17006_v44, -inf }
 0x386   : > { %2476 = vmax.xlane.f32.xlu0 %v2475_v30  ;;  %v1733_v49 = vpop.f32.mrf.mxu1  ;;  %v13722_v32 = vpop.f32.mrf.mxu0 }
 0x387   : > { %21015 = vst [vmem:[#allocation68_spill] sm:$0xff] %v17009_v29  ;;  %v17014_v25 = vpack.c.bf16 %v1646_v43, %v1643_v52  ;;  %v17016_v48 = vmul.f32 0.17677669, %v1733_v49  ;;  %v1667_v45 = vadd.f32 %v13722_v32, %v16928_v50 }
 0x388   : > { %v13729_v40 = vpop.f32.mrf.mxu1  ;;  %v1658_v21 = vpop.f32.mrf.mxu0 }
 0x389   : > { %21016 = vst [vmem:[#allocation69_spill] sm:$0xff] %v17014_v25  ;;  %v1659_v19 = vadd.f32 %v1658_v21, %v16928_v50  ;;  %v2478_v33 = vsel %vm2474_vm2, %v17016_v48, -inf }
 0x38a   : > { %2479 = vmax.xlane.f32.xlu1 %v2478_v33  ;;  %v1777_v23 = vpop.f32.mrf.mxu1  ;;  %v13723_v27 = vpop.f32.mrf.mxu0 }
 0x38b   : > { %v17022_v6 = vmul.f32 0.17677669, %v1777_v23  ;;  %v1670_v30 = vadd.f32 %v13723_v27, %v16928_v50 }
 0x38c   : > { %v13734_v52 = vpop.f32.mrf.mxu1  ;;  %v1661_v43 = vpop.f32.mrf.mxu0 }
 0x38d   : > { %v17025_v49 = vpack.c.bf16 %v1670_v30, %v1667_v45  ;;  %v1662_v32 = vadd.f32 %v1661_v43, %v16928_v50  ;;  %v2481_v40 = vsel %vm2474_vm2, %v17022_v6, -inf }
 0x38e   : > { %2482 = vmax.xlane.f32.xlu0 %v2481_v40  ;;  %v1780_v21 = vpop.f32.mrf.mxu1 }
 0x38f   : > { %21017 = vst [vmem:[#allocation70_spill] sm:$0xff] %v17025_v49  ;;  %v17030_v1 = vpack.c.bf16 %v1662_v32, %v1659_v19  ;;  %v17032_v33 = vmul.f32 0.17677669, %v1780_v21 }
 0x390   : > { %v13735_v57 = vpop.f32.mrf.mxu1 }
 0x391   : > { %21018 = vst [vmem:[#allocation71_spill] sm:$0xff] %v17030_v1  ;;  %v2484_v23 = vsel %vm2474_vm2, %v17032_v33, -inf }
 0x392   : > { %2485 = vmax.xlane.f32.xlu1 %v2484_v23  ;;  %v1824_v27 = vpop.f32.mrf.mxu1 }
 0x393   : > { %v17036_v52 = vmul.f32 0.17677669, %v1824_v27 }
 0x394   : > { %v13740_v45 = vpop.f32.mrf.mxu1 }
 0x395   : > { %v2487_v50 = vsel %vm2474_vm2, %v17036_v52, -inf }
 0x396   : > { %2488 = vmax.xlane.f32.xlu0 %v2487_v50  ;;  %v1827_v30 = vpop.f32.mrf.mxu1 }
 0x397   : > { %v17040_v43 = vmul.f32 0.17677669, %v1827_v30 }
 0x398   : > { %v13741_v19 = vpop.f32.mrf.mxu1 }
 0x399   : > { %v2490_v32 = vsel %vm2474_vm2, %v17040_v43, -inf }
 0x39a   : > { %2491 = vmax.xlane.f32.xlu1 %v2490_v32  ;;  %v1871_v57 = vpop.f32.mrf.mxu1 }
 0x39b   : > { %v17044_v40 = vmul.f32 0.17677669, %v1871_v57 }
 0x39c   : > { %v13746_v21 = vpop.f32.mrf.mxu1 }
 0x39d   : > { %v2493_v23 = vsel %vm2474_vm2, %v17044_v40, -inf }
 0x39e   : > { %2494 = vmax.xlane.f32.xlu0 %v2493_v23  ;;  %v1874_v27 = vpop.f32.mrf.mxu1 }
 0x39f   : > { %v17048_v45 = vmul.f32 0.17677669, %v1874_v27 }
 0x3a0   : > { %v13747_v50 = vpop.f32.mrf.mxu1 }
 0x3a1   : > { %v2496_v30 = vsel %vm2474_vm2, %v17048_v45, -inf }
 0x3a2   : > { %2497 = vmax.xlane.f32.xlu1 %v2496_v30  ;;  %v1918_v19 = vpop.f32.mrf.mxu1 }
 0x3a3   : > { %v17052_v49 = vmul.f32 0.17677669, %v1918_v19 }
 0x3a4   : > { %v13752_v32 = vpop.f32.mrf.mxu1 }
 0x3a5   : > { %v2499_v57 = vsel %vm2474_vm2, %v17052_v49, -inf }
 0x3a6   : > { %2500 = vmax.xlane.f32.xlu0 %v2499_v57  ;;  %v1921_v21 = vpop.f32.mrf.mxu1 }
 0x3a7   : > { %v17056_v17 = vmul.f32 0.17677669, %v1921_v21 }
 0x3a8   : > { %v13753_v23 = vpop.f32.mrf.mxu1 }
 0x3a9   : > { %v2502_v27 = vsel %vm2474_vm2, %v17056_v17, -inf }
 0x3aa   : > { %2503 = vmax.xlane.f32.xlu1 %v2502_v27  ;;  %v1965_v50 = vpop.f32.mrf.mxu1  ;;  %v2106_v63 = vpop.f32.mrf.mxu0 }
 0x3ab   : > { %v17060_v20 = vmul.f32 0.17677669, %v1965_v50  ;;  %v17080_v13 = vmul.f32 0.17677669, %v2106_v63 }
 0x3ac   : > { %v13758_v30 = vpop.f32.mrf.mxu1  ;;  %v13776_v19 = vpop.f32.mrf.mxu0 }
 0x3ad   : > { %v2505_v32 = vsel %vm2474_vm2, %v17060_v20, -inf }
 0x3ae   : > { %2506 = vmax.xlane.f32.xlu0 %v2505_v32  ;;  %v1968_v0 = vpop.f32.mrf.mxu1  ;;  %v2109_v57 = vpop.f32.mrf.mxu0 }
 0x3af   : > { %v17064_v58 = vmul.f32 0.17677669, %v1968_v0  ;;  %v17074_v18 = vmul.f32 0.17677669, %v2109_v57 }
 0x3b0   : > { %v13759_v21 = vpop.f32.mrf.mxu1  ;;  %v13777_v23 = vpop.f32.mrf.mxu0 }
 0x3b1   : > { %v2508_v14 = vsel %vm2474_vm2, %v17064_v58, -inf }
 0x3b2   : > { %2509 = vmax.xlane.f32.xlu1 %v2508_v14  ;;  %v2012_v27 = vpop.f32.mrf.mxu1  ;;  %v2200_v39 = vpop.f32.mrf.mxu0 }
 0x3b3   : > { %v17068_v50 = vmul.f32 0.17677669, %v2012_v27 }
 0x3b4   : > { %v13764_v30 = vpop.f32.mrf.mxu1  ;;  %v13788_v19 = vpop.f32.mrf.mxu0 }
 0x3b5   : > { %v2511_v54 = vsel %vm2474_vm2, %v17068_v50, -inf }
 0x3b6   : > { %2512 = vmax.xlane.f32.xlu0 %v2511_v54  ;;  %v2015_v32 = vpop.f32.mrf.mxu1  ;;  %v2203_v16 = vpop.f32.mrf.mxu0 }
 0x3b7   : > { %v17072_v0 = vmul.f32 0.17677669, %v2015_v32  ;;  %v2526_v32 = vsel %vm2474_vm2, %v17074_v18, -inf }
 0x3b8   : > { %v13765_v21 = vpop.f32.mrf.mxu1  ;;  %v13789_v23 = vpop.f32.mrf.mxu0 }
 0x3b9   : > { %v2514_v14 = vsel %vm2474_vm2, %v17072_v0, -inf }
 0x3ba   : > { %2515 = vmax.xlane.f32.xlu1 %v2514_v14  ;;  %v2059_v27 = vpop.f32.mrf.mxu1  ;;  %v2294_v53 = vpop.f32.mrf.mxu0 }
 0x3bb   : > { %v17078_v30 = vmul.f32 0.17677669, %v2059_v27  ;;  %v17088_v27 = vmul.f32 0.17677669, %v2203_v16  ;;  %v17112_v10 = vmul.f32 0.17677669, %v2294_v53 }
 0x3bc   : > { %v13770_v19 = vpop.f32.mrf.mxu1  ;;  %v13800_v5 = vpop.f32.mrf.mxu0 }
 0x3bd   : > { %v2517_v54 = vsel %vm2474_vm2, %v17078_v30, -inf  ;;  %v2523_v5 = vsel %vm2474_vm2, %v17080_v13, -inf }
 0x3be   : > { %2518 = vmax.xlane.f32.xlu0 %v2517_v54  ;;  %v2062_v57 = vpop.f32.mrf.mxu1  ;;  %2527 = vmax.xlane.f32.xlu1 %v2526_v32  ;;  %v2297_v21 = vpop.f32.mrf.mxu0  ;;  %v17096_v32 = vmul.f32 0.17677669, %v2200_v39 }
 0x3bf   : > { %v17086_v23 = vmul.f32 0.17677669, %v2062_v57  ;;  %v17104_v56 = vmul.f32 0.17677669, %v2297_v21 }
 0x3c0   : > { %v13771_v14 = vpop.f32.mrf.mxu1  ;;  %v13801_v38 = vpop.f32.mrf.mxu0 }
 0x3c1   : > { %v2520_v63 = vsel %vm2474_vm2, %v17086_v23, -inf  ;;  %v2538_v38 = vsel %vm2474_vm2, %v17088_v27, -inf }
 0x3c2   : > { %v2153_v19 = vpop.f32.mrf.mxu1  ;;  %2524 = vmax.xlane.f32.xlu0 %v2523_v5  ;;  %2521 = vmax.xlane.f32.xlu1 %v2520_v63  ;;  %v2535_v5 = vsel %vm2474_vm2, %v17096_v32, -inf }
 0x3c3   : > { %v17094_v37 = vmul.f32 0.17677669, %v2153_v19 }
 0x3c4   : > { %v13782_v54 = vpop.f32.mrf.mxu1 }
 0x3c5   : > { %v2529_v57 = vsel %vm2474_vm2, %v17094_v37, -inf }
 0x3c6   : > { %v2156_v16 = vpop.f32.mrf.mxu1  ;;  %2530 = vmax.xlane.f32.xlu0 %v2529_v57  ;;  %2539 = vmax.xlane.f32.xlu1 %v2538_v38 }
 0x3c7   : > { %v17102_v14 = vmul.f32 0.17677669, %v2156_v16 }
 0x3c8   : > { %v13783_v47 = vpop.f32.mrf.mxu1 }
 0x3c9   : > { %v2532_v39 = vsel %vm2474_vm2, %v17102_v14, -inf  ;;  %v2550_v47 = vsel %vm2474_vm2, %v17104_v56, -inf }
 0x3ca   : > { %v2247_v63 = vpop.f32.mrf.mxu1  ;;  %2536 = vmax.xlane.f32.xlu0 %v2535_v5  ;;  %2533 = vmax.xlane.f32.xlu1 %v2532_v39  ;;  %v2547_v5 = vsel %vm2474_vm2, %v17112_v10, -inf }
 0x3cb   : > { %v17110_v19 = vmul.f32 0.17677669, %v2247_v63 }
 0x3cc   : > { %v13794_v54 = vpop.f32.mrf.mxu1 }
 0x3cd   : > { %v2541_v57 = vsel %vm2474_vm2, %v17110_v19, -inf }
 0x3ce   : > { %v2250_v21 = vpop.f32.mrf.mxu1  ;;  %2542 = vmax.xlane.f32.xlu0 %v2541_v57  ;;  %2551 = vmax.xlane.f32.xlu1 %v2550_v47 }
 0x3cf   : > { %v17118_v38 = vmul.f32 0.17677669, %v2250_v21 }
 0x3d0   : > { %v13795_v16 = vpop.f32.mrf.mxu1 }
 0x3d1   : > { %v2544_v39 = vsel %vm2474_vm2, %v17118_v38, -inf }
 0x3d2   : > { %v2341_v53 = vpop.f32.mrf.mxu1  ;;  %2548 = vmax.xlane.f32.xlu0 %v2547_v5  ;;  %2545 = vmax.xlane.f32.xlu1 %v2544_v39 }
 0x3d3   : > { %v17124_v63 = vmul.f32 0.17677669, %v2341_v53 }
 0x3d4   : > { %v13806_v54 = vpop.f32.mrf.mxu1 }
 0x3d5   : > { %v2553_v29 = vsel %vm2474_vm2, %v17124_v63, -inf }
 0x3d6   : > { %v2344_v57 = vpop.f32.mrf.mxu1  ;;  %2554 = vmax.xlane.f32.xlu0 %v2553_v29 }
 0x3d8   : > { %v13807_v47 = vpop.f32.mrf.mxu1 }
 0x40f   : > { %v2477_v21 = vpop.xlane.xlu0 %2476 }
 0x410   : > { %v2571_v16 = vsub.f32 %v17006_v44, %v2477_v21 }
 0x412   : > { %v2603_v1 = vmul.f32 1.442695, %v2571_v16  ;;  %v17140_v16 = vmul.f32 0.17677669, %v2344_v57 }
 0x413   : > { %v2480_v35 = vpop.xlane.xlu1 %2479 }
 0x414   : > { %14872 = vpow2.f32 %v2603_v1  ;;  %v2572_v62 = vsub.f32 %v17016_v48, %v2480_v35  ;;  %v2556_v57 = vsel %vm2474_vm2, %v17140_v16, -inf }
 0x416   : > { %v2605_v34 = vmul.f32 1.442695, %v2572_v62 }
 0x417   : > { %v2483_v5 = vpop.xlane.xlu0 %2482  ;;  %v2435_v39 = vpop.f32.mrf.mxu1 }
 0x418   : > { %v2573_v53 = vsub.f32 %v17022_v6, %v2483_v5  ;;  %14874 = vpow2.f32 %v2605_v34  ;;  %v17133_v44 = vmul.f32 0.17677669, %v2435_v39 }
 0x419   : > { %v2388_v54 = vpop.f32.mrf.mxu0  ;;  %v13818_v25 = vpop.f32.mrf.mxu1 }
 0x41a   : > { %v2607_v51 = vmul.f32 1.442695, %v2573_v53  ;;  %v17131_v4 = vmul.f32 0.17677669, %v2388_v54 }
 0x41b   : > { %v2486_v29 = vpop.xlane.xlu1 %2485  ;;  %v13812_v47 = vpop.f32.mrf.mxu0 }
 0x41c   : > { %14876 = vpow2.f32 %v2607_v51  ;;  %v2574_v1 = vsub.f32 %v17032_v33, %v2486_v29  ;;  %v2438_v21 = vpop.f32.mrf.mxu1  ;;  %v2559_v48 = vsel %vm2474_vm2, %v17131_v4, -inf  ;;  %v2565_v33 = vsel %vm2474_vm2, %v17133_v44, -inf }
 0x41d   : > { %2560 = vmax.xlane.f32.xlu0 %v2559_v48  ;;  %v2391_v62 = vpop.f32.mrf.mxu0  ;;  %v17151_v47 = vmul.f32 0.17677669, %v2438_v21 }
 0x41e   : > { %v2609_v6 = vmul.f32 1.442695, %v2574_v1  ;;  %v13819_v35 = vpop.f32.mrf.mxu1  ;;  %v17138_v25 = vmul.f32 0.17677669, %v2391_v62 }
 0x41f   : > { %v2489_v34 = vpop.xlane.xlu0 %2488  ;;  %v13813_v5 = vpop.f32.mrf.mxu0 }
 0x420   : > { %14878 = vpow2.f32 %v2609_v6  ;;  %v2575_v51 = vsub.f32 %v17036_v52, %v2489_v34  ;;  %v2562_v39 = vsel %vm2474_vm2, %v17138_v25, -inf  ;;  %v2568_v34 = vsel %vm2474_vm2, %v17151_v47, -inf }
 0x421   : > { %v17147_v53 = vpop.eup %14872  ;;  %2566 = vmax.xlane.f32.xlu0 %v2565_v33  ;;  %2563 = vmax.xlane.f32.xlu1 %v2562_v39 }
 0x422   : > { %v2611_v54 = vmul.f32 1.442695, %v2575_v51  ;;  %v2667_v1 = vsel %vm2474_vm2, %v17147_v53, 0.0 }
 0x423   : > { %v2492_v29 = vpop.xlane.xlu1 %2491 }
 0x424   : > { %14880 = vpow2.f32 %v2611_v54  ;;  %v2576_v52 = vsub.f32 %v17040_v43, %v2492_v29 }
 0x425   : > { %2668 = vadd.xlane.f32.xlu0 %v2667_v1  ;;  %2557 = vmax.xlane.f32.xlu1 %v2556_v57  ;;  %v17156_v6 = vpop.eup %14874 }
 0x426   : > { %v2613_v48 = vmul.f32 1.442695, %v2576_v52  ;;  %v2670_v39 = vsel %vm2474_vm2, %v17156_v6, 0.0 }
 0x427   : > { %v2495_v62 = vpop.xlane.xlu0 %2494 }
 0x428   : > { %14882 = vpow2.f32 %v2613_v48  ;;  %v2577_v35 = vsub.f32 %v17044_v40, %v2495_v62 }
 0x429   : > { %v17161_v21 = vpop.eup %14876  ;;  %2569 = vmax.xlane.f32.xlu1 %v2568_v34 }
 0x42a   : > { %v2615_v5 = vmul.f32 1.442695, %v2577_v35  ;;  %v2673_v43 = vsel %vm2474_vm2, %v17161_v21, 0.0 }
 0x42b   : > { %v2498_v51 = vpop.xlane.xlu1 %2497  ;;  %2674 = vadd.xlane.f32.xlu0 %v2673_v43 }
 0x42c   : > { %14884 = vpow2.f32 %v2615_v5  ;;  %v2578_v33 = vsub.f32 %v17048_v45, %v2498_v51 }
 0x42d   : > { %v17168_v54 = vpop.eup %14878  ;;  %2671 = vadd.xlane.f32.xlu1 %v2670_v39 }
 0x42e   : > { %v2617_v40 = vmul.f32 1.442695, %v2578_v33  ;;  %v2676_v52 = vsel %vm2474_vm2, %v17168_v54, 0.0 }
 0x42f   : > { %v2501_v29 = vpop.xlane.xlu0 %2500 }
 0x430   : > { %14886 = vpow2.f32 %v2617_v40  ;;  %v2579_v57 = vsub.f32 %v17052_v49, %v2501_v29 }
 0x431   : > { %v17173_v1 = vpop.eup %14880  ;;  %2677 = vadd.xlane.f32.xlu1 %v2676_v52 }
 0x432   : > { %v2619_v48 = vmul.f32 1.442695, %v2579_v57  ;;  %v2679_v45 = vsel %vm2474_vm2, %v17173_v1, 0.0 }
 0x433   : > { %v2504_v62 = vpop.xlane.xlu1 %2503  ;;  %2680 = vadd.xlane.f32.xlu0 %v2679_v45 }
 0x434   : > { %14888 = vpow2.f32 %v2619_v48  ;;  %v2580_v35 = vsub.f32 %v17056_v17, %v2504_v62 }
 0x435   : > { %v17178_v34 = vpop.eup %14882 }
 0x436   : > { %v2621_v5 = vmul.f32 1.442695, %v2580_v35  ;;  %v2682_v49 = vsel %vm2474_vm2, %v17178_v34, 0.0 }
 0x437   : > { %v2507_v43 = vpop.xlane.xlu0 %2506  ;;  %2683 = vadd.xlane.f32.xlu1 %v2682_v49 }
 0x438   : > { %14890 = vpow2.f32 %v2621_v5  ;;  %v2581_v51 = vsub.f32 %v17060_v20, %v2507_v43 }
 0x439   : > { %v17183_v33 = vpop.eup %14884 }
 0x43a   : > { %v2623_v39 = vmul.f32 1.442695, %v2581_v51  ;;  %v2685_v40 = vsel %vm2474_vm2, %v17183_v33, 0.0 }
 0x43b   : > { %v2510_v29 = vpop.xlane.xlu1 %2509  ;;  %2686 = vadd.xlane.f32.xlu0 %v2685_v40 }
 0x43c   : > { %14892 = vpow2.f32 %v2623_v39  ;;  %v2582_v17 = vsub.f32 %v17064_v58, %v2510_v29 }
 0x43d   : > { %v17188_v57 = vpop.eup %14886 }
 0x43e   : > { %v2625_v52 = vmul.f32 1.442695, %v2582_v17  ;;  %v2688_v48 = vsel %vm2474_vm2, %v17188_v57, 0.0 }
 0x43f   : > { %v2513_v45 = vpop.xlane.xlu0 %2512  ;;  %2689 = vadd.xlane.f32.xlu1 %v2688_v48 }
 0x440   : > { %14894 = vpow2.f32 %v2625_v52  ;;  %v2583_v20 = vsub.f32 %v17068_v50, %v2513_v45 }
 0x441   : > { %v17193_v62 = vpop.eup %14888 }
 0x442   : > { %v2627_v35 = vmul.f32 1.442695, %v2583_v20  ;;  %v2691_v5 = vsel %vm2474_vm2, %v17193_v62, 0.0 }
 0x443   : > { %v2516_v49 = vpop.xlane.xlu1 %2515  ;;  %2692 = vadd.xlane.f32.xlu0 %v2691_v5 }
 0x444   : > { %14896 = vpow2.f32 %v2627_v35  ;;  %v2584_v58 = vsub.f32 %v17072_v0, %v2516_v49 }
 0x445   : > { %v17198_v43 = vpop.eup %14890 }
 0x446   : > { %v2629_v51 = vmul.f32 1.442695, %v2584_v58  ;;  %v2694_v39 = vsel %vm2474_vm2, %v17198_v43, 0.0 }
 0x447   : > { %v2519_v40 = vpop.xlane.xlu0 %2518  ;;  %v2528_v29 = vpop.xlane.xlu1 %2527  ;;  %2695 = vadd.xlane.f32.xlu1 %v2694_v39 }
 0x448   : > { %14898 = vpow2.f32 %v2629_v51  ;;  %v2585_v50 = vsub.f32 %v17078_v30, %v2519_v40  ;;  %v2588_v17 = vsub.f32 %v17074_v18, %v2528_v29 }
 0x449   : > { %v17204_v52 = vpop.eup %14892 }
 0x44a   : > { %v2631_v48 = vmul.f32 1.442695, %v2585_v50  ;;  %v2637_v45 = vmul.f32 1.442695, %v2588_v17  ;;  %v2697_v0 = vsel %vm2474_vm2, %v17204_v52, 0.0 }
 0x44b   : > { %v2525_v20 = vpop.xlane.xlu0 %2524  ;;  %v2522_v35 = vpop.xlane.xlu1 %2521  ;;  %2698 = vadd.xlane.f32.xlu0 %v2697_v0 }
 0x44c   : > { %14900 = vpow2.f32 %v2631_v48  ;;  %v2587_v5 = vsub.f32 %v17080_v13, %v2525_v20  ;;  %v2586_v49 = vsub.f32 %v17086_v23, %v2522_v35 }
 0x44d   : > { %v17210_v58 = vpop.eup %14894  ;;  %14902 = vpow2.f32 %v2637_v45 }
 0x44e   : > { %v2635_v30 = vmul.f32 1.442695, %v2587_v5  ;;  %v2633_v18 = vmul.f32 1.442695, %v2586_v49  ;;  %v2700_v51 = vsel %vm2474_vm2, %v17210_v58, 0.0 }
 0x44f   : > { %v2531_v39 = vpop.xlane.xlu0 %2530  ;;  %v2540_v40 = vpop.xlane.xlu1 %2539  ;;  %2701 = vadd.xlane.f32.xlu1 %v2700_v51 }
 0x450   : > { %14904 = vpow2.f32 %v2635_v30  ;;  %v2589_v29 = vsub.f32 %v17094_v37, %v2531_v39  ;;  %v2592_v50 = vsub.f32 %v17088_v27, %v2540_v40 }
 0x451   : > { %v17216_v17 = vpop.eup %14896  ;;  %14906 = vpow2.f32 %v2633_v18 }
 0x452   : > { %v2639_v13 = vmul.f32 1.442695, %v2589_v29  ;;  %v2645_v23 = vmul.f32 1.442695, %v2592_v50  ;;  %v2703_v48 = vsel %vm2474_vm2, %v17216_v17, 0.0 }
 0x453   : > { %v2537_v45 = vpop.xlane.xlu0 %2536  ;;  %v2534_v0 = vpop.xlane.xlu1 %2533  ;;  %2704 = vadd.xlane.f32.xlu0 %v2703_v48 }
 0x454   : > { %14908 = vpow2.f32 %v2639_v13  ;;  %v2591_v20 = vsub.f32 %v17096_v32, %v2537_v45  ;;  %v2590_v35 = vsub.f32 %v17102_v14, %v2534_v0 }
 0x455   : > { %v17222_v5 = vpop.eup %14898  ;;  %14910 = vpow2.f32 %v2645_v23 }
 0x456   : > { %v2643_v37 = vmul.f32 1.442695, %v2591_v20  ;;  %v2641_v27 = vmul.f32 1.442695, %v2590_v35  ;;  %v2706_v49 = vsel %vm2474_vm2, %v17222_v5, 0.0 }
 0x457   : > { %v2543_v30 = vpop.xlane.xlu0 %2542  ;;  %v2552_v18 = vpop.xlane.xlu1 %2551  ;;  %2707 = vadd.xlane.f32.xlu1 %v2706_v49 }
 0x458   : > { %14912 = vpow2.f32 %v2643_v37  ;;  %v2593_v51 = vsub.f32 %v17110_v19, %v2543_v30  ;;  %v2596_v39 = vsub.f32 %v17104_v56, %v2552_v18 }
 0x459   : > { %v17228_v40 = vpop.eup %14900  ;;  %14914 = vpow2.f32 %v2641_v27 }
 0x45a   : > { %v17230_v32 = vpop.eup %14902  ;;  %v2647_v14 = vmul.f32 1.442695, %v2593_v51  ;;  %v2653_v29 = vmul.f32 1.442695, %v2596_v39  ;;  %v2709_v50 = vsel %vm2474_vm2, %v17228_v40, 0.0 }
 0x45b   : > { %v2549_v13 = vpop.xlane.xlu0 %2548  ;;  %v2546_v23 = vpop.xlane.xlu1 %2545  ;;  %2710 = vadd.xlane.f32.xlu0 %v2709_v50  ;;  %v2718_v48 = vsel %vm2474_vm2, %v17230_v32, 0.0 }
 0x45c   : > { %14916 = vpow2.f32 %v2647_v14  ;;  %v2595_v19 = vsub.f32 %v17112_v10, %v2549_v13  ;;  %v2594_v56 = vsub.f32 %v17118_v38, %v2546_v23  ;;  %2719 = vadd.xlane.f32.xlu1 %v2718_v48 }
 0x45d   : > { %v17238_v45 = vpop.eup %14904  ;;  %14918 = vpow2.f32 %v2653_v29 }
 0x45e   : > { %v17240_v0 = vpop.eup %14906  ;;  %v2651_v20 = vmul.f32 1.442695, %v2595_v19  ;;  %v2649_v35 = vmul.f32 1.442695, %v2594_v56  ;;  %v2715_v37 = vsel %vm2474_vm2, %v17238_v45, 0.0 }
 0x45f   : > { %v2555_v27 = vpop.xlane.xlu0 %2554  ;;  %2716 = vadd.xlane.f32.xlu0 %v2715_v37  ;;  %v2712_v49 = vsel %vm2474_vm2, %v17240_v0, 0.0 }
 0x460   : > { %14920 = vpow2.f32 %v2651_v20  ;;  %v2597_v10 = vsub.f32 %v17124_v63, %v2555_v27  ;;  %2713 = vadd.xlane.f32.xlu1 %v2712_v49 }
 0x461   : > { %v17247_v38 = vpop.eup %14908  ;;  %14922 = vpow2.f32 %v2649_v35 }
 0x462   : > { %v17249_v30 = vpop.eup %14910  ;;  %v2655_v18 = vmul.f32 1.442695, %v2597_v10  ;;  %v2721_v51 = vsel %vm2474_vm2, %v17247_v38, 0.0 }
 0x463   : > { %2722 = vadd.xlane.f32.xlu0 %v2721_v51  ;;  %v2730_v39 = vsel %vm2474_vm2, %v17249_v30, 0.0 }
 0x464   : > { %14924 = vpow2.f32 %v2655_v18  ;;  %2731 = vadd.xlane.f32.xlu1 %v2730_v39 }
 0x465   : > { %v17255_v14 = vpop.eup %14912 }
 0x466   : > { %v17257_v29 = vpop.eup %14914  ;;  %v2727_v63 = vsel %vm2474_vm2, %v17255_v14, 0.0 }
 0x467   : > { %2728 = vadd.xlane.f32.xlu0 %v2727_v63  ;;  %v2724_v50 = vsel %vm2474_vm2, %v17257_v29, 0.0 }
 0x468   : > { %2725 = vadd.xlane.f32.xlu1 %v2724_v50 }
 0x469   : > { %v17263_v13 = vpop.eup %14916 }
 0x46a   : > { %21019 = vst [vmem:[#allocation72_spill] sm:$0xff] %v17263_v13  ;;  %v17265_v23 = vpop.eup %14918  ;;  %v2733_v48 = vsel %vm2474_vm2, %v17263_v13, 0.0 }
 0x46b   : > { %2734 = vadd.xlane.f32.xlu0 %v2733_v48  ;;  %v2742_v19 = vsel %vm2474_vm2, %v17265_v23, 0.0 }
 0x46c   : > { %2743 = vadd.xlane.f32.xlu1 %v2742_v19 }
 0x46d   : > { %v17271_v56 = vpop.eup %14920 }
 0x46e   : > { %v17273_v20 = vpop.eup %14922  ;;  %v2739_v35 = vsel %vm2474_vm2, %v17271_v56, 0.0 }
 0x46f   : > { %21020 = vst [vmem:[#allocation73_spill] sm:$0xff] %v17273_v20  ;;  %2740 = vadd.xlane.f32.xlu0 %v2739_v35  ;;  %v2736_v37 = vsel %vm2474_vm2, %v17273_v20, 0.0 }
 0x470   : > { %2737 = vadd.xlane.f32.xlu1 %v2736_v37 }
 0x471   : > { %v17279_v27 = vpop.eup %14924 }
 0x472   : > { %21021 = vst [vmem:[#allocation74_spill] sm:$0xff] %v17279_v27  ;;  %v2745_v49 = vsel %vm2474_vm2, %v17279_v27, 0.0 }
 0x473   : > { %2746 = vadd.xlane.f32.xlu0 %v2745_v49 }
 0x4a6   : > { %v2561_v10 = vpop.xlane.xlu0 %2560 }
 0x4a7   : > { %v2599_v18 = vsub.f32 %v17131_v4, %v2561_v10 }
 0x4a9   : > { %v2659_v51 = vmul.f32 1.442695, %v2599_v18 }
 0x4aa   : > { %v2567_v39 = vpop.xlane.xlu0 %2566  ;;  %v2564_v63 = vpop.xlane.xlu1 %2563 }
 0x4ab   : > { %14926 = vpow2.f32 %v2659_v51  ;;  %v2601_v50 = vsub.f32 %v17133_v44, %v2567_v39  ;;  %v2600_v48 = vsub.f32 %v17138_v25, %v2564_v63 }
 0x4ad   : > { %v2663_v19 = vmul.f32 1.442695, %v2601_v50  ;;  %v2661_v35 = vmul.f32 1.442695, %v2600_v48 }
 0x4ae   : > { %v2558_v37 = vpop.xlane.xlu1 %2557  ;;  %v2669_v27 = vpop.xlane.xlu0 %2668 }
 0x4af   : > { %14928 = vpow2.f32 %v2663_v19  ;;  %v2598_v20 = vsub.f32 %v17140_v16, %v2558_v37 }
 0x4b0   : > { %14930 = vpow2.f32 %v2661_v35 }
 0x4b1   : > { %v2657_v49 = vmul.f32 1.442695, %v2598_v20 }
 0x4b2   : > { %v17287_v13 = vpop.xlane.xlu1 %2569 }
 0x4b3   : > { %14932 = vpow2.f32 %v2657_v49 }
 0x4b4   : > { %14934 = vrcp.f32 %v2669_v27  ;;  %v2675_v4 = vpop.xlane.xlu0 %2674 }
 0x4b6   : > { %v2672_v10 = vpop.xlane.xlu1 %2671 }
 0x4b7   : > { %14936 = vrcp.f32 %v2672_v10 }
 0x4b8   : > { %v17289_v18 = vpop.eup %14926  ;;  %14938 = vrcp.f32 %v2675_v4 }
 0x4b9   : > { %v2751_v44 = vsel %vm2474_vm2, %v17289_v18, 0.0 }
 0x4ba   : > { %2752 = vadd.xlane.f32.xlu0 %v2751_v44  ;;  %v2678_v25 = vpop.xlane.xlu1 %2677 }
 0x4bb   : > { %14940 = vrcp.f32 %v2678_v25 }
 0x4bc   : > { %v17293_v16 = vpop.eup %14928  ;;  %v2681_v51 = vpop.xlane.xlu0 %2680 }
 0x4bd   : > { %v17295_v20 = vpop.eup %14930  ;;  %v2757_v27 = vsel %vm2474_vm2, %v17293_v16, 0.0  ;;  %14942 = vrcp.f32 %v2681_v51 }
 0x4be   : > { %2758 = vadd.xlane.f32.xlu0 %v2757_v27  ;;  %v2754_v39 = vsel %vm2474_vm2, %v17295_v20, 0.0 }
 0x4bf   : > { %2755 = vadd.xlane.f32.xlu1 %v2754_v39 }
 0x4c0   : > { %v17301_v63 = vpop.eup %14932  ;;  %v2684_v50 = vpop.xlane.xlu1 %2683 }
 0x4c1   : > { %14944 = vrcp.f32 %v2684_v50  ;;  %v2748_v48 = vsel %vm2474_vm2, %v17301_v63, 0.0  ;;  %v14935_v19 = vpop.eup %14934 }
 0x4c2   : > { %v2795_v4 = vmul.f32 %v14935_v19, %v17147_v53 }
 0x4c3   : > { %2749 = vadd.xlane.f32.xlu1 %v2748_v48  ;;  %v21022_v48 = vmov 0.0  }
 0x4c4   : > { %v2687_v35 = vpop.xlane.xlu0 %2686  ;;  %v14937_v37 = vpop.eup %14936 }
 0x4c5   : > { %v14939_v49 = vpop.eup %14938  ;;  %v2796_v10 = vmul.f32 %v14937_v37, %v17156_v6  ;;  %14946 = vrcp.f32 %v2687_v35 }
 0x4c6   : > { %v2797_v27 = vmul.f32 %v14939_v49, %v17161_v21 }
 0x4c7   : > { %v2827_v51 = vpack.c.bf16 %v2796_v10, %v2795_v4 }
 0x4c8   : > { %v14941_v44 = vpop.eup %14940  ;;  %v2690_v25 = vpop.xlane.xlu1 %2689 }
 0x4c9   : > { %14948 = vrcp.f32 %v2690_v25  ;;  %v2798_v39 = vmul.f32 %v14941_v44, %v17168_v54  ;;  %13823 = vmatmul.mubr.msk.bf16.vlgmr.msra.gmra.mxu0 %vm2474_vm2, %v2827_v51 }
 0x4ca   : > { %13833 = vmatpush3.bf16.msra.mxu0 %v16970_v15  ;;  %13834 = vmatprep.mubr.msk.bf16.mxu0 %vm15776_vm0, %v21022_v48  ;;  %v14943_v53 = vpop.eup %14942 }
 0x4cb   : > { %v2828_v50 = vpack.c.bf16 %v2798_v39, %v2797_v27  ;;  %13844 = vmatprep.subr.bf16.mxu0 %v21022_v48  ;;  %v2799_v21 = vmul.f32 %v14943_v53, %v17173_v1 }
 0x4cc   : > { %v2693_v19 = vpop.xlane.xlu0 %2692 }
 0x4cd   : > { %13829 = vmatmul.mubr.msk.bf16.vlgmr.msra.gmra.mxu1 %vm2474_vm2, %v2828_v50  ;;  %14950 = vrcp.f32 %v2693_v19 }
 0x4ce   : > { %v14945_v6 = vpop.eup %14944  ;;  %13839 = vmatpush3.bf16.msra.mxu1 %v16967_v36  ;;  %13840 = vmatprep.mubr.msk.bf16.mxu1 %vm15776_vm0, %v21022_v48 }
 0x4cf   : > { %v2800_v54 = vmul.f32 %v14945_v6, %v17178_v34  ;;  %13850 = vmatprep.subr.bf16.mxu1 %v21022_v48  ;;  %v2602_v6 = vsub.f32 %v17151_v47, %v17287_v13 }
 0x4d0   : > { %v2696_v35 = vpop.xlane.xlu1 %2695 }
 0x4d1   : > { %14952 = vrcp.f32 %v2696_v35  ;;  %v2829_v37 = vpack.c.bf16 %v2800_v54, %v2799_v21 }
 0x4d2   : > { %v14947_v49 = vpop.eup %14946 }
 0x4d3   : > { %13835 = vmatmul.mubr.msk.bf16.vlgmr.msra.gmra.mxu0 %vm2474_vm2, %v2829_v37  ;;  %v2801_v34 = vmul.f32 %v14947_v49, %v17183_v33  ;;  %v2665_v37 = vmul.f32 1.442695, %v2602_v6 }
 0x4d4   : > { %13845 = vmatpush3.bf16.msra.mxu0 %v16978_v31  ;;  %v2699_v4 = vpop.xlane.xlu0 %2698  ;;  %3620 = vrot.lane.b32.xlu1 %v16662_v7, %s15777_s9 }
 0x4d5   : > { %3567 = vrot.lane.b32.xlu0 %v16650_v8, %s15777_s9  ;;  %13846 = vmatprep.mubr.msk.bf16.mxu0 %vm15776_vm0, %v21022_v48  ;;  %14954 = vrcp.f32 %v2699_v4 }
 0x4d6   : > { %v14949_v1 = vpop.eup %14948  ;;  %13856 = vmatprep.subr.bf16.mxu0 %v21022_v48 }
 0x4d7   : > { %v2802_v10 = vmul.f32 %v14949_v1, %v17188_v57 }
 0x4d8   : > { %3564 = vrot.lane.b32.xlu1 %v16665_v24, %s15777_s9  ;;  %v2702_v44 = vpop.xlane.xlu1 %2701 }
 0x4d9   : > { %14956 = vrcp.f32 %v2702_v44  ;;  %3617 = vrot.lane.b32.xlu0 %v16682_v41, %s15777_s9  ;;  %v2830_v25 = vpack.c.bf16 %v2802_v10, %v2801_v34 }
 0x4da   : > { %v14951_v51 = vpop.eup %14950 }
 0x4db   : > { %13841 = vmatmul.mubr.msk.bf16.vlgmr.msra.gmra.mxu1 %vm2474_vm2, %v2830_v25  ;;  %v2803_v57 = vmul.f32 %v14951_v51, %v17193_v62 }
 0x4dc   : > { %13851 = vmatpush3.bf16.msra.mxu1 %v16975_v28  ;;  %v2705_v27 = vpop.xlane.xlu0 %2704  ;;  %13852 = vmatprep.mubr.msk.bf16.mxu1 %vm15776_vm0, %v21022_v48 }
 0x4dd   : > { %3670 = vrot.lane.b32.xlu0 %v16705_v11, %s15777_s9  ;;  %13862 = vmatprep.subr.bf16.mxu1 %v21022_v48  ;;  %14958 = vrcp.f32 %v2705_v27 }
 0x4de   : > { %v14953_v33 = vpop.eup %14952 }
 0x4df   : > { %v2804_v39 = vmul.f32 %v14953_v33, %v17198_v43 }
 0x4e0   : > { %v2708_v50 = vpop.xlane.xlu1 %2707 }
 0x4e1   : > { %14960 = vrcp.f32 %v2708_v50  ;;  %3723 = vrot.lane.b32.xlu0 %v16732_v46, %s15777_s9  ;;  %v2831_v53 = vpack.c.bf16 %v2804_v39, %v2803_v57 }
 0x4e2   : > { %v14955_v19 = vpop.eup %14954 }
 0x4e3   : > { %13847 = vmatmul.mubr.msk.bf16.vlgmr.msra.gmra.mxu0 %vm2474_vm2, %v2831_v53  ;;  %v2805_v54 = vmul.f32 %v14955_v19, %v17204_v52 }
 0x4e4   : > { %13857 = vmatpush3.bf16.msra.mxu0 %v16986_v22  ;;  %v2711_v21 = vpop.xlane.xlu0 %2710  ;;  %13858 = vmatprep.mubr.msk.bf16.mxu0 %vm15776_vm0, %v21022_v48 }
 0x4e5   : > { %v2720_v62 = vpop.xlane.xlu1 %2719  ;;  %3776 = vrot.lane.b32.xlu0 %v16757_v3, %s15777_s9  ;;  %13868 = vmatprep.subr.bf16.mxu0 %v21022_v48 }
 0x4e6   : > { %v14957_v43 = vpop.eup %14956  ;;  %14962 = vrcp.f32 %v2720_v62 }
 0x4e7   : > { %v2806_v35 = vmul.f32 %v14957_v43, %v17210_v58  ;;  %14964 = vrcp.f32 %v2711_v21 }
 0x4e8   : > { %v2717_v47 = vpop.xlane.xlu0 %2716 }
 0x4e9   : > { %14966 = vrcp.f32 %v2717_v47  ;;  %v2714_v13 = vpop.xlane.xlu1 %2713  ;;  %3829 = vrot.lane.b32.xlu0 %v16791_v55, %s15777_s9  ;;  %v2832_v49 = vpack.c.bf16 %v2806_v35, %v2805_v54 }
 0x4ea   : > { %14968 = vrcp.f32 %v2714_v13  ;;  %v14959_v4 = vpop.eup %14958 }
 0x4eb   : > { %13853 = vmatmul.mubr.msk.bf16.vlgmr.msra.gmra.mxu1 %vm2474_vm2, %v2832_v49  ;;  %14970 = vpow2.f32 %v2665_v37  ;;  %v2807_v34 = vmul.f32 %v14959_v4, %v17216_v17  ;;  %v21023_v37 = vld [vmem:[#allocation42_spill] sm:$0xff] }
 0x4ec   : > { %13863 = vmatpush3.bf16.msra.mxu1 %v16983_v9  ;;  %v2723_v1 = vpop.xlane.xlu0 %2722  ;;  %13864 = vmatprep.mubr.msk.bf16.mxu1 %vm15776_vm0, %v21022_v48 }
 0x4ed   : > { %v2732_v52 = vpop.xlane.xlu1 %2731  ;;  %3882 = vrot.lane.b32.xlu0 %v16825_v42, %s15777_s9  ;;  %13874 = vmatprep.subr.bf16.mxu1 %v21022_v48 }
 0x4ee   : > { %v14961_v58 = vpop.eup %14960  ;;  %14972 = vrcp.f32 %v2732_v52 }
 0x4ef   : > { %v2808_v10 = vmul.f32 %v14961_v58, %v17222_v5  ;;  %14974 = vrcp.f32 %v2723_v1  ;;  %v21024_v58 = vld [vmem:[#allocation50_spill] sm:$0xff] }
 0x4f0   : > { %v2729_v44 = vpop.xlane.xlu0 %2728 }
 0x4f1   : > { %14976 = vrcp.f32 %v2729_v44  ;;  %v2726_v25 = vpop.xlane.xlu1 %2725  ;;  %3935 = vrot.lane.b32.xlu0 %v16857_v12, %s15777_s9  ;;  %v2833_v51 = vpack.c.bf16 %v2808_v10, %v2807_v34  ;;  %v21025_v44 = vld [vmem:[#allocation69_spill] sm:$0xff] }
 0x4f2   : > { %14978 = vrcp.f32 %v2726_v25 }
 0x4f3   : > { %13859 = vmatmul.mubr.msk.bf16.vlgmr.msra.gmra.mxu0 %vm2474_vm2, %v2833_v51  ;;  %v14963_v27 = vpop.eup %14962 }
 0x4f4   : > { %13869 = vmatpush3.bf16.msra.mxu0 %v16994_v2  ;;  %v2735_v33 = vpop.xlane.xlu0 %2734  ;;  %13870 = vmatprep.mubr.msk.bf16.mxu0 %vm15776_vm0, %v21022_v48  ;;  %v14965_v17 = vpop.eup %14964  ;;  %v2812_v53 = vmul.f32 %v14963_v27, %v17230_v32 }
 0x4f5   : > { %v2744_v5 = vpop.xlane.xlu1 %2743  ;;  %3988 = vrot.lane.b32.xlu0 %v16793_v59, %s15777_s9  ;;  %13880 = vmatprep.subr.bf16.mxu0 %v21022_v48  ;;  %v2809_v6 = vmul.f32 %v14965_v17, %v17228_v40 }
 0x4f6   : > { %v14967_v57 = vpop.eup %14966  ;;  %14980 = vrcp.f32 %v2744_v5  ;;  %v21029_v5 = vld [vmem:[#allocation73_spill] sm:$0xff] }
 0x4f7   : > { %v14969_v39 = vpop.eup %14968  ;;  %v2811_v50 = vmul.f32 %v14967_v57, %v17238_v45  ;;  %14982 = vrcp.f32 %v2735_v33  ;;  %v21028_v33 = vld [vmem:[#allocation72_spill] sm:$0xff] }
 0x4f8   : > { %v2741_v19 = vpop.xlane.xlu0 %2740  ;;  %v2810_v21 = vmul.f32 %v14969_v39, %v17240_v0  ;;  %v17382_v62 = vpop.eup %14970 }
 0x4f9   : > { %14984 = vrcp.f32 %v2741_v19  ;;  %v2738_v43 = vpop.xlane.xlu1 %2737  ;;  %4041 = vrot.lane.b32.xlu0 %v16882_v61, %s15777_s9  ;;  %v2835_v54 = vpack.c.bf16 %v2812_v53, %v2811_v50  ;;  %v2760_v40 = vsel %vm2474_vm2, %v17382_v62, 0.0  ;;  %v21030_v50 = vld [vmem:[#allocation51_spill] sm:$0xff] }
 0x4fa   : > { %14986 = vrcp.f32 %v2738_v43  ;;  %v2834_v35 = vpack.c.bf16 %v2810_v21, %v2809_v6  ;;  %v21031_v19 = vld [vmem:[#allocation71_spill] sm:$0xff]  ;;  %v21032_v6 = vld [vmem:[#allocation68_spill] sm:$0xff]  ;;  %v21035_v21 = vld [vmem:[#allocation57_spill] sm:$0xff] }
 0x4fb   : > { %13871 = vmatmul.mubr.msk.bf16.vlgmr.msra.gmra.mxu0 %vm2474_vm2, %v2835_v54  ;;  %v14973_v45 = vpop.eup %14972  ;;  %v21036_v43 = vld [vmem:[#allocation33_spill] sm:$0xff]  ;;  %v21037_v54 = vld [vmem:[#allocation34_spill] sm:$0xff] }
 0x4fc   : > { %13865 = vmatmul.mubr.msk.bf16.vlgmr.msra.gmra.mxu1 %vm2474_vm2, %v2834_v35  ;;  %13881 = vmatpush3.bf16.msra.mxu0 %v17002_v60  ;;  %v14975_v32 = vpop.eup %14974  ;;  %v2816_v49 = vmul.f32 %v14973_v45, %v17249_v30  ;;  %v21026_v30 = vld [vmem:[#allocation66_spill] sm:$0xff]  ;;  %v21038_v35 = vld [vmem:[#allocation35_spill] sm:$0xff]  ;;  %v21039_v45 = vld [vmem:[#allocation37_spill] sm:$0xff] }
 0x4fd   : > { %13875 = vmatpush3.bf16.msra.mxu1 %v16991_v26  ;;  %2761 = vadd.xlane.f32.xlu1 %v2760_v40  ;;  %v2813_v4 = vmul.f32 %v14975_v32, %v17247_v38  ;;  %v21040_v40 = vld [vmem:[#allocation40_spill] sm:$0xff] }
 0x4fe   : > { %v14977_v0 = vpop.eup %14976  ;;  %4094 = vrot.lane.b32.xlu0 %v21023_v37, %s15777_s9  ;;  %13876 = vmatprep.mubr.msk.bf16.mxu1 %vm15776_vm0, %v21022_v48  ;;  %v21041_v32 = vld [vmem:[#allocation36_spill] sm:$0xff] }
 0x4ff   : > { %v14979_v47 = vpop.eup %14978  ;;  %13882 = vmatprep.mubr.msk.bf16.mxu0 %vm15776_vm0, %v21022_v48  ;;  %13886 = vmatprep.subr.bf16.mxu1 %v21022_v48  ;;  %v2815_v13 = vmul.f32 %v14977_v0, %v17255_v14  ;;  %v21042_v0 = vld [vmem:[#allocation44_spill] sm:$0xff] }
 0x500   : > { %13892 = vmatprep.subr.bf16.mxu0 %v21022_v48  ;;  %v2814_v1 = vmul.f32 %v14979_v47, %v17257_v29  ;;  %v21027_v29 = vld [vmem:[#allocation46_spill] sm:$0xff]  ;;  %v21043_v47 = vld [vmem:[#allocation39_spill] sm:$0xff] }
 0x501   : > { %v2837_v52 = vpack.c.bf16 %v2816_v49, %v2815_v13  ;;  %v21044_v13 = vld [vmem:[#allocation47_spill] sm:$0xff] }
 0x502   : > { %4147 = vrot.lane.b32.xlu0 %v21024_v58, %s15777_s9  ;;  %v2836_v34 = vpack.c.bf16 %v2814_v1, %v2813_v4  ;;  %v21045_v49 = vld [vmem:[#allocation43_spill] sm:$0xff]  ;;  %v21046_v4 = vld [vmem:[#allocation49_spill] sm:$0xff] }
 0x503   : > { %13883 = vmatmul.mubr.msk.bf16.vlgmr.msra.gmra.mxu0 %vm2474_vm2, %v2837_v52  ;;  %v14981_v10 = vpop.eup %14980  ;;  %v21047_v1 = vld [vmem:[#allocation53_spill] sm:$0xff]  ;;  %v2747_v52 = vpop.xlane.xlu0 %2746 }
 0x504   : > { %13877 = vmatmul.mubr.msk.bf16.vlgmr.msra.gmra.mxu1 %vm2474_vm2, %v2836_v34  ;;  %13893 = vmatpush3.bf16.msra.mxu0 %v21025_v44  ;;  %v14983_v14 = vpop.eup %14982  ;;  %v2820_v27 = vmul.f32 %v14981_v10, %v17265_v23  ;;  %v21033_v23 = vld [vmem:[#allocation56_spill] sm:$0xff] }
 0x505   : > { %13887 = vmatpush3.bf16.msra.mxu1 %v21026_v30  ;;  %13888 = vmatprep.mubr.msk.bf16.mxu1 %vm15776_vm0, %v21022_v48  ;;  %v2817_v17 = vmul.f32 %v14983_v14, %v21028_v33  ;;  %v21048_v34 = vld [vmem:[#allocation52_spill] sm:$0xff]  ;;  %v21049_v14 = vld [vmem:[#allocation54_spill] sm:$0xff] }
 0x506   : > { %v14985_v38 = vpop.eup %14984  ;;  %4200 = vrot.lane.b32.xlu0 %v21027_v29, %s15777_s9  ;;  %13894 = vmatprep.mubr.msk.bf16.mxu0 %vm15776_vm0, %v21022_v48 }
 0x507   : > { %v14987_v25 = vpop.eup %14986  ;;  %13898 = vmatprep.subr.bf16.mxu1 %v21022_v48  ;;  %13904 = vmatprep.subr.bf16.mxu0 %v21022_v48  ;;  %v2819_v51 = vmul.f32 %v14985_v38, %v17271_v56  ;;  %v21034_v56 = vld [vmem:[#allocation32_spill] sm:$0xff] }
 0x508   : > { %v2818_v57 = vmul.f32 %v14987_v25, %v21029_v5  ;;  %v21050_v25 = vld [vmem:[#allocation55_spill] sm:$0xff] }
 0x509   : > { %v2839_v39 = vpack.c.bf16 %v2820_v27, %v2819_v51 }
 0x50a   : > { %4253 = vrot.lane.b32.xlu0 %v21030_v50, %s15777_s9  ;;  %v2838_v53 = vpack.c.bf16 %v2818_v57, %v2817_v17 }
 0x50b   : > { %13895 = vmatmul.mubr.msk.bf16.vlgmr.msra.gmra.mxu0 %vm2474_vm2, %v2839_v39 }
 0x50c   : > { %13889 = vmatmul.mubr.msk.bf16.vlgmr.msra.gmra.mxu1 %vm2474_vm2, %v2838_v53  ;;  %13905 = vmatpush3.bf16.msra.mxu0 %v21031_v19 }
 0x50d   : > { %13899 = vmatpush3.bf16.msra.mxu1 %v21032_v6  ;;  %13906 = vmatprep.mubr.msk.bf16.mxu0 %vm15776_vm0, %v21022_v48 }
 0x50e   : > { %4306 = vrot.lane.b32.xlu0 %v21033_v23, %s15777_s9  ;;  %3673 = vrot.lane.b32.xlu1 %v21034_v56, %s15777_s9 }
 0x50f   : > { %13916 = vmatprep.subr.bf16.mxu0 %v21022_v48  ;;  %13900 = vmatprep.mubr.msk.bf16.mxu1 %vm15776_vm0, %v21022_v48 }
 0x510   : > { %13910 = vmatprep.subr.bf16.mxu1 %v21022_v48 }
 0x512   : > { %4812 = vrot.lane.b32.xlu0 %v21035_v21, %s15777_s9  ;;  %3726 = vrot.lane.b32.xlu1 %v21036_v43, %s15777_s9 }
 0x516   : > { %4908 = vrot.lane.b32.xlu0 %v16970_v15, %s15777_s9  ;;  %3779 = vrot.lane.b32.xlu1 %v21037_v54, %s15777_s9 }
 0x51a   : > { %5004 = vrot.lane.b32.xlu0 %v16978_v31, %s15777_s9  ;;  %3832 = vrot.lane.b32.xlu1 %v21038_v35, %s15777_s9 }
 0x51e   : > { %5100 = vrot.lane.b32.xlu0 %v16986_v22, %s15777_s9  ;;  %3885 = vrot.lane.b32.xlu1 %v21039_v45, %s15777_s9 }
 0x522   : > { %5196 = vrot.lane.b32.xlu0 %v16994_v2, %s15777_s9  ;;  %3938 = vrot.lane.b32.xlu1 %v21040_v40, %s15777_s9 }
 0x526   : > { %3991 = vrot.lane.b32.xlu1 %v21041_v32, %s15777_s9 }
 0x52a   : > { %4044 = vrot.lane.b32.xlu1 %v21042_v0, %s15777_s9 }
 0x52e   : > { %4097 = vrot.lane.b32.xlu1 %v21043_v47, %s15777_s9 }
 0x532   : > { %4150 = vrot.lane.b32.xlu1 %v21044_v13, %s15777_s9 }
 0x536   : > { %4203 = vrot.lane.b32.xlu1 %v21045_v49, %s15777_s9 }
 0x53a   : > { %4256 = vrot.lane.b32.xlu1 %v21046_v4, %s15777_s9 }
 0x53e   : > { %4309 = vrot.lane.b32.xlu1 %v21047_v1, %s15777_s9 }
 0x542   : > { %4362 = vrot.lane.b32.xlu1 %v21048_v34, %s15777_s9 }
 0x543   : > { %v2753_v10 = vpop.xlane.xlu0 %2752 }
 0x544   : > { %14988 = vrcp.f32 %v2753_v10 }
 0x546   : > { %4359 = vrot.lane.b32.xlu1 %v21049_v14, %s15777_s9 }
 0x547   : > { %v2759_v27 = vpop.xlane.xlu0 %2758 }
 0x548   : > { %v2756_v38 = vpop.xlane.xlu1 %2755 }
 0x549   : > { %14990 = vrcp.f32 %v2756_v38 }
 0x54a   : > { %4860 = vrot.lane.b32.xlu1 %v21050_v25, %s15777_s9  ;;  %14992 = vrcp.f32 %v2747_v52 }
 0x54b   : > { %v3568_v53 = vpop.permute.xlu0 %3567 }
 0x54c   : > { %v2750_v51 = vpop.xlane.xlu1 %2749  ;;  %v3573_v38 = vsel %vm1689_vm1, %v3568_v53, 0 }
 0x54d   : > { %14994 = vrcp.f32 %v2750_v51  ;;  %v21051_v51 = vld [vmem:[#allocation74_spill] sm:$0xff] }
 0x54e   : > { %4956 = vrot.lane.b32.xlu1 %v16967_v36, %s15777_s9  ;;  %14996 = vrcp.f32 %v2759_v27 }
 0x551   : > { %v14989_v33 = vpop.eup %14988 }
 0x552   : > { %5052 = vrot.lane.b32.xlu1 %v16975_v28, %s15777_s9  ;;  %v2823_v5 = vmul.f32 %v14989_v33, %v17289_v18 }
 0x556   : > { %v14991_v17 = vpop.eup %14990  ;;  %5148 = vrot.lane.b32.xlu1 %v16983_v9, %s15777_s9  ;;  %v3621_v9 = vpop.permute.xlu1 %3620 }
 0x557   : > { %v2824_v57 = vmul.f32 %v14991_v17, %v17295_v20  ;;  %v14993_v39 = vpop.eup %14992  ;;  %v21052_v20 = vld [vmem:[#allocation70_spill] sm:$0xff] }
 0x558   : > { %v2821_v2 = vmul.f32 %v14993_v39, %v21051_v51 }
 0x559   : > { %v2841_v52 = vpack.c.bf16 %v2824_v57, %v2823_v5 }
 0x55a   : > { %v14995_v10 = vpop.eup %14994  ;;  %5244 = vrot.lane.b32.xlu1 %v16991_v26, %s15777_s9 }
 0x55b   : > { %13907 = vmatmul.mubr.msk.bf16.vlgmr.msra.gmra.mxu0 %vm2474_vm2, %v2841_v52  ;;  %v2822_v22 = vmul.f32 %v14995_v10, %v17301_v63  ;;  %v3565_v63 = vpop.permute.xlu1 %3564  ;;  %v14997_v26 = vpop.eup %14996 }
 0x55c   : > { %13917 = vmatpush3.bf16.xpose.msra.mxu0 %v3573_v38  ;;  %13918 = vmatprep.mubr.msk.bf16.mxu0 %vm15776_vm0, %v21022_v48 }
 0x55d   : > { %v2840_v18 = vpack.c.bf16 %v2822_v22, %v2821_v2  ;;  %13928 = vmatprep.subr.bf16.mxu0 %v21022_v48  ;;  %v3618_v22 = vpop.permute.xlu0 %3617 }
 0x55e   : > { %5292 = vrot.lane.b32.xlu1 %v17002_v60, %s15777_s9 }
 0x55f   : > { %13901 = vmatmul.mubr.msk.bf16.vlgmr.msra.gmra.mxu1 %vm2474_vm2, %v2840_v18 }
 0x560   : > { %13911 = vmatpush3.bf16.msra.mxu1 %v21052_v20  ;;  %13912 = vmatprep.mubr.msk.bf16.mxu1 %vm15776_vm0, %v21022_v48 }
 0x561   : > { %13922 = vmatprep.subr.bf16.mxu1 %v21022_v48  ;;  %v3671_v2 = vpop.permute.xlu0 %3670 }
 0x562   : > { %5340 = vrot.lane.b32.xlu1 %v21026_v30, %s15777_s9 }
 0x563   : > { %13919 = vmatmul.mubr.msk.bf16.vlgmr.msra.gmra.mxu0 %vm1689_vm1, %v3565_v63 }
 0x564   : > { %13930 = vmatprep.mubr.msk.bf16.mxu0 %vm15776_vm0, %v21022_v48 }
 0x565   : > { %v17507_v33 = vpop.permute.xlu0 %3723 }
 0x569   : > { %v3777_v17 = vpop.permute.xlu0 %3776 }
 0x56d   : > { %v17509_v57 = vpop.permute.xlu0 %3829 }
 0x571   : > { %v3883_v38 = vpop.permute.xlu0 %3882 }
 0x586   : > { %v2762_v5 = vpop.xlane.xlu1 %2761 }
 0x587   : > { %14998 = vrcp.f32 %v2762_v5 }
 0x589   : > { %v17511_v53 = vpop.f32.mrf.mxu0 }
 0x58a   : > { %v3674_v39 = vpop.permute.xlu1 %3673  ;;  %21053 = vst [vmem:[#allocation72_spill] sm:$0xff] %v17511_v53 }
 0x58b   : > { %v3679_v52 = vsel %vm1689_vm1, %v3674_v39, 0  ;;  %v13824_v10 = vpop.f32.mrf.mxu0 }
 0x58c   : > { %13929 = vmatpush3.bf16.xpose.msra.mxu0 %v3679_v52  ;;  %v17525_v52 = vpop.permute.xlu0 %3935 }
 0x58d   : > { %v17514_v51 = vpop.f32.mrf.mxu1  ;;  %13940 = vmatprep.subr.bf16.mxu0 %v21022_v48  ;;  %v17517_v63 = vpop.f32.mrf.mxu0 }
 0x58e   : > { %21054 = vst [vmem:[#allocation73_spill] sm:$0xff] %v17514_v51  ;;  %v3727_v18 = vpop.permute.xlu1 %3726  ;;  %21055 = vst [vmem:[#allocation71_spill] sm:$0xff] %v17517_v63 }
 0x58f   : > { %v13830_v30 = vpop.f32.mrf.mxu1  ;;  %v13825_v5 = vpop.f32.mrf.mxu0 }
 0x590   : > { %v2825_v5 = vmul.f32 %v14997_v26, %v17293_v16 }
 0x591   : > { %v17521_v60 = vpop.f32.mrf.mxu1 }
 0x592   : > { %21056 = vst [vmem:[#allocation32_spill] sm:$0xff] %v17521_v60  ;;  %v3780_v31 = vpop.permute.xlu1 %3779 }
 0x593   : > { %v3785_v10 = vsel %vm1689_vm1, %v3780_v31, 0  ;;  %13931 = vmatmul.mubr.msk.bf16.vlgmr.msra.gmra.mxu0 %vm1689_vm1, %v3671_v2  ;;  %v17529_v28 = vpop.f32.mrf.mxu0  ;;  %v13831_v27 = vpop.f32.mrf.mxu1 }
 0x594   : > { %21057 = vst [vmem:[#allocation33_spill] sm:$0xff] %v17529_v28  ;;  %v14999_v15 = vpop.eup %14998  ;;  %13941 = vmatpush3.bf16.xpose.msra.mxu0 %v3785_v10  ;;  %13942 = vmatprep.mubr.msk.bf16.mxu0 %vm15776_vm0, %v21022_v48  ;;  %v3626_v10 = vsel %vm1689_vm1, %v3621_v9, 0  ;;  %v3989_v27 = vpop.permute.xlu0 %3988 }
 0x595   : > { %v13836_v30 = vpop.f32.mrf.mxu0  ;;  %v2826_v53 = vmul.f32 %v14999_v15, %v17382_v62  ;;  %13952 = vmatprep.subr.bf16.mxu0 %v21022_v48 }
 0x596   : > { %v3833_v39 = vpop.permute.xlu1 %3832 }
 0x597   : > { %v17536_v51 = vpop.f32.mrf.mxu0  ;;  %v2842_v31 = vpack.c.bf16 %v2826_v53, %v2825_v5 }
 0x598   : > { %21058 = vst [vmem:[#allocation34_spill] sm:$0xff] %v17536_v51  ;;  %v17552_v16 = vpop.permute.xlu0 %4041 }
 0x599   : > { %13913 = vmatmul.mubr.msk.bf16.vlgmr.msra.gmra.mxu1 %vm2474_vm2, %v2842_v31  ;;  %v13837_v60 = vpop.f32.mrf.mxu0 }
 0x59a   : > { %13923 = vmatpush3.bf16.xpose.msra.mxu1 %v3626_v10  ;;  %v3886_v30 = vpop.permute.xlu1 %3885  ;;  %13924 = vmatprep.mubr.msk.bf16.mxu1 %vm15776_vm0, %v21022_v48 }
 0x59b   : > { %v3891_v15 = vsel %vm1689_vm1, %v3886_v30, 0  ;;  %13943 = vmatmul.mubr.msk.bf16.vlgmr.msra.gmra.mxu0 %vm1689_vm1, %v3777_v17  ;;  %v17546_v26 = vpop.f32.mrf.mxu1  ;;  %13934 = vmatprep.subr.bf16.mxu1 %v21022_v48  ;;  %v3732_v17 = vsel %vm1689_vm1, %v3727_v18, 0 }
 0x59c   : > { %21059 = vst [vmem:[#allocation35_spill] sm:$0xff] %v17546_v26  ;;  %13953 = vmatpush3.bf16.xpose.msra.mxu0 %v3891_v15  ;;  %13954 = vmatprep.mubr.msk.bf16.mxu0 %vm15776_vm0, %v21022_v48  ;;  %v4095_v18 = vpop.permute.xlu0 %4094 }
 0x59d   : > { %v13842_v9 = vpop.f32.mrf.mxu1  ;;  %13964 = vmatprep.subr.bf16.mxu0 %v21022_v48 }
 0x59e   : > { %v3939_v60 = vpop.permute.xlu1 %3938 }
 0x59f   : > { %v17554_v62 = vpop.f32.mrf.mxu1 }
 0x5a0   : > { %21060 = vst [vmem:[#allocation74_spill] sm:$0xff] %v17554_v62 }
 0x5a1   : > { %13925 = vmatmul.mubr.msk.bf16.vlgmr.msra.gmra.mxu1 %vm1689_vm1, %v3618_v22  ;;  %v13843_v5 = vpop.f32.mrf.mxu1 }
 0x5a2   : > { %13935 = vmatpush3.bf16.xpose.msra.mxu1 %v3732_v17  ;;  %v3992_v31 = vpop.permute.xlu1 %3991  ;;  %13936 = vmatprep.mubr.msk.bf16.mxu1 %vm15776_vm0, %v21022_v48 }
 0x5a3   : > { %v3997_v10 = vsel %vm1689_vm1, %v3992_v31, 0  ;;  %13955 = vmatmul.mubr.msk.bf16.vlgmr.msra.gmra.mxu0 %vm1689_vm1, %v3883_v38  ;;  %v17564_v30 = vpop.f32.mrf.mxu0  ;;  %13946 = vmatprep.subr.bf16.mxu1 %v21022_v48  ;;  %v3838_v38 = vsel %vm1689_vm1, %v3833_v39, 0 }
 0x5a4   : > { %21061 = vst [vmem:[#allocation70_spill] sm:$0xff] %v17564_v30  ;;  %13965 = vmatpush3.bf16.xpose.msra.mxu0 %v3997_v10  ;;  %13966 = vmatprep.mubr.msk.bf16.mxu0 %vm15776_vm0, %v21022_v48  ;;  %v17579_v10 = vpop.permute.xlu0 %4147 }
 0x5a5   : > { %v13848_v22 = vpop.f32.mrf.mxu0  ;;  %13976 = vmatprep.subr.bf16.mxu0 %v21022_v48 }
 0x5a6   : > { %v4045_v15 = vpop.permute.xlu1 %4044 }
 0x5a7   : > { %v17570_v9 = vpop.f32.mrf.mxu0 }
 0x5a8   : > { %21062 = vst [vmem:[#allocation75_spill] sm:$0xff] %v17570_v9 }
 0x5a9   : > { %13937 = vmatmul.mubr.msk.bf16.vlgmr.msra.gmra.mxu1 %vm1689_vm1, %v17507_v33  ;;  %v13849_v5 = vpop.f32.mrf.mxu0 }
 0x5aa   : > { %13947 = vmatpush3.bf16.xpose.msra.mxu1 %v3838_v38  ;;  %v4098_v31 = vpop.permute.xlu1 %4097  ;;  %13948 = vmatprep.mubr.msk.bf16.mxu1 %vm15776_vm0, %v21022_v48 }
 0x5ab   : > { %v4103_v22 = vsel %vm1689_vm1, %v4098_v31, 0  ;;  %13967 = vmatmul.mubr.msk.bf16.vlgmr.msra.gmra.mxu0 %vm1689_vm1, %v3989_v27  ;;  %v17583_v53 = vpop.f32.mrf.mxu1  ;;  %13958 = vmatprep.subr.bf16.mxu1 %v21022_v48  ;;  %v4201_v31 = vpop.permute.xlu0 %4200  ;;  %v3944_v27 = vsel %vm1689_vm1, %v3939_v60, 0 }
 0x5ac   : > { %21063 = vst [vmem:[#allocation76_spill] sm:$0xff] %v17583_v53  ;;  %13977 = vmatpush3.bf16.xpose.msra.mxu0 %v4103_v22  ;;  %13978 = vmatprep.mubr.msk.bf16.mxu0 %vm15776_vm0, %v21022_v48 }
 0x5ad   : > { %v13854_v33 = vpop.f32.mrf.mxu1  ;;  %13988 = vmatprep.subr.bf16.mxu0 %v21022_v48 }
 0x5ae   : > { %v4151_v39 = vpop.permute.xlu1 %4150 }
 0x5af   : > { %v17589_v38 = vpop.f32.mrf.mxu1 }
 0x5b0   : > { %21064 = vst [vmem:[#allocation77_spill] sm:$0xff] %v17589_v38 }
 0x5b1   : > { %13949 = vmatmul.mubr.msk.bf16.vlgmr.msra.gmra.mxu1 %vm1689_vm1, %v17509_v57  ;;  %v13855_v17 = vpop.f32.mrf.mxu1 }
 0x5b2   : > { %13959 = vmatpush3.bf16.xpose.msra.mxu1 %v3944_v27  ;;  %v4204_v22 = vpop.permute.xlu1 %4203  ;;  %13960 = vmatprep.mubr.msk.bf16.mxu1 %vm15776_vm0, %v21022_v48  ;;  %v4254_v17 = vpop.permute.xlu0 %4253 }
 0x5b3   : > { %v4209_v33 = vsel %vm1689_vm1, %v4204_v22, 0  ;;  %13979 = vmatmul.mubr.msk.bf16.vlgmr.msra.gmra.mxu0 %vm1689_vm1, %v4095_v18  ;;  %v17600_v2 = vpop.f32.mrf.mxu0  ;;  %13970 = vmatprep.subr.bf16.mxu1 %v21022_v48  ;;  %v4050_v18 = vsel %vm1689_vm1, %v4045_v15, 0 }
 0x5b4   : > { %21065 = vst [vmem:[#allocation78_spill] sm:$0xff] %v17600_v2  ;;  %13989 = vmatpush3.bf16.xpose.msra.mxu0 %v4209_v33  ;;  %13990 = vmatprep.mubr.msk.bf16.mxu0 %vm15776_vm0, %v21022_v48  ;;  %v4156_v2 = vsel %vm1689_vm1, %v4151_v39, 0 }
 0x5b5   : > { %v13860_v60 = vpop.f32.mrf.mxu0  ;;  %14000 = vmatprep.subr.bf16.mxu0 %v21022_v48 }
 0x5b6   : > { %v4257_v57 = vpop.permute.xlu1 %4256 }
 0x5b7   : > { %v17606_v27 = vpop.f32.mrf.mxu0 }
 0x5b8   : > { %21066 = vst [vmem:[#allocation79_spill] sm:$0xff] %v17606_v27 }
 0x5b9   : > { %13961 = vmatmul.mubr.msk.bf16.vlgmr.msra.gmra.mxu1 %vm1689_vm1, %v17525_v52  ;;  %v13861_v5 = vpop.f32.mrf.mxu0  ;;  %v4307_v52 = vpop.permute.xlu0 %4306 }
 0x5ba   : > { %13971 = vmatpush3.bf16.xpose.msra.mxu1 %v4050_v18  ;;  %v4310_v33 = vpop.permute.xlu1 %4309  ;;  %13972 = vmatprep.mubr.msk.bf16.mxu1 %vm15776_vm0, %v21022_v48 }
 0x5bb   : > { %v4315_v60 = vsel %vm1689_vm1, %v4310_v33, 0  ;;  %13991 = vmatmul.mubr.msk.bf16.vlgmr.msra.gmra.mxu0 %vm1689_vm1, %v4201_v31  ;;  %v17617_v53 = vpop.f32.mrf.mxu0  ;;  %13982 = vmatprep.subr.bf16.mxu1 %v21022_v48  ;;  %v4262_v31 = vsel %vm1689_vm1, %v4257_v57, 0 }
 0x5bc   : > { %21067 = vst [vmem:[#allocation80_spill] sm:$0xff] %v17617_v53  ;;  %v17620_v22 = vpop.f32.mrf.mxu1  ;;  %14001 = vmatpush3.bf16.xpose.msra.mxu0 %v4315_v60  ;;  %14002 = vmatprep.mubr.msk.bf16.mxu0 %vm15776_vm0, %v21022_v48 }
 0x5bd   : > { %21068 = vst [vmem:[#allocation81_spill] sm:$0xff] %v17620_v22  ;;  %v13872_v15 = vpop.f32.mrf.mxu0  ;;  %14012 = vmatprep.subr.bf16.mxu0 %v21022_v48 }
 0x5be   : > { %v13866_v5 = vpop.f32.mrf.mxu1 }
 0x5bf   : > { %v17625_v18 = vpop.f32.mrf.mxu0  ;;  %v4813_v5 = vpop.permute.xlu0 %4812 }
 0x5c0   : > { %21069 = vst [vmem:[#allocation82_spill] sm:$0xff] %v17625_v18  ;;  %v17627_v33 = vpop.f32.mrf.mxu1 }
 0x5c1   : > { %21070 = vst [vmem:[#allocation83_spill] sm:$0xff] %v17627_v33  ;;  %13973 = vmatmul.mubr.msk.bf16.vlgmr.msra.gmra.mxu1 %vm1689_vm1, %v17552_v16  ;;  %v13873_v27 = vpop.f32.mrf.mxu0 }
 0x5c2   : > { %13983 = vmatpush3.bf16.xpose.msra.mxu1 %v4156_v2  ;;  %v13867_v15 = vpop.f32.mrf.mxu1  ;;  %13984 = vmatprep.mubr.msk.bf16.mxu1 %vm15776_vm0, %v21022_v48 }
 0x5c3   : > { %14003 = vmatmul.mubr.msk.bf16.vlgmr.msra.gmra.mxu0 %vm1689_vm1, %v4307_v52  ;;  %v17639_v38 = vpop.f32.mrf.mxu0  ;;  %13994 = vmatprep.subr.bf16.mxu1 %v21022_v48  ;;  %v4363_v52 = vpop.permute.xlu1 %4362 }
 0x5c4   : > { %21071 = vst [vmem:[#allocation84_spill] sm:$0xff] %v17639_v38  ;;  %v17642_v39 = vpop.f32.mrf.mxu1  ;;  %14013 = vmatpush3.bf16.msra.mxu0 %v4813_v5  ;;  %14014 = vmatprep.mubr.msk.bf16.mxu0 %vm15776_vm0, %v21022_v48 }
 0x5c5   : > { %21072 = vst [vmem:[#allocation85_spill] sm:$0xff] %v17642_v39  ;;  %v13884_v16 = vpop.f32.mrf.mxu0  ;;  %14024 = vmatprep.subr.bf16.mxu0 %v21022_v48 }
 0x5c6   : > { %v13878_v2 = vpop.f32.mrf.mxu1 }
 0x5c7   : > { %v17647_v27 = vpop.f32.mrf.mxu0 }
 0x5c8   : > { %21073 = vst [vmem:[#allocation86_spill] sm:$0xff] %v17647_v27  ;;  %v17649_v15 = vpop.f32.mrf.mxu1 }
 0x5c9   : > { %21074 = vst [vmem:[#allocation87_spill] sm:$0xff] %v17649_v15  ;;  %13985 = vmatmul.mubr.msk.bf16.vlgmr.msra.gmra.mxu1 %vm1689_vm1, %v17579_v10  ;;  %v13885_v5 = vpop.f32.mrf.mxu0 }
 0x5ca   : > { %13995 = vmatpush3.bf16.xpose.msra.mxu1 %v4262_v31  ;;  %v13879_v16 = vpop.f32.mrf.mxu1  ;;  %13996 = vmatprep.mubr.msk.bf16.mxu1 %vm15776_vm0, %v21022_v48  ;;  %v4368_v31 = vsel %vm1689_vm1, %v4363_v52, 0 }
 0x5cb   : > { %v17660_v2 = vpop.f32.mrf.mxu0  ;;  %14006 = vmatprep.subr.bf16.mxu1 %v21022_v48 }
 0x5cc   : > { %21075 = vst [vmem:[#allocation88_spill] sm:$0xff] %v17660_v2  ;;  %v17663_v53 = vpop.f32.mrf.mxu1 }
 0x5cd   : > { %21076 = vst [vmem:[#allocation89_spill] sm:$0xff] %v17663_v53  ;;  %v13896_v57 = vpop.f32.mrf.mxu0 }
 0x5ce   : > { %v13890_v38 = vpop.f32.mrf.mxu1 }
 0x5cf   : > { %v17665_v27 = vpop.f32.mrf.mxu0  ;;  %v4360_v38 = vpop.permute.xlu1 %4359 }
 0x5d0   : > { %21077 = vst [vmem:[#allocation90_spill] sm:$0xff] %v17665_v27  ;;  %v17667_v60 = vpop.f32.mrf.mxu1 }
 0x5d1   : > { %21078 = vst [vmem:[#allocation91_spill] sm:$0xff] %v17667_v60  ;;  %13997 = vmatmul.mubr.msk.bf16.vlgmr.msra.gmra.mxu1 %vm1689_vm1, %v4254_v17  ;;  %v13897_v16 = vpop.f32.mrf.mxu0 }
 0x5d2   : > { %14007 = vmatpush3.bf16.xpose.msra.mxu1 %v4368_v31  ;;  %v13891_v39 = vpop.f32.mrf.mxu1  ;;  %14008 = vmatprep.mubr.msk.bf16.mxu1 %vm15776_vm0, %v21022_v48 }
 0x5d3   : > { %14018 = vmatprep.subr.bf16.mxu1 %v21022_v48  ;;  %v4861_v57 = vpop.permute.xlu1 %4860 }
 0x5d9   : > { %14009 = vmatmul.mubr.msk.bf16.vlgmr.msra.gmra.mxu1 %vm1689_vm1, %v4360_v38 }
 0x5da   : > { %14019 = vmatpush3.bf16.msra.mxu1 %v4861_v57  ;;  %14020 = vmatprep.mubr.msk.bf16.mxu1 %vm15776_vm0, %v21022_v48 }
 0x5db   : > { %14030 = vmatprep.subr.bf16.mxu1 %v21022_v48 }
 0x61b   : > { %v17682_v52 = vpop.f32.mrf.mxu0 }
 0x61c   : > { %21079 = vst [vmem:[#allocation92_spill] sm:$0xff] %v17682_v52 }
 0x61d   : > { %v13908_v17 = vpop.f32.mrf.mxu0 }
 0x61f   : > { %v17684_v31 = vpop.f32.mrf.mxu1  ;;  %v17686_v39 = vpop.f32.mrf.mxu0 }
 0x620   : > { %21080 = vst [vmem:[#allocation93_spill] sm:$0xff] %v17684_v31  ;;  %21081 = vst [vmem:[#allocation94_spill] sm:$0xff] %v17686_v39 }
 0x621   : > { %v13902_v10 = vpop.f32.mrf.mxu1  ;;  %v13909_v5 = vpop.f32.mrf.mxu0 }
 0x623   : > { %v17690_v2 = vpop.f32.mrf.mxu1  ;;  %v3609_v38 = vpop.f32.mrf.mxu0 }
 0x624   : > { %21082 = vst [vmem:[#allocation95_spill] sm:$0xff] %v17690_v2  ;;  %v17694_v27 = vmul.f32 0.17677669, %v3609_v38 }
 0x625   : > { %v13903_v53 = vpop.f32.mrf.mxu1  ;;  %v13920_v60 = vpop.f32.mrf.mxu0 }
 0x626   : > { %v4443_v17 = vsel %vm2474_vm2, %v17694_v27, -inf }
 0x627   : > { %4444 = vmax.xlane.f32.xlu0 %v4443_v17  ;;  %v3612_v15 = vpop.f32.mrf.mxu0 }
 0x628   : > { %v17698_v18 = vmul.f32 0.17677669, %v3612_v15 }
 0x629   : > { %v13921_v16 = vpop.f32.mrf.mxu0 }
 0x62a   : > { %v4446_v10 = vsel %vm2474_vm2, %v17698_v18, -inf }
 0x62b   : > { %4447 = vmax.xlane.f32.xlu1 %v4446_v10 }
 0x653   : > { %v3715_v5 = vpop.f32.mrf.mxu0 }
 0x654   : > { %v17714_v9 = vmul.f32 0.17677669, %v3715_v5 }
 0x655   : > { %v13932_v52 = vpop.f32.mrf.mxu0 }
 0x657   : > { %v3718_v39 = vpop.f32.mrf.mxu0 }
 0x658   : > { %v17702_v57 = vmul.f32 0.17677669, %v3718_v39 }
 0x659   : > { %v17704_v38 = vpop.f32.mrf.mxu1  ;;  %v13933_v53 = vpop.f32.mrf.mxu0 }
 0x65a   : > { %21083 = vst [vmem:[#allocation96_spill] sm:$0xff] %v17704_v38  ;;  %v4458_v60 = vsel %vm2474_vm2, %v17702_v57, -inf }
 0x65b   : > { %v13914_v17 = vpop.f32.mrf.mxu1  ;;  %4459 = vmax.xlane.f32.xlu1 %v4458_v60  ;;  %v3821_v15 = vpop.f32.mrf.mxu0 }
 0x65c   : > { %v17728_v51 = vmul.f32 0.17677669, %v3821_v15 }
 0x65d   : > { %v17708_v31 = vpop.f32.mrf.mxu1  ;;  %v13944_v16 = vpop.f32.mrf.mxu0 }
 0x65e   : > { %21084 = vst [vmem:[#allocation97_spill] sm:$0xff] %v17708_v31  ;;  %v4467_v15 = vsel %vm2474_vm2, %v17728_v51, -inf }
 0x65f   : > { %v13915_v2 = vpop.f32.mrf.mxu1  ;;  %v3824_v52 = vpop.f32.mrf.mxu0 }
 0x660   : > { %v4455_v2 = vsel %vm2474_vm2, %v17714_v9, -inf  ;;  %v17730_v63 = vmul.f32 0.17677669, %v3824_v52 }
 0x661   : > { %v3662_v22 = vpop.f32.mrf.mxu1  ;;  %v13945_v39 = vpop.f32.mrf.mxu0 }
 0x662   : > { %v17712_v33 = vmul.f32 0.17677669, %v3662_v22  ;;  %v4470_v52 = vsel %vm2474_vm2, %v17730_v63, -inf }
 0x663   : > { %v13926_v30 = vpop.f32.mrf.mxu1  ;;  %v3927_v53 = vpop.f32.mrf.mxu0 }
 0x664   : > { %v4449_v60 = vsel %vm2474_vm2, %v17712_v33, -inf }
 0x665   : > { %v3665_v17 = vpop.f32.mrf.mxu1  ;;  %4450 = vmax.xlane.f32.xlu0 %v4449_v60  ;;  %v13956_v26 = vpop.f32.mrf.mxu0 }
 0x666   : > { %v17718_v28 = vmul.f32 0.17677669, %v3665_v17 }
 0x667   : > { %v13927_v16 = vpop.f32.mrf.mxu1  ;;  %v3930_v62 = vpop.f32.mrf.mxu0 }
 0x668   : > { %v4452_v38 = vsel %vm2474_vm2, %v17718_v28, -inf }
 0x669   : > { %v3768_v39 = vpop.f32.mrf.mxu1  ;;  %4456 = vmax.xlane.f32.xlu0 %v4455_v2  ;;  %v13957_v22 = vpop.f32.mrf.mxu0 }
 0x66a   : > { %v17722_v5 = vmul.f32 0.17677669, %v3768_v39 }
 0x66b   : > { %v13938_v30 = vpop.f32.mrf.mxu1  ;;  %v4033_v10 = vpop.f32.mrf.mxu0 }
 0x66c   : > { %v4461_v2 = vsel %vm2474_vm2, %v17722_v5, -inf }
 0x66d   : > { %v3771_v31 = vpop.f32.mrf.mxu1  ;;  %4453 = vmax.xlane.f32.xlu0 %v4452_v38  ;;  %v13968_v26 = vpop.f32.mrf.mxu0 }
 0x66e   : > { %v17726_v60 = vmul.f32 0.17677669, %v3771_v31 }
 0x66f   : > { %v13939_v17 = vpop.f32.mrf.mxu1  ;;  %v4036_v16 = vpop.f32.mrf.mxu0 }
 0x670   : > { %v4464_v39 = vsel %vm2474_vm2, %v17726_v60, -inf }
 0x671   : > { %v3874_v22 = vpop.f32.mrf.mxu1  ;;  %4462 = vmax.xlane.f32.xlu0 %v4461_v2  ;;  %4465 = vmax.xlane.f32.xlu1 %v4464_v39  ;;  %v13969_v30 = vpop.f32.mrf.mxu0  ;;  %v17744_v39 = vmul.f32 0.17677669, %v3927_v53 }
 0x672   : > { %v17736_v31 = vmul.f32 0.17677669, %v3874_v22  ;;  %v17746_v30 = vmul.f32 0.17677669, %v3930_v62 }
 0x673   : > { %v13950_v38 = vpop.f32.mrf.mxu1  ;;  %v4139_v26 = vpop.f32.mrf.mxu0 }
 0x674   : > { %v4473_v22 = vsel %vm2474_vm2, %v17736_v31, -inf  ;;  %v4482_v62 = vsel %vm2474_vm2, %v17746_v30, -inf }
 0x675   : > { %v3877_v17 = vpop.f32.mrf.mxu1  ;;  %4468 = vmax.xlane.f32.xlu0 %v4467_v15  ;;  %4471 = vmax.xlane.f32.xlu1 %v4470_v52  ;;  %v13980_v36 = vpop.f32.mrf.mxu0 }
 0x676   : > { %v17742_v21 = vmul.f32 0.17677669, %v3877_v17 }
 0x677   : > { %v13951_v25 = vpop.f32.mrf.mxu1  ;;  %v4142_v2 = vpop.f32.mrf.mxu0 }
 0x678   : > { %v4476_v38 = vsel %vm2474_vm2, %v17742_v21, -inf  ;;  %v4479_v25 = vsel %vm2474_vm2, %v17744_v39, -inf }
 0x679   : > { %v3980_v23 = vpop.f32.mrf.mxu1  ;;  %4474 = vmax.xlane.f32.xlu0 %v4473_v22  ;;  %4477 = vmax.xlane.f32.xlu1 %v4476_v38  ;;  %v13981_v15 = vpop.f32.mrf.mxu0  ;;  %v17760_v38 = vmul.f32 0.17677669, %v4033_v10 }
 0x67a   : > { %v17752_v17 = vmul.f32 0.17677669, %v3980_v23  ;;  %v17762_v15 = vmul.f32 0.17677669, %v4036_v16 }
 0x67b   : > { %v13962_v52 = vpop.f32.mrf.mxu1  ;;  %v4245_v36 = vpop.f32.mrf.mxu0 }
 0x67c   : > { %v4485_v23 = vsel %vm2474_vm2, %v17752_v17, -inf  ;;  %v4494_v10 = vsel %vm2474_vm2, %v17762_v15, -inf  ;;  %v17792_v61 = vmul.f32 0.17677669, %v4245_v36 }
 0x67d   : > { %v3983_v53 = vpop.f32.mrf.mxu1  ;;  %4480 = vmax.xlane.f32.xlu0 %v4479_v25  ;;  %4483 = vmax.xlane.f32.xlu1 %v4482_v62  ;;  %v13992_v14 = vpop.f32.mrf.mxu0 }
 0x67e   : > { %v17758_v50 = vmul.f32 0.17677669, %v3983_v53 }
 0x67f   : > { %v13963_v34 = vpop.f32.mrf.mxu1  ;;  %v4248_v22 = vpop.f32.mrf.mxu0 }
 0x680   : > { %v4488_v52 = vsel %vm2474_vm2, %v17758_v50, -inf  ;;  %v4491_v34 = vsel %vm2474_vm2, %v17760_v38, -inf }
 0x681   : > { %v4086_v29 = vpop.f32.mrf.mxu1  ;;  %4486 = vmax.xlane.f32.xlu0 %v4485_v23  ;;  %4489 = vmax.xlane.f32.xlu1 %v4488_v52  ;;  %v13993_v25 = vpop.f32.mrf.mxu0  ;;  %v17776_v52 = vmul.f32 0.17677669, %v4139_v26 }
 0x682   : > { %v17768_v53 = vmul.f32 0.17677669, %v4086_v29  ;;  %v17778_v25 = vmul.f32 0.17677669, %v4142_v2 }
 0x683   : > { %v13974_v62 = vpop.f32.mrf.mxu1  ;;  %v4351_v14 = vpop.f32.mrf.mxu0 }
 0x684   : > { %v4497_v29 = vsel %vm2474_vm2, %v17768_v53, -inf  ;;  %v4506_v26 = vsel %vm2474_vm2, %v17778_v25, -inf  ;;  %v17810_v59 = vmul.f32 0.17677669, %v4351_v14 }
 0x685   : > { %v4089_v16 = vpop.f32.mrf.mxu1  ;;  %4492 = vmax.xlane.f32.xlu0 %v4491_v34  ;;  %4495 = vmax.xlane.f32.xlu1 %v4494_v10  ;;  %v14004_v1 = vpop.f32.mrf.mxu0 }
 0x686   : > { %v17774_v58 = vmul.f32 0.17677669, %v4089_v16 }
 0x687   : > { %v13975_v4 = vpop.f32.mrf.mxu1  ;;  %v4354_v23 = vpop.f32.mrf.mxu0 }
 0x688   : > { %v4500_v62 = vsel %vm2474_vm2, %v17774_v58, -inf  ;;  %v4503_v4 = vsel %vm2474_vm2, %v17776_v52, -inf }
 0x689   : > { %v4192_v37 = vpop.f32.mrf.mxu1  ;;  %4498 = vmax.xlane.f32.xlu0 %v4497_v29  ;;  %4501 = vmax.xlane.f32.xlu1 %v4500_v62  ;;  %v14005_v34 = vpop.f32.mrf.mxu0  ;;  %v17794_v29 = vmul.f32 0.17677669, %v4248_v22 }
 0x68a   : > { %v17784_v1 = vmul.f32 0.17677669, %v4192_v37 }
 0x68b   : > { %v13986_v10 = vpop.f32.mrf.mxu1 }
 0x68c   : > { %v4509_v37 = vsel %vm2474_vm2, %v17784_v1, -inf }
 0x68d   : > { %v4195_v2 = vpop.f32.mrf.mxu1  ;;  %4504 = vmax.xlane.f32.xlu0 %v4503_v4  ;;  %4507 = vmax.xlane.f32.xlu1 %v4506_v26  ;;  %v4515_v4 = vsel %vm2474_vm2, %v17792_v61, -inf }
 0x68e   : > { %v17790_v16 = vmul.f32 0.17677669, %v4195_v2  ;;  %v17808_v2 = vpop.permute.xlu1 %4956 }
 0x68f   : > { %v13987_v49 = vpop.f32.mrf.mxu1  ;;  %21085 = vst [vmem:[#allocation98_spill] sm:$0xff] %v17808_v2 }
 0x690   : > { %v4512_v62 = vsel %vm2474_vm2, %v17790_v16, -inf  ;;  %v4518_v49 = vsel %vm2474_vm2, %v17794_v29, -inf }
 0x691   : > { %v4298_v34 = vpop.f32.mrf.mxu1  ;;  %4510 = vmax.xlane.f32.xlu0 %v4509_v37  ;;  %4513 = vmax.xlane.f32.xlu1 %v4512_v62  ;;  %v17812_v37 = vmul.f32 0.17677669, %v4354_v23 }
 0x692   : > { %v17800_v13 = vmul.f32 0.17677669, %v4298_v34 }
 0x693   : > { %v13998_v10 = vpop.f32.mrf.mxu1  ;;  %v4530_v14 = vsel %vm2474_vm2, %v17812_v37, -inf }
 0x694   : > { %v4521_v62 = vsel %vm2474_vm2, %v17800_v13, -inf }
 0x695   : > { %v4301_v36 = vpop.f32.mrf.mxu1  ;;  %4516 = vmax.xlane.f32.xlu0 %v4515_v4  ;;  %4519 = vmax.xlane.f32.xlu1 %v4518_v49 }
 0x696   : > { %v17806_v22 = vmul.f32 0.17677669, %v4301_v36  ;;  %v4527_v36 = vsel %vm2474_vm2, %v17810_v59, -inf }
 0x697   : > { %v13999_v26 = vpop.f32.mrf.mxu1 }
 0x698   : > { %v4524_v34 = vsel %vm2474_vm2, %v17806_v22, -inf  ;;  %v17824_v26 = vpop.permute.xlu1 %5052 }
 0x699   : > { %v4404_v10 = vpop.f32.mrf.mxu1  ;;  %4522 = vmax.xlane.f32.xlu0 %v4521_v62  ;;  %4525 = vmax.xlane.f32.xlu1 %v4524_v34  ;;  %21086 = vst [vmem:[#allocation99_spill] sm:$0xff] %v17824_v26 }
 0x69a   : > { %v17818_v49 = vmul.f32 0.17677669, %v4404_v10  ;;  %v17832_v10 = vpop.permute.xlu0 %4908 }
 0x69b   : > { %v14010_v4 = vpop.f32.mrf.mxu1 }
 0x69c   : > { %v4533_v62 = vsel %vm2474_vm2, %v17818_v49, -inf  ;;  %v17834_v4 = vpop.permute.xlu1 %5148 }
 0x69d   : > { %v4407_v23 = vpop.f32.mrf.mxu1  ;;  %4528 = vmax.xlane.f32.xlu0 %v4527_v36  ;;  %4531 = vmax.xlane.f32.xlu1 %v4530_v14  ;;  %21087 = vst [vmem:[#allocation100_spill] sm:$0xff] %v17834_v4 }
 0x69e   : > { %v17826_v2 = vmul.f32 0.17677669, %v4407_v23  ;;  %v17836_v12 = vpop.permute.xlu0 %5004 }
 0x69f   : > { %v14011_v47 = vpop.f32.mrf.mxu1  ;;  %21088 = vst [vmem:[#allocation101_spill] sm:$0xff] %v17836_v12 }
 0x6a0   : > { %v4536_v34 = vsel %vm2474_vm2, %v17826_v2, -inf  ;;  %v17838_v36 = vpop.permute.xlu1 %5244 }
 0x6a1   : > { %4534 = vmax.xlane.f32.xlu0 %v4533_v62  ;;  %4537 = vmax.xlane.f32.xlu1 %v4536_v34  ;;  %21089 = vst [vmem:[#allocation102_spill] sm:$0xff] %v17838_v36 }
 0x6a2   : > { %v17840_v14 = vpop.permute.xlu0 %5100 }
 0x6a3   : > { %21090 = vst [vmem:[#allocation103_spill] sm:$0xff] %v17840_v14 }
 0x6a4   : > { %v17842_v23 = vpop.permute.xlu1 %5292 }
 0x6a5   : > { %21091 = vst [vmem:[#allocation104_spill] sm:$0xff] %v17842_v23 }
 0x6a6   : > { %v17846_v47 = vpop.permute.xlu0 %5196 }
 0x6a7   : > { %21092 = vst [vmem:[#allocation105_spill] sm:$0xff] %v17846_v47 }
 0x6a8   : > { %v17848_v26 = vpop.permute.xlu1 %5340 }
 0x6a9   : > { %21093 = vst [vmem:[#allocation106_spill] sm:$0xff] %v17848_v26 }
 0x6b0   : > { %v4445_v62 = vpop.xlane.xlu0 %4444 }
 0x6b1   : > { %v4539_v4 = vsub.f32 %v17694_v27, %v4445_v62 }
 0x6b2   : > { %5436 = vrot.lane.b32.xlu1 %v21032_v6, %s15777_s9 }
 0x6b3   : > { %v4571_v12 = vmul.f32 1.442695, %v4539_v4 }
 0x6b4   : > { %v4448_v34 = vpop.xlane.xlu1 %4447 }
 0x6b5   : > { %v4540_v36 = vsub.f32 %v17698_v18, %v4448_v34  ;;  %15000 = vpow2.f32 %v4571_v12 }
 0x6b7   : > { %5388 = vrot.lane.b32.xlu0 %v21025_v44, %s15777_s9  ;;  %v4573_v14 = vmul.f32 1.442695, %v4540_v36 }
 0x6b9   : > { %15002 = vpow2.f32 %v4573_v14 }
 0x6c2   : > { %v17854_v23 = vpop.eup %15000 }
 0x6c3   : > { %v4635_v26 = vsel %vm2474_vm2, %v17854_v23, 0.0 }
 0x6c6   : > { %v17856_v6 = vpop.eup %15002 }
 0x6c7   : > { %v4638_v44 = vsel %vm2474_vm2, %v17856_v6, 0.0 }
 0x6d6   : > { %4636 = vadd.xlane.f32.xlu0 %v4635_v26  ;;  %4639 = vadd.xlane.f32.xlu1 %v4638_v44 }
 0x6e4   : > { %v4460_v4 = vpop.xlane.xlu1 %4459 }
 0x6e5   : > { %v4544_v14 = vsub.f32 %v17702_v57, %v4460_v4 }
 0x6e7   : > { %v4581_v42 = vmul.f32 1.442695, %v4544_v14 }
 0x6ee   : > { %v4451_v47 = vpop.xlane.xlu0 %4450 }
 0x6ef   : > { %v4541_v27 = vsub.f32 %v17712_v33, %v4451_v47 }
 0x6f1   : > { %v4575_v18 = vmul.f32 1.442695, %v4541_v27 }
 0x6f2   : > { %v4457_v36 = vpop.xlane.xlu0 %4456 }
 0x6f3   : > { %15004 = vpow2.f32 %v4575_v18  ;;  %v4543_v12 = vsub.f32 %v17714_v9, %v4457_v36 }
 0x6f5   : > { %v4579_v62 = vmul.f32 1.442695, %v4543_v12 }
 0x6f6   : > { %v4454_v34 = vpop.xlane.xlu0 %4453 }
 0x6f7   : > { %15006 = vpow2.f32 %v4579_v62  ;;  %v4542_v0 = vsub.f32 %v17718_v28, %v4454_v34 }
 0x6f9   : > { %v4577_v48 = vmul.f32 1.442695, %v4542_v0 }
 0x6fa   : > { %v4463_v26 = vpop.xlane.xlu0 %4462  ;;  %v4466_v44 = vpop.xlane.xlu1 %4465 }
 0x6fb   : > { %15008 = vpow2.f32 %v4577_v48  ;;  %v4545_v33 = vsub.f32 %v17722_v5, %v4463_v26  ;;  %v4546_v47 = vsub.f32 %v17726_v60, %v4466_v44 }
 0x6fc   : > { %15010 = vpow2.f32 %v4581_v42 }
 0x6fd   : > { %v4583_v27 = vmul.f32 1.442695, %v4545_v33  ;;  %v4585_v18 = vmul.f32 1.442695, %v4546_v47 }
 0x6fe   : > { %v4469_v9 = vpop.xlane.xlu0 %4468  ;;  %v4472_v36 = vpop.xlane.xlu1 %4471 }
 0x6ff   : > { %15012 = vpow2.f32 %v4583_v27  ;;  %v4547_v57 = vsub.f32 %v17728_v51, %v4469_v9  ;;  %v4548_v4 = vsub.f32 %v17730_v63, %v4472_v36 }
 0x700   : > { %v17870_v28 = vpop.eup %15004  ;;  %15014 = vpow2.f32 %v4585_v18 }
 0x701   : > { %v4587_v0 = vmul.f32 1.442695, %v4547_v57  ;;  %v4589_v12 = vmul.f32 1.442695, %v4548_v4  ;;  %v4641_v48 = vsel %vm2474_vm2, %v17870_v28, 0.0 }
 0x702   : > { %v4475_v5 = vpop.xlane.xlu0 %4474  ;;  %v4478_v60 = vpop.xlane.xlu1 %4477  ;;  %4642 = vadd.xlane.f32.xlu0 %v4641_v48 }
 0x703   : > { %15016 = vpow2.f32 %v4587_v0  ;;  %v4549_v42 = vsub.f32 %v17736_v31, %v4475_v5  ;;  %v4550_v14 = vsub.f32 %v17742_v21, %v4478_v60 }
 0x704   : > { %v17876_v62 = vpop.eup %15006  ;;  %15018 = vpow2.f32 %v4589_v12 }
 0x705   : > { %v4591_v51 = vmul.f32 1.442695, %v4549_v42  ;;  %v4593_v63 = vmul.f32 1.442695, %v4550_v14  ;;  %v4647_v34 = vsel %vm2474_vm2, %v17876_v62, 0.0 }
 0x706   : > { %v4481_v26 = vpop.xlane.xlu0 %4480  ;;  %v4484_v44 = vpop.xlane.xlu1 %4483  ;;  %4648 = vadd.xlane.f32.xlu0 %v4647_v34 }
 0x707   : > { %15020 = vpow2.f32 %v4591_v51  ;;  %v4551_v33 = vsub.f32 %v17744_v39, %v4481_v26  ;;  %v4552_v47 = vsub.f32 %v17746_v30, %v4484_v44 }
 0x708   : > { %v17882_v27 = vpop.eup %15008  ;;  %15022 = vpow2.f32 %v4593_v63 }
 0x709   : > { %v4595_v21 = vmul.f32 1.442695, %v4551_v33  ;;  %v4597_v31 = vmul.f32 1.442695, %v4552_v47  ;;  %v4644_v18 = vsel %vm2474_vm2, %v17882_v27, 0.0  ;;  %v17886_v9 = vpop.eup %15010 }
 0x70a   : > { %v4487_v36 = vpop.xlane.xlu0 %4486  ;;  %v4490_v57 = vpop.xlane.xlu1 %4489  ;;  %4645 = vadd.xlane.f32.xlu1 %v4644_v18  ;;  %v4650_v48 = vsel %vm2474_vm2, %v17886_v9, 0.0 }
 0x70b   : > { %15024 = vpow2.f32 %v4595_v21  ;;  %v4553_v4 = vsub.f32 %v17752_v17, %v4487_v36  ;;  %v4554_v39 = vsub.f32 %v17758_v50, %v4490_v57 }
 0x70c   : > { %v17889_v0 = vpop.eup %15012  ;;  %15026 = vpow2.f32 %v4597_v31 }
 0x70d   : > { %v4599_v30 = vmul.f32 1.442695, %v4553_v4  ;;  %v4653_v12 = vsel %vm2474_vm2, %v17889_v0, 0.0  ;;  %v17896_v5 = vpop.eup %15014  ;;  %v4601_v51 = vmul.f32 1.442695, %v4554_v39 }
 0x70e   : > { %v4493_v60 = vpop.xlane.xlu0 %4492  ;;  %v4496_v42 = vpop.xlane.xlu1 %4495  ;;  %4654 = vadd.xlane.f32.xlu0 %v4653_v12  ;;  %4651 = vadd.xlane.f32.xlu1 %v4650_v48  ;;  %v4656_v44 = vsel %vm2474_vm2, %v17896_v5, 0.0 }
 0x70f   : > { %15028 = vpow2.f32 %v4599_v30  ;;  %v4555_v17 = vsub.f32 %v17760_v38, %v4493_v60  ;;  %v4556_v14 = vsub.f32 %v17762_v15, %v4496_v42 }
 0x710   : > { %v17900_v50 = vpop.eup %15016 }
 0x711   : > { %v4603_v63 = vmul.f32 1.442695, %v4555_v17  ;;  %v4605_v34 = vmul.f32 1.442695, %v4556_v14  ;;  %v4659_v26 = vsel %vm2474_vm2, %v17900_v50, 0.0  ;;  %v17906_v33 = vpop.eup %15018 }
 0x712   : > { %v4499_v47 = vpop.xlane.xlu0 %4498  ;;  %v4502_v21 = vpop.xlane.xlu1 %4501  ;;  %4660 = vadd.xlane.f32.xlu0 %v4659_v26  ;;  %4657 = vadd.xlane.f32.xlu1 %v4656_v44  ;;  %v4662_v57 = vsel %vm2474_vm2, %v17906_v33, 0.0 }
 0x713   : > { %15030 = vpow2.f32 %v4603_v63  ;;  %v4557_v38 = vsub.f32 %v17768_v53, %v4499_v47  ;;  %v4558_v15 = vsub.f32 %v17774_v58, %v4502_v21 }
 0x714   : > { %v17910_v31 = vpop.eup %15020  ;;  %15032 = vpow2.f32 %v4605_v34 }
 0x715   : > { %15034 = vpow2.f32 %v4601_v51  ;;  %v4607_v18 = vmul.f32 1.442695, %v4557_v38  ;;  %v4665_v36 = vsel %vm2474_vm2, %v17910_v31, 0.0  ;;  %v17916_v4 = vpop.eup %15022  ;;  %v4609_v39 = vmul.f32 1.442695, %v4558_v15 }
 0x716   : > { %v4505_v30 = vpop.xlane.xlu0 %4504  ;;  %v4508_v12 = vpop.xlane.xlu1 %4507  ;;  %4666 = vadd.xlane.f32.xlu0 %v4665_v36  ;;  %4663 = vadd.xlane.f32.xlu1 %v4662_v57  ;;  %v4668_v14 = vsel %vm2474_vm2, %v17916_v4, 0.0 }
 0x717   : > { %15036 = vpow2.f32 %v4607_v18  ;;  %v4559_v58 = vsub.f32 %v17776_v52, %v4505_v30  ;;  %v4560_v53 = vsub.f32 %v17778_v25, %v4508_v12 }
 0x718   : > { %v17920_v48 = vpop.eup %15024  ;;  %15038 = vpow2.f32 %v4609_v39 }
 0x719   : > { %v4611_v60 = vmul.f32 1.442695, %v4559_v58  ;;  %v4613_v42 = vmul.f32 1.442695, %v4560_v53  ;;  %v4671_v17 = vsel %vm2474_vm2, %v17920_v48, 0.0  ;;  %v17926_v51 = vpop.eup %15026 }
 0x71a   : > { %v4511_v63 = vpop.xlane.xlu0 %4510  ;;  %v4514_v34 = vpop.xlane.xlu1 %4513  ;;  %4672 = vadd.xlane.f32.xlu0 %v4671_v17  ;;  %4669 = vadd.xlane.f32.xlu1 %v4668_v14  ;;  %v4674_v21 = vsel %vm2474_vm2, %v17926_v51, 0.0 }
 0x71b   : > { %15040 = vpow2.f32 %v4611_v60  ;;  %v4561_v52 = vsub.f32 %v17784_v1, %v4511_v63  ;;  %v4562_v26 = vsub.f32 %v17790_v16, %v4514_v34 }
 0x71c   : > { %v17929_v25 = vpop.eup %15028  ;;  %15042 = vpow2.f32 %v4613_v42 }
 0x71d   : > { %v4615_v44 = vmul.f32 1.442695, %v4561_v52  ;;  %v4677_v47 = vsel %vm2474_vm2, %v17929_v25, 0.0  ;;  %v4617_v57 = vmul.f32 1.442695, %v4562_v26 }
 0x71e   : > { %v4517_v38 = vpop.xlane.xlu0 %4516  ;;  %v4520_v15 = vpop.xlane.xlu1 %4519  ;;  %4678 = vadd.xlane.f32.xlu0 %v4677_v47  ;;  %4675 = vadd.xlane.f32.xlu1 %v4674_v21 }
 0x71f   : > { %15044 = vpow2.f32 %v4615_v44  ;;  %v4563_v18 = vsub.f32 %v17792_v61, %v4517_v38  ;;  %v4564_v1 = vsub.f32 %v17794_v29, %v4520_v15 }
 0x720   : > { %v17938_v36 = vpop.eup %15030 }
 0x721   : > { %v17940_v16 = vpop.eup %15032  ;;  %v4619_v39 = vmul.f32 1.442695, %v4563_v18  ;;  %v4621_v30 = vmul.f32 1.442695, %v4564_v1  ;;  %v4683_v12 = vsel %vm2474_vm2, %v17938_v36, 0.0 }
 0x722   : > { %v17944_v58 = vpop.eup %15034  ;;  %v4523_v53 = vpop.xlane.xlu0 %4522  ;;  %v4686_v42 = vsel %vm2474_vm2, %v17940_v16, 0.0  ;;  %4684 = vadd.xlane.f32.xlu1 %v4683_v12 }
 0x723   : > { %v4526_v60 = vpop.xlane.xlu1 %4525  ;;  %15046 = vpow2.f32 %v4619_v39  ;;  %v4565_v61 = vsub.f32 %v17800_v13, %v4523_v53  ;;  %4687 = vadd.xlane.f32.xlu0 %v4686_v42  ;;  %v4680_v34 = vsel %vm2474_vm2, %v17944_v58, 0.0 }
 0x724   : > { %v17949_v29 = vpop.eup %15036  ;;  %15048 = vpow2.f32 %v4621_v30  ;;  %v4566_v17 = vsub.f32 %v17806_v22, %v4526_v60 }
 0x725   : > { %15050 = vpow2.f32 %v4617_v57  ;;  %v4623_v14 = vmul.f32 1.442695, %v4565_v61  ;;  %v4689_v63 = vsel %vm2474_vm2, %v17949_v29, 0.0  ;;  %v17956_v44 = vpop.eup %15038 }
 0x726   : > { %v4529_v52 = vpop.xlane.xlu0 %4528  ;;  %4681 = vadd.xlane.f32.xlu1 %v4680_v34  ;;  %v4625_v21 = vmul.f32 1.442695, %v4566_v17  ;;  %v4692_v53 = vsel %vm2474_vm2, %v17956_v44, 0.0 }
 0x727   : > { %v4532_v26 = vpop.xlane.xlu1 %4531  ;;  %15052 = vpow2.f32 %v4623_v14  ;;  %4690 = vadd.xlane.f32.xlu0 %v4689_v63  ;;  %v4567_v13 = vsub.f32 %v17810_v59, %v4529_v52 }
 0x728   : > { %v4568_v47 = vsub.f32 %v17812_v37, %v4532_v26  ;;  %v17960_v22 = vpop.eup %15040 }
 0x729   : > { %v17962_v38 = vpop.eup %15042  ;;  %v4627_v15 = vmul.f32 1.442695, %v4567_v13  ;;  %v4695_v1 = vsel %vm2474_vm2, %v17960_v22, 0.0 }
 0x72a   : > { %v4629_v18 = vmul.f32 1.442695, %v4568_v47  ;;  %v4698_v57 = vsel %vm2474_vm2, %v17962_v38, 0.0  ;;  %v4535_v39 = vpop.xlane.xlu0 %4534  ;;  %4696 = vadd.xlane.f32.xlu1 %v4695_v1 }
 0x72b   : > { %v4538_v30 = vpop.xlane.xlu1 %4537  ;;  %15054 = vpow2.f32 %v4627_v15  ;;  %4699 = vadd.xlane.f32.xlu0 %v4698_v57  ;;  %v4569_v59 = vsub.f32 %v17818_v49, %v4535_v39 }
 0x72c   : > { %v4570_v37 = vsub.f32 %v17826_v2, %v4538_v30  ;;  %v17970_v12 = vpop.eup %15044  ;;  %15056 = vpow2.f32 %v4629_v18 }
 0x72d   : > { %15058 = vpow2.f32 %v4625_v21  ;;  %v4631_v60 = vmul.f32 1.442695, %v4569_v59  ;;  %v4701_v61 = vsel %vm2474_vm2, %v17970_v12, 0.0 }
 0x72e   : > { %v4633_v42 = vmul.f32 1.442695, %v4570_v37  ;;  %4693 = vadd.xlane.f32.xlu1 %v4692_v53  ;;  %v18020_v37 = vpop.permute.xlu0 %5388 }
 0x72f   : > { %15060 = vpow2.f32 %v4631_v60  ;;  %4702 = vadd.xlane.f32.xlu0 %v4701_v61  ;;  %v18022_v53 = vpop.permute.xlu1 %5436 }
 0x730   : > { %v17976_v17 = vpop.eup %15046  ;;  %15062 = vpow2.f32 %v4633_v42 }
 0x731   : > { %v17978_v49 = vpop.eup %15048  ;;  %v4707_v2 = vsel %vm2474_vm2, %v17976_v17, 0.0 }
 0x732   : > { %v17982_v14 = vpop.eup %15050  ;;  %v4710_v63 = vsel %vm2474_vm2, %v17978_v49, 0.0  ;;  %4708 = vadd.xlane.f32.xlu1 %v4707_v2 }
 0x733   : > { %4711 = vadd.xlane.f32.xlu0 %v4710_v63  ;;  %v4704_v26 = vsel %vm2474_vm2, %v17982_v14, 0.0 }
 0x734   : > { %v17986_v34 = vpop.eup %15052 }
 0x735   : > { %v4713_v52 = vsel %vm2474_vm2, %v17986_v34, 0.0 }
 0x736   : > { %4705 = vadd.xlane.f32.xlu1 %v4704_v26 }
 0x737   : > { %4714 = vadd.xlane.f32.xlu0 %v4713_v52 }
 0x738   : > { %v17992_v13 = vpop.eup %15054 }
 0x739   : > { %v17994_v47 = vpop.eup %15056  ;;  %v4719_v21 = vsel %vm2474_vm2, %v17992_v13, 0.0 }
 0x73a   : > { %v17998_v15 = vpop.eup %15058  ;;  %4720 = vadd.xlane.f32.xlu1 %v4719_v21  ;;  %v4722_v18 = vsel %vm2474_vm2, %v17994_v47, 0.0  ;;  %v21094_v21 = vmov 0.0  }
 0x73b   : > { %4723 = vadd.xlane.f32.xlu0 %v4722_v18  ;;  %v4716_v57 = vsel %vm2474_vm2, %v17998_v15, 0.0  ;;  %v21097_v18 = vld [vmem:[#allocation45_spill] sm:$0xff] }
 0x73c   : > { %v18002_v1 = vpop.eup %15060 }
 0x73d   : > { %v4725_v39 = vsel %vm2474_vm2, %v18002_v1, 0.0  ;;  %v18008_v30 = vpop.eup %15062 }
 0x73e   : > { %4717 = vadd.xlane.f32.xlu1 %v4716_v57  ;;  %v4728_v59 = vsel %vm2474_vm2, %v18008_v30, 0.0  ;;  %v21098_v57 = vld [vmem:[#allocation39_spill] sm:$0xff] }
 0x73f   : > { %4726 = vadd.xlane.f32.xlu0 %v4725_v39  ;;  %v21099_v39 = vld [vmem:[#allocation38_spill] sm:$0xff] }
 0x742   : > { %4729 = vadd.xlane.f32.xlu1 %v4728_v59  ;;  %v21101_v59 = vld [vmem:[#allocation48_spill] sm:$0xff] }
 0x753   : > { %5532 = vrot.lane.b32.xlu1 %v21052_v20, %s15777_s9 }
 0x755   : > { %5484 = vrot.lane.b32.xlu0 %v21031_v19, %s15777_s9 }
 0x757   : > { %6082 = vrot.lane.b32.xlu1 %v16662_v7, %s15778_s12 }
 0x759   : > { %6031 = vrot.lane.b32.xlu0 %v16650_v8, %s15778_s12 }
 0x75b   : > { %6133 = vrot.lane.b32.xlu1 %v21034_v56, %s15778_s12 }
 0x75d   : > { %6029 = vrot.lane.b32.xlu0 %v16665_v24, %s15778_s12 }
 0x75f   : > { %v4637_v60 = vpop.xlane.xlu0 %4636  ;;  %6184 = vrot.lane.b32.xlu1 %v21036_v43, %s15778_s12  ;;  %v4640_v42 = vpop.xlane.xlu1 %4639 }
 0x760   : > { %15064 = vrcp.f32 %v4637_v60  ;;  %v21102_v60 = vld [vmem:[#allocation43_spill] sm:$0xff] }
 0x761   : > { %15066 = vrcp.f32 %v4640_v42  ;;  %6080 = vrot.lane.b32.xlu0 %v16682_v41, %s15778_s12  ;;  %v21103_v42 = vld [vmem:[#allocation42_spill] sm:$0xff] }
 0x763   : > { %6235 = vrot.lane.b32.xlu1 %v21037_v54, %s15778_s12 }
 0x765   : > { %6131 = vrot.lane.b32.xlu0 %v16705_v11, %s15778_s12 }
 0x767   : > { %6286 = vrot.lane.b32.xlu1 %v21038_v35, %s15778_s12 }
 0x769   : > { %6182 = vrot.lane.b32.xlu0 %v16732_v46, %s15778_s12 }
 0x76b   : > { %6337 = vrot.lane.b32.xlu1 %v21039_v45, %s15778_s12 }
 0x76d   : > { %v15065_v61 = vpop.eup %15064  ;;  %6233 = vrot.lane.b32.xlu0 %v16757_v3, %s15778_s12 }
 0x76e   : > { %v15067_v2 = vpop.eup %15066  ;;  %v4763_v63 = vmul.f32 %v15065_v61, %v17854_v23  ;;  %v21095_v23 = vld [vmem:[#allocation41_spill] sm:$0xff] }
 0x76f   : > { %v4764_v52 = vmul.f32 %v15067_v2, %v17856_v6  ;;  %6388 = vrot.lane.b32.xlu1 %v21040_v40, %s15778_s12  ;;  %v21096_v6 = vld [vmem:[#allocation44_spill] sm:$0xff]  ;;  %v21104_v61 = vld [vmem:[#allocation49_spill] sm:$0xff]  ;;  %v21105_v2 = vld [vmem:[#allocation50_spill] sm:$0xff] }
 0x771   : > { %6284 = vrot.lane.b32.xlu0 %v16791_v55, %s15778_s12  ;;  %v4795_v26 = vpack.c.bf16 %v4764_v52, %v4763_v63  ;;  %v21106_v63 = vld [vmem:[#allocation53_spill] sm:$0xff] }
 0x773   : > { %14015 = vmatmul.mubr.msk.bf16.vlgmr.msra.gmra.mxu0 %vm2474_vm2, %v4795_v26  ;;  %6439 = vrot.lane.b32.xlu1 %v21041_v32, %s15778_s12  ;;  %v21107_v26 = vld [vmem:[#allocation46_spill] sm:$0xff] }
 0x774   : > { %14025 = vmatpush3.bf16.msra.mxu0 %v17832_v10  ;;  %14026 = vmatprep.mubr.msk.bf16.mxu0 %vm15776_vm0, %v21094_v21  ;;  %v21100_v10 = vld [vmem:[#allocation47_spill] sm:$0xff] }
 0x775   : > { %6335 = vrot.lane.b32.xlu0 %v21095_v23, %s15778_s12  ;;  %14036 = vmatprep.subr.bf16.mxu0 %v21094_v21 }
 0x777   : > { %6490 = vrot.lane.b32.xlu1 %v21096_v6, %s15778_s12 }
 0x779   : > { %6386 = vrot.lane.b32.xlu0 %v21097_v18, %s15778_s12 }
 0x77b   : > { %6541 = vrot.lane.b32.xlu1 %v21098_v57, %s15778_s12  ;;  %v21108_v57 = vld [vmem:[#allocation52_spill] sm:$0xff] }
 0x77d   : > { %6437 = vrot.lane.b32.xlu0 %v21099_v39, %s15778_s12 }
 0x77f   : > { %6592 = vrot.lane.b32.xlu1 %v21100_v10, %s15778_s12 }
 0x781   : > { %6488 = vrot.lane.b32.xlu0 %v21101_v59, %s15778_s12 }
 0x783   : > { %6643 = vrot.lane.b32.xlu1 %v21102_v60, %s15778_s12  ;;  %v21109_v60 = vld [vmem:[#allocation51_spill] sm:$0xff] }
 0x785   : > { %6539 = vrot.lane.b32.xlu0 %v21103_v42, %s15778_s12 }
 0x787   : > { %6694 = vrot.lane.b32.xlu1 %v21104_v61, %s15778_s12  ;;  %v21110_v61 = vld [vmem:[#allocation54_spill] sm:$0xff] }
 0x789   : > { %6590 = vrot.lane.b32.xlu0 %v21105_v2, %s15778_s12  ;;  %v21111_v2 = vld [vmem:[#allocation56_spill] sm:$0xff] }
 0x78b   : > { %6745 = vrot.lane.b32.xlu1 %v21106_v63, %s15778_s12  ;;  %v4643_v52 = vpop.xlane.xlu0 %4642 }
 0x78c   : > { %15068 = vrcp.f32 %v4643_v52 }
 0x78d   : > { %6641 = vrot.lane.b32.xlu0 %v21107_v26, %s15778_s12  ;;  %v21112_v26 = vld [vmem:[#allocation55_spill] sm:$0xff] }
 0x78f   : > { %6796 = vrot.lane.b32.xlu1 %v21108_v57, %s15778_s12  ;;  %v4649_v42 = vpop.xlane.xlu0 %4648  ;;  %v21113_v57 = vld [vmem:[#allocation57_spill] sm:$0xff] }
 0x791   : > { %6692 = vrot.lane.b32.xlu0 %v21109_v60, %s15778_s12  ;;  %v21114_v60 = vld [vmem:[#allocation58_spill] sm:$0xff] }
 0x793   : > { %6794 = vrot.lane.b32.xlu1 %v21110_v61, %s15778_s12  ;;  %v4646_v39 = vpop.xlane.xlu1 %4645 }
 0x794   : > { %15070 = vrcp.f32 %v4646_v39  ;;  %v21115_v39 = vld [vmem:[#allocation59_spill] sm:$0xff] }
 0x795   : > { %6743 = vrot.lane.b32.xlu0 %v21111_v2, %s15778_s12  ;;  %15072 = vrcp.f32 %v4649_v42 }
 0x797   : > { %v4655_v63 = vpop.xlane.xlu0 %4654  ;;  %7292 = vrot.lane.b32.xlu1 %v21112_v26, %s15778_s12  ;;  %v4652_v32 = vpop.xlane.xlu1 %4651  ;;  %v21116_v26 = vld [vmem:[#allocation60_spill] sm:$0xff] }
 0x798   : > { %15074 = vrcp.f32 %v4652_v32 }
 0x799   : > { %7245 = vrot.lane.b32.xlu0 %v21113_v57, %s15778_s12  ;;  %15076 = vrcp.f32 %v4655_v63  ;;  %v15069_v42 = vpop.eup %15068  ;;  %v21117_v63 = vld [vmem:[#allocation61_spill] sm:$0xff] }
 0x79a   : > { %v4765_v57 = vmul.f32 %v15069_v42, %v17870_v28 }
 0x79b   : > { %v4661_v52 = vpop.xlane.xlu0 %4660  ;;  %7386 = vrot.lane.b32.xlu1 %v21114_v60, %s15778_s12  ;;  %v4658_v61 = vpop.xlane.xlu1 %4657 }
 0x79c   : > { %15078 = vrcp.f32 %v4658_v61 }
 0x79d   : > { %7339 = vrot.lane.b32.xlu0 %v21115_v39, %s15778_s12  ;;  %15080 = vrcp.f32 %v4661_v52  ;;  %v21118_v39 = vld [vmem:[#allocation62_spill] sm:$0xff] }
 0x79f   : > { %v4667_v2 = vpop.xlane.xlu0 %4666  ;;  %7480 = vrot.lane.b32.xlu1 %v21116_v26, %s15778_s12  ;;  %v4664_v32 = vpop.xlane.xlu1 %4663  ;;  %v21119_v26 = vld [vmem:[#allocation63_spill] sm:$0xff] }
 0x7a0   : > { %15082 = vrcp.f32 %v4664_v32 }
 0x7a1   : > { %v15071_v10 = vpop.eup %15070  ;;  %7433 = vrot.lane.b32.xlu0 %v21117_v63, %s15778_s12  ;;  %15084 = vrcp.f32 %v4667_v2  ;;  %v21121_v2 = vld [vmem:[#allocation64_spill] sm:$0xff] }
 0x7a2   : > { %v4766_v60 = vmul.f32 %v15071_v10, %v17882_v27  ;;  %v15073_v40 = vpop.eup %15072  ;;  %v21120_v27 = vld [vmem:[#allocation98_spill] sm:$0xff] }
 0x7a3   : > { %v4673_v61 = vpop.xlane.xlu0 %4672  ;;  %7574 = vrot.lane.b32.xlu1 %v21118_v39, %s15778_s12  ;;  %v4670_v52 = vpop.xlane.xlu1 %4669  ;;  %v4767_v63 = vmul.f32 %v15073_v40, %v17876_v62 }
 0x7a4   : > { %v4796_v59 = vpack.c.bf16 %v4766_v60, %v4765_v57  ;;  %15086 = vrcp.f32 %v4670_v52 }
 0x7a5   : > { %7527 = vrot.lane.b32.xlu0 %v21119_v26, %s15778_s12  ;;  %v15075_v32 = vpop.eup %15074  ;;  %15088 = vrcp.f32 %v4673_v61  ;;  %v21123_v61 = vld [vmem:[#allocation67_spill] sm:$0xff] }
 0x7a6   : > { %14021 = vmatmul.mubr.msk.bf16.vlgmr.msra.gmra.mxu1 %vm2474_vm2, %v4796_v59  ;;  %v4768_v28 = vmul.f32 %v15075_v32, %v17886_v9  ;;  %v15077_v57 = vpop.eup %15076  ;;  %v21122_v59 = vld [vmem:[#allocation65_spill] sm:$0xff] }
 0x7a7   : > { %14031 = vmatpush3.bf16.msra.mxu1 %v21120_v27  ;;  %v4679_v10 = vpop.xlane.xlu0 %4678  ;;  %7668 = vrot.lane.b32.xlu1 %v21121_v2, %s15778_s12  ;;  %v4676_v42 = vpop.xlane.xlu1 %4675  ;;  %v4769_v9 = vmul.f32 %v15077_v57, %v17889_v0  ;;  %v21124_v27 = vld [vmem:[#allocation101_spill] sm:$0xff] }
 0x7a8   : > { %14032 = vmatprep.mubr.msk.bf16.mxu1 %vm15776_vm0, %v21094_v21  ;;  %14042 = vmatprep.subr.bf16.mxu1 %v21094_v21  ;;  %15090 = vrcp.f32 %v4676_v42  ;;  %v4797_v40 = vpack.c.bf16 %v4768_v28, %v4767_v63  ;;  %v21125_v42 = vld [vmem:[#allocation66_spill] sm:$0xff] }
 0x7a9   : > { %7621 = vrot.lane.b32.xlu0 %v21122_v59, %s15778_s12  ;;  %v15079_v62 = vpop.eup %15078 }
 0x7aa   : > { %v4770_v60 = vmul.f32 %v15079_v62, %v17896_v5  ;;  %14027 = vmatmul.mubr.msk.bf16.vlgmr.msra.gmra.mxu0 %vm2474_vm2, %v4797_v40  ;;  %v15081_v32 = vpop.eup %15080  ;;  %v21126_v62 = vld [vmem:[#allocation99_spill] sm:$0xff] }
 0x7ab   : > { %7715 = vrot.lane.b32.xlu1 %v21123_v61, %s15778_s12  ;;  %v4685_v52 = vpop.xlane.xlu1 %4684  ;;  %14037 = vmatpush3.bf16.msra.mxu0 %v21124_v27  ;;  %v4771_v5 = vmul.f32 %v15081_v32, %v17900_v50  ;;  %v21127_v32 = vld [vmem:[#allocation103_spill] sm:$0xff] }
 0x7ac   : > { %v4688_v2 = vpop.xlane.xlu0 %4687  ;;  %15092 = vrcp.f32 %v4685_v52  ;;  %14038 = vmatprep.mubr.msk.bf16.mxu0 %vm15776_vm0, %v21094_v21  ;;  %v4798_v63 = vpack.c.bf16 %v4770_v60, %v4769_v9  ;;  %14048 = vmatprep.subr.bf16.mxu0 %v21094_v21 }
 0x7ad   : > { %15094 = vrcp.f32 %v4688_v2  ;;  %v15083_v0 = vpop.eup %15082 }
 0x7ae   : > { %15096 = vrcp.f32 %v4679_v10  ;;  %v4772_v28 = vmul.f32 %v15083_v0, %v17906_v33  ;;  %14033 = vmatmul.mubr.msk.bf16.vlgmr.msra.gmra.mxu1 %vm2474_vm2, %v4798_v63  ;;  %v15085_v40 = vpop.eup %15084 }
 0x7af   : > { %7762 = vrot.lane.b32.xlu1 %v21125_v42, %s15778_s12  ;;  %v4682_v57 = vpop.xlane.xlu1 %4681  ;;  %14043 = vmatpush3.bf16.msra.mxu1 %v21126_v62  ;;  %v4773_v33 = vmul.f32 %v15085_v40, %v17910_v31 }
 0x7b0   : > { %v4691_v52 = vpop.xlane.xlu0 %4690  ;;  %15098 = vrcp.f32 %v4682_v57  ;;  %14044 = vmatprep.mubr.msk.bf16.mxu1 %vm15776_vm0, %v21094_v21  ;;  %v4799_v2 = vpack.c.bf16 %v4772_v28, %v4771_v5  ;;  %14054 = vmatprep.subr.bf16.mxu1 %v21094_v21  ;;  %v21128_v28 = vld [vmem:[#allocation100_spill] sm:$0xff] }
 0x7b1   : > { %v15087_v50 = vpop.eup %15086 }
 0x7b2   : > { %v4774_v10 = vmul.f32 %v15087_v50, %v17916_v4  ;;  %14039 = vmatmul.mubr.msk.bf16.vlgmr.msra.gmra.mxu0 %vm2474_vm2, %v4799_v2  ;;  %v15089_v60 = vpop.eup %15088 }
 0x7b3   : > { %v4697_v9 = vpop.xlane.xlu1 %4696  ;;  %14049 = vmatpush3.bf16.msra.mxu0 %v21127_v32  ;;  %14050 = vmatprep.mubr.msk.bf16.mxu0 %vm15776_vm0, %v21094_v21  ;;  %v4775_v31 = vmul.f32 %v15089_v60, %v17920_v48 }
 0x7b4   : > { %v4700_v27 = vpop.xlane.xlu0 %4699  ;;  %15100 = vrcp.f32 %v4697_v9  ;;  %v4800_v63 = vpack.c.bf16 %v4774_v10, %v4773_v33  ;;  %14060 = vmatprep.subr.bf16.mxu0 %v21094_v21 }
 0x7b5   : > { %15102 = vrcp.f32 %v4700_v27  ;;  %v15091_v0 = vpop.eup %15090 }
 0x7b6   : > { %15104 = vrcp.f32 %v4691_v52  ;;  %v4776_v4 = vmul.f32 %v15091_v0, %v17926_v51  ;;  %14045 = vmatmul.mubr.msk.bf16.vlgmr.msra.gmra.mxu1 %vm2474_vm2, %v4800_v63  ;;  %v21129_v51 = vld [vmem:[#allocation105_spill] sm:$0xff] }
 0x7b7   : > { %v4694_v5 = vpop.xlane.xlu1 %4693  ;;  %14055 = vmatpush3.bf16.msra.mxu1 %v21128_v28  ;;  %14056 = vmatprep.mubr.msk.bf16.mxu1 %vm15776_vm0, %v21094_v21 }
 0x7b8   : > { %v4703_v57 = vpop.xlane.xlu0 %4702  ;;  %15106 = vrcp.f32 %v4694_v5  ;;  %v4801_v62 = vpack.c.bf16 %v4776_v4, %v4775_v31  ;;  %14066 = vmatprep.subr.bf16.mxu1 %v21094_v21 }
 0x7b9   : > { %v15093_v40 = vpop.eup %15092 }
 0x7ba   : > { %v15095_v2 = vpop.eup %15094  ;;  %14051 = vmatmul.mubr.msk.bf16.vlgmr.msra.gmra.mxu0 %vm2474_vm2, %v4801_v62  ;;  %v4779_v9 = vmul.f32 %v15093_v40, %v17938_v36  ;;  %v21130_v36 = vld [vmem:[#allocation102_spill] sm:$0xff]  ;;  %v21131_v40 = vld [vmem:[#allocation104_spill] sm:$0xff] }
 0x7bb   : > { %v15097_v52 = vpop.eup %15096  ;;  %v4709_v48 = vpop.xlane.xlu1 %4708  ;;  %14061 = vmatpush3.bf16.msra.mxu0 %v21129_v51  ;;  %14062 = vmatprep.mubr.msk.bf16.mxu0 %vm15776_vm0, %v21094_v21  ;;  %v4780_v10 = vmul.f32 %v15095_v2, %v17940_v16 }
 0x7bc   : > { %v4712_v50 = vpop.xlane.xlu0 %4711  ;;  %15108 = vrcp.f32 %v4709_v48  ;;  %14072 = vmatprep.subr.bf16.mxu0 %v21094_v21  ;;  %v4777_v60 = vmul.f32 %v15097_v52, %v17929_v25 }
 0x7bd   : > { %v15099_v33 = vpop.eup %15098  ;;  %15110 = vrcp.f32 %v4712_v50  ;;  %v4803_v4 = vpack.c.bf16 %v4780_v10, %v4779_v9  ;;  %v21132_v9 = vld [vmem:[#allocation106_spill] sm:$0xff] }
 0x7be   : > { %v4778_v32 = vmul.f32 %v15099_v33, %v17944_v58  ;;  %15112 = vrcp.f32 %v4703_v57 }
 0x7bf   : > { %v4706_v27 = vpop.xlane.xlu1 %4705 }
 0x7c0   : > { %v4715_v63 = vpop.xlane.xlu0 %4714  ;;  %15114 = vrcp.f32 %v4706_v27  ;;  %v4802_v0 = vpack.c.bf16 %v4778_v32, %v4777_v60 }
 0x7c1   : > { %v15101_v31 = vpop.eup %15100 }
 0x7c2   : > { %v15103_v5 = vpop.eup %15102  ;;  %14057 = vmatmul.mubr.msk.bf16.vlgmr.msra.gmra.mxu1 %vm2474_vm2, %v4802_v0  ;;  %14063 = vmatmul.mubr.msk.bf16.vlgmr.msra.gmra.mxu0 %vm2474_vm2, %v4803_v4  ;;  %v4783_v62 = vmul.f32 %v15101_v31, %v17960_v22 }
 0x7c3   : > { %v15105_v16 = vpop.eup %15104  ;;  %14067 = vmatpush3.bf16.msra.mxu1 %v21130_v36  ;;  %v4721_v28 = vpop.xlane.xlu1 %4720  ;;  %14073 = vmatpush3.bf16.msra.mxu0 %v21131_v40  ;;  %v4784_v57 = vmul.f32 %v15103_v5, %v17962_v38  ;;  %v15450_v40 = vld [vmem:[%s16065_s27 + $0x68] sm:$0xff] }
 0x7c4   : > { %v4724_v25 = vpop.xlane.xlu0 %4723  ;;  %15116 = vrcp.f32 %v4721_v28  ;;  %14068 = vmatprep.mubr.msk.bf16.mxu1 %vm15776_vm0, %v21094_v21  ;;  %14074 = vmatprep.mubr.msk.bf16.mxu0 %vm15776_vm0, %v21094_v21  ;;  %v4781_v2 = vmul.f32 %v15105_v16, %v17949_v29 }
 0x7c5   : > { %v15107_v58 = vpop.eup %15106  ;;  %15118 = vrcp.f32 %v4724_v25  ;;  %14078 = vmatprep.subr.bf16.mxu1 %v21094_v21  ;;  %14084 = vmatprep.subr.bf16.mxu0 %v21094_v21  ;;  %v4805_v38 = vpack.c.bf16 %v4784_v57, %v4783_v62 }
 0x7c6   : > { %v4782_v52 = vmul.f32 %v15107_v58, %v17956_v44  ;;  %15120 = vrcp.f32 %v4715_v63 }
 0x7c7   : > { %v4718_v48 = vpop.xlane.xlu1 %4717 }
 0x7c8   : > { %15122 = vrcp.f32 %v4718_v48  ;;  %v4804_v51 = vpack.c.bf16 %v4782_v52, %v4781_v2  ;;  %v4727_v10 = vpop.xlane.xlu0 %4726  ;;  %v15451_v2 = vld [vmem:[%s16065_s27 + $0x8] sm:$0xff] }
 0x7c9   : > { %v15109_v50 = vpop.eup %15108  ;;  %v15452_v52 = vld [vmem:[%s16065_s27 + $0x28] sm:$0xff] }
 0x7ca   : > { %v15111_v33 = vpop.eup %15110  ;;  %14069 = vmatmul.mubr.msk.bf16.vlgmr.msra.gmra.mxu1 %vm2474_vm2, %v4804_v51  ;;  %14075 = vmatmul.mubr.msk.bf16.vlgmr.msra.gmra.mxu0 %vm2474_vm2, %v4805_v38  ;;  %v4787_v32 = vmul.f32 %v15109_v50, %v17976_v17  ;;  %v12760_v48 = vcombine.high %v15451_v2, %v15452_v52  ;;  %v21133_v51 = vld [vmem:[#allocation71_spill] sm:$0xff]  ;;  %v21134_v50 = vld [vmem:[#allocation72_spill] sm:$0xff]  ;;  %v21161_v52 = vld [vmem:[#allocation85_spill] sm:$0xff] }
 0x7cb   : > { %v15113_v22 = vpop.eup %15112  ;;  %14079 = vmatpush3.bf16.msra.mxu1 %v21132_v9  ;;  %v4730_v29 = vpop.xlane.xlu1 %4729  ;;  %14085 = vmatpush3.bf16.msra.mxu0 %v18020_v37  ;;  %v4788_v60 = vmul.f32 %v15111_v33, %v17978_v49  ;;  %v21135_v38 = vpack.c.bf16 %v21133_v51, %v21134_v50  ;;  %v15454_v33 = vld [vmem:[%s16065_s27 + $0xe8] sm:$0xff]  ;;  %v21160_v2 = vld [vmem:[#allocation87_spill] sm:$0xff]  ;;  %v21163_v50 = vld [vmem:[#allocation86_spill] sm:$0xff] }
 0x7cc   : > { %15124 = vrcp.f32 %v4730_v29  ;;  %14080 = vmatprep.mubr.msk.bf16.mxu1 %vm15776_vm0, %v21094_v21  ;;  %14086 = vmatprep.mubr.msk.bf16.mxu0 %vm15776_vm0, %v21094_v21  ;;  %v4785_v27 = vmul.f32 %v15113_v22, %v17970_v12  ;;  %v5485_v49 = vpop.permute.xlu0 %5484  ;;  %v15456_v9 = vld [vmem:[%s16065_s27 + $0xa8] sm:$0xff] }
 0x7cd   : > { %v15115_v44 = vpop.eup %15114  ;;  %14090 = vmatprep.subr.bf16.mxu1 %v21094_v21  ;;  %15126 = vrcp.f32 %v4727_v10  ;;  %14096 = vmatprep.subr.bf16.mxu0 %v21094_v21  ;;  %v4807_v31 = vpack.c.bf16 %v4788_v60, %v4787_v32  ;;  %v15455_v10 = vld [vmem:[%s16065_s27 + $0x88] sm:$0xff]  ;;  %v21136_v60 = vld [vmem:[#allocation32_spill] sm:$0xff] }
 0x7ce   : > { %v4786_v63 = vmul.f32 %v15115_v44, %v17982_v14  ;;  %v12742_v29 = vcombine.high %v15455_v10, %v15456_v9  ;;  %v21137_v32 = vld [vmem:[#allocation73_spill] sm:$0xff] }
 0x7cf   : > { %v21167_v10 = vld [vmem:[#allocation89_spill] sm:$0xff] }
 0x7d0   : > { %v4806_v37 = vpack.c.bf16 %v4786_v63, %v4785_v27  ;;  %v21138_v27 = vpack.c.bf16 %v21136_v60, %v21137_v32  ;;  %v21139_v63 = vld [vmem:[#allocation34_spill] sm:$0xff] }
 0x7d1   : > { %v15117_v0 = vpop.eup %15116 }
 0x7d2   : > { %v15119_v4 = vpop.eup %15118  ;;  %14081 = vmatmul.mubr.msk.bf16.vlgmr.msra.gmra.mxu1 %vm2474_vm2, %v4806_v37  ;;  %14087 = vmatmul.mubr.msk.bf16.vlgmr.msra.gmra.mxu0 %vm2474_vm2, %v4807_v31  ;;  %v4791_v5 = vmul.f32 %v15117_v0, %v17992_v13  ;;  %v21140_v37 = vld [vmem:[#allocation33_spill] sm:$0xff]  ;;  %v21142_v31 = vld [vmem:[#allocation74_spill] sm:$0xff] }
 0x7d3   : > { %v15121_v17 = vpop.eup %15120  ;;  %14091 = vmatpush3.bf16.msra.mxu1 %v18022_v53  ;;  %14097 = vmatpush3.bf16.msra.mxu0 %v5485_v49  ;;  %v4792_v14 = vmul.f32 %v15119_v4, %v17994_v47  ;;  %v15449_v53 = vld [vmem:[%s16065_s27 + $0x48] sm:$0xff]  ;;  %v5533_v47 = vpop.permute.xlu1 %5532  ;;  %v21141_v0 = vpack.c.bf16 %v21139_v63, %v21140_v37  ;;  %v21143_v4 = vld [vmem:[#allocation35_spill] sm:$0xff] }
 0x7d4   : > { %14092 = vmatprep.mubr.msk.bf16.mxu1 %vm15776_vm0, %v21094_v21  ;;  %14098 = vmatprep.mubr.msk.bf16.mxu0 %vm15776_vm0, %v21094_v21  ;;  %v4789_v16 = vmul.f32 %v15121_v17, %v17986_v34  ;;  %v12761_v25 = vcombine.high %v15449_v53, %v15450_v40  ;;  %v21144_v17 = vpack.c.bf16 %v21142_v31, %v21143_v4  ;;  %v21145_v49 = vld [vmem:[#allocation75_spill] sm:$0xff]  ;;  %v21152_v53 = vld [vmem:[#allocation78_spill] sm:$0xff] }
 0x7d5   : > { %v15123_v12 = vpop.eup %15122  ;;  %14102 = vmatprep.subr.bf16.mxu1 %v21094_v21  ;;  %v4809_v57 = vpack.c.bf16 %v4792_v14, %v4791_v5  ;;  %v21148_v5 = vld [vmem:[#allocation77_spill] sm:$0xff]  ;;  %v21172_v37 = vld [vmem:[#allocation95_spill] sm:$0xff]  ;;  %v21175_v4 = vld [vmem:[#allocation94_spill] sm:$0xff] }
 0x7d6   : > { %v4790_v36 = vmul.f32 %v15123_v12, %v17998_v15  ;;  %v21146_v12 = vld [vmem:[#allocation70_spill] sm:$0xff] }
 0x7d7   : > { %v21147_v14 = vpack.c.bf16 %v21145_v49, %v21146_v12 }
 0x7d8   : > { %v4808_v28 = vpack.c.bf16 %v4790_v36, %v4789_v16  ;;  %v21149_v16 = vld [vmem:[#allocation76_spill] sm:$0xff] }
 0x7d9   : > { %v15125_v58 = vpop.eup %15124  ;;  %v21150_v36 = vpack.c.bf16 %v21148_v5, %v21149_v16  ;;  %v21178_v5 = vld [vmem:[#allocation97_spill] sm:$0xff]  ;;  %v21179_v16 = vld [vmem:[#allocation96_spill] sm:$0xff] }
 0x7da   : > { %14093 = vmatmul.mubr.msk.bf16.vlgmr.msra.gmra.mxu1 %vm2474_vm2, %v4808_v28  ;;  %v15127_v13 = vpop.eup %15126  ;;  %14099 = vmatmul.mubr.msk.bf16.vlgmr.msra.gmra.mxu0 %vm2474_vm2, %v4809_v57  ;;  %v4794_v34 = vmul.f32 %v15125_v58, %v18008_v30  ;;  %v15453_v30 = vld [vmem:[%s16065_s27 + $0xc8] sm:$0xff]  ;;  %v21151_v28 = vld [vmem:[#allocation79_spill] sm:$0xff] }
 0x7db   : > { %14103 = vmatpush3.bf16.msra.mxu1 %v5533_v47  ;;  %14104 = vmatprep.mubr.msk.bf16.mxu1 %vm15776_vm0, %v21094_v21  ;;  %v4793_v15 = vmul.f32 %v15127_v13, %v18002_v1  ;;  %v12743_v22 = vcombine.high %v15453_v30, %v15454_v33  ;;  %v6083_v1 = vpop.permute.xlu1 %6082  ;;  %v21153_v40 = vpack.c.bf16 %v21151_v28, %v21152_v53  ;;  %v21155_v58 = vld [vmem:[#allocation81_spill] sm:$0xff]  ;;  %v21157_v47 = vld [vmem:[#allocation82_spill] sm:$0xff]  ;;  %v21158_v13 = vld [vmem:[#allocation80_spill] sm:$0xff] }
 0x7dc   : > { %14144 = vmatprep.subr.bf16.mxu1 %v12761_v25  ;;  %v6088_v44 = vsel %vm1689_vm1, %v6083_v1, 0  ;;  %v21166_v1 = vld [vmem:[#allocation91_spill] sm:$0xff] }
 0x7dd   : > { %v4810_v62 = vpack.c.bf16 %v4794_v34, %v4793_v15  ;;  %14108 = vmatprep.subr.bf16.mxu0 %v12743_v22  ;;  %v21159_v34 = vpack.c.bf16 %v21157_v47, %v21158_v13  ;;  %v18256_v15 = vpop.permute.xlu0 %6031  ;;  %v21168_v9 = vpack.c.bf16 %v21166_v1, %v21167_v10 }
 0x7de   : > { %14109 = vmatpush3.bf16.msra.mxu0 %v12743_v22 }
 0x7df   : > { %14110 = vmatprep.subr.bf16.mxu0 %v12742_v29 }
 0x7e1   : > { %v18264_v51 = vpop.permute.xlu0 %6029 }
 0x7e2   : > { %14105 = vmatmul.mubr.msk.bf16.vlgmr.msra.gmra.mxu1 %vm2474_vm2, %v4810_v62  ;;  %14111 = vmatpush3.bf16.msra.mxu0 %v12742_v29  ;;  %v18258_v62 = vpop.permute.xlu1 %6133  ;;  %v21169_v29 = vld [vmem:[#allocation90_spill] sm:$0xff] }
 0x7e3   : > { %14145 = vmatpush3.bf16.msra.mxu1 %v12761_v25  ;;  %14148 = vmatprep.mubr.msk.bf16.mxu1 %vm1689_vm1, %v21135_v38  ;;  %v21154_v25 = vld [vmem:[#allocation83_spill] sm:$0xff]  ;;  %v21164_v38 = vld [vmem:[#allocation84_spill] sm:$0xff] }
 0x7e4   : > { %14146 = vmatprep.subr.bf16.mxu1 %v12760_v48  ;;  %14180 = vmatprep.subr.bf16.mxu0 %v21094_v21  ;;  %v21156_v57 = vpack.c.bf16 %v21154_v25, %v21155_v58  ;;  %v21165_v30 = vpack.c.bf16 %v21163_v50, %v21164_v38 }
 0x7e5   : > { %v6081_v22 = vpop.permute.xlu0 %6080 }
 0x7e6   : > { %v6185_v33 = vpop.permute.xlu1 %6184 }
 0x7e7   : > { %14147 = vmatpush3.bf16.msra.mxu1 %v12760_v48  ;;  %v21162_v48 = vpack.c.bf16 %v21160_v2, %v21161_v52  ;;  %v6190_v25 = vsel %vm1689_vm1, %v6185_v33, 0 }
 0x7e8   : > { %14186 = vmatprep.subr.bf16.mxu1 %v21094_v21 }
 0x7ea   : > { %14149 = vmatmul.mubr.msk.bf16.vlgmr.msra.gmra.mxu1 %vm1689_vm1, %v21138_v27  ;;  %v18278_v32 = vpop.permute.xlu1 %6235  ;;  %v18280_v27 = vpop.permute.xlu0 %6131 }
 0x7eb   : > { %14187 = vmatpush3.bf16.xpose.msra.mxu1 %v6088_v44  ;;  %14152 = vmatprep.mubr.msk.bf16.mxu1 %vm1689_vm1, %v21141_v0  ;;  %v21170_v44 = vld [vmem:[#allocation88_spill] sm:$0xff]  ;;  %v21173_v0 = vld [vmem:[#allocation93_spill] sm:$0xff] }
 0x7ec   : > { %14198 = vmatprep.subr.bf16.mxu1 %v21094_v21  ;;  %v21171_v60 = vpack.c.bf16 %v21169_v29, %v21170_v44  ;;  %v21174_v31 = vpack.c.bf16 %v21172_v37, %v21173_v0 }
 0x7ee   : > { %v6287_v63 = vpop.permute.xlu1 %6286  ;;  %v6183_v12 = vpop.permute.xlu0 %6182 }
 0x7ef   : > { %v6292_v47 = vsel %vm1689_vm1, %v6287_v63, 0 }
 0x7f2   : > { %14153 = vmatmul.mubr.msk.bf16.gmra.mxu1 %vm1689_vm1, %v21144_v17  ;;  %v21176_v17 = vld [vmem:[#allocation92_spill] sm:$0xff]  ;;  %v18296_v28 = vpop.permute.xlu0 %6233 }
 0x7f3   : > { %14156 = vmatprep.mubr.msk.bf16.mxu1 %vm1689_vm1, %v21147_v14  ;;  %v21177_v49 = vpack.c.bf16 %v21175_v4, %v21176_v17  ;;  %v18290_v14 = vpop.permute.xlu1 %6337 }
 0x7f7   : > { %v6389_v53 = vpop.permute.xlu1 %6388 }
 0x7f8   : > { %v6394_v33 = vsel %vm1689_vm1, %v6389_v53, 0 }
 0x7fa   : > { %14157 = vmatmul.mubr.msk.bf16.gmra.mxu1 %vm1689_vm1, %v21150_v36  ;;  %v21180_v36 = vpack.c.bf16 %v21178_v5, %v21179_v16 }
 0x7fb   : > { %14160 = vmatprep.mubr.msk.bf16.mxu1 %vm1689_vm1, %v21153_v40  ;;  %v6285_v40 = vpop.permute.xlu0 %6284  ;;  %v18304_v58 = vpop.permute.xlu1 %6439 }
 0x7ff   : > { %v6491_v13 = vpop.permute.xlu1 %6490 }
 0x802   : > { %14161 = vmatmul.mubr.msk.bf16.gmra.mxu1 %vm1689_vm1, %v21156_v57  ;;  %v18307_v57 = vpop.permute.xlu0 %6335 }
 0x803   : > { %14164 = vmatprep.mubr.msk.bf16.mxu1 %vm1689_vm1, %v21159_v34  ;;  %v18314_v50 = vpop.permute.xlu1 %6541 }
 0x806   : > { %v6387_v2 = vpop.permute.xlu0 %6386 }
 0x807   : > { %v6593_v1 = vpop.permute.xlu1 %6592 }
 0x80a   : > { %14165 = vmatmul.mubr.msk.bf16.gmra.mxu1 %vm1689_vm1, %v21162_v48 }
 0x80b   : > { %14168 = vmatprep.mubr.msk.bf16.mxu1 %vm1689_vm1, %v21165_v30  ;;  %v18328_v29 = vpop.permute.xlu1 %6643 }
 0x80f   : > { %v6695_v63 = vpop.permute.xlu1 %6694 }
 0x812   : > { %14169 = vmatmul.mubr.msk.bf16.gmra.mxu1 %vm1689_vm1, %v21168_v9  ;;  %v6496_v9 = vsel %vm1689_vm1, %v6491_v13, 0 }
 0x813   : > { %14172 = vmatprep.mubr.msk.bf16.mxu1 %vm1689_vm1, %v21171_v60  ;;  %v6598_v60 = vsel %vm1689_vm1, %v6593_v1, 0  ;;  %v18338_v0 = vpop.permute.xlu1 %6745 }
 0x817   : > { %v6797_v17 = vpop.permute.xlu1 %6796 }
 0x81a   : > { %14173 = vmatmul.mubr.msk.bf16.gmra.mxu1 %vm1689_vm1, %v21174_v31  ;;  %v6700_v31 = vsel %vm1689_vm1, %v6695_v63, 0 }
 0x81b   : > { %14176 = vmatprep.mubr.msk.bf16.mxu1 %vm1689_vm1, %v21177_v49  ;;  %v6795_v5 = vpop.permute.xlu1 %6794 }
 0x81f   : > { %v7293_v16 = vpop.permute.xlu1 %7292 }
 0x822   : > { %14177 = vmatmul.mubr.msk.bf16.gmra.mxu1 %vm1689_vm1, %v21180_v36 }
 0x823   : > { %14188 = vmatprep.mubr.msk.bf16.mxu1 %vm15776_vm0, %v21094_v21 }
 0x82a   : > { %14189 = vmatmul.mubr.msk.bf16.vlgmr.msra.gmra.mxu1 %vm1689_vm1, %v6081_v22  ;;  %v18319_v22 = vpop.permute.xlu0 %6437 }
 0x82b   : > { %14199 = vmatpush3.bf16.xpose.msra.mxu1 %v6190_v25  ;;  %14200 = vmatprep.mubr.msk.bf16.mxu1 %vm15776_vm0, %v21094_v21 }
 0x82c   : > { %14210 = vmatprep.subr.bf16.mxu1 %v21094_v21 }
 0x82e   : > { %v6489_v10 = vpop.permute.xlu0 %6488 }
 0x832   : > { %14201 = vmatmul.mubr.msk.bf16.vlgmr.msra.gmra.mxu1 %vm1689_vm1, %v6183_v12  ;;  %v18331_v44 = vpop.permute.xlu0 %6539  ;;  %v6802_v12 = vsel %vm1689_vm1, %v6797_v17, 0 }
 0x833   : > { %v4852_v34 = vpop.f32.mrf.mxu0  ;;  %14211 = vmatpush3.bf16.xpose.msra.mxu1 %v6292_v47  ;;  %14212 = vmatprep.mubr.msk.bf16.mxu1 %vm15776_vm0, %v21094_v21 }
 0x834   : > { %14222 = vmatprep.subr.bf16.mxu1 %v21094_v21 }
 0x835   : > { %v14016_v52 = vpop.f32.mrf.mxu0 }
 0x836   : > { %v6591_v37 = vpop.permute.xlu0 %6590 }
 0x837   : > { %v4855_v48 = vpop.f32.mrf.mxu0 }
 0x838   : > { %v5579_v38 = vpack.c.bf16 %v4855_v48, %v4852_v34  ;;  %v6037_v34 = vsel %vm1689_vm1, %v18256_v15, 0 }
 0x839   : > { %v14017_v30 = vpop.f32.mrf.mxu0 }
 0x83a   : > { %14112 = vmatprep.mubr.msk.bf16.mxu0 %vm1689_vm1, %v5579_v38  ;;  %14213 = vmatmul.mubr.msk.bf16.vlgmr.msra.gmra.mxu1 %vm1689_vm1, %v6285_v40  ;;  %v18342_v4 = vpop.permute.xlu0 %6641 }
 0x83b   : > { %14223 = vmatpush3.bf16.xpose.msra.mxu1 %v6394_v33  ;;  %14224 = vmatprep.mubr.msk.bf16.mxu1 %vm15776_vm0, %v21094_v21 }
 0x83c   : > { %14234 = vmatprep.subr.bf16.mxu1 %v21094_v21 }
 0x83e   : > { %v6693_v49 = vpop.permute.xlu0 %6692 }
 0x842   : > { %14225 = vmatmul.mubr.msk.bf16.vlgmr.msra.gmra.mxu1 %vm1689_vm1, %v6387_v2 }
 0x843   : > { %14235 = vmatpush3.bf16.xpose.msra.mxu1 %v6496_v9  ;;  %14236 = vmatprep.mubr.msk.bf16.mxu1 %vm15776_vm0, %v21094_v21 }
 0x844   : > { %14246 = vmatprep.subr.bf16.mxu1 %v21094_v21 }
 0x84a   : > { %14237 = vmatmul.mubr.msk.bf16.vlgmr.msra.gmra.mxu1 %vm1689_vm1, %v6489_v10 }
 0x84b   : > { %14247 = vmatpush3.bf16.xpose.msra.mxu1 %v6598_v60  ;;  %14248 = vmatprep.mubr.msk.bf16.mxu1 %vm15776_vm0, %v21094_v21 }
 0x84c   : > { %14258 = vmatprep.subr.bf16.mxu1 %v21094_v21 }
 0x852   : > { %14249 = vmatmul.mubr.msk.bf16.vlgmr.msra.gmra.mxu1 %vm1689_vm1, %v6591_v37 }
 0x853   : > { %14259 = vmatpush3.bf16.xpose.msra.mxu1 %v6700_v31  ;;  %14260 = vmatprep.mubr.msk.bf16.mxu1 %vm15776_vm0, %v21094_v21 }
 0x854   : > { %14270 = vmatprep.subr.bf16.mxu1 %v21094_v21 }
 0x85a   : > { %14261 = vmatmul.mubr.msk.bf16.vlgmr.msra.gmra.mxu1 %vm1689_vm1, %v6693_v49 }
 0x85b   : > { %14271 = vmatpush3.bf16.xpose.msra.mxu1 %v6802_v12  ;;  %14272 = vmatprep.mubr.msk.bf16.mxu1 %vm15776_vm0, %v21094_v21 }
 0x85c   : > { %14282 = vmatprep.subr.bf16.mxu1 %v21094_v21 }
 0x862   : > { %14273 = vmatmul.mubr.msk.bf16.vlgmr.msra.gmra.mxu1 %vm1689_vm1, %v6795_v5 }
 0x863   : > { %14283 = vmatpush3.bf16.msra.mxu1 %v7293_v16  ;;  %14284 = vmatprep.mubr.msk.bf16.mxu1 %vm15776_vm0, %v21094_v21 }
 0x864   : > { %14294 = vmatprep.subr.bf16.mxu1 %v21094_v21 }
 0x866   : > { %v4900_v36 = vpop.f32.mrf.mxu1 }
 0x868   : > { %v14022_v53 = vpop.f32.mrf.mxu1 }
 0x86a   : > { %v4903_v40 = vpop.f32.mrf.mxu1  ;;  %v4948_v47 = vpop.f32.mrf.mxu0 }
 0x86b   : > { %v5580_v25 = vpack.c.bf16 %v4903_v40, %v4900_v36 }
 0x86c   : > { %v14023_v13 = vpop.f32.mrf.mxu1  ;;  %v14028_v2 = vpop.f32.mrf.mxu0 }
 0x86d   : > { %14113 = vmatmul.mubr.msk.bf16.vlgmr.msra.gmra.mxu0 %vm1689_vm1, %v5580_v25 }
 0x86e   : > { %14181 = vmatpush3.bf16.xpose.msra.mxu0 %v6037_v34  ;;  %v4951_v52 = vpop.f32.mrf.mxu0  ;;  %v4996_v48 = vpop.f32.mrf.mxu1 }
 0x86f   : > { %14192 = vmatprep.subr.bf16.mxu0 %v21094_v21  ;;  %v5581_v38 = vpack.c.bf16 %v4951_v52, %v4948_v47 }
 0x870   : > { %v14029_v30 = vpop.f32.mrf.mxu0  ;;  %v14034_v33 = vpop.f32.mrf.mxu1 }
 0x871   : > { %14116 = vmatprep.mubr.msk.bf16.mxu0 %vm1689_vm1, %v5581_v38 }
 0x872   : > { %v4999_v1 = vpop.f32.mrf.mxu1  ;;  %v5044_v10 = vpop.f32.mrf.mxu0 }
 0x873   : > { %v5582_v9 = vpack.c.bf16 %v4999_v1, %v4996_v48 }
 0x874   : > { %v14035_v60 = vpop.f32.mrf.mxu1  ;;  %v14040_v63 = vpop.f32.mrf.mxu0 }
 0x875   : > { %14117 = vmatmul.mubr.msk.bf16.gmra.mxu0 %vm1689_vm1, %v5582_v9 }
 0x876   : > { %v5047_v15 = vpop.f32.mrf.mxu0  ;;  %v5092_v37 = vpop.f32.mrf.mxu1 }
 0x877   : > { %v5583_v31 = vpack.c.bf16 %v5047_v15, %v5044_v10 }
 0x878   : > { %v14041_v17 = vpop.f32.mrf.mxu0  ;;  %v14046_v49 = vpop.f32.mrf.mxu1 }
 0x879   : > { %14120 = vmatprep.mubr.msk.bf16.mxu0 %vm1689_vm1, %v5583_v31 }
 0x87a   : > { %v5095_v12 = vpop.f32.mrf.mxu1  ;;  %v5140_v5 = vpop.f32.mrf.mxu0 }
 0x87b   : > { %v5584_v16 = vpack.c.bf16 %v5095_v12, %v5092_v37 }
 0x87c   : > { %v14047_v36 = vpop.f32.mrf.mxu1  ;;  %v14052_v53 = vpop.f32.mrf.mxu0 }
 0x87d   : > { %14121 = vmatmul.mubr.msk.bf16.gmra.mxu0 %vm1689_vm1, %v5584_v16 }
 0x87e   : > { %v5143_v40 = vpop.f32.mrf.mxu0 }
 0x87f   : > { %v5585_v25 = vpack.c.bf16 %v5143_v40, %v5140_v5 }
 0x880   : > { %v14053_v47 = vpop.f32.mrf.mxu0 }
 0x881   : > { %14124 = vmatprep.mubr.msk.bf16.mxu0 %vm1689_vm1, %v5585_v25 }
 0x882   : > { %v5188_v13 = vpop.f32.mrf.mxu1  ;;  %v5236_v34 = vpop.f32.mrf.mxu0 }
 0x884   : > { %v14058_v2 = vpop.f32.mrf.mxu1  ;;  %v14064_v52 = vpop.f32.mrf.mxu0 }
 0x886   : > { %v5191_v48 = vpop.f32.mrf.mxu1  ;;  %v5239_v30 = vpop.f32.mrf.mxu0 }
 0x887   : > { %v5586_v38 = vpack.c.bf16 %v5191_v48, %v5188_v13  ;;  %v5587_v33 = vpack.c.bf16 %v5239_v30, %v5236_v34 }
 0x888   : > { %v14059_v1 = vpop.f32.mrf.mxu1  ;;  %v14065_v10 = vpop.f32.mrf.mxu0 }
 0x889   : > { %14125 = vmatmul.mubr.msk.bf16.gmra.mxu0 %vm1689_vm1, %v5586_v38 }
 0x88a   : > { %v5284_v9 = vpop.f32.mrf.mxu1  ;;  %14128 = vmatprep.mubr.msk.bf16.mxu0 %vm1689_vm1, %v5587_v33  ;;  %v5332_v60 = vpop.f32.mrf.mxu0 }
 0x88c   : > { %v14070_v63 = vpop.f32.mrf.mxu1  ;;  %v14076_v15 = vpop.f32.mrf.mxu0 }
 0x88e   : > { %v5287_v37 = vpop.f32.mrf.mxu1  ;;  %v5335_v17 = vpop.f32.mrf.mxu0 }
 0x88f   : > { %v5588_v31 = vpack.c.bf16 %v5287_v37, %v5284_v9  ;;  %v5589_v49 = vpack.c.bf16 %v5335_v17, %v5332_v60 }
 0x890   : > { %v14071_v12 = vpop.f32.mrf.mxu1  ;;  %v14077_v5 = vpop.f32.mrf.mxu0 }
 0x891   : > { %14129 = vmatmul.mubr.msk.bf16.gmra.mxu0 %vm1689_vm1, %v5588_v31 }
 0x892   : > { %v5380_v16 = vpop.f32.mrf.mxu1  ;;  %14132 = vmatprep.mubr.msk.bf16.mxu0 %vm1689_vm1, %v5589_v49  ;;  %v5428_v36 = vpop.f32.mrf.mxu0 }
 0x894   : > { %v14082_v53 = vpop.f32.mrf.mxu1  ;;  %v14088_v40 = vpop.f32.mrf.mxu0 }
 0x895   : > { %v6139_v40 = vsel %vm1689_vm1, %v18258_v62, 0  ;;  %v6241_v62 = vsel %vm1689_vm1, %v18278_v32, 0  ;;  %v6343_v32 = vsel %vm1689_vm1, %v18290_v14, 0  ;;  %v6445_v14 = vsel %vm1689_vm1, %v18304_v58, 0 }
 0x896   : > { %v5383_v25 = vpop.f32.mrf.mxu1  ;;  %v5431_v13 = vpop.f32.mrf.mxu0  ;;  %v6547_v58 = vsel %vm1689_vm1, %v18314_v50, 0  ;;  %v6649_v50 = vsel %vm1689_vm1, %v18328_v29, 0  ;;  %v6751_v29 = vsel %vm1689_vm1, %v18338_v0, 0 }
 0x897   : > { %v5590_v47 = vpack.c.bf16 %v5383_v25, %v5380_v16  ;;  %v5591_v34 = vpack.c.bf16 %v5431_v13, %v5428_v36 }
 0x898   : > { %v14083_v2 = vpop.f32.mrf.mxu1  ;;  %v14089_v52 = vpop.f32.mrf.mxu0 }
 0x899   : > { %14133 = vmatmul.mubr.msk.bf16.gmra.mxu0 %vm1689_vm1, %v5590_v47 }
 0x89a   : > { %v5476_v48 = vpop.f32.mrf.mxu1  ;;  %14136 = vmatprep.mubr.msk.bf16.mxu0 %vm1689_vm1, %v5591_v34  ;;  %v5524_v38 = vpop.f32.mrf.mxu0 }
 0x89c   : > { %v14094_v30 = vpop.f32.mrf.mxu1  ;;  %v14100_v33 = vpop.f32.mrf.mxu0 }
 0x89e   : > { %v5479_v1 = vpop.f32.mrf.mxu1  ;;  %v5527_v9 = vpop.f32.mrf.mxu0 }
 0x89f   : > { %v5592_v10 = vpack.c.bf16 %v5479_v1, %v5476_v48  ;;  %v5593_v60 = vpack.c.bf16 %v5527_v9, %v5524_v38 }
 0x8a0   : > { %v14095_v63 = vpop.f32.mrf.mxu1  ;;  %v14101_v15 = vpop.f32.mrf.mxu0 }
 0x8a1   : > { %14137 = vmatmul.mubr.msk.bf16.gmra.mxu0 %vm1689_vm1, %v5592_v10 }
 0x8a2   : > { %v5572_v37 = vpop.f32.mrf.mxu1  ;;  %14140 = vmatprep.mubr.msk.bf16.mxu0 %vm1689_vm1, %v5593_v60 }
 0x8a4   : > { %v14106_v31 = vpop.f32.mrf.mxu1 }
 0x8a6   : > { %v5575_v17 = vpop.f32.mrf.mxu1 }
 0x8a7   : > { %v5594_v49 = vpack.c.bf16 %v5575_v17, %v5572_v37 }
 0x8a8   : > { %v14107_v12 = vpop.f32.mrf.mxu1 }
 0x8a9   : > { %14141 = vmatmul.mubr.msk.bf16.gmra.mxu0 %vm1689_vm1, %v5594_v49  ;;  %v6744_v49 = vpop.permute.xlu0 %6743 }
 0x8aa   : > { %v18374_v5 = vpop.f32.mrf.mxu1  ;;  %14182 = vmatprep.mubr.msk.bf16.mxu0 %vm15776_vm0, %v21094_v21 }
 0x8ab   : > { %21181 = vst [vmem:[#allocation41_spill] sm:$0xff] %v18374_v5 }
 0x8ac   : > { %v18378_v16 = vpop.f32.mrf.mxu1 }
 0x8ad   : > { %21182 = vst [vmem:[#allocation44_spill] sm:$0xff] %v18378_v16 }
 0x8ae   : > { %v18380_v36 = vpop.f32.mrf.mxu1 }
 0x8af   : > { %21183 = vst [vmem:[#allocation45_spill] sm:$0xff] %v18380_v36 }
 0x8b0   : > { %v18382_v53 = vpop.f32.mrf.mxu1 }
 0x8b1   : > { %21184 = vst [vmem:[#allocation98_spill] sm:$0xff] %v18382_v53  ;;  %14183 = vmatmul.mubr.msk.bf16.vlgmr.msra.gmra.mxu0 %vm1689_vm1, %v18264_v51 }
 0x8b2   : > { %14193 = vmatpush3.bf16.xpose.msra.mxu0 %v6139_v40  ;;  %v18388_v25 = vpop.f32.mrf.mxu1  ;;  %14194 = vmatprep.mubr.msk.bf16.mxu0 %vm15776_vm0, %v21094_v21 }
 0x8b3   : > { %21185 = vst [vmem:[#allocation101_spill] sm:$0xff] %v18388_v25  ;;  %14204 = vmatprep.subr.bf16.mxu0 %v21094_v21 }
 0x8b4   : > { %v18393_v47 = vpop.f32.mrf.mxu1 }
 0x8b5   : > { %21186 = vst [vmem:[#allocation99_spill] sm:$0xff] %v18393_v47 }
 0x8b6   : > { %v18395_v13 = vpop.f32.mrf.mxu1 }
 0x8b7   : > { %21187 = vst [vmem:[#allocation103_spill] sm:$0xff] %v18395_v13 }
 0x8b8   : > { %v18397_v34 = vpop.f32.mrf.mxu1 }
 0x8b9   : > { %21188 = vst [vmem:[#allocation100_spill] sm:$0xff] %v18397_v34  ;;  %14195 = vmatmul.mubr.msk.bf16.vlgmr.msra.gmra.mxu0 %vm1689_vm1, %v18280_v27 }
 0x8ba   : > { %14205 = vmatpush3.bf16.xpose.msra.mxu0 %v6241_v62  ;;  %v18403_v51 = vpop.f32.mrf.mxu1  ;;  %14206 = vmatprep.mubr.msk.bf16.mxu0 %vm15776_vm0, %v21094_v21 }
 0x8bb   : > { %21189 = vst [vmem:[#allocation105_spill] sm:$0xff] %v18403_v51  ;;  %14216 = vmatprep.subr.bf16.mxu0 %v21094_v21 }
 0x8bc   : > { %v18408_v2 = vpop.f32.mrf.mxu1 }
 0x8bd   : > { %21190 = vst [vmem:[#allocation102_spill] sm:$0xff] %v18408_v2 }
 0x8be   : > { %v18410_v52 = vpop.f32.mrf.mxu1 }
 0x8bf   : > { %21191 = vst [vmem:[#allocation104_spill] sm:$0xff] %v18410_v52 }
 0x8c0   : > { %v18412_v48 = vpop.f32.mrf.mxu1 }
 0x8c1   : > { %21192 = vst [vmem:[#allocation106_spill] sm:$0xff] %v18412_v48  ;;  %14207 = vmatmul.mubr.msk.bf16.vlgmr.msra.gmra.mxu0 %vm1689_vm1, %v18296_v28 }
 0x8c2   : > { %14217 = vmatpush3.bf16.xpose.msra.mxu0 %v6343_v32  ;;  %v18418_v27 = vpop.f32.mrf.mxu1  ;;  %14218 = vmatprep.mubr.msk.bf16.mxu0 %vm15776_vm0, %v21094_v21  ;;  %v7246_v32 = vpop.permute.xlu0 %7245 }
 0x8c3   : > { %21193 = vst [vmem:[#allocation71_spill] sm:$0xff] %v18418_v27  ;;  %14228 = vmatprep.subr.bf16.mxu0 %v21094_v21 }
 0x8c4   : > { %v18423_v38 = vpop.f32.mrf.mxu1 }
 0x8c5   : > { %21194 = vst [vmem:[#allocation72_spill] sm:$0xff] %v18423_v38 }
 0x8c6   : > { %v18425_v30 = vpop.f32.mrf.mxu1 }
 0x8c7   : > { %21195 = vst [vmem:[#allocation32_spill] sm:$0xff] %v18425_v30 }
 0x8c8   : > { %v18427_v33 = vpop.f32.mrf.mxu1 }
 0x8c9   : > { %21196 = vst [vmem:[#allocation73_spill] sm:$0xff] %v18427_v33  ;;  %14219 = vmatmul.mubr.msk.bf16.vlgmr.msra.gmra.mxu0 %vm1689_vm1, %v18307_v57 }
 0x8ca   : > { %14229 = vmatpush3.bf16.xpose.msra.mxu0 %v6445_v14  ;;  %v18433_v28 = vpop.f32.mrf.mxu1  ;;  %14230 = vmatprep.mubr.msk.bf16.mxu0 %vm15776_vm0, %v21094_v21 }
 0x8cb   : > { %21197 = vst [vmem:[#allocation34_spill] sm:$0xff] %v18433_v28  ;;  %14240 = vmatprep.subr.bf16.mxu0 %v21094_v21 }
 0x8cc   : > { %v18438_v1 = vpop.f32.mrf.mxu1 }
 0x8cd   : > { %21198 = vst [vmem:[#allocation33_spill] sm:$0xff] %v18438_v1 }
 0x8ce   : > { %v18440_v10 = vpop.f32.mrf.mxu1 }
 0x8cf   : > { %21199 = vst [vmem:[#allocation74_spill] sm:$0xff] %v18440_v10 }
 0x8d0   : > { %v18442_v9 = vpop.f32.mrf.mxu1 }
 0x8d1   : > { %21200 = vst [vmem:[#allocation35_spill] sm:$0xff] %v18442_v9  ;;  %14231 = vmatmul.mubr.msk.bf16.vlgmr.msra.gmra.mxu0 %vm1689_vm1, %v18319_v22 }
 0x8d2   : > { %14241 = vmatpush3.bf16.xpose.msra.mxu0 %v6547_v58  ;;  %v18448_v57 = vpop.f32.mrf.mxu1  ;;  %14242 = vmatprep.mubr.msk.bf16.mxu0 %vm15776_vm0, %v21094_v21 }
 0x8d3   : > { %21201 = vst [vmem:[#allocation75_spill] sm:$0xff] %v18448_v57  ;;  %14252 = vmatprep.subr.bf16.mxu0 %v21094_v21 }
 0x8d4   : > { %v18453_v60 = vpop.f32.mrf.mxu1 }
 0x8d5   : > { %21202 = vst [vmem:[#allocation70_spill] sm:$0xff] %v18453_v60 }
 0x8d6   : > { %v18455_v63 = vpop.f32.mrf.mxu1 }
 0x8d7   : > { %21203 = vst [vmem:[#allocation77_spill] sm:$0xff] %v18455_v63 }
 0x8d8   : > { %v18457_v15 = vpop.f32.mrf.mxu1 }
 0x8d9   : > { %21204 = vst [vmem:[#allocation76_spill] sm:$0xff] %v18457_v15  ;;  %14243 = vmatmul.mubr.msk.bf16.vlgmr.msra.gmra.mxu0 %vm1689_vm1, %v18331_v44 }
 0x8da   : > { %14253 = vmatpush3.bf16.xpose.msra.mxu0 %v6649_v50  ;;  %v18463_v22 = vpop.f32.mrf.mxu1  ;;  %14254 = vmatprep.mubr.msk.bf16.mxu0 %vm15776_vm0, %v21094_v21 }
 0x8db   : > { %21205 = vst [vmem:[#allocation79_spill] sm:$0xff] %v18463_v22  ;;  %14264 = vmatprep.subr.bf16.mxu0 %v21094_v21 }
 0x8dc   : > { %v18468_v37 = vpop.f32.mrf.mxu1 }
 0x8dd   : > { %21206 = vst [vmem:[#allocation78_spill] sm:$0xff] %v18468_v37 }
 0x8de   : > { %v18470_v31 = vpop.f32.mrf.mxu1 }
 0x8df   : > { %21207 = vst [vmem:[#allocation83_spill] sm:$0xff] %v18470_v31 }
 0x8e0   : > { %v18472_v17 = vpop.f32.mrf.mxu1 }
 0x8e1   : > { %21208 = vst [vmem:[#allocation81_spill] sm:$0xff] %v18472_v17  ;;  %14255 = vmatmul.mubr.msk.bf16.vlgmr.msra.gmra.mxu0 %vm1689_vm1, %v18342_v4 }
 0x8e2   : > { %14265 = vmatpush3.bf16.xpose.msra.mxu0 %v6751_v29  ;;  %v18478_v44 = vpop.f32.mrf.mxu1  ;;  %14266 = vmatprep.mubr.msk.bf16.mxu0 %vm15776_vm0, %v21094_v21 }
 0x8e3   : > { %21209 = vst [vmem:[#allocation82_spill] sm:$0xff] %v18478_v44  ;;  %14276 = vmatprep.subr.bf16.mxu0 %v21094_v21 }
 0x8e4   : > { %v18483_v12 = vpop.f32.mrf.mxu1 }
 0x8e5   : > { %21210 = vst [vmem:[#allocation80_spill] sm:$0xff] %v18483_v12 }
 0x8e6   : > { %v18485_v40 = vpop.f32.mrf.mxu1 }
 0x8e7   : > { %21211 = vst [vmem:[#allocation87_spill] sm:$0xff] %v18485_v40 }
 0x8e8   : > { %v18487_v62 = vpop.f32.mrf.mxu1 }
 0x8e9   : > { %21212 = vst [vmem:[#allocation85_spill] sm:$0xff] %v18487_v62  ;;  %14267 = vmatmul.mubr.msk.bf16.vlgmr.msra.gmra.mxu0 %vm1689_vm1, %v6744_v49 }
 0x8ea   : > { %14277 = vmatpush3.bf16.msra.mxu0 %v7246_v32  ;;  %v6124_v0 = vpop.f32.mrf.mxu1  ;;  %14278 = vmatprep.mubr.msk.bf16.mxu0 %vm15776_vm0, %v21094_v21 }
 0x8eb   : > { %v18492_v4 = vmul.f32 0.17677669, %v6124_v0  ;;  %14288 = vmatprep.subr.bf16.mxu0 %v21094_v21 }
 0x8ec   : > { %v14190_v14 = vpop.f32.mrf.mxu1 }
 0x8ed   : > { %v6883_v58 = vsel %vm2474_vm2, %v18492_v4, -inf }
 0x8ee   : > { %6884 = vmax.xlane.f32.xlu0 %v6883_v58  ;;  %v6127_v50 = vpop.f32.mrf.mxu1 }
 0x8ef   : > { %v18497_v29 = vmul.f32 0.17677669, %v6127_v50 }
 0x8f0   : > { %v14191_v62 = vpop.f32.mrf.mxu1 }
 0x8f1   : > { %v6886_v49 = vsel %vm2474_vm2, %v18497_v29, -inf }
 0x8f2   : > { %6887 = vmax.xlane.f32.xlu0 %v6886_v49  ;;  %v6226_v32 = vpop.f32.mrf.mxu1 }
 0x8f3   : > { %v18501_v17 = vmul.f32 0.17677669, %v6226_v32 }
 0x8f4   : > { %v14202_v0 = vpop.f32.mrf.mxu1 }
 0x8f5   : > { %v6895_v15 = vsel %vm2474_vm2, %v18501_v17, -inf }
 0x8f6   : > { %6896 = vmax.xlane.f32.xlu0 %v6895_v15  ;;  %v6229_v14 = vpop.f32.mrf.mxu1 }
 0x8f7   : > { %v18505_v9 = vmul.f32 0.17677669, %v6229_v14 }
 0x8f8   : > { %v14203_v58 = vpop.f32.mrf.mxu1 }
 0x8f9   : > { %v6898_v50 = vsel %vm2474_vm2, %v18505_v9, -inf }
 0x8fa   : > { %6899 = vmax.xlane.f32.xlu1 %v6898_v50  ;;  %v6328_v62 = vpop.f32.mrf.mxu1 }
 0x8fb   : > { %v18509_v33 = vmul.f32 0.17677669, %v6328_v62 }
 0x8fc   : > { %v14214_v49 = vpop.f32.mrf.mxu1 }
 0x8fd   : > { %v6907_v32 = vsel %vm2474_vm2, %v18509_v33, -inf }
 0x8fe   : > { %6908 = vmax.xlane.f32.xlu0 %v6907_v32  ;;  %v6331_v0 = vpop.f32.mrf.mxu1 }
 0x8ff   : > { %v18513_v48 = vmul.f32 0.17677669, %v6331_v0 }
 0x900   : > { %v14215_v15 = vpop.f32.mrf.mxu1 }
 0x901   : > { %v6910_v14 = vsel %vm2474_vm2, %v18513_v48, -inf }
 0x902   : > { %6911 = vmax.xlane.f32.xlu1 %v6910_v14  ;;  %v6430_v58 = vpop.f32.mrf.mxu1 }
 0x903   : > { %v18517_v34 = vmul.f32 0.17677669, %v6430_v58 }
 0x904   : > { %v14226_v50 = vpop.f32.mrf.mxu1 }
 0x905   : > { %v6919_v62 = vsel %vm2474_vm2, %v18517_v34, -inf }
 0x906   : > { %6920 = vmax.xlane.f32.xlu0 %v6919_v62  ;;  %v6433_v49 = vpop.f32.mrf.mxu1 }
 0x907   : > { %v18521_v53 = vmul.f32 0.17677669, %v6433_v49 }
 0x908   : > { %v14227_v32 = vpop.f32.mrf.mxu1 }
 0x909   : > { %v6922_v0 = vsel %vm2474_vm2, %v18521_v53, -inf }
 0x90a   : > { %6923 = vmax.xlane.f32.xlu1 %v6922_v0  ;;  %v6532_v15 = vpop.f32.mrf.mxu1 }
 0x90b   : > { %v18525_v61 = vmul.f32 0.17677669, %v6532_v15 }
 0x90c   : > { %v14238_v14 = vpop.f32.mrf.mxu1 }
 0x90d   : > { %v6931_v58 = vsel %vm2474_vm2, %v18525_v61, -inf }
 0x90e   : > { %6932 = vmax.xlane.f32.xlu0 %v6931_v58  ;;  %v6535_v50 = vpop.f32.mrf.mxu1 }
 0x90f   : > { %v18529_v42 = vmul.f32 0.17677669, %v6535_v50 }
 0x910   : > { %v14239_v62 = vpop.f32.mrf.mxu1 }
 0x911   : > { %v6934_v49 = vsel %vm2474_vm2, %v18529_v42, -inf }
 0x912   : > { %6935 = vmax.xlane.f32.xlu1 %v6934_v49  ;;  %v6634_v32 = vpop.f32.mrf.mxu1 }
 0x913   : > { %v18533_v59 = vmul.f32 0.17677669, %v6634_v32 }
 0x914   : > { %v14250_v0 = vpop.f32.mrf.mxu1 }
 0x915   : > { %v6943_v15 = vsel %vm2474_vm2, %v18533_v59, -inf }
 0x916   : > { %6944 = vmax.xlane.f32.xlu0 %v6943_v15  ;;  %v6637_v14 = vpop.f32.mrf.mxu1 }
 0x917   : > { %v18537_v40 = vmul.f32 0.17677669, %v6637_v14 }
 0x918   : > { %v14251_v58 = vpop.f32.mrf.mxu1 }
 0x919   : > { %v6946_v50 = vsel %vm2474_vm2, %v18537_v40, -inf }
 0x91a   : > { %6947 = vmax.xlane.f32.xlu1 %v6946_v50  ;;  %v6736_v62 = vpop.f32.mrf.mxu1 }
 0x91b   : > { %v18541_v12 = vmul.f32 0.17677669, %v6736_v62 }
 0x91c   : > { %v14262_v49 = vpop.f32.mrf.mxu1 }
 0x91d   : > { %v6955_v32 = vsel %vm2474_vm2, %v18541_v12, -inf }
 0x91e   : > { %6956 = vmax.xlane.f32.xlu0 %v6955_v32  ;;  %v6739_v0 = vpop.f32.mrf.mxu1 }
 0x91f   : > { %v18545_v44 = vmul.f32 0.17677669, %v6739_v0 }
 0x920   : > { %v14263_v15 = vpop.f32.mrf.mxu1 }
 0x921   : > { %v6958_v14 = vsel %vm2474_vm2, %v18545_v44, -inf }
 0x922   : > { %6959 = vmax.xlane.f32.xlu1 %v6958_v14  ;;  %v6838_v58 = vpop.f32.mrf.mxu1 }
 0x923   : > { %v18549_v31 = vmul.f32 0.17677669, %v6838_v58 }
 0x924   : > { %v14274_v50 = vpop.f32.mrf.mxu1 }
 0x925   : > { %v6967_v62 = vsel %vm2474_vm2, %v18549_v31, -inf }
 0x926   : > { %6968 = vmax.xlane.f32.xlu0 %v6967_v62  ;;  %v6841_v49 = vpop.f32.mrf.mxu1 }
 0x927   : > { %v18553_v37 = vmul.f32 0.17677669, %v6841_v49 }
 0x928   : > { %v14275_v32 = vpop.f32.mrf.mxu1 }
 0x929   : > { %v6970_v0 = vsel %vm2474_vm2, %v18553_v37, -inf }
 0x92a   : > { %6971 = vmax.xlane.f32.xlu1 %v6970_v0 }
 0x92d   : > { %v18557_v15 = vpop.f32.mrf.mxu0 }
 0x92e   : > { %21213 = vst [vmem:[#allocation86_spill] sm:$0xff] %v18557_v15 }
 0x92f   : > { %v18559_v22 = vpop.f32.mrf.mxu0 }
 0x930   : > { %21214 = vst [vmem:[#allocation84_spill] sm:$0xff] %v18559_v22 }
 0x931   : > { %v18561_v14 = vpop.f32.mrf.mxu0 }
 0x932   : > { %21215 = vst [vmem:[#allocation91_spill] sm:$0xff] %v18561_v14 }
 0x933   : > { %v18563_v58 = vpop.f32.mrf.mxu0 }
 0x934   : > { %21216 = vst [vmem:[#allocation89_spill] sm:$0xff] %v18563_v58 }
 0x935   : > { %v18565_v50 = vpop.f32.mrf.mxu0 }
 0x936   : > { %21217 = vst [vmem:[#allocation90_spill] sm:$0xff] %v18565_v50 }
 0x937   : > { %v18567_v63 = vpop.f32.mrf.mxu0 }
 0x938   : > { %21218 = vst [vmem:[#allocation88_spill] sm:$0xff] %v18567_v63 }
 0x939   : > { %v18569_v62 = vpop.f32.mrf.mxu0 }
 0x93a   : > { %21219 = vst [vmem:[#allocation95_spill] sm:$0xff] %v18569_v62 }
 0x93b   : > { %v18571_v49 = vpop.f32.mrf.mxu0 }
 0x93c   : > { %21220 = vst [vmem:[#allocation93_spill] sm:$0xff] %v18571_v49 }
 0x93d   : > { %v18573_v32 = vpop.f32.mrf.mxu0 }
 0x93e   : > { %21221 = vst [vmem:[#allocation94_spill] sm:$0xff] %v18573_v32 }
 0x93f   : > { %v18575_v60 = vpop.f32.mrf.mxu0 }
 0x940   : > { %21222 = vst [vmem:[#allocation92_spill] sm:$0xff] %v18575_v60 }
 0x941   : > { %v18577_v0 = vpop.f32.mrf.mxu0 }
 0x942   : > { %21223 = vst [vmem:[#allocation97_spill] sm:$0xff] %v18577_v0 }
 0x943   : > { %v18579_v57 = vpop.f32.mrf.mxu0 }
 0x944   : > { %21224 = vst [vmem:[#allocation96_spill] sm:$0xff] %v18579_v57 }
 0x949   : > { %v18581_v10 = vpop.f32.mrf.mxu0 }
 0x94a   : > { %21225 = vst [vmem:[#allocation107_spill] sm:$0xff] %v18581_v10 }
 0x94b   : > { %v18583_v1 = vpop.f32.mrf.mxu0 }
 0x94c   : > { %21226 = vst [vmem:[#allocation108_spill] sm:$0xff] %v18583_v1  ;;  %v18605_v1 = vpop.permute.xlu1 %7386 }
 0x94d   : > { %v18585_v58 = vpop.f32.mrf.mxu0 }
 0x94e   : > { %21227 = vst [vmem:[#allocation109_spill] sm:$0xff] %v18585_v58  ;;  %v18607_v58 = vpop.permute.xlu0 %7339 }
 0x94f   : > { %v18587_v28 = vpop.f32.mrf.mxu0  ;;  %21237 = vst [vmem:[#allocation119_spill] sm:$0xff] %v18607_v58 }
 0x950   : > { %21228 = vst [vmem:[#allocation110_spill] sm:$0xff] %v18587_v28 }
 0x951   : > { %v18589_v30 = vpop.f32.mrf.mxu0 }
 0x952   : > { %21229 = vst [vmem:[#allocation111_spill] sm:$0xff] %v18589_v30 }
 0x953   : > { %v18591_v38 = vpop.f32.mrf.mxu0 }
 0x954   : > { %21230 = vst [vmem:[#allocation112_spill] sm:$0xff] %v18591_v38 }
 0x955   : > { %v18593_v49 = vpop.f32.mrf.mxu0 }
 0x956   : > { %21231 = vst [vmem:[#allocation113_spill] sm:$0xff] %v18593_v49  ;;  %v18615_v49 = vpop.permute.xlu1 %7480 }
 0x957   : > { %v18595_v27 = vpop.f32.mrf.mxu0 }
 0x958   : > { %21232 = vst [vmem:[#allocation114_spill] sm:$0xff] %v18595_v27  ;;  %v18617_v27 = vpop.permute.xlu0 %7433 }
 0x959   : > { %v18597_v52 = vpop.f32.mrf.mxu0  ;;  %21241 = vst [vmem:[#allocation123_spill] sm:$0xff] %v18617_v27 }
 0x95a   : > { %21233 = vst [vmem:[#allocation115_spill] sm:$0xff] %v18597_v52 }
 0x95b   : > { %v18599_v0 = vpop.f32.mrf.mxu0 }
 0x95c   : > { %21234 = vst [vmem:[#allocation116_spill] sm:$0xff] %v18599_v0  ;;  %v18627_v2 = vpop.permute.xlu0 %7527 }
 0x95d   : > { %v18601_v57 = vpop.f32.mrf.mxu0  ;;  %21245 = vst [vmem:[#allocation127_spill] sm:$0xff] %v18627_v2 }
 0x95e   : > { %21235 = vst [vmem:[#allocation117_spill] sm:$0xff] %v18601_v57 }
 0x95f   : > { %v18603_v10 = vpop.f32.mrf.mxu0 }
 0x960   : > { %21236 = vst [vmem:[#allocation118_spill] sm:$0xff] %v18603_v10  ;;  %v18625_v10 = vpop.permute.xlu1 %7574  ;;  %v18637_v32 = vpop.permute.xlu0 %7621 }
 0x961   : > { %v18609_v28 = vpop.f32.mrf.mxu0  ;;  %21248 = vst [vmem:[#allocation130_spill] sm:$0xff] %v18637_v32 }
 0x962   : > { %21238 = vst [vmem:[#allocation120_spill] sm:$0xff] %v18609_v28 }
 0x963   : > { %v18611_v30 = vpop.f32.mrf.mxu0 }
 0x964   : > { %21239 = vst [vmem:[#allocation121_spill] sm:$0xff] %v18611_v30 }
 0x965   : > { %v18613_v38 = vpop.f32.mrf.mxu0 }
 0x966   : > { %21240 = vst [vmem:[#allocation122_spill] sm:$0xff] %v18613_v38  ;;  %v18633_v38 = vpop.permute.xlu1 %7668 }
 0x967   : > { %v18619_v52 = vpop.f32.mrf.mxu0 }
 0x968   : > { %21242 = vst [vmem:[#allocation124_spill] sm:$0xff] %v18619_v52 }
 0x969   : > { %v18621_v0 = vpop.f32.mrf.mxu0 }
 0x96a   : > { %21243 = vst [vmem:[#allocation125_spill] sm:$0xff] %v18621_v0 }
 0x96b   : > { %v18623_v57 = vpop.f32.mrf.mxu0 }
 0x96c   : > { %21244 = vst [vmem:[#allocation126_spill] sm:$0xff] %v18623_v57 }
 0x96d   : > { %v18629_v60 = vpop.f32.mrf.mxu0 }
 0x96e   : > { %21246 = vst [vmem:[#allocation128_spill] sm:$0xff] %v18629_v60  ;;  %v18643_v60 = vpop.permute.xlu1 %7715 }
 0x96f   : > { %v18631_v28 = vpop.f32.mrf.mxu0  ;;  %21249 = vst [vmem:[#allocation131_spill] sm:$0xff] %v18643_v60 }
 0x970   : > { %21247 = vst [vmem:[#allocation129_spill] sm:$0xff] %v18631_v28 }
 0x971   : > { %v6073_v30 = vpop.f32.mrf.mxu0 }
 0x972   : > { %v18635_v51 = vmul.f32 0.17677669, %v6073_v30  ;;  %v18653_v14 = vpop.permute.xlu1 %7762 }
 0x973   : > { %v14184_v52 = vpop.f32.mrf.mxu0 }
 0x974   : > { %v6877_v0 = vsel %vm2474_vm2, %v18635_v51, -inf }
 0x975   : > { %6878 = vmax.xlane.f32.xlu0 %v6877_v0  ;;  %v6076_v57 = vpop.f32.mrf.mxu0 }
 0x976   : > { %v18641_v13 = vmul.f32 0.17677669, %v6076_v57 }
 0x977   : > { %v6885_v62 = vpop.xlane.xlu0 %6884  ;;  %v14185_v47 = vpop.f32.mrf.mxu0 }
 0x978   : > { %v6975_v28 = vsub.f32 %v18492_v4, %v6885_v62  ;;  %v6880_v30 = vsel %vm2474_vm2, %v18641_v13, -inf }
 0x979   : > { %6881 = vmax.xlane.f32.xlu1 %v6880_v30  ;;  %v6175_v63 = vpop.f32.mrf.mxu0 }
 0x97a   : > { %v7009_v25 = vmul.f32 1.442695, %v6975_v28  ;;  %v18648_v52 = vmul.f32 0.17677669, %v6175_v63 }
 0x97b   : > { %v6888_v50 = vpop.xlane.xlu0 %6887  ;;  %v14196_v36 = vpop.f32.mrf.mxu0 }
 0x97c   : > { %15128 = vpow2.f32 %v7009_v25  ;;  %v6976_v57 = vsub.f32 %v18497_v29, %v6888_v50  ;;  %v6889_v47 = vsel %vm2474_vm2, %v18648_v52, -inf }
 0x97d   : > { %6890 = vmax.xlane.f32.xlu0 %v6889_v47  ;;  %v6178_v0 = vpop.f32.mrf.mxu0 }
 0x97e   : > { %v7011_v4 = vmul.f32 1.442695, %v6976_v57  ;;  %v18655_v62 = vmul.f32 0.17677669, %v6178_v0 }
 0x97f   : > { %v6897_v30 = vpop.xlane.xlu0 %6896  ;;  %v14197_v16 = vpop.f32.mrf.mxu0 }
 0x980   : > { %15130 = vpow2.f32 %v7011_v4  ;;  %v6979_v28 = vsub.f32 %v18501_v17, %v6897_v30  ;;  %v6892_v36 = vsel %vm2474_vm2, %v18655_v62, -inf }
 0x981   : > { %6893 = vmax.xlane.f32.xlu1 %v6892_v36  ;;  %v6277_v25 = vpop.f32.mrf.mxu0 }
 0x982   : > { %v7017_v63 = vmul.f32 1.442695, %v6979_v28  ;;  %v18660_v29 = vmul.f32 0.17677669, %v6277_v25 }
 0x983   : > { %v6900_v50 = vpop.xlane.xlu1 %6899  ;;  %v14208_v47 = vpop.f32.mrf.mxu0 }
 0x984   : > { %15132 = vpow2.f32 %v7017_v63  ;;  %v6980_v57 = vsub.f32 %v18505_v9, %v6900_v50  ;;  %v6901_v0 = vsel %vm2474_vm2, %v18660_v29, -inf }
 0x985   : > { %6902 = vmax.xlane.f32.xlu0 %v6901_v0  ;;  %v6280_v16 = vpop.f32.mrf.mxu0 }
 0x986   : > { %v7019_v4 = vmul.f32 1.442695, %v6980_v57  ;;  %v18665_v17 = vmul.f32 0.17677669, %v6280_v16 }
 0x987   : > { %v6909_v30 = vpop.xlane.xlu0 %6908  ;;  %v14209_v22 = vpop.f32.mrf.mxu0 }
 0x988   : > { %15134 = vpow2.f32 %v7019_v4  ;;  %v6983_v28 = vsub.f32 %v18509_v33, %v6909_v30  ;;  %v6904_v36 = vsel %vm2474_vm2, %v18665_v17, -inf }
 0x989   : > { %v18670_v25 = vpop.eup %15128  ;;  %6905 = vmax.xlane.f32.xlu1 %v6904_v36  ;;  %v6379_v9 = vpop.f32.mrf.mxu0 }
 0x98a   : > { %v7025_v63 = vmul.f32 1.442695, %v6983_v28  ;;  %v18672_v50 = vmul.f32 0.17677669, %v6379_v9  ;;  %v7075_v47 = vsel %vm2474_vm2, %v18670_v25, 0.0 }
 0x98b   : > { %v6912_v57 = vpop.xlane.xlu1 %6911  ;;  %7076 = vadd.xlane.f32.xlu0 %v7075_v47  ;;  %v14220_v0 = vpop.f32.mrf.mxu0 }
 0x98c   : > { %15136 = vpow2.f32 %v7025_v63  ;;  %v6984_v22 = vsub.f32 %v18513_v48, %v6912_v57  ;;  %v6913_v36 = vsel %vm2474_vm2, %v18672_v50, -inf }
 0x98d   : > { %v18677_v33 = vpop.eup %15130  ;;  %v6382_v16 = vpop.f32.mrf.mxu0 }
 0x98e   : > { %v7027_v4 = vmul.f32 1.442695, %v6984_v22  ;;  %v18679_v30 = vmul.f32 0.17677669, %v6382_v16  ;;  %v7078_v28 = vsel %vm2474_vm2, %v18677_v33, 0.0 }
 0x98f   : > { %v6921_v9 = vpop.xlane.xlu0 %6920  ;;  %7079 = vadd.xlane.f32.xlu1 %v7078_v28  ;;  %6914 = vmax.xlane.f32.xlu0 %v6913_v36  ;;  %v14221_v47 = vpop.f32.mrf.mxu0 }
 0x990   : > { %15138 = vpow2.f32 %v7027_v4  ;;  %v6987_v63 = vsub.f32 %v18517_v34, %v6921_v9  ;;  %v6916_v5 = vsel %vm2474_vm2, %v18679_v30, -inf }
 0x991   : > { %v18686_v48 = vpop.eup %15132  ;;  %v6481_v57 = vpop.f32.mrf.mxu0 }
 0x992   : > { %v7033_v0 = vmul.f32 1.442695, %v6987_v63  ;;  %v18688_v22 = vmul.f32 0.17677669, %v6481_v57  ;;  %v7087_v16 = vsel %vm2474_vm2, %v18686_v48, 0.0 }
 0x993   : > { %v6924_v15 = vpop.xlane.xlu1 %6923  ;;  %7088 = vadd.xlane.f32.xlu0 %v7087_v16  ;;  %6917 = vmax.xlane.f32.xlu1 %v6916_v5  ;;  %v14232_v28 = vpop.f32.mrf.mxu0 }
 0x994   : > { %15140 = vpow2.f32 %v7033_v0  ;;  %v6988_v4 = vsub.f32 %v18521_v53, %v6924_v15  ;;  %v6925_v57 = vsel %vm2474_vm2, %v18688_v22, -inf }
 0x995   : > { %v18695_v34 = vpop.eup %15134  ;;  %v6484_v36 = vpop.f32.mrf.mxu0 }
 0x996   : > { %v7035_v9 = vmul.f32 1.442695, %v6988_v4  ;;  %v18697_v47 = vmul.f32 0.17677669, %v6484_v36  ;;  %v7090_v63 = vsel %vm2474_vm2, %v18695_v34, 0.0 }
 0x997   : > { %v6933_v26 = vpop.xlane.xlu0 %6932  ;;  %7091 = vadd.xlane.f32.xlu1 %v7090_v63  ;;  %6926 = vmax.xlane.f32.xlu0 %v6925_v57  ;;  %v14233_v5 = vpop.f32.mrf.mxu0 }
 0x998   : > { %15142 = vpow2.f32 %v7035_v9  ;;  %v6991_v0 = vsub.f32 %v18525_v61, %v6933_v26  ;;  %v6928_v36 = vsel %vm2474_vm2, %v18697_v47, -inf }
 0x999   : > { %v18704_v53 = vpop.eup %15136  ;;  %v6583_v15 = vpop.f32.mrf.mxu0 }
 0x99a   : > { %v7041_v16 = vmul.f32 1.442695, %v6991_v0  ;;  %v18706_v28 = vmul.f32 0.17677669, %v6583_v15  ;;  %v7099_v4 = vsel %vm2474_vm2, %v18704_v53, 0.0 }
 0x99b   : > { %v6936_v39 = vpop.xlane.xlu1 %6935  ;;  %7100 = vadd.xlane.f32.xlu0 %v7099_v4  ;;  %6929 = vmax.xlane.f32.xlu1 %v6928_v36  ;;  %v14244_v63 = vpop.f32.mrf.mxu0 }
 0x99c   : > { %15144 = vpow2.f32 %v7041_v16  ;;  %v6992_v9 = vsub.f32 %v18529_v42, %v6936_v39  ;;  %v6937_v15 = vsel %vm2474_vm2, %v18706_v28, -inf }
 0x99d   : > { %v18713_v26 = vpop.eup %15138  ;;  %v6586_v61 = vpop.f32.mrf.mxu0 }
 0x99e   : > { %v7043_v57 = vmul.f32 1.442695, %v6992_v9  ;;  %v18715_v5 = vmul.f32 0.17677669, %v6586_v61  ;;  %v7102_v0 = vsel %vm2474_vm2, %v18713_v26, 0.0 }
 0x99f   : > { %v6945_v60 = vpop.xlane.xlu0 %6944  ;;  %7103 = vadd.xlane.f32.xlu1 %v7102_v0  ;;  %6938 = vmax.xlane.f32.xlu0 %v6937_v15  ;;  %v14245_v4 = vpop.f32.mrf.mxu0 }
 0x9a0   : > { %15146 = vpow2.f32 %v7043_v57  ;;  %v6995_v16 = vsub.f32 %v18533_v59, %v6945_v60  ;;  %v6940_v61 = vsel %vm2474_vm2, %v18715_v5, -inf }
 0x9a1   : > { %v18722_v39 = vpop.eup %15140  ;;  %v6685_v42 = vpop.f32.mrf.mxu0 }
 0x9a2   : > { %v7049_v36 = vmul.f32 1.442695, %v6995_v16  ;;  %v18724_v63 = vmul.f32 0.17677669, %v6685_v42  ;;  %v7111_v9 = vsel %vm2474_vm2, %v18722_v39, 0.0 }
 0x9a3   : > { %v6948_v32 = vpop.xlane.xlu1 %6947  ;;  %7112 = vadd.xlane.f32.xlu0 %v7111_v9  ;;  %6941 = vmax.xlane.f32.xlu1 %v6940_v61  ;;  %v14256_v0 = vpop.f32.mrf.mxu0 }
 0x9a4   : > { %15148 = vpow2.f32 %v7049_v36  ;;  %v6996_v57 = vsub.f32 %v18537_v40, %v6948_v32  ;;  %v6949_v42 = vsel %vm2474_vm2, %v18724_v63, -inf }
 0x9a5   : > { %v18731_v59 = vpop.eup %15142  ;;  %v6688_v60 = vpop.f32.mrf.mxu0 }
 0x9a6   : > { %v7051_v15 = vmul.f32 1.442695, %v6996_v57  ;;  %v18733_v4 = vmul.f32 0.17677669, %v6688_v60  ;;  %v7114_v16 = vsel %vm2474_vm2, %v18731_v59, 0.0 }
 0x9a7   : > { %v6957_v2 = vpop.xlane.xlu0 %6956  ;;  %7115 = vadd.xlane.f32.xlu1 %v7114_v16  ;;  %6950 = vmax.xlane.f32.xlu0 %v6949_v42  ;;  %v14257_v9 = vpop.f32.mrf.mxu0 }
 0x9a8   : > { %15150 = vpow2.f32 %v7051_v15  ;;  %v6999_v36 = vsub.f32 %v18541_v12, %v6957_v2  ;;  %v6952_v60 = vsel %vm2474_vm2, %v18733_v4, -inf }
 0x9a9   : > { %v18740_v40 = vpop.eup %15144  ;;  %v6787_v32 = vpop.f32.mrf.mxu0 }
 0x9aa   : > { %v7057_v61 = vmul.f32 1.442695, %v6999_v36  ;;  %v18742_v0 = vmul.f32 0.17677669, %v6787_v32  ;;  %v7123_v57 = vsel %vm2474_vm2, %v18740_v40, 0.0 }
 0x9ab   : > { %v6960_v27 = vpop.xlane.xlu1 %6959  ;;  %7124 = vadd.xlane.f32.xlu0 %v7123_v57  ;;  %6953 = vmax.xlane.f32.xlu1 %v6952_v60  ;;  %v14268_v16 = vpop.f32.mrf.mxu0 }
 0x9ac   : > { %15152 = vpow2.f32 %v7057_v61  ;;  %v7000_v15 = vsub.f32 %v18545_v44, %v6960_v27  ;;  %v6961_v32 = vsel %vm2474_vm2, %v18742_v0, -inf }
 0x9ad   : > { %v18749_v2 = vpop.eup %15146  ;;  %v6790_v12 = vpop.f32.mrf.mxu0 }
 0x9ae   : > { %v7059_v42 = vmul.f32 1.442695, %v7000_v15  ;;  %v18751_v9 = vmul.f32 0.17677669, %v6790_v12  ;;  %v7126_v36 = vsel %vm2474_vm2, %v18749_v2, 0.0 }
 0x9af   : > { %v6969_v58 = vpop.xlane.xlu0 %6968  ;;  %7127 = vadd.xlane.f32.xlu1 %v7126_v36  ;;  %6962 = vmax.xlane.f32.xlu0 %v6961_v32  ;;  %v14269_v57 = vpop.f32.mrf.mxu0 }
 0x9b0   : > { %15154 = vpow2.f32 %v7059_v42  ;;  %v7003_v61 = vsub.f32 %v18549_v31, %v6969_v58  ;;  %v6964_v16 = vsel %vm2474_vm2, %v18751_v9, -inf }
 0x9b1   : > { %v18758_v27 = vpop.eup %15148 }
 0x9b2   : > { %v7065_v44 = vmul.f32 1.442695, %v7003_v61  ;;  %v7135_v60 = vsel %vm2474_vm2, %v18758_v27, 0.0 }
 0x9b3   : > { %v6972_v15 = vpop.xlane.xlu1 %6971  ;;  %7136 = vadd.xlane.f32.xlu0 %v7135_v60  ;;  %6965 = vmax.xlane.f32.xlu1 %v6964_v16 }
 0x9b4   : > { %15156 = vpow2.f32 %v7065_v44  ;;  %v7004_v12 = vsub.f32 %v18553_v37, %v6972_v15 }
 0x9b5   : > { %v18765_v36 = vpop.eup %15150 }
 0x9b6   : > { %v7067_v42 = vmul.f32 1.442695, %v7004_v12  ;;  %v7138_v31 = vsel %vm2474_vm2, %v18765_v36, 0.0 }
 0x9b7   : > { %7139 = vadd.xlane.f32.xlu1 %v7138_v31 }
 0x9b8   : > { %15158 = vpow2.f32 %v7067_v42 }
 0x9b9   : > { %v18769_v58 = vpop.eup %15152 }
 0x9ba   : > { %21250 = vst [vmem:[#allocation132_spill] sm:$0xff] %v18769_v58  ;;  %v7147_v32 = vsel %vm2474_vm2, %v18769_v58, 0.0 }
 0x9bb   : > { %7148 = vadd.xlane.f32.xlu0 %v7147_v32 }
 0x9bd   : > { %v18773_v57 = vpop.eup %15154 }
 0x9be   : > { %21251 = vst [vmem:[#allocation133_spill] sm:$0xff] %v18773_v57  ;;  %v7150_v61 = vsel %vm2474_vm2, %v18773_v57, 0.0 }
 0x9bf   : > { %7151 = vadd.xlane.f32.xlu1 %v7150_v61 }
 0x9c1   : > { %v18777_v37 = vpop.eup %15156 }
 0x9c2   : > { %21252 = vst [vmem:[#allocation134_spill] sm:$0xff] %v18777_v37  ;;  %v7159_v44 = vsel %vm2474_vm2, %v18777_v37, 0.0 }
 0x9c3   : > { %7160 = vadd.xlane.f32.xlu0 %v7159_v44 }
 0x9c5   : > { %v18781_v60 = vpop.eup %15158 }
 0x9c6   : > { %21253 = vst [vmem:[#allocation135_spill] sm:$0xff] %v18781_v60  ;;  %v7162_v16 = vsel %vm2474_vm2, %v18781_v60, 0.0 }
 0x9c7   : > { %7163 = vadd.xlane.f32.xlu1 %v7162_v16 }
 0x9fe   : > { %v6879_v15 = vpop.xlane.xlu0 %6878 }
 0x9ff   : > { %v6973_v12 = vsub.f32 %v18635_v51, %v6879_v15 }
 0xa01   : > { %v7005_v42 = vmul.f32 1.442695, %v6973_v12 }
 0xa02   : > { %v6882_v31 = vpop.xlane.xlu1 %6881 }
 0xa03   : > { %15160 = vpow2.f32 %v7005_v42  ;;  %v6974_v32 = vsub.f32 %v18641_v13, %v6882_v31 }
 0xa05   : > { %v7007_v61 = vmul.f32 1.442695, %v6974_v32 }
 0xa06   : > { %v6891_v58 = vpop.xlane.xlu0 %6890 }
 0xa07   : > { %15162 = vpow2.f32 %v7007_v61  ;;  %v6977_v37 = vsub.f32 %v18648_v52, %v6891_v58 }
 0xa09   : > { %v7013_v44 = vmul.f32 1.442695, %v6977_v37 }
 0xa0a   : > { %v6894_v57 = vpop.xlane.xlu1 %6893 }
 0xa0b   : > { %15164 = vpow2.f32 %v7013_v44  ;;  %v6978_v45 = vsub.f32 %v18655_v62, %v6894_v57 }
 0xa0d   : > { %v7015_v60 = vmul.f32 1.442695, %v6978_v45 }
 0xa0e   : > { %v6903_v16 = vpop.xlane.xlu0 %6902 }
 0xa0f   : > { %15166 = vpow2.f32 %v7015_v60  ;;  %v6981_v51 = vsub.f32 %v18660_v29, %v6903_v16 }
 0xa10   : > { %v18790_v15 = vpop.eup %15160 }
 0xa11   : > { %v7021_v12 = vmul.f32 1.442695, %v6981_v51  ;;  %v7069_v13 = vsel %vm2474_vm2, %v18790_v15, 0.0 }
 0xa12   : > { %v6906_v42 = vpop.xlane.xlu1 %6905  ;;  %7070 = vadd.xlane.f32.xlu0 %v7069_v13 }
 0xa13   : > { %15168 = vpow2.f32 %v7021_v12  ;;  %v6982_v52 = vsub.f32 %v18665_v17, %v6906_v42 }
 0xa14   : > { %v18795_v58 = vpop.eup %15162  ;;  %v7077_v37 = vpop.xlane.xlu0 %7076 }
 0xa15   : > { %v7023_v62 = vmul.f32 1.442695, %v6982_v52  ;;  %v7072_v45 = vsel %vm2474_vm2, %v18795_v58, 0.0  ;;  %15170 = vrcp.f32 %v7077_v37 }
 0xa16   : > { %7073 = vadd.xlane.f32.xlu1 %v7072_v45 }
 0xa17   : > { %15172 = vpow2.f32 %v7023_v62 }
 0xa18   : > { %v18799_v29 = vpop.eup %15164  ;;  %v7080_v57 = vpop.xlane.xlu1 %7079 }
 0xa19   : > { %v6915_v60 = vpop.xlane.xlu0 %6914  ;;  %15174 = vrcp.f32 %v7080_v57  ;;  %v7081_v17 = vsel %vm2474_vm2, %v18799_v29, 0.0 }
 0xa1a   : > { %v6985_v31 = vsub.f32 %v18672_v50, %v6915_v60  ;;  %7082 = vadd.xlane.f32.xlu0 %v7081_v17 }
 0xa1c   : > { %v7029_v32 = vmul.f32 1.442695, %v6985_v31  ;;  %v18804_v61 = vpop.eup %15166  ;;  %v6918_v16 = vpop.xlane.xlu1 %6917 }
 0xa1d   : > { %v7089_v44 = vpop.xlane.xlu0 %7088  ;;  %v6986_v51 = vsub.f32 %v18679_v30, %v6918_v16  ;;  %v7084_v12 = vsel %vm2474_vm2, %v18804_v61, 0.0 }
 0xa1e   : > { %15176 = vpow2.f32 %v7029_v32  ;;  %7085 = vadd.xlane.f32.xlu1 %v7084_v12 }
 0xa1f   : > { %v7031_v13 = vmul.f32 1.442695, %v6986_v51  ;;  %15178 = vrcp.f32 %v7089_v44 }
 0xa20   : > { %v18809_v42 = vpop.eup %15168  ;;  %v7092_v50 = vpop.xlane.xlu1 %7091 }
 0xa21   : > { %v6927_v52 = vpop.xlane.xlu0 %6926  ;;  %15180 = vpow2.f32 %v7031_v13  ;;  %v7093_v62 = vsel %vm2474_vm2, %v18809_v42, 0.0 }
 0xa22   : > { %v6989_v37 = vsub.f32 %v18688_v22, %v6927_v52  ;;  %15182 = vrcp.f32 %v7092_v50  ;;  %7094 = vadd.xlane.f32.xlu0 %v7093_v62  ;;  %v15171_v45 = vpop.eup %15170 }
 0xa23   : > { %v7199_v22 = vmul.f32 %v15171_v45, %v18670_v25 }
 0xa24   : > { %v7037_v30 = vmul.f32 1.442695, %v6989_v37  ;;  %v18814_v57 = vpop.eup %15172  ;;  %v6930_v31 = vpop.xlane.xlu1 %6929 }
 0xa25   : > { %v7101_v60 = vpop.xlane.xlu0 %7100  ;;  %v6990_v17 = vsub.f32 %v18697_v47, %v6930_v31  ;;  %v7096_v32 = vsel %vm2474_vm2, %v18814_v57, 0.0 }
 0xa26   : > { %15184 = vpow2.f32 %v7037_v30  ;;  %v15175_v44 = vpop.eup %15174  ;;  %7097 = vadd.xlane.f32.xlu1 %v7096_v32 }
 0xa27   : > { %v7200_v16 = vmul.f32 %v15175_v44, %v18677_v33  ;;  %v7039_v51 = vmul.f32 1.442695, %v6990_v17  ;;  %15186 = vrcp.f32 %v7101_v60 }
 0xa28   : > { %v7104_v12 = vpop.xlane.xlu1 %7103 }
 0xa29   : > { %v6939_v13 = vpop.xlane.xlu0 %6938  ;;  %15188 = vpow2.f32 %v7039_v51  ;;  %v7230_v52 = vpack.c.bf16 %v7200_v16, %v7199_v22 }
 0xa2a   : > { %v6993_v50 = vsub.f32 %v18706_v28, %v6939_v13  ;;  %15190 = vrcp.f32 %v7104_v12 }
 0xa2b   : > { %v18822_v37 = vpop.eup %15176  ;;  %14285 = vmatmul.mubr.msk.bf16.vlgmr.msra.gmra.mxu1 %vm2474_vm2, %v7230_v52 }
 0xa2c   : > { %v7045_v47 = vmul.f32 1.442695, %v6993_v50  ;;  %v7105_v62 = vsel %vm2474_vm2, %v18822_v37, 0.0  ;;  %14295 = vmatpush3.bf16.msra.mxu1 %v18605_v1  ;;  %v6942_v33 = vpop.xlane.xlu1 %6941  ;;  %v15179_v45 = vpop.eup %15178  ;;  %14296 = vmatprep.mubr.msk.bf16.mxu1 %vm15776_vm0, %v21094_v21 }
 0xa2d   : > { %v7113_v25 = vpop.xlane.xlu0 %7112  ;;  %7106 = vadd.xlane.f32.xlu0 %v7105_v62  ;;  %v6994_v30 = vsub.f32 %v18715_v5, %v6942_v33  ;;  %14306 = vmatprep.subr.bf16.mxu1 %v21094_v21  ;;  %v7203_v1 = vmul.f32 %v15179_v45, %v18686_v48 }
 0xa2e   : > { %15192 = vpow2.f32 %v7045_v47  ;;  %v18832_v28 = vpop.eup %15180 }
 0xa2f   : > { %v15183_v60 = vpop.eup %15182  ;;  %v7047_v31 = vmul.f32 1.442695, %v6994_v30  ;;  %v7108_v17 = vsel %vm2474_vm2, %v18832_v28, 0.0  ;;  %15194 = vrcp.f32 %v7113_v25 }
 0xa30   : > { %v7204_v32 = vmul.f32 %v15183_v60, %v18695_v34  ;;  %v7116_v44 = vpop.xlane.xlu1 %7115  ;;  %7109 = vadd.xlane.f32.xlu1 %v7108_v17 }
 0xa31   : > { %v18838_v22 = vpop.xlane.xlu0 %6950  ;;  %15196 = vpow2.f32 %v7047_v31 }
 0xa32   : > { %15198 = vrcp.f32 %v7116_v44  ;;  %v7232_v16 = vpack.c.bf16 %v7204_v32, %v7203_v1 }
 0xa33   : > { %v18840_v5 = vpop.eup %15184 }
 0xa34   : > { %v7117_v51 = vsel %vm2474_vm2, %v18840_v5, 0.0  ;;  %14297 = vmatmul.mubr.msk.bf16.vlgmr.msra.gmra.mxu1 %vm2474_vm2, %v7232_v16  ;;  %v18845_v13 = vpop.xlane.xlu1 %6953  ;;  %v15187_v48 = vpop.eup %15186 }
 0xa35   : > { %v7125_v12 = vpop.xlane.xlu0 %7124  ;;  %7118 = vadd.xlane.f32.xlu1 %v7117_v51  ;;  %14307 = vmatpush3.bf16.msra.mxu1 %v18615_v49  ;;  %v7207_v47 = vmul.f32 %v15187_v48, %v18704_v53 }
 0xa36   : > { %14308 = vmatprep.mubr.msk.bf16.mxu1 %vm15776_vm0, %v21094_v21  ;;  %v18850_v34 = vpop.eup %15188  ;;  %14318 = vmatprep.subr.bf16.mxu1 %v21094_v21  ;;  %15200 = vrcp.f32 %v7125_v12 }
 0xa37   : > { %v15191_v50 = vpop.eup %15190  ;;  %v7120_v52 = vsel %vm2474_vm2, %v18850_v34, 0.0 }
 0xa38   : > { %v7208_v62 = vmul.f32 %v15191_v50, %v18713_v26  ;;  %v7128_v25 = vpop.xlane.xlu1 %7127  ;;  %7121 = vadd.xlane.f32.xlu0 %v7120_v52  ;;  %v21254_v52 = vld [vmem:[#allocation68_spill] sm:$0xff] }
 0xa39   : > { %v6963_v33 = vpop.xlane.xlu0 %6962  ;;  %15202 = vrcp.f32 %v7128_v25  ;;  %v6998_v25 = vsub.f32 %v18733_v4, %v18845_v13 }
 0xa3a   : > { %v7234_v45 = vpack.c.bf16 %v7208_v62, %v7207_v47  ;;  %v6997_v62 = vsub.f32 %v18724_v63, %v18838_v22 }
 0xa3b   : > { %v18857_v49 = vpop.eup %15192 }
 0xa3c   : > { %v7129_v30 = vsel %vm2474_vm2, %v18857_v49, 0.0  ;;  %14309 = vmatmul.mubr.msk.bf16.vlgmr.msra.gmra.mxu1 %vm2474_vm2, %v7234_v45  ;;  %v6966_v60 = vpop.xlane.xlu1 %6965  ;;  %v15195_v31 = vpop.eup %15194  ;;  %v7053_v45 = vmul.f32 1.442695, %v6997_v62 }
 0xa3d   : > { %7130 = vadd.xlane.f32.xlu1 %v7129_v30  ;;  %14319 = vmatpush3.bf16.msra.mxu1 %v18625_v10  ;;  %v7137_v53 = vpop.xlane.xlu0 %7136  ;;  %v7211_v32 = vmul.f32 %v15195_v31, %v18722_v39  ;;  %v7055_v30 = vmul.f32 1.442695, %v6998_v25  ;;  %v7002_v31 = vsub.f32 %v18751_v9, %v6966_v60 }
 0xa3e   : > { %14320 = vmatprep.mubr.msk.bf16.mxu1 %vm15776_vm0, %v21094_v21  ;;  %v18865_v26 = vpop.eup %15196  ;;  %14330 = vmatprep.subr.bf16.mxu1 %v21094_v21  ;;  %15204 = vrcp.f32 %v7137_v53 }
 0xa3f   : > { %v15199_v17 = vpop.eup %15198  ;;  %v7132_v1 = vsel %vm2474_vm2, %v18865_v26, 0.0  ;;  %v7063_v53 = vmul.f32 1.442695, %v7002_v31 }
 0xa40   : > { %v7212_v44 = vmul.f32 %v15199_v17, %v18731_v59  ;;  %7133 = vadd.xlane.f32.xlu0 %v7132_v1  ;;  %v7140_v16 = vpop.xlane.xlu1 %7139 }
 0xa41   : > { %15206 = vrcp.f32 %v7140_v16 }
 0xa42   : > { %v7236_v10 = vpack.c.bf16 %v7212_v44, %v7211_v32  ;;  %15208 = vpow2.f32 %v7053_v45  ;;  %v21259_v44 = vld [vmem:[#allocation47_spill] sm:$0xff] }
 0xa43   : > { %v15201_v51 = vpop.eup %15200  ;;  %15210 = vpow2.f32 %v7055_v30  ;;  %v21268_v30 = vld [vmem:[#allocation42_spill] sm:$0xff] }
 0xa44   : > { %14321 = vmatmul.mubr.msk.bf16.vlgmr.msra.gmra.mxu1 %vm2474_vm2, %v7236_v10  ;;  %v7215_v39 = vmul.f32 %v15201_v51, %v18740_v40  ;;  %v21260_v10 = vld [vmem:[#allocation119_spill] sm:$0xff] }
 0xa45   : > { %14331 = vmatpush3.bf16.msra.mxu1 %v18633_v38  ;;  %14332 = vmatprep.mubr.msk.bf16.mxu1 %vm15776_vm0, %v21094_v21 }
 0xa46   : > { %14342 = vmatprep.subr.bf16.mxu1 %v21094_v21  ;;  %v15203_v12 = vpop.eup %15202 }
 0xa47   : > { %v7216_v59 = vmul.f32 %v15203_v12, %v18749_v2 }
 0xa48   : > { %v7152_v60 = vpop.xlane.xlu1 %7151 }
 0xa49   : > { %v7238_v48 = vpack.c.bf16 %v7216_v59, %v7215_v39  ;;  %v21262_v59 = vld [vmem:[#allocation50_spill] sm:$0xff] }
 0xa4b   : > { %v15205_v50 = vpop.eup %15204 }
 0xa4c   : > { %14333 = vmatmul.mubr.msk.bf16.vlgmr.msra.gmra.mxu1 %vm2474_vm2, %v7238_v48  ;;  %v7219_v47 = vmul.f32 %v15205_v50, %v18758_v27  ;;  %v7001_v27 = vsub.f32 %v18742_v0, %v6963_v33  ;;  %v7149_v33 = vpop.xlane.xlu0 %7148  ;;  %v21263_v48 = vld [vmem:[#allocation38_spill] sm:$0xff] }
 0xa4d   : > { %14343 = vmatpush3.bf16.msra.mxu1 %v18653_v14  ;;  %14344 = vmatprep.mubr.msk.bf16.mxu1 %vm15776_vm0, %v21094_v21  ;;  %v21255_v14 = vld [vmem:[#allocation69_spill] sm:$0xff] }
 0xa4e   : > { %7856 = vrot.lane.b32.xlu1 %v21254_v52, %s15778_s12  ;;  %14354 = vmatprep.subr.bf16.mxu1 %v21094_v21  ;;  %v15207_v38 = vpop.eup %15206 }
 0xa4f   : > { %v7220_v40 = vmul.f32 %v15207_v38, %v18765_v36  ;;  %v7061_v36 = vmul.f32 1.442695, %v7001_v27  ;;  %v18899_v17 = vpop.eup %15208  ;;  %v21267_v27 = vld [vmem:[#allocation51_spill] sm:$0xff] }
 0xa50   : > { %v18901_v1 = vpop.eup %15210  ;;  %v7141_v63 = vsel %vm2474_vm2, %v18899_v17, 0.0  ;;  %v18929_v32 = vpop.xlane.xlu0 %7160 }
 0xa51   : > { %v7240_v2 = vpack.c.bf16 %v7220_v40, %v7219_v47  ;;  %15212 = vpow2.f32 %v7061_v36  ;;  %v7144_v0 = vsel %vm2474_vm2, %v18901_v1, 0.0  ;;  %v21264_v47 = vld [vmem:[#allocation49_spill] sm:$0xff]  ;;  %v21265_v40 = vld [vmem:[#allocation123_spill] sm:$0xff] }
 0xa52   : > { %15214 = vpow2.f32 %v7063_v53  ;;  %v21269_v53 = vld [vmem:[#allocation52_spill] sm:$0xff] }
 0xa54   : > { %14345 = vmatmul.mubr.msk.bf16.vlgmr.msra.gmra.mxu1 %vm2474_vm2, %v7240_v2 }
 0xa55   : > { %14356 = vmatprep.mubr.msk.bf16.mxu1 %vm15776_vm0, %v21094_v21 }
 0xa56   : > { %7809 = vrot.lane.b32.xlu0 %v21255_v14, %s15778_s12 }
 0xa5e   : > { %v18905_v4 = vpop.eup %15212 }
 0xa5f   : > { %v7153_v9 = vsel %vm2474_vm2, %v18905_v4, 0.0  ;;  %v18911_v22 = vpop.eup %15214 }
 0xa60   : > { %v7156_v13 = vsel %vm2474_vm2, %v18911_v22, 0.0 }
 0xa72   : > { %7142 = vadd.xlane.f32.xlu1 %v7141_v63  ;;  %v21270_v63 = vld [vmem:[#allocation127_spill] sm:$0xff] }
 0xa75   : > { %7145 = vadd.xlane.f32.xlu0 %v7144_v0 }
 0xa76   : > { %7154 = vadd.xlane.f32.xlu1 %v7153_v9 }
 0xa79   : > { %7157 = vadd.xlane.f32.xlu0 %v7156_v13 }
 0xa87   : > { %7950 = vrot.lane.b32.xlu1 %v21052_v20, %s15778_s12 }
 0xa8b   : > { %8262 = vrot.lane.b32.xlu1 %v16665_v24, %s15779_s21  ;;  %v18935_v24 = vpop.xlane.xlu1 %7163 }
 0xa8f   : > { %8313 = vrot.lane.b32.xlu1 %v16682_v41, %s15779_s21  ;;  %7903 = vrot.lane.b32.xlu0 %v21031_v19, %s15778_s12 }
 0xa93   : > { %8364 = vrot.lane.b32.xlu1 %v16705_v11, %s15779_s21  ;;  %8264 = vrot.lane.b32.xlu0 %v16650_v8, %s15779_s21 }
 0xa97   : > { %8415 = vrot.lane.b32.xlu1 %v16732_v46, %s15779_s21  ;;  %8315 = vrot.lane.b32.xlu0 %v16662_v7, %s15779_s21 }
 0xa9b   : > { %8466 = vrot.lane.b32.xlu1 %v16757_v3, %s15779_s21  ;;  %v7071_v41 = vpop.xlane.xlu0 %7070  ;;  %8366 = vrot.lane.b32.xlu0 %v21034_v56, %s15779_s21 }
 0xa9c   : > { %15216 = vrcp.f32 %v7071_v41  ;;  %v21273_v41 = vld [vmem:[#allocation133_spill] sm:$0xff] }
 0xa9f   : > { %8517 = vrot.lane.b32.xlu1 %v16791_v55, %s15779_s21  ;;  %8417 = vrot.lane.b32.xlu0 %v21036_v43, %s15779_s21  ;;  %v7074_v8 = vpop.xlane.xlu1 %7073  ;;  %v21256_v55 = vld [vmem:[#allocation37_spill] sm:$0xff] }
 0xaa0   : > { %15218 = vrcp.f32 %v7074_v8 }
 0xaa3   : > { %8568 = vrot.lane.b32.xlu1 %v21095_v23, %s15779_s21  ;;  %v7083_v7 = vpop.xlane.xlu0 %7082  ;;  %8468 = vrot.lane.b32.xlu0 %v21037_v54, %s15779_s21  ;;  %v21257_v23 = vld [vmem:[#allocation48_spill] sm:$0xff] }
 0xaa4   : > { %15220 = vrcp.f32 %v7083_v7  ;;  %v21274_v7 = vld [vmem:[#allocation46_spill] sm:$0xff] }
 0xaa7   : > { %8619 = vrot.lane.b32.xlu1 %v21097_v18, %s15779_s21  ;;  %8519 = vrot.lane.b32.xlu0 %v21038_v35, %s15779_s21  ;;  %v7086_v11 = vpop.xlane.xlu1 %7085  ;;  %v21258_v35 = vld [vmem:[#allocation40_spill] sm:$0xff] }
 0xaa8   : > { %15222 = vrcp.f32 %v7086_v11 }
 0xaa9   : > { %v15217_v46 = vpop.eup %15216 }
 0xaaa   : > { %v7197_v43 = vmul.f32 %v15217_v46, %v18790_v15  ;;  %v21261_v15 = vld [vmem:[#allocation36_spill] sm:$0xff] }
 0xaab   : > { %8723 = vrot.lane.b32.xlu1 %v21096_v6, %s15779_s21  ;;  %v7095_v3 = vpop.xlane.xlu0 %7094  ;;  %8570 = vrot.lane.b32.xlu0 %v21256_v55, %s15779_s21 }
 0xaac   : > { %15224 = vrcp.f32 %v7095_v3  ;;  %v21275_v3 = vld [vmem:[#allocation132_spill] sm:$0xff] }
 0xaad   : > { %v15219_v56 = vpop.eup %15218 }
 0xaae   : > { %v7198_v54 = vmul.f32 %v15219_v56, %v18795_v58 }
 0xaaf   : > { %8721 = vrot.lane.b32.xlu1 %v21257_v23, %s15779_s21  ;;  %8621 = vrot.lane.b32.xlu0 %v21258_v35, %s15779_s21  ;;  %v7098_v18 = vpop.xlane.xlu1 %7097  ;;  %v21277_v35 = vld [vmem:[#allocation53_spill] sm:$0xff] }
 0xab0   : > { %15226 = vrcp.f32 %v7098_v18  ;;  %v7229_v6 = vpack.c.bf16 %v7198_v54, %v7197_v43  ;;  %v21276_v54 = vld [vmem:[#allocation55_spill] sm:$0xff] }
 0xab1   : > { %v15221_v16 = vpop.eup %15220  ;;  %15228 = vrcp.f32 %v7152_v60 }
 0xab2   : > { %14279 = vmatmul.mubr.msk.bf16.vlgmr.msra.gmra.mxu0 %vm2474_vm2, %v7229_v6  ;;  %v7201_v12 = vmul.f32 %v15221_v16, %v18799_v29  ;;  %v21279_v6 = vld [vmem:[#allocation58_spill] sm:$0xff]  ;;  %v21280_v16 = vld [vmem:[#allocation56_spill] sm:$0xff] }
 0xab3   : > { %8825 = vrot.lane.b32.xlu1 %v21259_v44, %s15779_s21  ;;  %14289 = vmatpush3.bf16.msra.mxu0 %v21260_v10 }
 0xab4   : > { %8672 = vrot.lane.b32.xlu0 %v21261_v15, %s15779_s21  ;;  %14290 = vmatprep.mubr.msk.bf16.mxu0 %vm15776_vm0, %v21094_v21 }
 0xab5   : > { %14300 = vmatprep.subr.bf16.mxu0 %v21094_v21  ;;  %v15223_v58 = vpop.eup %15222 }
 0xab6   : > { %v7107_v51 = vpop.xlane.xlu0 %7106  ;;  %v7202_v39 = vmul.f32 %v15223_v58, %v18804_v61  ;;  %v21266_v61 = vld [vmem:[#allocation39_spill] sm:$0xff]  ;;  %v21281_v58 = vld [vmem:[#allocation60_spill] sm:$0xff] }
 0xab7   : > { %8823 = vrot.lane.b32.xlu1 %v21262_v59, %s15779_s21  ;;  %15230 = vrcp.f32 %v7107_v51  ;;  %v21283_v59 = vld [vmem:[#allocation131_spill] sm:$0xff] }
 0xab8   : > { %8670 = vrot.lane.b32.xlu0 %v21263_v48, %s15779_s21  ;;  %v7231_v50 = vpack.c.bf16 %v7202_v39, %v7201_v12  ;;  %15232 = vrcp.f32 %v7149_v33  ;;  %v21272_v33 = vld [vmem:[#allocation54_spill] sm:$0xff]  ;;  %v21282_v12 = vld [vmem:[#allocation57_spill] sm:$0xff]  ;;  %v21285_v48 = vld [vmem:[#allocation59_spill] sm:$0xff] }
 0xab9   : > { %v7110_v38 = vpop.xlane.xlu1 %7109  ;;  %v15225_v29 = vpop.eup %15224 }
 0xaba   : > { %15234 = vrcp.f32 %v7110_v38  ;;  %14291 = vmatmul.mubr.msk.bf16.vlgmr.msra.gmra.mxu0 %vm2474_vm2, %v7231_v50  ;;  %v7205_v25 = vmul.f32 %v15225_v29, %v18809_v42  ;;  %v21271_v42 = vld [vmem:[#allocation43_spill] sm:$0xff]  ;;  %v21286_v29 = vld [vmem:[#allocation61_spill] sm:$0xff] }
 0xabb   : > { %8927 = vrot.lane.b32.xlu1 %v21264_v47, %s15779_s21  ;;  %14301 = vmatpush3.bf16.msra.mxu0 %v21265_v40 }
 0xabc   : > { %8774 = vrot.lane.b32.xlu0 %v21266_v61, %s15779_s21  ;;  %14302 = vmatprep.mubr.msk.bf16.mxu0 %vm15776_vm0, %v21094_v21  ;;  %v21287_v61 = vld [vmem:[#allocation63_spill] sm:$0xff] }
 0xabd   : > { %14312 = vmatprep.subr.bf16.mxu0 %v21094_v21  ;;  %v15227_v2 = vpop.eup %15226 }
 0xabe   : > { %v7119_v62 = vpop.xlane.xlu1 %7118  ;;  %v7206_v45 = vmul.f32 %v15227_v2, %v18814_v57  ;;  %v15229_v57 = vpop.eup %15228 }
 0xabf   : > { %8925 = vrot.lane.b32.xlu1 %v21267_v27, %s15779_s21  ;;  %15236 = vrcp.f32 %v7119_v62  ;;  %v7224_v8 = vmul.f32 %v15229_v57, %v21273_v41 }
 0xac0   : > { %8772 = vrot.lane.b32.xlu0 %v21268_v30, %s15779_s21  ;;  %v7233_v36 = vpack.c.bf16 %v7206_v45, %v7205_v25 }
 0xac1   : > { %v7122_v31 = vpop.xlane.xlu0 %7121 }
 0xac2   : > { %15238 = vrcp.f32 %v7122_v31  ;;  %14303 = vmatmul.mubr.msk.bf16.vlgmr.msra.gmra.mxu0 %vm2474_vm2, %v7233_v36 }
 0xac3   : > { %9029 = vrot.lane.b32.xlu1 %v21269_v53, %s15779_s21  ;;  %14313 = vmatpush3.bf16.msra.mxu0 %v21270_v63 }
 0xac4   : > { %8876 = vrot.lane.b32.xlu0 %v21271_v42, %s15779_s21  ;;  %14314 = vmatprep.mubr.msk.bf16.mxu0 %vm15776_vm0, %v21094_v21  ;;  %v15231_v0 = vpop.eup %15230 }
 0xac5   : > { %14324 = vmatprep.subr.bf16.mxu0 %v21094_v21  ;;  %v15233_v13 = vpop.eup %15232  ;;  %v7209_v11 = vmul.f32 %v15231_v0, %v18822_v37 }
 0xac6   : > { %v7131_v9 = vpop.xlane.xlu1 %7130  ;;  %v7223_v55 = vmul.f32 %v15233_v13, %v21275_v3  ;;  %v21288_v13 = vld [vmem:[#allocation135_spill] sm:$0xff] }
 0xac7   : > { %9027 = vrot.lane.b32.xlu1 %v21272_v33, %s15779_s21  ;;  %v15235_v60 = vpop.eup %15234  ;;  %15240 = vrcp.f32 %v7131_v9 }
 0xac8   : > { %8874 = vrot.lane.b32.xlu0 %v21274_v7, %s15779_s21  ;;  %v7210_v46 = vmul.f32 %v15235_v60, %v18832_v28  ;;  %v7242_v18 = vpack.c.bf16 %v7224_v8, %v7223_v55  ;;  %v21278_v28 = vld [vmem:[#allocation130_spill] sm:$0xff] }
 0xac9   : > { %v7134_v56 = vpop.xlane.xlu0 %7133  ;;  %v21289_v7 = vld [vmem:[#allocation134_spill] sm:$0xff] }
 0xaca   : > { %v7857_v43 = vpop.permute.xlu1 %7856  ;;  %15242 = vrcp.f32 %v7134_v56  ;;  %v7235_v23 = vpack.c.bf16 %v7210_v46, %v7209_v11 }
 0xacb   : > { %9525 = vrot.lane.b32.xlu1 %v21276_v54, %s15779_s21  ;;  %14355 = vmatpush3.bf16.msra.mxu1 %v7857_v43  ;;  %15244 = vrcp.f32 %v18935_v24 }
 0xacc   : > { %8978 = vrot.lane.b32.xlu0 %v21277_v35, %s15779_s21  ;;  %14366 = vmatprep.subr.bf16.mxu1 %v21094_v21  ;;  %v15237_v37 = vpop.eup %15236  ;;  %15246 = vrcp.f32 %v18929_v32 }
 0xacd   : > { %14315 = vmatmul.mubr.msk.bf16.vlgmr.msra.gmra.mxu0 %vm2474_vm2, %v7235_v23  ;;  %v7213_v10 = vmul.f32 %v15237_v37, %v18840_v5  ;;  %v21284_v5 = vld [vmem:[#allocation62_spill] sm:$0xff]  ;;  %v7810_v40 = vpop.permute.xlu0 %7809 }
 0xace   : > { %14325 = vmatpush3.bf16.msra.mxu0 %v21278_v28  ;;  %14357 = vmatmul.mubr.msk.bf16.vlgmr.msra.gmra.mxu1 %vm2474_vm2, %v7242_v18 }
 0xacf   : > { %9619 = vrot.lane.b32.xlu1 %v21279_v6, %s15779_s21  ;;  %14326 = vmatprep.mubr.msk.bf16.mxu0 %vm15776_vm0, %v21094_v21  ;;  %v15239_v44 = vpop.eup %15238 }
 0xad0   : > { %8976 = vrot.lane.b32.xlu0 %v21280_v16, %s15779_s21  ;;  %14336 = vmatprep.subr.bf16.mxu0 %v21094_v21  ;;  %v7214_v15 = vmul.f32 %v15239_v44, %v18850_v34 }
 0xad1   : > { %14368 = vmatprep.mubr.msk.bf16.mxu1 %vm15776_vm0, %v21094_v21 }
 0xad2   : > { %v7237_v51 = vpack.c.bf16 %v7214_v15, %v7213_v10 }
 0xad3   : > { %9713 = vrot.lane.b32.xlu1 %v21281_v58, %s15779_s21 }
 0xad4   : > { %9478 = vrot.lane.b32.xlu0 %v21282_v12, %s15779_s21  ;;  %v15241_v39 = vpop.eup %15240  ;;  %v15457_v12 = vld [vmem:[%s16065_s27 + $0x148] sm:$0xff] }
 0xad5   : > { %14327 = vmatmul.mubr.msk.bf16.vlgmr.msra.gmra.mxu0 %vm2474_vm2, %v7237_v51  ;;  %v7217_v50 = vmul.f32 %v15241_v39, %v18857_v49  ;;  %v15458_v39 = vld [vmem:[%s16065_s27 + $0x168] sm:$0xff] }
 0xad6   : > { %14337 = vmatpush3.bf16.msra.mxu0 %v21283_v59  ;;  %14338 = vmatprep.mubr.msk.bf16.mxu0 %vm15776_vm0, %v21094_v21  ;;  %v12811_v59 = vcombine.high %v15457_v12, %v15458_v39 }
 0xad7   : > { %9807 = vrot.lane.b32.xlu1 %v21284_v5, %s15779_s21  ;;  %14348 = vmatprep.subr.bf16.mxu0 %v21094_v21  ;;  %v15243_v34 = vpop.eup %15242 }
 0xad8   : > { %9572 = vrot.lane.b32.xlu0 %v21285_v48, %s15779_s21  ;;  %v7218_v38 = vmul.f32 %v15243_v34, %v18865_v26  ;;  %v15245_v42 = vpop.eup %15244 }
 0xad9   : > { %v15247_v9 = vpop.eup %15246  ;;  %v7228_v33 = vmul.f32 %v15245_v42, %v21288_v13 }
 0xada   : > { %v7239_v47 = vpack.c.bf16 %v7218_v38, %v7217_v50  ;;  %v7227_v11 = vmul.f32 %v15247_v9, %v21289_v7 }
 0xadc   : > { %9666 = vrot.lane.b32.xlu0 %v21286_v29, %s15779_s21  ;;  %v7244_v55 = vpack.c.bf16 %v7228_v33, %v7227_v11 }
 0xadd   : > { %14339 = vmatmul.mubr.msk.bf16.vlgmr.msra.gmra.mxu0 %vm2474_vm2, %v7239_v47 }
 0xade   : > { %14349 = vmatpush3.bf16.msra.mxu0 %v7810_v40  ;;  %14350 = vmatprep.mubr.msk.bf16.mxu0 %vm15776_vm0, %v21094_v21 }
 0xadf   : > { %14360 = vmatprep.subr.bf16.mxu0 %v21094_v21 }
 0xae0   : > { %9760 = vrot.lane.b32.xlu0 %v21287_v61, %s15779_s21 }
 0xaeb   : > { %v19050_v2 = vpop.f32.mrf.mxu1 }
 0xaed   : > { %v14286_v49 = vpop.f32.mrf.mxu1 }
 0xaef   : > { %v19052_v26 = vpop.f32.mrf.mxu1 }
 0xaf0   : > { %v7998_v62 = vpack.c.bf16 %v19052_v26, %v19050_v2 }
 0xaf1   : > { %v14287_v25 = vpop.f32.mrf.mxu1 }
 0xaf4   : > { %v19058_v45 = vpop.f32.mrf.mxu1 }
 0xaf6   : > { %v14298_v27 = vpop.f32.mrf.mxu1 }
 0xaf8   : > { %v19060_v30 = vpop.f32.mrf.mxu1 }
 0xaf9   : > { %v8000_v36 = vpack.c.bf16 %v19060_v30, %v19058_v45 }
 0xafa   : > { %v14299_v31 = vpop.f32.mrf.mxu1 }
 0xafb   : > { %v7143_v53 = vpop.xlane.xlu1 %7142  ;;  %v15459_v31 = vld [vmem:[%s16065_s27 + $0x108] sm:$0xff] }
 0xafc   : > { %v19064_v63 = vpop.f32.mrf.mxu1  ;;  %15248 = vrcp.f32 %v7143_v53 }
 0xafe   : > { %v14310_v57 = vpop.f32.mrf.mxu1  ;;  %v7146_v0 = vpop.xlane.xlu0 %7145 }
 0xaff   : > { %15250 = vrcp.f32 %v7146_v0  ;;  %v7155_v24 = vpop.xlane.xlu1 %7154 }
 0xb00   : > { %v19066_v32 = vpop.f32.mrf.mxu1 }
 0xb01   : > { %v8002_v60 = vpack.c.bf16 %v19066_v32, %v19064_v63 }
 0xb02   : > { %v14311_v41 = vpop.f32.mrf.mxu1  ;;  %v7158_v8 = vpop.xlane.xlu0 %7157 }
 0xb03   : > { %15252 = vrcp.f32 %v7158_v8  ;;  %v7951_v46 = vpop.permute.xlu1 %7950 }
 0xb04   : > { %v19072_v3 = vpop.f32.mrf.mxu1  ;;  %14367 = vmatpush3.bf16.msra.mxu1 %v7951_v46  ;;  %15254 = vrcp.f32 %v7155_v24 }
 0xb05   : > { %14408 = vmatprep.subr.bf16.mxu1 %v21094_v21 }
 0xb06   : > { %v14322_v56 = vpop.f32.mrf.mxu1  ;;  %v7904_v43 = vpop.permute.xlu0 %7903 }
 0xb07   : > { %14369 = vmatmul.mubr.msk.bf16.vlgmr.msra.gmra.mxu1 %vm2474_vm2, %v7244_v55  ;;  %v8263_v28 = vpop.permute.xlu1 %8262 }
 0xb08   : > { %v19076_v54 = vpop.f32.mrf.mxu1  ;;  %14410 = vmatprep.mubr.msk.bf16.mxu1 %vm15776_vm0, %v21094_v21 }
 0xb09   : > { %v8004_v23 = vpack.c.bf16 %v19076_v54, %v19072_v3  ;;  %v15249_v35 = vpop.eup %15248 }
 0xb0a   : > { %v14323_v18 = vpop.f32.mrf.mxu1  ;;  %v8265_v37 = vpop.permute.xlu0 %8264  ;;  %v7221_v10 = vmul.f32 %v15249_v35, %v18899_v17 }
 0xb0b   : > { %v8270_v6 = vsel %vm1689_vm1, %v8265_v37, 0  ;;  %v8314_v50 = vpop.permute.xlu1 %8313 }
 0xb0c   : > { %v15251_v44 = vpop.eup %15250  ;;  %v19083_v16 = vpop.f32.mrf.mxu1  ;;  %14409 = vmatpush3.bf16.xpose.msra.mxu1 %v8270_v6 }
 0xb0d   : > { %v7222_v15 = vmul.f32 %v15251_v44, %v18901_v1  ;;  %14414 = vmatprep.subr.bf16.mxu1 %v21094_v21 }
 0xb0e   : > { %v14334_v58 = vpop.f32.mrf.mxu1  ;;  %v8316_v34 = vpop.permute.xlu0 %8315 }
 0xb0f   : > { %v7241_v51 = vpack.c.bf16 %v7222_v15, %v7221_v10  ;;  %v8321_v29 = vsel %vm1689_vm1, %v8316_v34, 0  ;;  %v8365_v25 = vpop.permute.xlu1 %8364 }
 0xb10   : > { %v15253_v5 = vpop.eup %15252  ;;  %v19090_v48 = vpop.f32.mrf.mxu1 }
 0xb11   : > { %v8006_v38 = vpack.c.bf16 %v19090_v48, %v19083_v16  ;;  %14351 = vmatmul.mubr.msk.bf16.vlgmr.msra.gmra.mxu0 %vm2474_vm2, %v7241_v51  ;;  %v15255_v17 = vpop.eup %15254  ;;  %v7226_v47 = vmul.f32 %v15253_v5, %v18911_v22  ;;  %v15460_v22 = vld [vmem:[%s16065_s27 + $0x128] sm:$0xff] }
 0xb12   : > { %v14335_v1 = vpop.f32.mrf.mxu1  ;;  %14361 = vmatpush3.bf16.msra.mxu0 %v7904_v43  ;;  %14362 = vmatprep.mubr.msk.bf16.mxu0 %vm15776_vm0, %v21094_v21  ;;  %v7225_v61 = vmul.f32 %v15255_v17, %v18905_v4  ;;  %v12810_v53 = vcombine.high %v15459_v31, %v15460_v22  ;;  %v8367_v42 = vpop.permute.xlu0 %8366 }
 0xb13   : > { %14411 = vmatmul.mubr.msk.bf16.vlgmr.msra.gmra.mxu1 %vm1689_vm1, %v8263_v28  ;;  %14372 = vmatprep.subr.bf16.mxu0 %v12811_v59  ;;  %v8372_v4 = vsel %vm1689_vm1, %v8367_v42, 0  ;;  %v8416_v9 = vpop.permute.xlu1 %8415 }
 0xb14   : > { %v19100_v40 = vpop.f32.mrf.mxu1  ;;  %14415 = vmatpush3.bf16.xpose.msra.mxu1 %v8321_v29  ;;  %14416 = vmatprep.mubr.msk.bf16.mxu1 %vm15776_vm0, %v21094_v21  ;;  %v7243_v27 = vpack.c.bf16 %v7226_v47, %v7225_v61 }
 0xb15   : > { %14420 = vmatprep.subr.bf16.mxu1 %v21094_v21 }
 0xb16   : > { %v14346_v49 = vpop.f32.mrf.mxu1  ;;  %v8418_v13 = vpop.permute.xlu0 %8417 }
 0xb17   : > { %v8423_v33 = vsel %vm1689_vm1, %v8418_v13, 0  ;;  %v8467_v41 = vpop.permute.xlu1 %8466 }
 0xb18   : > { %v19108_v57 = vpop.f32.mrf.mxu1 }
 0xb19   : > { %v8008_v0 = vpack.c.bf16 %v19108_v57, %v19100_v40  ;;  %14363 = vmatmul.mubr.msk.bf16.vlgmr.msra.gmra.mxu0 %vm2474_vm2, %v7243_v27 }
 0xb1a   : > { %v14347_v24 = vpop.f32.mrf.mxu1  ;;  %14373 = vmatpush3.bf16.msra.mxu0 %v12811_v59  ;;  %v8469_v8 = vpop.permute.xlu0 %8468 }
 0xb1b   : > { %14417 = vmatmul.mubr.msk.bf16.vlgmr.msra.gmra.mxu1 %vm1689_vm1, %v8314_v50  ;;  %14374 = vmatprep.subr.bf16.mxu0 %v12810_v53  ;;  %v8518_v7 = vpop.permute.xlu1 %8517  ;;  %v8474_v11 = vsel %vm1689_vm1, %v8469_v8, 0 }
 0xb1c   : > { %14421 = vmatpush3.bf16.xpose.msra.mxu1 %v8372_v4  ;;  %14422 = vmatprep.mubr.msk.bf16.mxu1 %vm15776_vm0, %v21094_v21 }
 0xb1d   : > { %14426 = vmatprep.subr.bf16.mxu1 %v21094_v21 }
 0xb1e   : > { %14375 = vmatpush3.bf16.msra.mxu0 %v12810_v53  ;;  %v8520_v55 = vpop.permute.xlu0 %8519 }
 0xb1f   : > { %14456 = vmatprep.subr.bf16.mxu0 %v21094_v21  ;;  %v8569_v46 = vpop.permute.xlu1 %8568  ;;  %v8525_v56 = vsel %vm1689_vm1, %v8520_v55, 0 }
 0xb22   : > { %v8571_v35 = vpop.permute.xlu0 %8570 }
 0xb23   : > { %14423 = vmatmul.mubr.msk.bf16.vlgmr.msra.gmra.mxu1 %vm1689_vm1, %v8365_v25  ;;  %v8620_v43 = vpop.permute.xlu1 %8619  ;;  %v8576_v18 = vsel %vm1689_vm1, %v8571_v35, 0 }
 0xb24   : > { %14427 = vmatpush3.bf16.xpose.msra.mxu1 %v8423_v33  ;;  %14428 = vmatprep.mubr.msk.bf16.mxu1 %vm15776_vm0, %v21094_v21 }
 0xb25   : > { %14432 = vmatprep.subr.bf16.mxu1 %v21094_v21 }
 0xb26   : > { %v8622_v28 = vpop.permute.xlu0 %8621 }
 0xb27   : > { %v8724_v37 = vpop.permute.xlu1 %8723  ;;  %v8627_v44 = vsel %vm1689_vm1, %v8622_v28, 0 }
 0xb28   : > { %v8729_v15 = vsel %vm1689_vm1, %v8724_v37, 0 }
 0xb2a   : > { %v8673_v61 = vpop.permute.xlu0 %8672 }
 0xb2b   : > { %14429 = vmatmul.mubr.msk.bf16.vlgmr.msra.gmra.mxu1 %vm1689_vm1, %v8416_v9  ;;  %v8722_v6 = vpop.permute.xlu1 %8721  ;;  %v8678_v27 = vsel %vm1689_vm1, %v8673_v61, 0 }
 0xb2c   : > { %14433 = vmatpush3.bf16.xpose.msra.mxu1 %v8474_v11  ;;  %14434 = vmatprep.mubr.msk.bf16.mxu1 %vm15776_vm0, %v21094_v21 }
 0xb2d   : > { %14438 = vmatprep.subr.bf16.mxu1 %v21094_v21 }
 0xb2f   : > { %v8826_v10 = vpop.permute.xlu1 %8825 }
 0xb30   : > { %v8831_v51 = vsel %vm1689_vm1, %v8826_v10, 0 }
 0xb33   : > { %14435 = vmatmul.mubr.msk.bf16.vlgmr.msra.gmra.mxu1 %vm1689_vm1, %v8467_v41  ;;  %v8824_v58 = vpop.permute.xlu1 %8823 }
 0xb34   : > { %14439 = vmatpush3.bf16.xpose.msra.mxu1 %v8525_v56  ;;  %14440 = vmatprep.mubr.msk.bf16.mxu1 %vm15776_vm0, %v21094_v21 }
 0xb35   : > { %14444 = vmatprep.subr.bf16.mxu1 %v21094_v21 }
 0xb37   : > { %v8928_v12 = vpop.permute.xlu1 %8927 }
 0xb38   : > { %v8933_v59 = vsel %vm1689_vm1, %v8928_v12, 0 }
 0xb3b   : > { %14441 = vmatmul.mubr.msk.bf16.vlgmr.msra.gmra.mxu1 %vm1689_vm1, %v8518_v7  ;;  %v8926_v39 = vpop.permute.xlu1 %8925 }
 0xb3c   : > { %14445 = vmatpush3.bf16.xpose.msra.mxu1 %v8576_v18  ;;  %14446 = vmatprep.mubr.msk.bf16.mxu1 %vm15776_vm0, %v21094_v21 }
 0xb3d   : > { %14450 = vmatprep.subr.bf16.mxu1 %v21094_v21 }
 0xb3f   : > { %v9030_v5 = vpop.permute.xlu1 %9029 }
 0xb40   : > { %v9035_v34 = vsel %vm1689_vm1, %v9030_v5, 0 }
 0xb43   : > { %14447 = vmatmul.mubr.msk.bf16.vlgmr.msra.gmra.mxu1 %vm1689_vm1, %v8569_v46  ;;  %v9028_v50 = vpop.permute.xlu1 %9027 }
 0xb44   : > { %14451 = vmatpush3.bf16.xpose.msra.mxu1 %v8627_v44  ;;  %14452 = vmatprep.mubr.msk.bf16.mxu1 %vm15776_vm0, %v21094_v21 }
 0xb45   : > { %14462 = vmatprep.subr.bf16.mxu1 %v21094_v21 }
 0xb47   : > { %v9526_v17 = vpop.permute.xlu1 %9525 }
 0xb4b   : > { %14453 = vmatmul.mubr.msk.bf16.vlgmr.msra.gmra.mxu1 %vm1689_vm1, %v8620_v43 }
 0xb4c   : > { %14463 = vmatpush3.bf16.xpose.msra.mxu1 %v8729_v15  ;;  %14464 = vmatprep.mubr.msk.bf16.mxu1 %vm15776_vm0, %v21094_v21 }
 0xb4d   : > { %14474 = vmatprep.subr.bf16.mxu1 %v21094_v21 }
 0xb53   : > { %14465 = vmatmul.mubr.msk.bf16.vlgmr.msra.gmra.mxu1 %vm1689_vm1, %v8722_v6 }
 0xb54   : > { %14475 = vmatpush3.bf16.xpose.msra.mxu1 %v8831_v51  ;;  %14476 = vmatprep.mubr.msk.bf16.mxu1 %vm15776_vm0, %v21094_v21 }
 0xb55   : > { %14486 = vmatprep.subr.bf16.mxu1 %v21094_v21 }
 0xb5b   : > { %14477 = vmatmul.mubr.msk.bf16.vlgmr.msra.gmra.mxu1 %vm1689_vm1, %v8824_v58  ;;  %v8671_v58 = vpop.permute.xlu0 %8670 }
 0xb5c   : > { %14487 = vmatpush3.bf16.xpose.msra.mxu1 %v8933_v59  ;;  %14488 = vmatprep.mubr.msk.bf16.mxu1 %vm15776_vm0, %v21094_v21 }
 0xb5d   : > { %14498 = vmatprep.subr.bf16.mxu1 %v21094_v21 }
 0xb63   : > { %14489 = vmatmul.mubr.msk.bf16.vlgmr.msra.gmra.mxu1 %vm1689_vm1, %v8926_v39 }
 0xb64   : > { %14499 = vmatpush3.bf16.xpose.msra.mxu1 %v9035_v34  ;;  %14500 = vmatprep.mubr.msk.bf16.mxu1 %vm15776_vm0, %v21094_v21 }
 0xb65   : > { %14510 = vmatprep.subr.bf16.mxu1 %v21094_v21 }
 0xb6b   : > { %14501 = vmatmul.mubr.msk.bf16.vlgmr.msra.gmra.mxu1 %vm1689_vm1, %v9028_v50 }
 0xb6c   : > { %14511 = vmatpush3.bf16.msra.mxu1 %v9526_v17  ;;  %14512 = vmatprep.mubr.msk.bf16.mxu1 %vm15776_vm0, %v21094_v21  ;;  %v8775_v17 = vpop.permute.xlu0 %8774 }
 0xb6d   : > { %14522 = vmatprep.subr.bf16.mxu1 %v21094_v21 }
 0xb72   : > { %v7285_v1 = vpop.f32.mrf.mxu0 }
 0xb74   : > { %v14280_v47 = vpop.f32.mrf.mxu0 }
 0xb76   : > { %v7288_v29 = vpop.f32.mrf.mxu0 }
 0xb77   : > { %v7997_v49 = vpack.c.bf16 %v7288_v29, %v7285_v1 }
 0xb78   : > { %v14281_v25 = vpop.f32.mrf.mxu0 }
 0xb79   : > { %14376 = vmatprep.mubr.msk.bf16.mxu0 %vm1689_vm1, %v7997_v49 }
 0xb7a   : > { %v7379_v31 = vpop.f32.mrf.mxu0  ;;  %14377 = vmatmul.mubr.msk.bf16.vlgmr.msra.gmra.mxu0 %vm1689_vm1, %v7998_v62 }
 0xb7b   : > { %14457 = vmatpush3.bf16.xpose.msra.mxu0 %v8678_v27 }
 0xb7c   : > { %v14292_v22 = vpop.f32.mrf.mxu0  ;;  %14468 = vmatprep.subr.bf16.mxu0 %v21094_v21 }
 0xb7e   : > { %v7382_v53 = vpop.f32.mrf.mxu0 }
 0xb7f   : > { %v7999_v42 = vpack.c.bf16 %v7382_v53, %v7379_v31 }
 0xb80   : > { %v14293_v24 = vpop.f32.mrf.mxu0 }
 0xb81   : > { %14380 = vmatprep.mubr.msk.bf16.mxu0 %vm1689_vm1, %v7999_v42  ;;  %v8773_v24 = vpop.permute.xlu0 %8772 }
 0xb82   : > { %v7473_v4 = vpop.f32.mrf.mxu0  ;;  %14381 = vmatmul.mubr.msk.bf16.gmra.mxu0 %vm1689_vm1, %v8000_v36 }
 0xb84   : > { %v14304_v9 = vpop.f32.mrf.mxu0 }
 0xb86   : > { %v7476_v13 = vpop.f32.mrf.mxu0 }
 0xb87   : > { %v8001_v2 = vpack.c.bf16 %v7476_v13, %v7473_v4 }
 0xb88   : > { %v14305_v26 = vpop.f32.mrf.mxu0 }
 0xb89   : > { %14384 = vmatprep.mubr.msk.bf16.mxu0 %vm1689_vm1, %v8001_v2 }
 0xb8a   : > { %14385 = vmatmul.mubr.msk.bf16.gmra.mxu0 %vm1689_vm1, %v8002_v60 }
 0xb8d   : > { %v7567_v62 = vpop.f32.mrf.mxu0 }
 0xb8e   : > { %v7896_v33 = vpop.f32.mrf.mxu1 }
 0xb8f   : > { %v14316_v41 = vpop.f32.mrf.mxu0 }
 0xb90   : > { %v14358_v8 = vpop.f32.mrf.mxu1  ;;  %v8877_v41 = vpop.permute.xlu0 %8876 }
 0xb91   : > { %v7570_v7 = vpop.f32.mrf.mxu0 }
 0xb92   : > { %v8003_v11 = vpack.c.bf16 %v7570_v7, %v7567_v62  ;;  %v7899_v45 = vpop.f32.mrf.mxu1 }
 0xb93   : > { %v8010_v30 = vpack.c.bf16 %v7899_v45, %v7896_v33  ;;  %v14317_v36 = vpop.f32.mrf.mxu0  ;;  %v8780_v33 = vsel %vm1689_vm1, %v8775_v17, 0 }
 0xb94   : > { %v14359_v46 = vpop.f32.mrf.mxu1  ;;  %14388 = vmatprep.mubr.msk.bf16.mxu0 %vm1689_vm1, %v8003_v11 }
 0xb95   : > { %v7661_v55 = vpop.f32.mrf.mxu0  ;;  %14389 = vmatmul.mubr.msk.bf16.gmra.mxu0 %vm1689_vm1, %v8004_v23  ;;  %v8875_v46 = vpop.permute.xlu0 %8874 }
 0xb97   : > { %v14328_v63 = vpop.f32.mrf.mxu0 }
 0xb99   : > { %v7664_v32 = vpop.f32.mrf.mxu0 }
 0xb9a   : > { %v8005_v60 = vpack.c.bf16 %v7664_v32, %v7661_v55  ;;  %v8882_v32 = vsel %vm1689_vm1, %v8877_v41, 0 }
 0xb9b   : > { %v14329_v56 = vpop.f32.mrf.mxu0 }
 0xb9c   : > { %14392 = vmatprep.mubr.msk.bf16.mxu0 %vm1689_vm1, %v8005_v60 }
 0xb9d   : > { %v7755_v43 = vpop.f32.mrf.mxu0  ;;  %14393 = vmatmul.mubr.msk.bf16.gmra.mxu0 %vm1689_vm1, %v8006_v38 }
 0xb9f   : > { %v14340_v35 = vpop.f32.mrf.mxu0 }
 0xba1   : > { %v7758_v18 = vpop.f32.mrf.mxu0 }
 0xba2   : > { %v8007_v37 = vpack.c.bf16 %v7758_v18, %v7755_v43  ;;  %v8979_v18 = vpop.permute.xlu0 %8978 }
 0xba3   : > { %v14341_v28 = vpop.f32.mrf.mxu0 }
 0xba4   : > { %14396 = vmatprep.mubr.msk.bf16.mxu0 %vm1689_vm1, %v8007_v37 }
 0xba5   : > { %14397 = vmatmul.mubr.msk.bf16.gmra.mxu0 %vm1689_vm1, %v8008_v0 }
 0xbc7   : > { %v7990_v3 = vpop.f32.mrf.mxu1 }
 0xbc9   : > { %v14370_v54 = vpop.f32.mrf.mxu1 }
 0xbcb   : > { %v7993_v23 = vpop.f32.mrf.mxu1 }
 0xbcc   : > { %v8012_v25 = vpack.c.bf16 %v7993_v23, %v7990_v3  ;;  %v8984_v23 = vsel %vm1689_vm1, %v8979_v18, 0 }
 0xbcd   : > { %v14371_v6 = vpop.f32.mrf.mxu1 }
 0xbd1   : > { %v7849_v44 = vpop.f32.mrf.mxu0 }
 0xbd3   : > { %v14352_v10 = vpop.f32.mrf.mxu0  ;;  %v8306_v16 = vpop.f32.mrf.mxu1 }
 0xbd4   : > { %v19200_v48 = vmul.f32 0.17677669, %v8306_v16  ;;  %v8977_v10 = vpop.permute.xlu0 %8976 }
 0xbd5   : > { %v7852_v38 = vpop.f32.mrf.mxu0  ;;  %v14412_v15 = vpop.f32.mrf.mxu1 }
 0xbd6   : > { %v8009_v51 = vpack.c.bf16 %v7852_v38, %v7849_v44  ;;  %v9110_v12 = vsel %vm2474_vm2, %v19200_v48, -inf }
 0xbd7   : > { %9111 = vmax.xlane.f32.xlu0 %v9110_v12  ;;  %v14353_v40 = vpop.f32.mrf.mxu0  ;;  %v8309_v57 = vpop.f32.mrf.mxu1 }
 0xbd8   : > { %v19204_v0 = vmul.f32 0.17677669, %v8309_v57  ;;  %14400 = vmatprep.mubr.msk.bf16.mxu0 %vm1689_vm1, %v8009_v51  ;;  %v9479_v40 = vpop.permute.xlu0 %9478 }
 0xbd9   : > { %v7943_v39 = vpop.f32.mrf.mxu0  ;;  %14401 = vmatmul.mubr.msk.bf16.gmra.mxu0 %vm1689_vm1, %v8010_v30  ;;  %v14413_v59 = vpop.f32.mrf.mxu1 }
 0xbda   : > { %v9113_v5 = vsel %vm2474_vm2, %v19204_v0, -inf }
 0xbdb   : > { %9114 = vmax.xlane.f32.xlu1 %v9113_v5  ;;  %v14364_v34 = vpop.f32.mrf.mxu0  ;;  %v8357_v50 = vpop.f32.mrf.mxu1 }
 0xbdc   : > { %v19210_v1 = vmul.f32 0.17677669, %v8357_v50 }
 0xbdd   : > { %v7946_v47 = vpop.f32.mrf.mxu0  ;;  %v14418_v29 = vpop.f32.mrf.mxu1 }
 0xbde   : > { %v8011_v61 = vpack.c.bf16 %v7946_v47, %v7943_v39  ;;  %v9116_v49 = vsel %vm2474_vm2, %v19210_v1, -inf }
 0xbdf   : > { %9117 = vmax.xlane.f32.xlu0 %v9116_v49  ;;  %v14365_v27 = vpop.f32.mrf.mxu0  ;;  %v8360_v31 = vpop.f32.mrf.mxu1 }
 0xbe0   : > { %v19214_v22 = vmul.f32 0.17677669, %v8360_v31  ;;  %14404 = vmatprep.mubr.msk.bf16.mxu0 %vm1689_vm1, %v8011_v61 }
 0xbe1   : > { %14405 = vmatmul.mubr.msk.bf16.gmra.mxu0 %vm1689_vm1, %v8012_v25  ;;  %v14419_v53 = vpop.f32.mrf.mxu1 }
 0xbe2   : > { %v9119_v42 = vsel %vm2474_vm2, %v19214_v22, -inf  ;;  %14458 = vmatprep.mubr.msk.bf16.mxu0 %vm15776_vm0, %v21094_v21 }
 0xbe3   : > { %9120 = vmax.xlane.f32.xlu0 %v9119_v42  ;;  %v8408_v4 = vpop.f32.mrf.mxu1 }
 0xbe4   : > { %v19222_v9 = vmul.f32 0.17677669, %v8408_v4 }
 0xbe5   : > { %v14424_v13 = vpop.f32.mrf.mxu1 }
 0xbe6   : > { %v9122_v2 = vsel %vm2474_vm2, %v19222_v9, -inf }
 0xbe7   : > { %9123 = vmax.xlane.f32.xlu0 %v9122_v2  ;;  %v8411_v26 = vpop.f32.mrf.mxu1 }
 0xbe8   : > { %v19226_v62 = vmul.f32 0.17677669, %v8411_v26 }
 0xbe9   : > { %v14425_v8 = vpop.f32.mrf.mxu1  ;;  %14459 = vmatmul.mubr.msk.bf16.vlgmr.msra.gmra.mxu0 %vm1689_vm1, %v8671_v58 }
 0xbea   : > { %14469 = vmatpush3.bf16.xpose.msra.mxu0 %v8780_v33  ;;  %v9125_v7 = vsel %vm2474_vm2, %v19226_v62, -inf  ;;  %14470 = vmatprep.mubr.msk.bf16.mxu0 %vm15776_vm0, %v21094_v21 }
 0xbeb   : > { %9126 = vmax.xlane.f32.xlu1 %v9125_v7  ;;  %v8459_v11 = vpop.f32.mrf.mxu1  ;;  %14480 = vmatprep.subr.bf16.mxu0 %v21094_v21 }
 0xbec   : > { %v19235_v45 = vmul.f32 0.17677669, %v8459_v11 }
 0xbed   : > { %v14430_v30 = vpop.f32.mrf.mxu1 }
 0xbee   : > { %v9128_v36 = vsel %vm2474_vm2, %v19235_v45, -inf }
 0xbef   : > { %9129 = vmax.xlane.f32.xlu0 %v9128_v36  ;;  %v8462_v55 = vpop.f32.mrf.mxu1 }
 0xbf0   : > { %v19239_v63 = vmul.f32 0.17677669, %v8462_v55 }
 0xbf1   : > { %v14431_v60 = vpop.f32.mrf.mxu1  ;;  %14471 = vmatmul.mubr.msk.bf16.vlgmr.msra.gmra.mxu0 %vm1689_vm1, %v8773_v24 }
 0xbf2   : > { %14481 = vmatpush3.bf16.xpose.msra.mxu0 %v8882_v32  ;;  %v9131_v56 = vsel %vm2474_vm2, %v19239_v63, -inf  ;;  %14482 = vmatprep.mubr.msk.bf16.mxu0 %vm15776_vm0, %v21094_v21 }
 0xbf3   : > { %9132 = vmax.xlane.f32.xlu1 %v9131_v56  ;;  %v8510_v43 = vpop.f32.mrf.mxu1  ;;  %14492 = vmatprep.subr.bf16.mxu0 %v21094_v21 }
 0xbf4   : > { %v19248_v35 = vmul.f32 0.17677669, %v8510_v43 }
 0xbf5   : > { %v14436_v37 = vpop.f32.mrf.mxu1 }
 0xbf6   : > { %v9134_v28 = vsel %vm2474_vm2, %v19248_v35, -inf }
 0xbf7   : > { %9135 = vmax.xlane.f32.xlu0 %v9134_v28  ;;  %v8513_v3 = vpop.f32.mrf.mxu1 }
 0xbf8   : > { %v19252_v54 = vmul.f32 0.17677669, %v8513_v3 }
 0xbf9   : > { %v14437_v6 = vpop.f32.mrf.mxu1  ;;  %14483 = vmatmul.mubr.msk.bf16.vlgmr.msra.gmra.mxu0 %vm1689_vm1, %v8875_v46 }
 0xbfa   : > { %14493 = vmatpush3.bf16.xpose.msra.mxu0 %v8984_v23  ;;  %v9137_v44 = vsel %vm2474_vm2, %v19252_v54, -inf  ;;  %14494 = vmatprep.mubr.msk.bf16.mxu0 %vm15776_vm0, %v21094_v21 }
 0xbfb   : > { %9138 = vmax.xlane.f32.xlu1 %v9137_v44  ;;  %v8561_v16 = vpop.f32.mrf.mxu1  ;;  %14504 = vmatprep.subr.bf16.mxu0 %v21094_v21 }
 0xbfc   : > { %v19261_v38 = vmul.f32 0.17677669, %v8561_v16 }
 0xbfd   : > { %v14442_v15 = vpop.f32.mrf.mxu1 }
 0xbfe   : > { %v9140_v58 = vsel %vm2474_vm2, %v19261_v38, -inf }
 0xbff   : > { %9141 = vmax.xlane.f32.xlu0 %v9140_v58  ;;  %v8564_v51 = vpop.f32.mrf.mxu1 }
 0xc00   : > { %v19265_v12 = vmul.f32 0.17677669, %v8564_v51 }
 0xc01   : > { %v14443_v57 = vpop.f32.mrf.mxu1  ;;  %14495 = vmatmul.mubr.msk.bf16.vlgmr.msra.gmra.mxu0 %vm1689_vm1, %v8977_v10 }
 0xc02   : > { %14505 = vmatpush3.bf16.msra.mxu0 %v9479_v40  ;;  %v9143_v39 = vsel %vm2474_vm2, %v19265_v12, -inf  ;;  %14506 = vmatprep.mubr.msk.bf16.mxu0 %vm15776_vm0, %v21094_v21 }
 0xc03   : > { %9144 = vmax.xlane.f32.xlu1 %v9143_v39  ;;  %v8612_v59 = vpop.f32.mrf.mxu1  ;;  %14516 = vmatprep.subr.bf16.mxu0 %v21094_v21 }
 0xc04   : > { %v19273_v5 = vmul.f32 0.17677669, %v8612_v59 }
 0xc05   : > { %v14448_v34 = vpop.f32.mrf.mxu1 }
 0xc06   : > { %v9146_v50 = vsel %vm2474_vm2, %v19273_v5, -inf  ;;  %v21290_v34 = vld [vmem:[#allocation86_spill] sm:$0xff] }
 0xc07   : > { %9147 = vmax.xlane.f32.xlu0 %v9146_v50  ;;  %v8615_v17 = vpop.f32.mrf.mxu1  ;;  %v21291_v50 = vld [vmem:[#allocation41_spill] sm:$0xff] }
 0xc08   : > { %v19277_v47 = vmul.f32 0.17677669, %v8615_v17  ;;  %v5911_v17 = vadd.f32 %v21291_v50, %v21290_v34  ;;  %v21305_v50 = vld [vmem:[#allocation92_spill] sm:$0xff] }
 0xc09   : > { %v14449_v29 = vpop.f32.mrf.mxu1 }
 0xc0a   : > { %v9149_v61 = vsel %vm2474_vm2, %v19277_v47, -inf }
 0xc0b   : > { %9150 = vmax.xlane.f32.xlu1 %v9149_v61  ;;  %v8663_v49 = vpop.f32.mrf.mxu1  ;;  %v21292_v61 = vld [vmem:[#allocation84_spill] sm:$0xff] }
 0xc0c   : > { %v19281_v25 = vmul.f32 0.17677669, %v8663_v49  ;;  %v21293_v49 = vld [vmem:[#allocation44_spill] sm:$0xff] }
 0xc0d   : > { %v14454_v27 = vpop.f32.mrf.mxu1 }
 0xc0e   : > { %v9152_v31 = vsel %vm2474_vm2, %v19281_v25, -inf  ;;  %v5903_v27 = vadd.f32 %v21293_v49, %v21292_v61 }
 0xc0f   : > { %9153 = vmax.xlane.f32.xlu0 %v9152_v31  ;;  %v8666_v53 = vpop.f32.mrf.mxu1 }
 0xc10   : > { %v19285_v42 = vmul.f32 0.17677669, %v8666_v53 }
 0xc11   : > { %v14455_v24 = vpop.f32.mrf.mxu1 }
 0xc12   : > { %v9155_v4 = vsel %vm2474_vm2, %v19285_v42, -inf  ;;  %v21294_v24 = vld [vmem:[#allocation91_spill] sm:$0xff] }
 0xc13   : > { %9156 = vmax.xlane.f32.xlu1 %v9155_v4  ;;  %v8765_v13 = vpop.f32.mrf.mxu1  ;;  %v21295_v4 = vld [vmem:[#allocation45_spill] sm:$0xff] }
 0xc14   : > { %v19289_v2 = vmul.f32 0.17677669, %v8765_v13  ;;  %v5914_v13 = vadd.f32 %v21295_v4, %v21294_v24 }
 0xc15   : > { %v14466_v26 = vpop.f32.mrf.mxu1 }
 0xc16   : > { %v9164_v33 = vsel %vm2474_vm2, %v19289_v2, -inf }
 0xc17   : > { %9165 = vmax.xlane.f32.xlu0 %v9164_v33  ;;  %v8768_v41 = vpop.f32.mrf.mxu1 }
 0xc18   : > { %v19293_v8 = vmul.f32 0.17677669, %v8768_v41 }
 0xc19   : > { %v14467_v7 = vpop.f32.mrf.mxu1 }
 0xc1a   : > { %v9167_v11 = vsel %vm2474_vm2, %v19293_v8, -inf }
 0xc1b   : > { %9168 = vmax.xlane.f32.xlu1 %v9167_v11  ;;  %v8867_v30 = vpop.f32.mrf.mxu1  ;;  %v21296_v11 = vld [vmem:[#allocation90_spill] sm:$0xff] }
 0xc1c   : > { %v19297_v36 = vmul.f32 0.17677669, %v8867_v30  ;;  %v21297_v30 = vld [vmem:[#allocation101_spill] sm:$0xff] }
 0xc1d   : > { %v14478_v46 = vpop.f32.mrf.mxu1 }
 0xc1e   : > { %v9176_v55 = vsel %vm2474_vm2, %v19297_v36, -inf  ;;  %v5927_v46 = vadd.f32 %v21297_v30, %v21296_v11  ;;  %v19361_v11 = vpop.permute.xlu0 %9572 }
 0xc1f   : > { %9177 = vmax.xlane.f32.xlu0 %v9176_v55  ;;  %v8870_v32 = vpop.f32.mrf.mxu1 }
 0xc20   : > { %v19301_v60 = vmul.f32 0.17677669, %v8870_v32  ;;  %v21298_v32 = vld [vmem:[#allocation88_spill] sm:$0xff] }
 0xc21   : > { %v14479_v56 = vpop.f32.mrf.mxu1 }
 0xc22   : > { %v9179_v43 = vsel %vm2474_vm2, %v19301_v60, -inf  ;;  %v21299_v56 = vld [vmem:[#allocation99_spill] sm:$0xff] }
 0xc23   : > { %9180 = vmax.xlane.f32.xlu1 %v9179_v43  ;;  %v8969_v18 = vpop.f32.mrf.mxu1  ;;  %v5919_v43 = vadd.f32 %v21299_v56, %v21298_v32  ;;  %v19367_v56 = vpop.permute.xlu1 %9619 }
 0xc24   : > { %v19305_v37 = vmul.f32 0.17677669, %v8969_v18 }
 0xc25   : > { %v14490_v28 = vpop.f32.mrf.mxu1 }
 0xc26   : > { %v9188_v3 = vsel %vm2474_vm2, %v19305_v37, -inf }
 0xc27   : > { %9189 = vmax.xlane.f32.xlu0 %v9188_v3  ;;  %v8972_v23 = vpop.f32.mrf.mxu1  ;;  %v21300_v3 = vld [vmem:[#allocation95_spill] sm:$0xff] }
 0xc28   : > { %v19309_v6 = vmul.f32 0.17677669, %v8972_v23  ;;  %v21301_v23 = vld [vmem:[#allocation103_spill] sm:$0xff] }
 0xc29   : > { %v14491_v44 = vpop.f32.mrf.mxu1 }
 0xc2a   : > { %v9191_v10 = vsel %vm2474_vm2, %v19309_v6, -inf  ;;  %v5930_v44 = vadd.f32 %v21301_v23, %v21300_v3  ;;  %v21316_v3 = vld [vmem:[#allocation72_spill] sm:$0xff] }
 0xc2b   : > { %9192 = vmax.xlane.f32.xlu1 %v9191_v10  ;;  %v9071_v16 = vpop.f32.mrf.mxu1 }
 0xc2c   : > { %v19313_v15 = vmul.f32 0.17677669, %v9071_v16 }
 0xc2d   : > { %v14502_v58 = vpop.f32.mrf.mxu1 }
 0xc2e   : > { %v9200_v51 = vsel %vm2474_vm2, %v19313_v15, -inf }
 0xc2f   : > { %9201 = vmax.xlane.f32.xlu0 %v9200_v51  ;;  %v9074_v40 = vpop.f32.mrf.mxu1 }
 0xc30   : > { %v19317_v57 = vmul.f32 0.17677669, %v9074_v40  ;;  %v21303_v40 = vld [vmem:[#allocation94_spill] sm:$0xff] }
 0xc31   : > { %v14503_v39 = vpop.f32.mrf.mxu1 }
 0xc32   : > { %v9203_v59 = vsel %vm2474_vm2, %v19317_v57, -inf  ;;  %v21304_v39 = vld [vmem:[#allocation105_spill] sm:$0xff] }
 0xc33   : > { %9204 = vmax.xlane.f32.xlu1 %v9203_v59  ;;  %v5943_v59 = vadd.f32 %v21304_v39, %v21303_v40  ;;  %v21318_v39 = vld [vmem:[#allocation109_spill] sm:$0xff] }
 0xc3a   : > { %v14378_v29 = vpop.f32.mrf.mxu0 }
 0xc3b   : > { %v19325_v31 = vadd.f32 %v14378_v29, %v5911_v17  ;;  %v21306_v17 = vld [vmem:[#allocation102_spill] sm:$0xff] }
 0xc3c   : > { %v8103_v53 = vpop.f32.mrf.mxu0  ;;  %v5935_v29 = vadd.f32 %v21306_v17, %v21305_v50 }
 0xc3d   : > { %v19329_v26 = vadd.f32 %v8103_v53, %v5903_v27  ;;  %v21308_v27 = vld [vmem:[#allocation97_spill] sm:$0xff]  ;;  %v21309_v53 = vld [vmem:[#allocation104_spill] sm:$0xff] }
 0xc3e   : > { %v14379_v33 = vpop.f32.mrf.mxu0  ;;  %v5946_v24 = vadd.f32 %v21309_v53, %v21308_v27  ;;  %v21323_v53 = vld [vmem:[#allocation111_spill] sm:$0xff] }
 0xc3f   : > { %v19331_v41 = vadd.f32 %v14379_v33, %v5914_v13 }
 0xc40   : > { %v19333_v7 = vpop.f32.mrf.mxu0 }
 0xc42   : > { %v14382_v55 = vpop.f32.mrf.mxu0 }
 0xc43   : > { %v19339_v18 = vadd.f32 %v14382_v55, %v5927_v46  ;;  %v21313_v46 = vld [vmem:[#allocation107_spill] sm:$0xff] }
 0xc44   : > { %v8119_v28 = vpop.f32.mrf.mxu0  ;;  %v21314_v55 = vld [vmem:[#allocation71_spill] sm:$0xff] }
 0xc45   : > { %v19343_v10 = vadd.f32 %v8119_v28, %v5919_v43  ;;  %v5959_v32 = vadd.f32 %v21314_v55, %v21313_v46  ;;  %v21315_v28 = vld [vmem:[#allocation108_spill] sm:$0xff] }
 0xc46   : > { %v14383_v16 = vpop.f32.mrf.mxu0  ;;  %v5951_v23 = vadd.f32 %v21316_v3, %v21315_v28 }
 0xc47   : > { %v19345_v58 = vadd.f32 %v14383_v16, %v5930_v44  ;;  %v19373_v16 = vpop.permute.xlu0 %9666 }
 0xc48   : > { %v19347_v51 = vpop.f32.mrf.mxu0 }
 0xc49   : > { %21302 = vst [vmem:[#allocation68_spill] sm:$0xff] %v19345_v58 }
 0xc4a   : > { %v14386_v34 = vpop.f32.mrf.mxu0 }
 0xc4b   : > { %v19353_v61 = vadd.f32 %v14386_v34, %v5943_v59  ;;  %v21319_v59 = vld [vmem:[#allocation32_spill] sm:$0xff]  ;;  %v19387_v46 = vpop.permute.xlu0 %9760 }
 0xc4c   : > { %v8135_v49 = vpop.f32.mrf.mxu0  ;;  %v5962_v34 = vadd.f32 %v21319_v59, %v21318_v39  ;;  %v21329_v39 = vld [vmem:[#allocation74_spill] sm:$0xff] }
 0xc4d   : > { %21307 = vst [vmem:[#allocation69_spill] sm:$0xff] %v19353_v61  ;;  %v19357_v4 = vadd.f32 %v8135_v49, %v5935_v29  ;;  %v19379_v29 = vpop.permute.xlu1 %9713 }
 0xc4e   : > { %v14387_v13 = vpop.f32.mrf.mxu0 }
 0xc4f   : > { %21310 = vst [vmem:[#allocation37_spill] sm:$0xff] %v19357_v4  ;;  %v19359_v33 = vadd.f32 %v14387_v13, %v5946_v24  ;;  %v21324_v24 = vld [vmem:[#allocation34_spill] sm:$0xff] }
 0xc50   : > { %v19363_v30 = vpop.f32.mrf.mxu0  ;;  %v5975_v13 = vadd.f32 %v21324_v24, %v21323_v53 }
 0xc51   : > { %21311 = vst [vmem:[#allocation48_spill] sm:$0xff] %v19359_v33  ;;  %21312 = vst [vmem:[#allocation40_spill] sm:$0xff] %v19363_v30  ;;  %v21335_v33 = vld [vmem:[#allocation116_spill] sm:$0xff] }
 0xc55   : > { %v14390_v43 = vpop.f32.mrf.mxu0 }
 0xc56   : > { %v19371_v44 = vadd.f32 %v14390_v43, %v5959_v32  ;;  %v21325_v32 = vld [vmem:[#allocation112_spill] sm:$0xff]  ;;  %v21326_v43 = vld [vmem:[#allocation33_spill] sm:$0xff] }
 0xc57   : > { %v8151_v40 = vpop.f32.mrf.mxu0  ;;  %v5967_v28 = vadd.f32 %v21326_v43, %v21325_v32  ;;  %v21334_v32 = vld [vmem:[#allocation75_spill] sm:$0xff] }
 0xc58   : > { %21317 = vst [vmem:[#allocation47_spill] sm:$0xff] %v19371_v44  ;;  %v19377_v50 = vadd.f32 %v8151_v40, %v5951_v23  ;;  %v21328_v40 = vld [vmem:[#allocation113_spill] sm:$0xff]  ;;  %v19395_v44 = vpop.permute.xlu1 %9807 }
 0xc59   : > { %v14391_v17 = vpop.f32.mrf.mxu0  ;;  %v5978_v59 = vadd.f32 %v21329_v39, %v21328_v40  ;;  %v21336_v40 = vld [vmem:[#allocation70_spill] sm:$0xff] }
 0xc5a   : > { %21320 = vst [vmem:[#allocation119_spill] sm:$0xff] %v19377_v50  ;;  %v19381_v49 = vadd.f32 %v14391_v17, %v5962_v34  ;;  %v21333_v50 = vld [vmem:[#allocation115_spill] sm:$0xff]  ;;  %v5983_v39 = vadd.f32 %v21336_v40, %v21335_v33 }
 0xc5b   : > { %v19383_v27 = vpop.f32.mrf.mxu0 }
 0xc5c   : > { %21321 = vst [vmem:[#allocation36_spill] sm:$0xff] %v19381_v49  ;;  %21322 = vst [vmem:[#allocation50_spill] sm:$0xff] %v19383_v27 }
 0xc5d   : > { %v14394_v55 = vpop.f32.mrf.mxu0 }
 0xc5e   : > { %v19391_v3 = vadd.f32 %v14394_v55, %v5975_v13  ;;  %v5991_v13 = vadd.f32 %v21334_v32, %v21333_v50 }
 0xc5f   : > { %v8167_v23 = vpop.f32.mrf.mxu0 }
 0xc60   : > { %21327 = vst [vmem:[#allocation38_spill] sm:$0xff] %v19391_v3  ;;  %v19397_v34 = vadd.f32 %v8167_v23, %v5967_v28  ;;  %v9112_v17 = vpop.xlane.xlu0 %9111 }
 0xc61   : > { %v14395_v49 = vpop.f32.mrf.mxu0  ;;  %v9206_v53 = vsub.f32 %v19200_v48, %v9112_v17  ;;  %v21338_v48 = vld [vmem:[#allocation117_spill] sm:$0xff] }
 0xc62   : > { %21330 = vst [vmem:[#allocation49_spill] sm:$0xff] %v19397_v34  ;;  %v19400_v24 = vadd.f32 %v14395_v49, %v5978_v59  ;;  %v21339_v49 = vld [vmem:[#allocation77_spill] sm:$0xff] }
 0xc63   : > { %v19402_v27 = vpop.f32.mrf.mxu0  ;;  %v9238_v55 = vmul.f32 1.442695, %v9206_v53  ;;  %v5994_v59 = vadd.f32 %v21339_v49, %v21338_v48 }
 0xc64   : > { %21331 = vst [vmem:[#allocation123_spill] sm:$0xff] %v19400_v24  ;;  %21332 = vst [vmem:[#allocation39_spill] sm:$0xff] %v19402_v27  ;;  %v9115_v43 = vpop.xlane.xlu1 %9114 }
 0xc65   : > { %v14398_v3 = vpop.f32.mrf.mxu0  ;;  %15256 = vpow2.f32 %v9238_v55  ;;  %v9207_v28 = vsub.f32 %v19204_v0, %v9115_v43 }
 0xc66   : > { %v19409_v23 = vadd.f32 %v14398_v3, %v5991_v13 }
 0xc67   : > { %v8183_v34 = vpop.f32.mrf.mxu0  ;;  %v9240_v17 = vmul.f32 1.442695, %v9207_v28 }
 0xc68   : > { %21337 = vst [vmem:[#allocation51_spill] sm:$0xff] %v19409_v23  ;;  %v19413_v24 = vadd.f32 %v8183_v34, %v5983_v39  ;;  %v9118_v27 = vpop.xlane.xlu0 %9117 }
 0xc69   : > { %v14399_v50 = vpop.f32.mrf.mxu0  ;;  %15258 = vpow2.f32 %v9240_v17  ;;  %v9208_v53 = vsub.f32 %v19210_v1, %v9118_v27 }
 0xc6a   : > { %21340 = vst [vmem:[#allocation42_spill] sm:$0xff] %v19413_v24  ;;  %v19416_v32 = vadd.f32 %v14399_v50, %v5994_v59 }
 0xc6b   : > { %v9242_v33 = vmul.f32 1.442695, %v9208_v53 }
 0xc6c   : > { %21341 = vst [vmem:[#allocation52_spill] sm:$0xff] %v19416_v32  ;;  %v9121_v55 = vpop.xlane.xlu0 %9120 }
 0xc6d   : > { %15260 = vpow2.f32 %v9242_v33  ;;  %v9209_v0 = vsub.f32 %v19214_v22, %v9121_v55 }
 0xc6f   : > { %v9244_v3 = vmul.f32 1.442695, %v9209_v0 }
 0xc70   : > { %v9124_v13 = vpop.xlane.xlu0 %9123 }
 0xc71   : > { %15262 = vpow2.f32 %v9244_v3  ;;  %v9210_v43 = vsub.f32 %v19222_v9, %v9124_v13 }
 0xc72   : > { %v19420_v40 = vpop.eup %15256 }
 0xc73   : > { %v9246_v34 = vmul.f32 1.442695, %v9210_v43  ;;  %v9302_v39 = vsel %vm2474_vm2, %v19420_v40, 0.0 }
 0xc74   : > { %9303 = vadd.xlane.f32.xlu0 %v9302_v39  ;;  %v9127_v1 = vpop.xlane.xlu1 %9126 }
 0xc75   : > { %15264 = vpow2.f32 %v9246_v34  ;;  %v9211_v27 = vsub.f32 %v19226_v62, %v9127_v1 }
 0xc76   : > { %v19425_v28 = vpop.eup %15258 }
 0xc77   : > { %v9248_v48 = vmul.f32 1.442695, %v9211_v27  ;;  %v9305_v22 = vsel %vm2474_vm2, %v19425_v28, 0.0 }
 0xc78   : > { %v9130_v49 = vpop.xlane.xlu0 %9129  ;;  %9306 = vadd.xlane.f32.xlu1 %v9305_v22 }
 0xc79   : > { %15266 = vpow2.f32 %v9248_v48  ;;  %v9212_v9 = vsub.f32 %v19235_v45, %v9130_v49 }
 0xc7a   : > { %v19430_v59 = vpop.eup %15260 }
 0xc7b   : > { %v9250_v17 = vmul.f32 1.442695, %v9212_v9  ;;  %v9308_v50 = vsel %vm2474_vm2, %v19430_v59, 0.0 }
 0xc7c   : > { %9309 = vadd.xlane.f32.xlu0 %v9308_v50  ;;  %v9133_v53 = vpop.xlane.xlu1 %9132 }
 0xc7d   : > { %15268 = vpow2.f32 %v9250_v17  ;;  %v9213_v62 = vsub.f32 %v19239_v63, %v9133_v53 }
 0xc7e   : > { %v19435_v33 = vpop.eup %15262 }
 0xc7f   : > { %v9252_v55 = vmul.f32 1.442695, %v9213_v62  ;;  %v9311_v0 = vsel %vm2474_vm2, %v19435_v33, 0.0 }
 0xc80   : > { %v9136_v3 = vpop.xlane.xlu0 %9135  ;;  %9312 = vadd.xlane.f32.xlu1 %v9311_v0 }
 0xc81   : > { %15270 = vpow2.f32 %v9252_v55  ;;  %v9214_v45 = vsub.f32 %v19248_v35, %v9136_v3 }
 0xc82   : > { %v19440_v13 = vpop.eup %15264 }
 0xc83   : > { %v9254_v43 = vmul.f32 1.442695, %v9214_v45  ;;  %v9314_v34 = vsel %vm2474_vm2, %v19440_v13, 0.0 }
 0xc84   : > { %9315 = vadd.xlane.f32.xlu0 %v9314_v34  ;;  %v9139_v39 = vpop.xlane.xlu1 %9138 }
 0xc85   : > { %15272 = vpow2.f32 %v9254_v43  ;;  %v9215_v63 = vsub.f32 %v19252_v54, %v9139_v39 }
 0xc86   : > { %v19445_v1 = vpop.eup %15266 }
 0xc87   : > { %v9256_v27 = vmul.f32 1.442695, %v9215_v63  ;;  %v9317_v48 = vsel %vm2474_vm2, %v19445_v1, 0.0  ;;  %v19467_v63 = vpop.f32.mrf.mxu0 }
 0xc88   : > { %v9142_v22 = vpop.xlane.xlu0 %9141  ;;  %9318 = vadd.xlane.f32.xlu1 %v9317_v48  ;;  %21342 = vst [vmem:[#allocation127_spill] sm:$0xff] %v19467_v63 }
 0xc89   : > { %15274 = vpow2.f32 %v9256_v27  ;;  %v9216_v35 = vsub.f32 %v19261_v38, %v9142_v22  ;;  %v21344_v22 = vld [vmem:[#allocation79_spill] sm:$0xff] }
 0xc8a   : > { %v19450_v49 = vpop.eup %15268 }
 0xc8b   : > { %v9258_v9 = vmul.f32 1.442695, %v9216_v35  ;;  %v9320_v17 = vsel %vm2474_vm2, %v19450_v49, 0.0 }
 0xc8c   : > { %9321 = vadd.xlane.f32.xlu0 %v9320_v17  ;;  %v9145_v50 = vpop.xlane.xlu1 %9144 }
 0xc8d   : > { %15276 = vpow2.f32 %v9258_v9  ;;  %v9217_v54 = vsub.f32 %v19265_v12, %v9145_v50 }
 0xc8e   : > { %v19455_v53 = vpop.eup %15270 }
 0xc8f   : > { %v9260_v62 = vmul.f32 1.442695, %v9217_v54  ;;  %v9323_v55 = vsel %vm2474_vm2, %v19455_v53, 0.0 }
 0xc90   : > { %v9148_v0 = vpop.xlane.xlu0 %9147  ;;  %9324 = vadd.xlane.f32.xlu1 %v9323_v55 }
 0xc91   : > { %15278 = vpow2.f32 %v9260_v62  ;;  %v9218_v38 = vsub.f32 %v19273_v5, %v9148_v0  ;;  %v21343_v5 = vld [vmem:[#allocation120_spill] sm:$0xff]  ;;  %v21346_v62 = vld [vmem:[#allocation78_spill] sm:$0xff] }
 0xc92   : > { %v19460_v3 = vpop.eup %15272  ;;  %v6007_v35 = vadd.f32 %v21344_v22, %v21343_v5 }
 0xc93   : > { %v9262_v45 = vmul.f32 1.442695, %v9218_v38  ;;  %v9326_v43 = vsel %vm2474_vm2, %v19460_v3, 0.0 }
 0xc94   : > { %9327 = vadd.xlane.f32.xlu1 %v9326_v43  ;;  %v9151_v34 = vpop.xlane.xlu1 %9150 }
 0xc95   : > { %15280 = vpow2.f32 %v9262_v45  ;;  %v9219_v12 = vsub.f32 %v19277_v47, %v9151_v34  ;;  %v21345_v47 = vld [vmem:[#allocation121_spill] sm:$0xff]  ;;  %v21348_v34 = vld [vmem:[#allocation122_spill] sm:$0xff] }
 0xc96   : > { %v19465_v39 = vpop.eup %15274  ;;  %v5999_v55 = vadd.f32 %v21346_v62, %v21345_v47  ;;  %v21353_v62 = vld [vmem:[#allocation125_spill] sm:$0xff] }
 0xc97   : > { %v9264_v27 = vmul.f32 1.442695, %v9219_v12  ;;  %v9329_v48 = vsel %vm2474_vm2, %v19465_v39, 0.0  ;;  %v21349_v12 = vld [vmem:[#allocation83_spill] sm:$0xff] }
 0xc98   : > { %v9154_v9 = vpop.xlane.xlu0 %9153  ;;  %9330 = vadd.xlane.f32.xlu0 %v9329_v48  ;;  %v6010_v5 = vadd.f32 %v21349_v12, %v21348_v34  ;;  %v21354_v34 = vld [vmem:[#allocation82_spill] sm:$0xff] }
 0xc99   : > { %15282 = vpow2.f32 %v9264_v27  ;;  %v9220_v17 = vsub.f32 %v19281_v25, %v9154_v9  ;;  %v14402_v50 = vpop.f32.mrf.mxu0  ;;  %v21355_v12 = vld [vmem:[#allocation126_spill] sm:$0xff] }
 0xc9a   : > { %v19474_v54 = vpop.eup %15276  ;;  %v19478_v0 = vadd.f32 %v14402_v50, %v6007_v35 }
 0xc9b   : > { %v9266_v38 = vmul.f32 1.442695, %v9220_v17  ;;  %v8199_v45 = vpop.f32.mrf.mxu0  ;;  %v9332_v43 = vsel %vm2474_vm2, %v19474_v54, 0.0 }
 0xc9c   : > { %21347 = vst [vmem:[#allocation43_spill] sm:$0xff] %v19478_v0  ;;  %v19484_v48 = vadd.f32 %v8199_v45, %v5999_v55  ;;  %9333 = vadd.xlane.f32.xlu0 %v9332_v43  ;;  %v9157_v25 = vpop.xlane.xlu1 %9156  ;;  %v6023_v55 = vadd.f32 %v21354_v34, %v21353_v62  ;;  %v21359_v62 = vld [vmem:[#allocation87_spill] sm:$0xff] }
 0xc9d   : > { %15284 = vpow2.f32 %v9266_v38  ;;  %v9221_v27 = vsub.f32 %v19285_v42, %v9157_v25  ;;  %v14403_v22 = vpop.f32.mrf.mxu0 }
 0xc9e   : > { %21350 = vst [vmem:[#allocation54_spill] sm:$0xff] %v19484_v48  ;;  %v19487_v9 = vpop.eup %15278  ;;  %v19489_v35 = vadd.f32 %v14403_v22, %v6010_v5  ;;  %v21356_v5 = vld [vmem:[#allocation80_spill] sm:$0xff] }
 0xc9f   : > { %v9268_v17 = vmul.f32 1.442695, %v9221_v27  ;;  %v19491_v50 = vpop.f32.mrf.mxu0  ;;  %v9335_v47 = vsel %vm2474_vm2, %v19487_v9, 0.0  ;;  %v6015_v25 = vadd.f32 %v21356_v5, %v21355_v12 }
 0xca0   : > { %21351 = vst [vmem:[#allocation133_spill] sm:$0xff] %v19489_v35  ;;  %21352 = vst [vmem:[#allocation46_spill] sm:$0xff] %v19491_v50  ;;  %v9166_v45 = vpop.xlane.xlu0 %9165  ;;  %9336 = vadd.xlane.f32.xlu1 %v9335_v47  ;;  %v21358_v50 = vld [vmem:[#allocation128_spill] sm:$0xff] }
 0xca1   : > { %15286 = vpow2.f32 %v9268_v17  ;;  %v9224_v38 = vsub.f32 %v19289_v2, %v9166_v45  ;;  %v14406_v42 = vpop.f32.mrf.mxu0  ;;  %v6026_v34 = vadd.f32 %v21359_v62, %v21358_v50 }
 0xca2   : > { %v19498_v43 = vpop.eup %15280  ;;  %v19502_v27 = vadd.f32 %v14406_v42, %v6023_v55 }
 0xca3   : > { %v9274_v22 = vmul.f32 1.442695, %v9224_v38  ;;  %v8215_v35 = vpop.f32.mrf.mxu0  ;;  %v9338_v0 = vsel %vm2474_vm2, %v19498_v43, 0.0 }
 0xca4   : > { %21357 = vst [vmem:[#allocation132_spill] sm:$0xff] %v19502_v27  ;;  %v19508_v47 = vadd.f32 %v8215_v35, %v6015_v25  ;;  %9339 = vadd.xlane.f32.xlu1 %v9338_v0  ;;  %v9169_v2 = vpop.xlane.xlu1 %9168 }
 0xca5   : > { %15288 = vpow2.f32 %v9274_v22  ;;  %v9225_v17 = vsub.f32 %v19293_v8, %v9169_v2  ;;  %v14407_v45 = vpop.f32.mrf.mxu0 }
 0xca6   : > { %21360 = vst [vmem:[#allocation55_spill] sm:$0xff] %v19508_v47  ;;  %v19511_v48 = vpop.eup %15282  ;;  %v19513_v55 = vadd.f32 %v14407_v45, %v6026_v34 }
 0xca7   : > { %v9276_v38 = vmul.f32 1.442695, %v9225_v17  ;;  %v19515_v42 = vpop.f32.mrf.mxu0  ;;  %v9341_v12 = vsel %vm2474_vm2, %v19511_v48, 0.0 }
 0xca8   : > { %21361 = vst [vmem:[#allocation53_spill] sm:$0xff] %v19513_v55  ;;  %21362 = vst [vmem:[#allocation130_spill] sm:$0xff] %v19515_v42  ;;  %v9178_v5 = vpop.xlane.xlu0 %9177  ;;  %9342 = vadd.xlane.f32.xlu0 %v9341_v12 }
 0xca9   : > { %15290 = vpow2.f32 %v9276_v38  ;;  %v9228_v0 = vsub.f32 %v19297_v36, %v9178_v5  ;;  %v8714_v35 = vpop.f32.mrf.mxu0 }
 0xcaa   : > { %v19520_v50 = vpop.eup %15284 }
 0xcab   : > { %v9282_v8 = vmul.f32 1.442695, %v9228_v0  ;;  %v14460_v25 = vpop.f32.mrf.mxu0  ;;  %v9344_v22 = vsel %vm2474_vm2, %v19520_v50, 0.0 }
 0xcac   : > { %9345 = vadd.xlane.f32.xlu0 %v9344_v22  ;;  %v9181_v62 = vpop.xlane.xlu1 %9180 }
 0xcad   : > { %15292 = vpow2.f32 %v9282_v8  ;;  %v9229_v34 = vsub.f32 %v19301_v60, %v9181_v62  ;;  %v8717_v2 = vpop.f32.mrf.mxu0 }
 0xcae   : > { %v19525_v17 = vpop.eup %15286  ;;  %v19545_v27 = vmul.f32 0.17677669, %v8717_v2 }
 0xcaf   : > { %v9284_v45 = vmul.f32 1.442695, %v9229_v34  ;;  %v14461_v38 = vpop.f32.mrf.mxu0  ;;  %v9347_v36 = vsel %vm2474_vm2, %v19525_v17, 0.0 }
 0xcb0   : > { %9348 = vadd.xlane.f32.xlu1 %v9347_v36  ;;  %v9161_v2 = vsel %vm2474_vm2, %v19545_v27, -inf }
 0xcb1   : > { %15294 = vpow2.f32 %v9284_v45  ;;  %v8816_v12 = vpop.f32.mrf.mxu0  ;;  %v19539_v45 = vmul.f32 0.17677669, %v8714_v35 }
 0xcb2   : > { %v19529_v5 = vpop.eup %15288 }
 0xcb3   : > { %v14472_v0 = vpop.f32.mrf.mxu0  ;;  %v9356_v25 = vsel %vm2474_vm2, %v19529_v5, 0.0  ;;  %v9158_v35 = vsel %vm2474_vm2, %v19539_v45, -inf }
 0xcb4   : > { %9357 = vadd.xlane.f32.xlu0 %v9356_v25 }
 0xcb5   : > { %v8819_v8 = vpop.f32.mrf.mxu0 }
 0xcb6   : > { %v19533_v60 = vpop.eup %15290  ;;  %v19553_v47 = vmul.f32 0.17677669, %v8819_v8 }
 0xcb7   : > { %v14473_v22 = vpop.f32.mrf.mxu0  ;;  %v9359_v62 = vsel %vm2474_vm2, %v19533_v60, 0.0 }
 0xcb8   : > { %9360 = vadd.xlane.f32.xlu1 %v9359_v62  ;;  %v19547_v22 = vmul.f32 0.17677669, %v8816_v12 }
 0xcb9   : > { %v8918_v34 = vpop.f32.mrf.mxu0 }
 0xcba   : > { %v19537_v38 = vpop.eup %15292 }
 0xcbb   : > { %v14484_v36 = vpop.f32.mrf.mxu0  ;;  %v9368_v0 = vsel %vm2474_vm2, %v19537_v38, 0.0 }
 0xcbc   : > { %9369 = vadd.xlane.f32.xlu0 %v9368_v0  ;;  %v19555_v0 = vmul.f32 0.17677669, %v8918_v34  ;;  %v21363_v34 = vld [vmem:[#allocation64_spill] sm:$0xff] }
 0xcbd   : > { %v8921_v55 = vpop.f32.mrf.mxu0 }
 0xcbe   : > { %v19543_v25 = vpop.eup %15294  ;;  %v19561_v23 = vmul.f32 0.17677669, %v8921_v55  ;;  %v9182_v8 = vsel %vm2474_vm2, %v19555_v0, -inf  ;;  %v9190_v55 = vpop.xlane.xlu0 %9189 }
 0xcbf   : > { %v14485_v42 = vpop.f32.mrf.mxu0  ;;  %v9371_v62 = vsel %vm2474_vm2, %v19543_v25, 0.0 }
 0xcc0   : > { %9372 = vadd.xlane.f32.xlu1 %v9371_v62  ;;  %9159 = vmax.xlane.f32.xlu0 %v9158_v35  ;;  %v9170_v42 = vsel %vm2474_vm2, %v19547_v22, -inf  ;;  %v9173_v62 = vsel %vm2474_vm2, %v19553_v47, -inf  ;;  %v21364_v35 = vld [vmem:[#allocation65_spill] sm:$0xff] }
 0xcc1   : > { %v9020_v36 = vpop.f32.mrf.mxu0 }
 0xcc2   : > { %v19577_v61 = vpop.xlane.xlu0 %9201 }
 0xcc3   : > { %v14496_v32 = vpop.f32.mrf.mxu0 }
 0xcc4   : > { %9162 = vmax.xlane.f32.xlu1 %v9161_v2  ;;  %9171 = vmax.xlane.f32.xlu0 %v9170_v42  ;;  %v9185_v32 = vsel %vm2474_vm2, %v19561_v23, -inf  ;;  %v9193_v2 = vpop.xlane.xlu1 %9192 }
 0xcc5   : > { %v9023_v12 = vpop.f32.mrf.mxu0  ;;  %v9233_v24 = vsub.f32 %v19309_v6, %v9193_v2 }
 0xcc7   : > { %v14497_v63 = vpop.f32.mrf.mxu0 }
 0xcc8   : > { %9174 = vmax.xlane.f32.xlu1 %v9173_v62  ;;  %9183 = vmax.xlane.f32.xlu0 %v9182_v8  ;;  %v9232_v63 = vsub.f32 %v19305_v37, %v9190_v55  ;;  %v9292_v62 = vmul.f32 1.442695, %v9233_v24  ;;  %v19585_v30 = vpop.xlane.xlu1 %9204  ;;  %v19587_v55 = vmul.f32 0.17677669, %v9023_v12 }
 0xcca   : > { %v9290_v42 = vmul.f32 1.442695, %v9232_v63  ;;  %v9197_v63 = vsel %vm2474_vm2, %v19587_v55, -inf }
 0xccc   : > { %9186 = vmax.xlane.f32.xlu1 %v9185_v32  ;;  %15296 = vpow2.f32 %v9290_v42  ;;  %v19579_v32 = vmul.f32 0.17677669, %v9020_v36 }
 0xccd   : > { %15298 = vpow2.f32 %v9292_v62 }
 0xcce   : > { %v9194_v24 = vsel %vm2474_vm2, %v19579_v32, -inf }
 0xcd9   : > { %v19575_v8 = vpop.eup %15296 }
 0xcdd   : > { %9901 = vrot.lane.b32.xlu1 %v21363_v34, %s15779_s21  ;;  %v9380_v34 = vsel %vm2474_vm2, %v19575_v8, 0.0 }
 0xcde   : > { %9854 = vrot.lane.b32.xlu0 %v21364_v35, %s15779_s21  ;;  %v19583_v35 = vpop.eup %15298 }
 0xcdf   : > { %v9383_v6 = vsel %vm2474_vm2, %v19583_v35, 0.0 }
 0xcfd   : > { %v9304_v37 = vpop.xlane.xlu0 %9303  ;;  %9381 = vadd.xlane.f32.xlu0 %v9380_v34 }
 0xcfe   : > { %15300 = vrcp.f32 %v9304_v37 }
 0xd01   : > { %v9307_v36 = vpop.xlane.xlu1 %9306  ;;  %9384 = vadd.xlane.f32.xlu1 %v9383_v6  ;;  %9195 = vmax.xlane.f32.xlu0 %v9194_v24 }
 0xd02   : > { %15302 = vrcp.f32 %v9307_v36 }
 0xd05   : > { %v9310_v2 = vpop.xlane.xlu0 %9309  ;;  %9198 = vmax.xlane.f32.xlu1 %v9197_v63 }
 0xd06   : > { %15304 = vrcp.f32 %v9310_v2 }
 0xd09   : > { %v9313_v42 = vpop.xlane.xlu1 %9312 }
 0xd0a   : > { %15306 = vrcp.f32 %v9313_v42 }
 0xd0b   : > { %v15301_v12 = vpop.eup %15300 }
 0xd0c   : > { %v9430_v37 = vmul.f32 %v15301_v12, %v19420_v40 }
 0xd0d   : > { %v9316_v62 = vpop.xlane.xlu0 %9315 }
 0xd0e   : > { %15308 = vrcp.f32 %v9316_v62 }
 0xd0f   : > { %v15303_v34 = vpop.eup %15302 }
 0xd10   : > { %v9431_v4 = vmul.f32 %v15303_v34, %v19425_v28 }
 0xd11   : > { %v9319_v58 = vpop.xlane.xlu1 %9318 }
 0xd12   : > { %15310 = vrcp.f32 %v9319_v58  ;;  %v9462_v6 = vpack.c.bf16 %v9431_v4, %v9430_v37 }
 0xd13   : > { %v15305_v24 = vpop.eup %15304 }
 0xd14   : > { %14507 = vmatmul.mubr.msk.bf16.vlgmr.msra.gmra.mxu0 %vm2474_vm2, %v9462_v6  ;;  %v9432_v40 = vmul.f32 %v15305_v24, %v19430_v59 }
 0xd15   : > { %14517 = vmatpush3.bf16.msra.mxu0 %v19361_v11  ;;  %v9322_v36 = vpop.xlane.xlu0 %9321  ;;  %14518 = vmatprep.mubr.msk.bf16.mxu0 %vm15776_vm0, %v21094_v21 }
 0xd16   : > { %14528 = vmatprep.subr.bf16.mxu0 %v21094_v21  ;;  %15312 = vrcp.f32 %v9322_v36 }
 0xd17   : > { %v15307_v63 = vpop.eup %15306 }
 0xd18   : > { %v9433_v28 = vmul.f32 %v15307_v63, %v19435_v33 }
 0xd19   : > { %v9325_v2 = vpop.xlane.xlu1 %9324 }
 0xd1a   : > { %15314 = vrcp.f32 %v9325_v2  ;;  %v9463_v58 = vpack.c.bf16 %v9433_v28, %v9432_v40 }
 0xd1b   : > { %v15309_v4 = vpop.eup %15308 }
 0xd1c   : > { %14513 = vmatmul.mubr.msk.bf16.vlgmr.msra.gmra.mxu1 %vm2474_vm2, %v9463_v58  ;;  %v9434_v59 = vmul.f32 %v15309_v4, %v19440_v13 }
 0xd1d   : > { %14523 = vmatpush3.bf16.msra.mxu1 %v19367_v56  ;;  %v9328_v11 = vpop.xlane.xlu1 %9327  ;;  %14524 = vmatprep.mubr.msk.bf16.mxu1 %vm15776_vm0, %v21094_v21 }
 0xd1e   : > { %14534 = vmatprep.subr.bf16.mxu1 %v21094_v21  ;;  %15316 = vrcp.f32 %v9328_v11 }
 0xd1f   : > { %v15311_v42 = vpop.eup %15310 }
 0xd20   : > { %v9435_v33 = vmul.f32 %v15311_v42, %v19445_v1 }
 0xd21   : > { %v9331_v12 = vpop.xlane.xlu0 %9330 }
 0xd22   : > { %15318 = vrcp.f32 %v9331_v12  ;;  %v9464_v62 = vpack.c.bf16 %v9435_v33, %v9434_v59 }
 0xd23   : > { %v15313_v34 = vpop.eup %15312 }
 0xd24   : > { %14519 = vmatmul.mubr.msk.bf16.vlgmr.msra.gmra.mxu0 %vm2474_vm2, %v9464_v62  ;;  %v9436_v13 = vmul.f32 %v15313_v34, %v19450_v49 }
 0xd25   : > { %14529 = vmatpush3.bf16.msra.mxu0 %v19373_v16  ;;  %v9334_v56 = vpop.xlane.xlu0 %9333  ;;  %14530 = vmatprep.mubr.msk.bf16.mxu0 %vm15776_vm0, %v21094_v21 }
 0xd26   : > { %14540 = vmatprep.subr.bf16.mxu0 %v21094_v21  ;;  %15320 = vrcp.f32 %v9334_v56 }
 0xd27   : > { %v15315_v37 = vpop.eup %15314 }
 0xd28   : > { %v9437_v1 = vmul.f32 %v15315_v37, %v19455_v53 }
 0xd29   : > { %v9337_v6 = vpop.xlane.xlu1 %9336 }
 0xd2a   : > { %15322 = vrcp.f32 %v9337_v6  ;;  %v9465_v24 = vpack.c.bf16 %v9437_v1, %v9436_v13 }
 0xd2b   : > { %v15317_v36 = vpop.eup %15316 }
 0xd2c   : > { %14525 = vmatmul.mubr.msk.bf16.vlgmr.msra.gmra.mxu1 %vm2474_vm2, %v9465_v24  ;;  %v9438_v49 = vmul.f32 %v15317_v36, %v19460_v3 }
 0xd2d   : > { %14535 = vmatpush3.bf16.msra.mxu1 %v19379_v29  ;;  %v9340_v16 = vpop.xlane.xlu1 %9339  ;;  %14536 = vmatprep.mubr.msk.bf16.mxu1 %vm15776_vm0, %v21094_v21 }
 0xd2e   : > { %14546 = vmatprep.subr.bf16.mxu1 %v21094_v21  ;;  %15324 = vrcp.f32 %v9340_v16 }
 0xd2f   : > { %v15319_v63 = vpop.eup %15318 }
 0xd30   : > { %v9439_v53 = vmul.f32 %v15319_v63, %v19465_v39 }
 0xd31   : > { %v9343_v40 = vpop.xlane.xlu0 %9342 }
 0xd32   : > { %15326 = vrcp.f32 %v9343_v40  ;;  %v9466_v28 = vpack.c.bf16 %v9439_v53, %v9438_v49 }
 0xd33   : > { %v15321_v2 = vpop.eup %15320 }
 0xd34   : > { %14531 = vmatmul.mubr.msk.bf16.vlgmr.msra.gmra.mxu0 %vm2474_vm2, %v9466_v28  ;;  %v9440_v3 = vmul.f32 %v15321_v2, %v19474_v54 }
 0xd35   : > { %14541 = vmatpush3.bf16.msra.mxu0 %v19387_v46  ;;  %v9346_v29 = vpop.xlane.xlu0 %9345  ;;  %14542 = vmatprep.mubr.msk.bf16.mxu0 %vm15776_vm0, %v21094_v21 }
 0xd36   : > { %14552 = vmatprep.subr.bf16.mxu0 %v21094_v21  ;;  %15328 = vrcp.f32 %v9346_v29 }
 0xd37   : > { %v15323_v58 = vpop.eup %15322 }
 0xd38   : > { %v9441_v39 = vmul.f32 %v15323_v58, %v19487_v9 }
 0xd39   : > { %v9349_v4 = vpop.xlane.xlu1 %9348 }
 0xd3a   : > { %15330 = vrcp.f32 %v9349_v4  ;;  %v9467_v11 = vpack.c.bf16 %v9441_v39, %v9440_v3 }
 0xd3b   : > { %v15325_v42 = vpop.eup %15324 }
 0xd3c   : > { %14537 = vmatmul.mubr.msk.bf16.vlgmr.msra.gmra.mxu1 %vm2474_vm2, %v9467_v11  ;;  %v9442_v59 = vmul.f32 %v15325_v42, %v19498_v43 }
 0xd3d   : > { %14547 = vmatpush3.bf16.msra.mxu1 %v19395_v44  ;;  %14548 = vmatprep.mubr.msk.bf16.mxu1 %vm15776_vm0, %v21094_v21  ;;  %v9358_v9 = vpop.xlane.xlu0 %9357 }
 0xd3e   : > { %14558 = vmatprep.subr.bf16.mxu1 %v21094_v21 }
 0xd3f   : > { %v15327_v46 = vpop.eup %15326 }
 0xd40   : > { %v9443_v54 = vmul.f32 %v15327_v46, %v19511_v48  ;;  %v21366_v46 = vld [vmem:[#allocation67_spill] sm:$0xff] }
 0xd41   : > { %v9361_v12 = vpop.xlane.xlu1 %9360 }
 0xd42   : > { %v9468_v33 = vpack.c.bf16 %v9443_v54, %v9442_v59  ;;  %15332 = vrcp.f32 %v9361_v12  ;;  %v9237_v54 = vsub.f32 %v19317_v57, %v19585_v30  ;;  %v9236_v12 = vsub.f32 %v19313_v15, %v19577_v61 }
 0xd43   : > { %v15329_v62 = vpop.eup %15328 }
 0xd44   : > { %14543 = vmatmul.mubr.msk.bf16.vlgmr.msra.gmra.mxu0 %vm2474_vm2, %v9468_v33  ;;  %v9444_v56 = vmul.f32 %v15329_v62, %v19520_v50  ;;  %v9300_v62 = vmul.f32 1.442695, %v9237_v54 }
 0xd45   : > { %v9370_v34 = vpop.xlane.xlu0 %9369  ;;  %14554 = vmatprep.mubr.msk.bf16.mxu0 %vm15776_vm0, %v21094_v21 }
 0xd46   : > { %15334 = vrcp.f32 %v9370_v34 }
 0xd47   : > { %v15331_v44 = vpop.eup %15330  ;;  %15336 = vrcp.f32 %v9358_v9 }
 0xd48   : > { %v9445_v37 = vmul.f32 %v15331_v44, %v19525_v17 }
 0xd49   : > { %v9373_v43 = vpop.xlane.xlu1 %9372  ;;  %v9160_v48 = vpop.xlane.xlu0 %9159 }
 0xd4a   : > { %v9469_v13 = vpack.c.bf16 %v9445_v37, %v9444_v56  ;;  %15338 = vrcp.f32 %v9373_v43  ;;  %v9222_v1 = vsub.f32 %v19539_v45, %v9160_v48  ;;  %v9298_v56 = vmul.f32 1.442695, %v9236_v12 }
 0xd4c   : > { %v9270_v6 = vmul.f32 1.442695, %v9222_v1  ;;  %14549 = vmatmul.mubr.msk.bf16.vlgmr.msra.gmra.mxu1 %vm2474_vm2, %v9469_v13 }
 0xd4d   : > { %v9163_v24 = vpop.xlane.xlu1 %9162  ;;  %v9172_v36 = vpop.xlane.xlu0 %9171  ;;  %14560 = vmatprep.mubr.msk.bf16.mxu1 %vm15776_vm0, %v21094_v21 }
 0xd4e   : > { %15340 = vpow2.f32 %v9270_v6  ;;  %v9223_v50 = vsub.f32 %v19545_v27, %v9163_v24  ;;  %v9226_v59 = vsub.f32 %v19547_v22, %v9172_v36 }
 0xd4f   : > { %v15333_v49 = vpop.eup %15332 }
 0xd50   : > { %v9272_v17 = vmul.f32 1.442695, %v9223_v50  ;;  %v9449_v29 = vmul.f32 %v15333_v49, %v19533_v60  ;;  %v9278_v9 = vmul.f32 1.442695, %v9226_v59 }
 0xd51   : > { %v9175_v16 = vpop.xlane.xlu1 %9174  ;;  %v9184_v63 = vpop.xlane.xlu0 %9183 }
 0xd52   : > { %15342 = vpow2.f32 %v9272_v17  ;;  %v9227_v33 = vsub.f32 %v19553_v47, %v9175_v16  ;;  %v9230_v34 = vsub.f32 %v19555_v0, %v9184_v63 }
 0xd53   : > { %v15335_v53 = vpop.eup %15334  ;;  %15344 = vpow2.f32 %v9278_v9 }
 0xd54   : > { %v15337_v45 = vpop.eup %15336  ;;  %v19652_v58 = vmul.f32 %v15335_v53, %v19537_v38  ;;  %v9280_v44 = vmul.f32 1.442695, %v9227_v33  ;;  %15346 = vpow2.f32 %v9300_v62  ;;  %v9286_v37 = vmul.f32 1.442695, %v9230_v34 }
 0xd55   : > { %v9855_v40 = vpop.permute.xlu0 %9854  ;;  %v9187_v28 = vpop.xlane.xlu1 %9186  ;;  %v9448_v3 = vmul.f32 %v15337_v45, %v19529_v5 }
 0xd56   : > { %14553 = vmatpush3.bf16.msra.mxu0 %v9855_v40  ;;  %15348 = vpow2.f32 %v9280_v44  ;;  %v9231_v22 = vsub.f32 %v19561_v23, %v9187_v28 }
 0xd57   : > { %v15339_v2 = vpop.eup %15338  ;;  %14564 = vmatprep.subr.bf16.mxu0 %v21094_v21  ;;  %v9471_v42 = vpack.c.bf16 %v9449_v29, %v9448_v3  ;;  %15350 = vpow2.f32 %v9298_v56 }
 0xd58   : > { %v19655_v27 = vmul.f32 %v15339_v2, %v19543_v25  ;;  %v21365_v25 = vld [vmem:[#allocation66_spill] sm:$0xff]  ;;  %15352 = vpow2.f32 %v9286_v37  ;;  %v9288_v57 = vmul.f32 1.442695, %v9231_v22 }
 0xd59   : > { %v9902_v39 = vpop.permute.xlu1 %9901 }
 0xd5a   : > { %v9473_v4 = vpack.c.bf16 %v19655_v27, %v19652_v58  ;;  %14559 = vmatpush3.bf16.msra.mxu1 %v9902_v39 }
 0xd5b   : > { %v19660_v11 = vpop.eup %15340  ;;  %14570 = vmatprep.subr.bf16.mxu1 %v21094_v21 }
 0xd5c   : > { %v9350_v60 = vsel %vm2474_vm2, %v19660_v11, 0.0 }
 0xd5d   : > { %14561 = vmatmul.mubr.msk.bf16.vlgmr.msra.gmra.mxu1 %vm2474_vm2, %v9471_v42  ;;  %9351 = vadd.xlane.f32.xlu1 %v9350_v60 }
 0xd5e   : > { %14572 = vmatprep.mubr.msk.bf16.mxu1 %vm15776_vm0, %v21094_v21 }
 0xd5f   : > { %v19668_v5 = vpop.eup %15342 }
 0xd60   : > { %v9353_v38 = vsel %vm2474_vm2, %v19668_v5, 0.0  ;;  %v19685_v0 = vpop.eup %15344 }
 0xd61   : > { %9354 = vadd.xlane.f32.xlu0 %v9353_v38  ;;  %v19688_v1 = vpop.eup %15346  ;;  %v9362_v6 = vsel %vm2474_vm2, %v19685_v0, 0.0 }
 0xd63   : > { %v19692_v24 = vpop.eup %15348 }
 0xd64   : > { %v19694_v36 = vpop.eup %15350  ;;  %v9365_v50 = vsel %vm2474_vm2, %v19692_v24, 0.0 }
 0xd65   : > { %v9392_v53 = vsel %vm2474_vm2, %v19694_v36, 0.0 }
 0xd6e   : > { %9995 = vrot.lane.b32.xlu1 %v21365_v25, %s15779_s21 }
 0xd77   : > { %9948 = vrot.lane.b32.xlu0 %v21366_v46, %s15779_s21 }
 0xd86   : > { %v9382_v43 = vpop.xlane.xlu0 %9381 }
 0xd87   : > { %15354 = vrcp.f32 %v9382_v43 }
 0xd8a   : > { %v9385_v30 = vpop.xlane.xlu1 %9384  ;;  %v9196_v47 = vpop.xlane.xlu0 %9195 }
 0xd8b   : > { %15356 = vrcp.f32 %v9385_v30  ;;  %v9234_v15 = vsub.f32 %v19579_v32, %v9196_v47  ;;  %v19696_v32 = vpop.eup %15352 }
 0xd8c   : > { %15358 = vpow2.f32 %v9288_v57  ;;  %v9374_v40 = vsel %vm2474_vm2, %v19696_v32, 0.0 }
 0xd8d   : > { %v9294_v61 = vmul.f32 1.442695, %v9234_v15 }
 0xd8e   : > { %v9199_v48 = vpop.xlane.xlu1 %9198 }
 0xd8f   : > { %15360 = vpow2.f32 %v9294_v61  ;;  %v9235_v13 = vsub.f32 %v19587_v55, %v9199_v48  ;;  %v9395_v55 = vsel %vm2474_vm2, %v19688_v1, 0.0 }
 0xd91   : > { %v9296_v23 = vmul.f32 1.442695, %v9235_v13 }
 0xd92   : > { %9363 = vadd.xlane.f32.xlu1 %v9362_v6 }
 0xd93   : > { %15362 = vpow2.f32 %v9296_v23 }
 0xd94   : > { %v15355_v17 = vpop.eup %15354 }
 0xd95   : > { %v19703_v63 = vmul.f32 %v15355_v17, %v19575_v8 }
 0xd96   : > { %9366 = vadd.xlane.f32.xlu0 %v9365_v50  ;;  %9396 = vadd.xlane.f32.xlu1 %v9395_v55 }
 0xd98   : > { %v15357_v16 = vpop.eup %15356 }
 0xd99   : > { %v19706_v49 = vmul.f32 %v15357_v16, %v19583_v35  ;;  %v19712_v28 = vpop.eup %15358 }
 0xd9a   : > { %9393 = vadd.xlane.f32.xlu0 %v9392_v53  ;;  %9375 = vadd.xlane.f32.xlu1 %v9374_v40  ;;  %v9377_v8 = vsel %vm2474_vm2, %v19712_v28, 0.0 }
 0xd9b   : > { %v9475_v45 = vpack.c.bf16 %v19706_v49, %v19703_v63 }
 0xd9c   : > { %v19716_v2 = vpop.eup %15360 }
 0xd9d   : > { %v9386_v35 = vsel %vm2474_vm2, %v19716_v2, 0.0 }
 0xd9e   : > { %9378 = vadd.xlane.f32.xlu0 %v9377_v8  ;;  %9387 = vadd.xlane.f32.xlu1 %v9386_v35 }
 0xda0   : > { %v19722_v29 = vpop.eup %15362 }
 0xda1   : > { %v9389_v3 = vsel %vm2474_vm2, %v19722_v29, 0.0 }
 0xda2   : > { %9390 = vadd.xlane.f32.xlu0 %v9389_v3 }
 0xdaf   : > { %10089 = vrot.lane.b32.xlu1 %v21254_v52, %s15779_s21 }
 0xdb3   : > { %10136 = vrot.lane.b32.xlu1 %v21031_v19, %s15779_s21 }
 0xdb7   : > { %10183 = vrot.lane.b32.xlu1 %v21052_v20, %s15779_s21 }
 0xdb8   : > { %10042 = vrot.lane.b32.xlu0 %v21255_v14, %s15779_s21 }
 0xdd4   : > { %v19734_v39 = vpop.f32.mrf.mxu0 }
 0xdd6   : > { %v14508_v42 = vpop.f32.mrf.mxu0 }
 0xdd8   : > { %v19736_v60 = vpop.f32.mrf.mxu0 }
 0xdd9   : > { %v10230_v38 = vpack.c.bf16 %v19736_v60, %v19734_v39 }
 0xdda   : > { %v14509_v25 = vpop.f32.mrf.mxu0 }
 0xddc   : > { %v19740_v46 = vpop.f32.mrf.mxu1 }
 0xdde   : > { %v14514_v52 = vpop.f32.mrf.mxu1 }
 0xde0   : > { %v19742_v59 = vpop.f32.mrf.mxu1 }
 0xde1   : > { %v10231_v19 = vpack.c.bf16 %v19742_v59, %v19740_v46 }
 0xde2   : > { %v14515_v20 = vpop.f32.mrf.mxu1 }
 0xde4   : > { %v19746_v54 = vpop.f32.mrf.mxu0 }
 0xde6   : > { %v9352_v14 = vpop.xlane.xlu1 %9351  ;;  %v14520_v9 = vpop.f32.mrf.mxu0 }
 0xde7   : > { %15364 = vrcp.f32 %v9352_v14 }
 0xde8   : > { %v19748_v33 = vpop.f32.mrf.mxu0 }
 0xde9   : > { %v10232_v12 = vpack.c.bf16 %v19748_v33, %v19746_v54 }
 0xdea   : > { %v9355_v62 = vpop.xlane.xlu0 %9354  ;;  %v9996_v34 = vpop.permute.xlu1 %9995 }
 0xdeb   : > { %15366 = vrcp.f32 %v9355_v62  ;;  %v14521_v44 = vpop.f32.mrf.mxu0  ;;  %14571 = vmatpush3.bf16.msra.mxu1 %v9996_v34 }
 0xdec   : > { %v19752_v56 = vpop.f32.mrf.mxu1  ;;  %14582 = vmatprep.subr.bf16.mxu1 %v21094_v21 }
 0xdee   : > { %v14526_v37 = vpop.f32.mrf.mxu1  ;;  %14573 = vmatmul.mubr.msk.bf16.vlgmr.msra.gmra.mxu1 %vm2474_vm2, %v9473_v4  ;;  %v9949_v50 = vpop.permute.xlu0 %9948 }
 0xdef   : > { %14584 = vmatprep.mubr.msk.bf16.mxu1 %vm15776_vm0, %v21094_v21 }
 0xdf0   : > { %v19761_v22 = vpop.f32.mrf.mxu1 }
 0xdf1   : > { %v10233_v43 = vpack.c.bf16 %v19761_v22, %v19752_v56 }
 0xdf2   : > { %v14527_v57 = vpop.f32.mrf.mxu1 }
 0xdf4   : > { %v19765_v30 = vpop.f32.mrf.mxu0  ;;  %v15365_v47 = vpop.eup %15364 }
 0xdf5   : > { %v9446_v58 = vmul.f32 %v15365_v47, %v19660_v11 }
 0xdf6   : > { %v14532_v15 = vpop.f32.mrf.mxu0 }
 0xdf8   : > { %v15367_v61 = vpop.eup %15366  ;;  %v19767_v48 = vpop.f32.mrf.mxu0 }
 0xdf9   : > { %v9447_v27 = vmul.f32 %v15367_v61, %v19668_v5  ;;  %v10234_v4 = vpack.c.bf16 %v19767_v48, %v19765_v30 }
 0xdfa   : > { %v14533_v13 = vpop.f32.mrf.mxu0 }
 0xdfb   : > { %v9470_v23 = vpack.c.bf16 %v9447_v27, %v9446_v58 }
 0xdfc   : > { %v19773_v6 = vpop.f32.mrf.mxu1 }
 0xdfd   : > { %14555 = vmatmul.mubr.msk.bf16.vlgmr.msra.gmra.mxu0 %vm2474_vm2, %v9470_v23 }
 0xdfe   : > { %14565 = vmatpush3.bf16.msra.mxu0 %v9949_v50  ;;  %v14538_v55 = vpop.f32.mrf.mxu1  ;;  %14566 = vmatprep.mubr.msk.bf16.mxu0 %vm15776_vm0, %v21094_v21 }
 0xdff   : > { %14576 = vmatprep.subr.bf16.mxu0 %v21094_v21 }
 0xe00   : > { %v19779_v11 = vpop.f32.mrf.mxu1 }
 0xe01   : > { %v10235_v5 = vpack.c.bf16 %v19779_v11, %v19773_v6 }
 0xe02   : > { %v14539_v17 = vpop.f32.mrf.mxu1 }
 0xe04   : > { %v19783_v16 = vpop.f32.mrf.mxu0 }
 0xe06   : > { %v14544_v53 = vpop.f32.mrf.mxu0 }
 0xe08   : > { %v19785_v40 = vpop.f32.mrf.mxu0 }
 0xe09   : > { %v10236_v8 = vpack.c.bf16 %v19785_v40, %v19783_v16 }
 0xe0a   : > { %v14545_v35 = vpop.f32.mrf.mxu0 }
 0xe0c   : > { %v19789_v3 = vpop.f32.mrf.mxu1 }
 0xe0e   : > { %v14550_v42 = vpop.f32.mrf.mxu1 }
 0xe10   : > { %v19791_v25 = vpop.f32.mrf.mxu1 }
 0xe11   : > { %v10237_v52 = vpack.c.bf16 %v19791_v25, %v19789_v3 }
 0xe12   : > { %v14551_v20 = vpop.f32.mrf.mxu1 }
 0xe1b   : > { %v9364_v14 = vpop.xlane.xlu1 %9363 }
 0xe1c   : > { %15368 = vrcp.f32 %v9364_v14 }
 0xe1d   : > { %v19795_v9 = vpop.f32.mrf.mxu1 }
 0xe1f   : > { %v14562_v62 = vpop.f32.mrf.mxu1  ;;  %v9367_v34 = vpop.xlane.xlu0 %9366 }
 0xe20   : > { %15370 = vrcp.f32 %v9367_v34  ;;  %v9397_v44 = vpop.xlane.xlu1 %9396 }
 0xe21   : > { %v19797_v37 = vpop.f32.mrf.mxu1  ;;  %15372 = vrcp.f32 %v9397_v44 }
 0xe22   : > { %v10239_v57 = vpack.c.bf16 %v19797_v37, %v19795_v9 }
 0xe23   : > { %v14563_v47 = vpop.f32.mrf.mxu1  ;;  %v9394_v15 = vpop.xlane.xlu0 %9393 }
 0xe24   : > { %15374 = vrcp.f32 %v9394_v15  ;;  %v9376_v61 = vpop.xlane.xlu1 %9375  ;;  %v21367_v47 = vld [vmem:[#allocation30_spill] sm:$0xff] }
 0xe25   : > { %15376 = vrcp.f32 %v9376_v61  ;;  %v21368_v61 = vld [vmem:[#allocation31_spill] sm:$0xff] }
 0xe27   : > { %v9379_v58 = vpop.xlane.xlu0 %9378 }
 0xe28   : > { %15378 = vrcp.f32 %v9379_v58  ;;  %v9388_v27 = vpop.xlane.xlu1 %9387 }
 0xe29   : > { %v15369_v13 = vpop.eup %15368 }
 0xe2a   : > { %v9450_v17 = vmul.f32 %v15369_v13, %v19685_v0 }
 0xe2b   : > { %v9391_v23 = vpop.xlane.xlu0 %9390 }
 0xe2c   : > { %15380 = vrcp.f32 %v9391_v23  ;;  %v10090_v50 = vpop.permute.xlu1 %10089 }
 0xe2d   : > { %v15371_v55 = vpop.eup %15370  ;;  %14583 = vmatpush3.bf16.msra.mxu1 %v10090_v50  ;;  %15382 = vrcp.f32 %v9388_v27 }
 0xe2e   : > { %v9451_v53 = vmul.f32 %v15371_v55, %v19692_v24  ;;  %14594 = vmatprep.subr.bf16.mxu1 %v21094_v21  ;;  %v15373_v35 = vpop.eup %15372 }
 0xe2f   : > { %v9461_v62 = vmul.f32 %v15373_v35, %v19688_v1  ;;  %v10043_v24 = vpop.permute.xlu0 %10042  ;;  %v21369_v35 = vld [vmem:[#allocation28_spill] sm:$0xff] }
 0xe30   : > { %v9472_v42 = vpack.c.bf16 %v9451_v53, %v9450_v17  ;;  %14585 = vmatmul.mubr.msk.bf16.vlgmr.msra.gmra.mxu1 %vm2474_vm2, %v9475_v45  ;;  %v10137_v20 = vpop.permute.xlu1 %10136 }
 0xe31   : > { %v15375_v14 = vpop.eup %15374  ;;  %14596 = vmatprep.mubr.msk.bf16.mxu1 %vm15776_vm0, %v21094_v21 }
 0xe32   : > { %v9460_v0 = vmul.f32 %v15375_v14, %v19694_v36  ;;  %14567 = vmatmul.mubr.msk.bf16.vlgmr.msra.gmra.mxu0 %vm2474_vm2, %v9472_v42  ;;  %v15377_v34 = vpop.eup %15376  ;;  %v10529_v42 = vsub.s32 7, %v21369_v35  ;;  %v21370_v14 = vld [vmem:[#allocation89_spill] sm:$0xff] }
 0xe33   : > { %14577 = vmatpush3.bf16.msra.mxu0 %v10043_v24  ;;  %14578 = vmatprep.mubr.msk.bf16.mxu0 %vm15776_vm0, %v21094_v21  ;;  %v9454_v44 = vmul.f32 %v15377_v34, %v19696_v32 }
 0xe34   : > { %v9477_v63 = vpack.c.bf16 %v9461_v62, %v9460_v0  ;;  %v10184_v49 = vpop.permute.xlu1 %10183  ;;  %14588 = vmatprep.subr.bf16.mxu0 %v21094_v21  ;;  %v21371_v62 = vld [vmem:[#allocation98_spill] sm:$0xff] }
 0xe35   : > { %v15379_v45 = vpop.eup %15378  ;;  %14595 = vmatpush3.bf16.msra.mxu1 %v10184_v49  ;;  %v5906_v0 = vadd.f32 %v21371_v62, %v21370_v14  ;;  %v21380_v14 = vld [vmem:[#allocation48_spill] sm:$0xff] }
 0xe36   : > { %v9455_v1 = vmul.f32 %v15379_v45, %v19712_v28  ;;  %14636 = vmatprep.subr.bf16.mxu1 %v21367_v47  ;;  %v15461_v45 = vld [vmem:[%s16073_s14] sm:$0xff] }
 0xe37   : > { %v8231_v49 = vadd.f32 %v19333_v7, %v5906_v0 }
 0xe38   : > { %v9474_v36 = vpack.c.bf16 %v9455_v1, %v9454_v44  ;;  %14597 = vmatmul.mubr.msk.bf16.vlgmr.msra.gmra.mxu1 %vm2474_vm2, %v9477_v63  ;;  %v19884_v1 = vld [vmem:[%s16057_s1] sm:$0xff] }
 0xe39   : > { %v15381_v15 = vpop.eup %15380  ;;  %14638 = vmatpush3.bf16.msra.mxu1 %v21367_v47 }
 0xe3a   : > { %14579 = vmatmul.mubr.msk.bf16.vlgmr.msra.gmra.mxu0 %vm2474_vm2, %v9474_v36  ;;  %14637 = vmatprep.subr.bf16.mxu1 %v21368_v61  ;;  %v15383_v58 = vpop.eup %15382  ;;  %v9459_v32 = vmul.f32 %v15381_v15, %v19722_v29  ;;  %v15463_v15 = vld [vmem:[%s16073_s14 + $0x10] sm:$0xff] }
 0xe3b   : > { %14589 = vmatpush3.bf16.msra.mxu0 %v10137_v20  ;;  %14590 = vmatprep.mubr.msk.bf16.mxu0 %vm15776_vm0, %v21094_v21  ;;  %v9458_v28 = vmul.f32 %v15383_v58, %v19716_v2 }
 0xe3c   : > { %14600 = vmatprep.subr.bf16.mxu0 %v21367_v47 }
 0xe3d   : > { %14639 = vmatpush3.bf16.msra.mxu1 %v21368_v61  ;;  %v9476_v27 = vpack.c.bf16 %v9459_v32, %v9458_v28  ;;  %v15464_v28 = vld [vmem:[%s16073_s14 + $0x8] sm:$0xff] }
 0xe42   : > { %14591 = vmatmul.mubr.msk.bf16.vlgmr.msra.gmra.mxu0 %vm2474_vm2, %v9476_v27  ;;  %v21372_v27 = vld [vmem:[#allocation93_spill] sm:$0xff] }
 0xe43   : > { %14601 = vmatpush3.bf16.msra.mxu0 %v21367_v47  ;;  %14604 = vmatprep.mubr.msk.bf16.mxu0 %vm1689_vm1, %v10230_v38  ;;  %v19887_v47 = vrot.slane %v19884_v1, %v10529_v42  ;;  %v15470_v42 = vld [vmem:[%s16073_s14 + $0x40] sm:$0xff] }
 0xe44   : > { %14602 = vmatprep.subr.bf16.mxu0 %v21368_v61 }
 0xe47   : > { %14603 = vmatpush3.bf16.msra.mxu0 %v21368_v61 }
 0xe4a   : > { %14605 = vmatmul.mubr.msk.bf16.vlgmr.msra.gmra.mxu0 %vm1689_vm1, %v10231_v19 }
 0xe4b   : > { %14608 = vmatprep.mubr.msk.bf16.mxu0 %vm1689_vm1, %v10232_v12 }
 0xe52   : > { %14609 = vmatmul.mubr.msk.bf16.gmra.mxu0 %vm1689_vm1, %v10233_v43 }
 0xe53   : > { %14612 = vmatprep.mubr.msk.bf16.mxu0 %vm1689_vm1, %v10234_v4 }
 0xe5a   : > { %14613 = vmatmul.mubr.msk.bf16.gmra.mxu0 %vm1689_vm1, %v10235_v5 }
 0xe5b   : > { %14616 = vmatprep.mubr.msk.bf16.mxu0 %vm1689_vm1, %v10236_v8 }
 0xe62   : > { %14617 = vmatmul.mubr.msk.bf16.gmra.mxu0 %vm1689_vm1, %v10237_v52 }
 0xeae   : > { %v10035_v21 = vpop.f32.mrf.mxu1 }
 0xeb0   : > { %v14574_v2 = vpop.f32.mrf.mxu1 }
 0xeb2   : > { %v10038_v29 = vpop.f32.mrf.mxu1 }
 0xeb3   : > { %v10241_v39 = vpack.c.bf16 %v10038_v29, %v10035_v21  ;;  %v21373_v21 = vld [vmem:[#allocation100_spill] sm:$0xff] }
 0xeb4   : > { %v14575_v60 = vpop.f32.mrf.mxu1  ;;  %v5922_v2 = vadd.f32 %v21373_v21, %v21372_v27 }
 0xebd   : > { %v9894_v38 = vpop.f32.mrf.mxu0 }
 0xebf   : > { %v14556_v46 = vpop.f32.mrf.mxu0 }
 0xec1   : > { %v9897_v59 = vpop.f32.mrf.mxu0 }
 0xec2   : > { %v10238_v19 = vpack.c.bf16 %v9897_v59, %v9894_v38 }
 0xec3   : > { %v14557_v54 = vpop.f32.mrf.mxu0 }
 0xec4   : > { %14620 = vmatprep.mubr.msk.bf16.mxu1 %vm1689_vm1, %v10238_v19  ;;  %v8235_v19 = vadd.f32 %v19347_v51, %v5922_v2  ;;  %v21375_v51 = vld [vmem:[#allocation96_spill] sm:$0xff] }
 0xec5   : > { %14621 = vmatmul.mubr.msk.bf16.vlgmr.msra.gmra.mxu1 %vm1689_vm1, %v10239_v57 }
 0xef0   : > { %v10129_v33 = vpop.f32.mrf.mxu1 }
 0xef2   : > { %v14586_v12 = vpop.f32.mrf.mxu1  ;;  %v9988_v56 = vpop.f32.mrf.mxu0 }
 0xef3   : > { %v15466_v12 = vld [vmem:[%s16073_s14 + $0x20] sm:$0xff] }
 0xef4   : > { %v10132_v22 = vpop.f32.mrf.mxu1  ;;  %v14568_v43 = vpop.f32.mrf.mxu0 }
 0xef5   : > { %v10243_v9 = vpack.c.bf16 %v10132_v22, %v10129_v33 }
 0xef6   : > { %v14587_v30 = vpop.f32.mrf.mxu1  ;;  %v9991_v48 = vpop.f32.mrf.mxu0 }
 0xef7   : > { %v10240_v4 = vpack.c.bf16 %v9991_v48, %v9988_v56  ;;  %v21374_v56 = vld [vmem:[#allocation68_spill] sm:$0xff] }
 0xef8   : > { %v10223_v6 = vpop.f32.mrf.mxu1  ;;  %v14569_v11 = vpop.f32.mrf.mxu0 }
 0xef9   : > { %14624 = vmatprep.mubr.msk.bf16.mxu1 %vm1689_vm1, %v10240_v4  ;;  %v15467_v4 = vld [vmem:[%s16073_s14 + $0x28] sm:$0xff]  ;;  %v21376_v11 = vld [vmem:[#allocation106_spill] sm:$0xff] }
 0xefa   : > { %v14598_v5 = vpop.f32.mrf.mxu1  ;;  %v10082_v16 = vpop.f32.mrf.mxu0  ;;  %14625 = vmatmul.mubr.msk.bf16.gmra.mxu1 %vm1689_vm1, %v10241_v39  ;;  %v15465_v39 = vld [vmem:[%s16073_s14 + $0x18] sm:$0xff] }
 0xefb   : > { %v5938_v5 = vadd.f32 %v21376_v11, %v21375_v51  ;;  %v15477_v51 = vld [vmem:[%s16073_s14 + $0x78] sm:$0xff] }
 0xefc   : > { %v10226_v40 = vpop.f32.mrf.mxu1  ;;  %v14580_v8 = vpop.f32.mrf.mxu0 }
 0xefd   : > { %v10245_v55 = vpack.c.bf16 %v10226_v40, %v10223_v6  ;;  %v15469_v8 = vld [vmem:[%s16073_s14 + $0x38] sm:$0xff] }
 0xefe   : > { %v14599_v3 = vpop.f32.mrf.mxu1  ;;  %v10085_v25 = vpop.f32.mrf.mxu0 }
 0xeff   : > { %v10242_v52 = vpack.c.bf16 %v10085_v25, %v10082_v16  ;;  %v15468_v16 = vld [vmem:[%s16073_s14 + $0x30] sm:$0xff]  ;;  %v21377_v25 = vld [vmem:[#allocation37_spill] sm:$0xff] }
 0xf00   : > { %v14581_v37 = vpop.f32.mrf.mxu0 }
 0xf01   : > { %14628 = vmatprep.mubr.msk.bf16.mxu1 %vm1689_vm1, %v10242_v52 }
 0xf02   : > { %v10176_v57 = vpop.f32.mrf.mxu0  ;;  %14629 = vmatmul.mubr.msk.bf16.gmra.mxu1 %vm1689_vm1, %v10243_v9 }
 0xf04   : > { %v14592_v13 = vpop.f32.mrf.mxu0 }
 0xf05   : > { %v21378_v13 = vld [vmem:[#allocation40_spill] sm:$0xff] }
 0xf06   : > { %v10179_v23 = vpop.f32.mrf.mxu0 }
 0xf07   : > { %v10244_v50 = vpack.c.bf16 %v10179_v23, %v10176_v57  ;;  %v8239_v23 = vadd.f32 %v21378_v13, %v5938_v5  ;;  %v21391_v13 = vld [vmem:[#allocation38_spill] sm:$0xff] }
 0xf08   : > { %v14593_v17 = vpop.f32.mrf.mxu0 }
 0xf09   : > { %14632 = vmatprep.mubr.msk.bf16.mxu1 %vm1689_vm1, %v10244_v50  ;;  %v21379_v50 = vld [vmem:[#allocation69_spill] sm:$0xff] }
 0xf0a   : > { %v14606_v53 = vpop.f32.mrf.mxu0  ;;  %14633 = vmatmul.mubr.msk.bf16.gmra.mxu1 %vm1689_vm1, %v10245_v55 }
 0xf0b   : > { %v10465_v24 = vadd.f32 %v14606_v53, %v19325_v31 }
 0xf0c   : > { %v10336_v20 = vpop.f32.mrf.mxu0 }
 0xf0d   : > { %v10463_v34 = vadd.f32 %v10336_v20, %v19329_v26  ;;  %v10497_v61 = vadd.f32 %v15463_v15, %v10465_v24  ;;  %v15472_v15 = vld [vmem:[%s16073_s14 + $0x50] sm:$0xff] }
 0xf0e   : > { %v14607_v63 = vpop.f32.mrf.mxu0 }
 0xf0f   : > { %v10495_v44 = vadd.f32 %v15461_v45, %v10463_v34  ;;  %v10466_v58 = vadd.f32 %v14607_v63, %v19331_v41  ;;  %v19901_v41 = vadd.f32 %v19887_v47, %v10497_v61  ;;  %v15471_v63 = vld [vmem:[%s16073_s14 + $0x48] sm:$0xff]  ;;  %v21381_v45 = vld [vmem:[#allocation110_spill] sm:$0xff] }
 0xf10   : > { %v10339_v36 = vpop.f32.mrf.mxu0 }
 0xf11   : > { %v10464_v32 = vadd.f32 %v10339_v36, %v8231_v49  ;;  %v19892_v31 = vadd.f32 %v19887_v47, %v10495_v44  ;;  %v10498_v60 = vadd.f32 %v15465_v39, %v10466_v58  ;;  %v21382_v44 = vld [vmem:[#allocation73_spill] sm:$0xff] }
 0xf12   : > { %v14610_v26 = vpop.f32.mrf.mxu0  ;;  %v5954_v36 = vadd.f32 %v21382_v44, %v21381_v45 }
 0xf13   : > { %v10496_v7 = vadd.f32 %v15464_v28, %v10464_v32  ;;  %10563 = vadd.xlane.f32.xlu0 %v19892_v31  ;;  %v10469_v54 = vadd.f32 %v14610_v26, %v19339_v18  ;;  %v19913_v30 = vadd.f32 %v19887_v47, %v10498_v60  ;;  %v15473_v32 = vld [vmem:[%s16073_s14 + $0x58] sm:$0xff] }
 0xf14   : > { %v10352_v29 = vpop.f32.mrf.mxu0  ;;  %v21383_v28 = vld [vmem:[#allocation119_spill] sm:$0xff] }
 0xf15   : > { %v10467_v38 = vadd.f32 %v10352_v29, %v19343_v10  ;;  %v19904_v46 = vadd.f32 %v19887_v47, %v10496_v7  ;;  %v10501_v18 = vadd.f32 %v15468_v16, %v10469_v54  ;;  %v21384_v29 = vld [vmem:[#allocation50_spill] sm:$0xff]  ;;  %v21385_v60 = vld [vmem:[#allocation47_spill] sm:$0xff]  ;;  %v15474_v54 = vld [vmem:[%s16073_s14 + $0x60] sm:$0xff] }
 0xf16   : > { %v14611_v59 = vpop.f32.mrf.mxu0  ;;  %v8243_v39 = vadd.f32 %v21384_v29, %v5954_v36 }
 0xf17   : > { %10567 = vadd.xlane.f32.xlu0 %v19901_v41  ;;  %10565 = vadd.xlane.f32.xlu1 %v19904_v46  ;;  %v10499_v10 = vadd.f32 %v15466_v12, %v10467_v38  ;;  %v10470_v22 = vadd.f32 %v14611_v59, %v21374_v56  ;;  %v19933_v53 = vadd.f32 %v19887_v47, %v10501_v18  ;;  %v21386_v12 = vld [vmem:[#allocation36_spill] sm:$0xff] }
 0xf18   : > { %v10355_v33 = vpop.f32.mrf.mxu0 }
 0xf19   : > { %v10468_v43 = vadd.f32 %v10355_v33, %v8235_v19  ;;  %v10502_v3 = vadd.f32 %v15469_v8, %v10470_v22  ;;  %v19923_v9 = vadd.f32 %v19887_v47, %v10499_v10 }
 0xf1a   : > { %v14614_v48 = vpop.f32.mrf.mxu0 }
 0xf1b   : > { %v10500_v6 = vadd.f32 %v15467_v4, %v10468_v43  ;;  %10569 = vadd.xlane.f32.xlu0 %v19913_v30  ;;  %v10473_v55 = vadd.f32 %v14614_v48, %v21379_v50  ;;  %v19938_v24 = vadd.f32 %v19887_v47, %v10502_v3  ;;  %v15475_v43 = vld [vmem:[%s16073_s14 + $0x68] sm:$0xff]  ;;  %v15476_v4 = vld [vmem:[%s16073_s14 + $0x70] sm:$0xff] }
 0xf1c   : > { %v10368_v40 = vpop.f32.mrf.mxu0  ;;  %v21392_v50 = vld [vmem:[#allocation49_spill] sm:$0xff] }
 0xf1d   : > { %v10471_v52 = vadd.f32 %v10368_v40, %v21377_v25  ;;  %v19926_v37 = vadd.f32 %v19887_v47, %v10500_v6  ;;  %v10505_v61 = vadd.f32 %v15472_v15, %v10473_v55  ;;  %v21389_v25 = vld [vmem:[#allocation114_spill] sm:$0xff]  ;;  %v15480_v15 = vld [vmem:[%s16073_s14 + $0x88] sm:$0xff] }
 0xf1e   : > { %v14615_v57 = vpop.f32.mrf.mxu0 }
 0xf1f   : > { %10571 = vadd.xlane.f32.xlu0 %v19923_v9  ;;  %10573 = vadd.xlane.f32.xlu1 %v19926_v37  ;;  %v10503_v20 = vadd.f32 %v15470_v42, %v10471_v52  ;;  %v10474_v62 = vadd.f32 %v14615_v57, %v21380_v14  ;;  %v19959_v19 = vadd.f32 %v19887_v47, %v10505_v61  ;;  %v21390_v52 = vld [vmem:[#allocation35_spill] sm:$0xff]  ;;  %v15478_v14 = vld [vmem:[%s16073_s14 + $0x80] sm:$0xff] }
 0xf20   : > { %v10371_v17 = vpop.f32.mrf.mxu0  ;;  %v5970_v57 = vadd.f32 %v21390_v52, %v21389_v25  ;;  %v21393_v42 = vld [vmem:[#allocation39_spill] sm:$0xff] }
 0xf21   : > { %v10472_v0 = vadd.f32 %v10371_v17, %v8239_v23  ;;  %v10506_v26 = vadd.f32 %v15473_v32, %v10474_v62  ;;  %v19949_v27 = vadd.f32 %v19887_v47, %v10503_v20  ;;  %v568_v52 = vld [vmem:[%s16065_s27 + $0x1b8] sm:$0xff] }
 0xf22   : > { %v14618_v34 = vpop.f32.mrf.mxu0  ;;  %v8247_v20 = vadd.f32 %v21393_v42, %v5970_v57 }
 0xf23   : > { %v10504_v49 = vadd.f32 %v15471_v63, %v10472_v0  ;;  %10575 = vadd.xlane.f32.xlu0 %v19933_v53  ;;  %10577 = vadd.xlane.f32.xlu1 %v19938_v24  ;;  %v10477_v38 = vadd.f32 %v14618_v34, %v21385_v60  ;;  %v19964_v22 = vadd.f32 %v19887_v47, %v10506_v26  ;;  %v15479_v34 = vld [vmem:[%s16073_s14 + $0x90] sm:$0xff] }
 0xf24   : > { %v10384_v58 = vpop.f32.mrf.mxu0 }
 0xf25   : > { %v10475_v7 = vadd.f32 %v10384_v58, %v21383_v28  ;;  %v19952_v21 = vadd.f32 %v19887_v47, %v10504_v49  ;;  %v10509_v6 = vadd.f32 %v15476_v4, %v10477_v38  ;;  %v21394_v49 = vld [vmem:[#allocation123_spill] sm:$0xff] }
 0xf26   : > { %v14619_v2 = vpop.f32.mrf.mxu0  ;;  %v15481_v58 = vld [vmem:[%s16073_s14 + $0x98] sm:$0xff] }
 0xf27   : > { %10579 = vadd.xlane.f32.xlu0 %v19949_v27  ;;  %10581 = vadd.xlane.f32.xlu1 %v19952_v21  ;;  %v10507_v33 = vadd.f32 %v15474_v54, %v10475_v7  ;;  %v10478_v10 = vadd.f32 %v14619_v2, %v21386_v12  ;;  %v19980_v18 = vadd.f32 %v19887_v47, %v10509_v6  ;;  %v571_v12 = vld [vmem:[%s16065_s27 + $0x1d0] sm:$0xff]  ;;  %v576_v4 = vld [vmem:[%s16065_s27 + $0x1f8] sm:$0xff] }
 0xf28   : > { %v10387_v59 = vpop.f32.mrf.mxu0 }
 0xf29   : > { %v10476_v56 = vadd.f32 %v10387_v59, %v8243_v39  ;;  %v10510_v11 = vadd.f32 %v15477_v51, %v10478_v10  ;;  %v19972_v5 = vadd.f32 %v19887_v47, %v10507_v33  ;;  %21387 = vst [vmem:[#allocation58_spill] sm:$0xff] %v19980_v18  ;;  %v575_v10 = vld [vmem:[%s16065_s27 + $0x1f0] sm:$0xff] }
 0xf2b   : > { %v10508_v48 = vadd.f32 %v15475_v43, %v10476_v56  ;;  %10583 = vadd.xlane.f32.xlu0 %v19959_v19  ;;  %10585 = vadd.xlane.f32.xlu1 %v19964_v22  ;;  %v19983_v40 = vadd.f32 %v19887_v47, %v10510_v11  ;;  %v572_v56 = vld [vmem:[%s16065_s27 + $0x1d8] sm:$0xff]  ;;  %v12906_v43 = vcombine.low %v571_v12, %v575_v10  ;;  %v563_v11 = vld [vmem:[%s16065_s27 + $0x190] sm:$0xff] }
 0xf2c   : > { %v12908_v6 = vcombine.low %v572_v56, %v576_v4  ;;  %v12909_v51 = vcombine.high %v572_v56, %v576_v4 }
 0xf2d   : > { %v19975_v16 = vadd.f32 %v19887_v47, %v10508_v48  ;;  %21388 = vst [vmem:[#allocation56_spill] sm:$0xff] %v19983_v40  ;;  %v12907_v48 = vcombine.high %v571_v12, %v575_v10  ;;  %v544_v10 = vld [vmem:[%s16065_s27 + $0xf8] sm:$0xff] }
 0xf2e   : > { %11378 = vmatprep.subr.bf16.mxu0 %v12909_v51  ;;  %v21400_v51 = vld [vmem:[#allocation76_spill] sm:$0xff] }
 0xf2f   : > { %10587 = vadd.xlane.f32.xlu0 %v19972_v5  ;;  %10589 = vadd.xlane.f32.xlu1 %v19975_v16 }
 0xf30   : > { %11185 = vmatprep.subr.bf16.mxu1 %v12907_v48  ;;  %11379 = vmatpush1.bf16.msra.mxu0 %v12908_v6  ;;  %v21399_v6 = vld [vmem:[#allocation118_spill] sm:$0xff] }
 0xf31   : > { %11186 = vmatpush1.bf16.msra.mxu1 %v12906_v43 }
 0xf33   : > { %10591 = vadd.xlane.f32.xlu0 %v19980_v18  ;;  %10593 = vadd.xlane.f32.xlu1 %v19983_v40 }
 0xf85   : > { %v14622_v8 = vpop.f32.mrf.mxu1 }
 0xf86   : > { %v10481_v23 = vadd.f32 %v14622_v8, %v21391_v13  ;;  %v567_v8 = vld [vmem:[%s16065_s27 + $0x1b0] sm:$0xff] }
 0xf87   : > { %v10400_v3 = vpop.f32.mrf.mxu1  ;;  %v12903_v25 = vcombine.high %v563_v11, %v567_v8  ;;  %v12902_v57 = vcombine.low %v563_v11, %v567_v8  ;;  %v5986_v11 = vadd.f32 %v21400_v51, %v21399_v6  ;;  %v21401_v8 = vld [vmem:[#allocation42_spill] sm:$0xff] }
 0xf88   : > { %v10479_v55 = vadd.f32 %v10400_v3, %v21392_v50  ;;  %v10513_v63 = vadd.f32 %v15479_v34, %v10481_v23  ;;  %v564_v3 = vld [vmem:[%s16065_s27 + $0x198] sm:$0xff]  ;;  %v555_v50 = vld [vmem:[%s16065_s27 + $0x150] sm:$0xff] }
 0xf89   : > { %v14623_v17 = vpop.f32.mrf.mxu1  ;;  %v12904_v13 = vcombine.low %v564_v3, %v568_v52  ;;  %v12905_v23 = vcombine.high %v564_v3, %v568_v52  ;;  %11187 = vmatprep.subr.bf16.mxu1 %v12903_v25  ;;  %v531_v52 = vld [vmem:[%s16065_s27 + $0x90] sm:$0xff] }
 0xf8a   : > { %v10511_v62 = vadd.f32 %v15478_v14, %v10479_v55  ;;  %v10482_v45 = vadd.f32 %v14623_v17, %v21394_v49  ;;  %v20002_v26 = vadd.f32 %v19887_v47, %v10513_v63  ;;  %11188 = vmatpush1.bf16.msra.mxu1 %v12902_v57  ;;  %v559_v55 = vld [vmem:[%s16065_s27 + $0x170] sm:$0xff]  ;;  %v556_v17 = vld [vmem:[%s16065_s27 + $0x158] sm:$0xff] }
 0xf8b   : > { %v10403_v0 = vpop.f32.mrf.mxu1  ;;  %11380 = vmatprep.subr.bf16.mxu0 %v12905_v23  ;;  %v12899_v42 = vcombine.high %v555_v50, %v559_v55  ;;  %v547_v63 = vld [vmem:[%s16065_s27 + $0x110] sm:$0xff]  ;;  %v21402_v23 = vld [vmem:[#allocation127_spill] sm:$0xff] }
 0xf8c   : > { %v10480_v44 = vadd.f32 %v10403_v0, %v8247_v20  ;;  %v19996_v36 = vadd.f32 %v19887_v47, %v10511_v62  ;;  %v10514_v32 = vadd.f32 %v15481_v58, %v10482_v45  ;;  %21396 = vst [vmem:[#allocation57_spill] sm:$0xff] %v20002_v26  ;;  %11381 = vmatpush1.bf16.msra.mxu0 %v12904_v13  ;;  %v560_v20 = vld [vmem:[%s16065_s27 + $0x178] sm:$0xff]  ;;  %v551_v49 = vld [vmem:[%s16065_s27 + $0x130] sm:$0xff] }
 0xf8d   : > { %v12898_v62 = vcombine.low %v555_v50, %v559_v55  ;;  %v12900_v0 = vcombine.low %v556_v17, %v560_v20  ;;  %v12901_v34 = vcombine.high %v556_v17, %v560_v20  ;;  %11189 = vmatprep.subr.bf16.mxu1 %v12899_v42  ;;  %v548_v45 = vld [vmem:[%s16065_s27 + $0x118] sm:$0xff]  ;;  %v535_v57 = vld [vmem:[%s16065_s27 + $0xb0] sm:$0xff]  ;;  %v8251_v50 = vadd.f32 %v21402_v23, %v5986_v11  ;;  %v15482_v42 = vld [vmem:[%s16073_s14 + $0xa0] sm:$0xff] }
 0xf8e   : > { %21395 = vst [vmem:[#allocation60_spill] sm:$0xff] %v19996_v36  ;;  %v10512_v61 = vadd.f32 %v15480_v15, %v10480_v44  ;;  %10595 = vadd.xlane.f32.xlu0 %v19996_v36  ;;  %v20010_v7 = vadd.f32 %v19887_v47, %v10514_v32  ;;  %v12895_v44 = vcombine.high %v547_v63, %v551_v49  ;;  %v552_v15 = vld [vmem:[%s16065_s27 + $0x138] sm:$0xff]  ;;  %v515_v23 = vld [vmem:[%s16065_s27 + $0x10] sm:$0xff] }
 0xf8f   : > { %11382 = vmatprep.subr.bf16.mxu0 %v12901_v34  ;;  %11190 = vmatpush1.bf16.msra.mxu1 %v12898_v62  ;;  %v12896_v58 = vcombine.low %v548_v45, %v552_v15  ;;  %v12897_v32 = vcombine.high %v548_v45, %v552_v15  ;;  %v532_v13 = vld [vmem:[%s16065_s27 + $0x98] sm:$0xff]  ;;  %v12887_v45 = vcombine.high %v531_v52, %v535_v57 }
 0xf90   : > { %v20005_v28 = vadd.f32 %v19887_v47, %v10512_v61  ;;  %21398 = vst [vmem:[#allocation62_spill] sm:$0xff] %v20010_v7  ;;  %11383 = vmatpush1.bf16.msra.mxu0 %v12900_v0  ;;  %v12894_v61 = vcombine.low %v547_v63, %v551_v49  ;;  %11191 = vmatprep.subr.bf16.mxu1 %v12895_v44  ;;  %v21403_v0 = vld [vmem:[#allocation51_spill] sm:$0xff] }
 0xf91   : > { %11384 = vmatprep.subr.bf16.mxu0 %v12897_v32  ;;  %v12886_v49 = vcombine.low %v531_v52, %v535_v57 }
 0xf92   : > { %21397 = vst [vmem:[#allocation131_spill] sm:$0xff] %v20005_v28  ;;  %10599 = vadd.xlane.f32.xlu0 %v20002_v26  ;;  %10597 = vadd.xlane.f32.xlu1 %v20005_v28 }
 0xf93   : > { %11192 = vmatpush1.bf16.msra.mxu1 %v12894_v61 }
 0xf94   : > { %11385 = vmatpush1.bf16.msra.mxu0 %v12896_v58 }
 0xf96   : > { %10601 = vadd.xlane.f32.xlu1 %v20010_v7 }
 0xf9c   : > { %v10564_v2 = vpop.xlane.xlu0 %10563 }
 0xf9d   : > { %v10627_v29 = vmul.f32 0.0078125, %v10564_v2 }
 0xf9f   : > { %v20014_v39 = vsub.f32 %v19892_v31, %v10627_v29 }
 0xfa0   : > { %v10566_v60 = vpop.xlane.xlu1 %10565  ;;  %v10568_v14 = vpop.xlane.xlu0 %10567 }
 0xfa1   : > { %v10628_v38 = vmul.f32 0.0078125, %v10566_v60  ;;  %v10691_v59 = vmul.f32 %v20014_v39, %v20014_v39  ;;  %v539_v60 = vld [vmem:[%s16065_s27 + $0xd0] sm:$0xff] }
 0xfa3   : > { %v20019_v54 = vsub.f32 %v19904_v46, %v10628_v38  ;;  %10723 = vadd.xlane.f32.xlu0 %v10691_v59  ;;  %v543_v38 = vld [vmem:[%s16065_s27 + $0xf0] sm:$0xff]  ;;  %v540_v59 = vld [vmem:[%s16065_s27 + $0xd8] sm:$0xff] }
 0xfa4   : > { %v10570_v2 = vpop.xlane.xlu0 %10569  ;;  %v12891_v12 = vcombine.high %v539_v60, %v543_v38  ;;  %v12890_v43 = vcombine.low %v539_v60, %v543_v38  ;;  %v12892_v48 = vcombine.low %v540_v59, %v544_v10  ;;  %v12893_v4 = vcombine.high %v540_v59, %v544_v10  ;;  %v527_v60 = vld [vmem:[%s16065_s27 + $0x70] sm:$0xff]  ;;  %v524_v38 = vld [vmem:[%s16065_s27 + $0x58] sm:$0xff] }
 0xfa5   : > { %v10692_v33 = vmul.f32 %v20019_v54, %v20019_v54  ;;  %v10630_v17 = vmul.f32 0.0078125, %v10570_v2  ;;  %v523_v2 = vld [vmem:[%s16065_s27 + $0x50] sm:$0xff] }
 0xfa6   : > { %11193 = vmatprep.subr.bf16.mxu1 %v12891_v12  ;;  %11386 = vmatprep.subr.bf16.mxu0 %v12893_v4  ;;  %v12882_v6 = vcombine.low %v523_v2, %v527_v60  ;;  %v12883_v51 = vcombine.high %v523_v2, %v527_v60  ;;  %v15485_v60 = vld [vmem:[%s16073_s14 + $0xb8] sm:$0xff] }
 0xfa7   : > { %10725 = vadd.xlane.f32.xlu1 %v10692_v33  ;;  %v10629_v33 = vmul.f32 0.0078125, %v10568_v14  ;;  %11194 = vmatpush1.bf16.msra.mxu1 %v12890_v43  ;;  %v536_v14 = vld [vmem:[%s16065_s27 + $0xb8] sm:$0xff]  ;;  %v20065_v59 = vsub.f32 %v19913_v30, %v10630_v17  ;;  %v15484_v43 = vld [vmem:[%s16073_s14 + $0xb0] sm:$0xff] }
 0xfa8   : > { %11387 = vmatpush1.bf16.msra.mxu0 %v12892_v48  ;;  %v10572_v62 = vpop.xlane.xlu0 %10571  ;;  %v12888_v61 = vcombine.low %v532_v13, %v536_v14  ;;  %11195 = vmatprep.subr.bf16.mxu1 %v12887_v45  ;;  %v12889_v32 = vcombine.high %v532_v13, %v536_v14  ;;  %v516_v17 = vld [vmem:[%s16065_s27 + $0x18] sm:$0xff] }
 0xfa9   : > { %v20051_v55 = vsub.f32 %v19901_v41, %v10629_v33  ;;  %v15483_v33 = vld [vmem:[%s16073_s14 + $0xa8] sm:$0xff]  ;;  %v520_v14 = vld [vmem:[%s16065_s27 + $0x38] sm:$0xff] }
 0xfaa   : > { %11388 = vmatprep.subr.bf16.mxu0 %v12889_v32  ;;  %v20922_v32 = vmov 0  }
 0xfab   : > { %v10693_v10 = vmul.f32 %v20051_v55, %v20051_v55  ;;  %11196 = vmatpush1.bf16.msra.mxu1 %v12886_v49  ;;  %11217 = vmatprep.mubr.bf16.mxu1 %v20922_v32 }
 0xfac   : > { %11389 = vmatpush1.bf16.msra.mxu0 %v12888_v61  ;;  %11197 = vmatprep.subr.bf16.mxu1 %v12883_v51  ;;  %v12881_v61 = vcombine.high %v516_v17, %v520_v14  ;;  %v10576_v2 = vpop.xlane.xlu0 %10575 }
 0xfad   : > { %11410 = vmatprep.mubr.bf16.mxu0 %v20922_v32 }
 0xfaf   : > { %11198 = vmatpush1.bf16.msra.mxu1 %v12882_v6  ;;  %v10633_v6 = vmul.f32 0.0078125, %v10576_v2 }
 0xfba   : > { %v14626_v29 = vpop.f32.mrf.mxu1 }
 0xfbb   : > { %v10485_v34 = vadd.f32 %v14626_v29, %v21403_v0  ;;  %v10631_v29 = vmul.f32 0.0078125, %v10572_v62  ;;  %v21407_v62 = vld [vmem:[#allocation124_spill] sm:$0xff]  ;;  %v21408_v0 = vld [vmem:[#allocation81_spill] sm:$0xff] }
 0xfbc   : > { %v10416_v56 = vpop.f32.mrf.mxu1 }
 0xfbd   : > { %v10483_v3 = vadd.f32 %v10416_v56, %v21401_v8  ;;  %v528_v56 = vld [vmem:[%s16065_s27 + $0x78] sm:$0xff]  ;;  %v10517_v48 = vadd.f32 %v15484_v43, %v10485_v34  ;;  %v10574_v8 = vpop.xlane.xlu1 %10573  ;;  %v6002_v34 = vadd.f32 %v21408_v0, %v21407_v62  ;;  %v15487_v0 = vld [vmem:[%s16073_s14 + $0xc8] sm:$0xff] }
 0xfbe   : > { %v14627_v25 = vpop.f32.mrf.mxu1  ;;  %v12885_v11 = vcombine.high %v524_v38, %v528_v56  ;;  %v12884_v13 = vcombine.low %v524_v38, %v528_v56  ;;  %v10632_v49 = vmul.f32 0.0078125, %v10574_v8  ;;  %v21411_v56 = vld [vmem:[#allocation46_spill] sm:$0xff] }
 0xfbf   : > { %v10515_v20 = vadd.f32 %v15482_v42, %v10483_v3  ;;  %v21405_v3 = vld [vmem:[#allocation52_spill] sm:$0xff]  ;;  %v20090_v45 = vadd.f32 %v19887_v47, %v10517_v48  ;;  %v8255_v43 = vadd.f32 %v21411_v56, %v6002_v34  ;;  %v21417_v56 = vld [vmem:[#allocation129_spill] sm:$0xff] }
 0xfc0   : > { %v10419_v63 = vpop.f32.mrf.mxu1  ;;  %v10486_v52 = vadd.f32 %v14627_v25, %v21405_v3  ;;  %11390 = vmatprep.subr.bf16.mxu0 %v12885_v11  ;;  %v10694_v25 = vmul.f32 %v20065_v59, %v20065_v59  ;;  %v20099_v48 = vsub.f32 %v19926_v37, %v10632_v49 }
 0xfc1   : > { %v10484_v44 = vadd.f32 %v10419_v63, %v8251_v50  ;;  %v20057_v15 = vadd.f32 %v19887_v47, %v10515_v20  ;;  %v519_v50 = vld [vmem:[%s16065_s27 + $0x30] sm:$0xff]  ;;  %v20084_v63 = vsub.f32 %v19923_v9, %v10631_v29  ;;  %21409 = vst [vmem:[#allocation63_spill] sm:$0xff] %v20090_v45  ;;  %11391 = vmatpush1.bf16.msra.mxu0 %v12884_v13  ;;  %v10578_v51 = vpop.xlane.xlu1 %10577 }
 0xfc2   : > { %v20059_v58 = vpop.f32.mrf.mxu1  ;;  %v12879_v20 = vcombine.high %v515_v23, %v519_v50  ;;  %v10518_v38 = vadd.f32 %v15485_v60, %v10486_v52  ;;  %v21410_v29 = vld [vmem:[#allocation54_spill] sm:$0xff]  ;;  %11392 = vmatprep.subr.bf16.mxu0 %v12881_v61 }
 0xfc3   : > { %21404 = vst [vmem:[#allocation59_spill] sm:$0xff] %v20057_v15  ;;  %v10516_v12 = vadd.f32 %v15483_v33, %v10484_v44  ;;  %10603 = vadd.xlane.f32.xlu0 %v20057_v15  ;;  %v12878_v44 = vcombine.low %v515_v23, %v519_v50  ;;  %v10695_v3 = vmul.f32 %v20084_v63, %v20084_v63  ;;  %v10634_v23 = vmul.f32 0.0078125, %v10578_v51  ;;  %v15488_v60 = vld [vmem:[%s16073_s14 + $0xd0] sm:$0xff] }
 0xfc4   : > { %v10432_v4 = vpop.f32.mrf.mxu1  ;;  %11199 = vmatprep.subr.bf16.mxu1 %v12879_v20  ;;  %v20105_v52 = vadd.f32 %v19887_v47, %v10518_v38  ;;  %v10696_v50 = vmul.f32 %v20099_v48, %v20099_v48  ;;  %v10580_v20 = vpop.xlane.xlu0 %10579 }
 0xfc5   : > { %v20075_v57 = vadd.f32 %v19887_v47, %v10516_v12  ;;  %v10487_v33 = vadd.f32 %v10432_v4, %v21410_v29  ;;  %v12880_v12 = vcombine.low %v516_v17, %v520_v14  ;;  %11200 = vmatpush1.bf16.msra.mxu1 %v12878_v44  ;;  %v15486_v4 = vld [vmem:[%s16073_s14 + $0xc0] sm:$0xff]  ;;  %v20111_v17 = vsub.f32 %v19933_v53, %v10633_v6  ;;  %v21413_v14 = vld [vmem:[#allocation43_spill] sm:$0xff]  ;;  %v10582_v2 = vpop.xlane.xlu1 %10581  ;;  %v21415_v29 = vld [vmem:[#allocation133_spill] sm:$0xff] }
 0xfc6   : > { %v14631_v42 = vpop.f32.mrf.mxu1  ;;  %21412 = vst [vmem:[#allocation135_spill] sm:$0xff] %v20105_v52  ;;  %v10489_v62 = vadd.f32 %v20059_v58, %v21413_v14  ;;  %v20121_v44 = vsub.f32 %v19938_v24, %v10634_v23  ;;  %v10635_v61 = vmul.f32 0.0078125, %v10580_v20  ;;  %v10636_v51 = vmul.f32 0.0078125, %v10582_v2  ;;  %v21419_v23 = vld [vmem:[#allocation55_spill] sm:$0xff] }
 0xfc7   : > { %21406 = vst [vmem:[#allocation61_spill] sm:$0xff] %v20075_v57  ;;  %10727 = vadd.xlane.f32.xlu0 %v10693_v10  ;;  %10605 = vadd.xlane.f32.xlu1 %v20075_v57  ;;  %v10519_v11 = vadd.f32 %v15486_v4, %v10487_v33  ;;  %v10490_v33 = vadd.f32 %v14631_v42, %v21415_v29 }
 0xfc8   : > { %v10435_v10 = vpop.f32.mrf.mxu1  ;;  %11393 = vmatpush1.bf16.msra.mxu0 %v12880_v12  ;;  %v10521_v38 = vadd.f32 %v15488_v60, %v10489_v62  ;;  %v10697_v58 = vmul.f32 %v20111_v17, %v20111_v17  ;;  %v10698_v4 = vmul.f32 %v20121_v44, %v20121_v44  ;;  %v20136_v42 = vsub.f32 %v19949_v27, %v10635_v61  ;;  %v21420_v62 = vld [vmem:[#allocation130_spill] sm:$0xff]  ;;  %v15490_v60 = vld [vmem:[%s16073_s14 + $0xe0] sm:$0xff] }
 0xfc9   : > { %v10488_v8 = vadd.f32 %v10435_v10, %v8255_v43  ;;  %v21418_v43 = vld [vmem:[#allocation85_spill] sm:$0xff]  ;;  %v10586_v2 = vpop.xlane.xlu1 %10585 }
 0xfca   : > { %v14634_v13 = vpop.f32.mrf.mxu1  ;;  %v6018_v6 = vadd.f32 %v21418_v43, %v21417_v56  ;;  %v20141_v20 = vadd.f32 %v19887_v47, %v10521_v38 }
 0xfcb   : > { %10607 = vadd.xlane.f32.xlu0 %v20090_v45  ;;  %10729 = vadd.xlane.f32.xlu1 %v10694_v25  ;;  %v10520_v34 = vadd.f32 %v15487_v0, %v10488_v8  ;;  %v20117_v25 = vadd.f32 %v19887_v47, %v10519_v11  ;;  %v10584_v11 = vpop.xlane.xlu0 %10583  ;;  %v15489_v8 = vld [vmem:[%s16073_s14 + $0xd8] sm:$0xff] }
 0xfcc   : > { %v10448_v49 = vpop.f32.mrf.mxu1  ;;  %v8259_v0 = vadd.f32 %v21420_v62, %v6018_v6  ;;  %v10637_v61 = vmul.f32 0.0078125, %v10584_v11  ;;  %v15491_v11 = vld [vmem:[%s16073_s14 + $0xe8] sm:$0xff]  ;;  %v15492_v62 = vld [vmem:[%s16073_s14 + $0xf0] sm:$0xff] }
 0xfcd   : > { %21414 = vst [vmem:[#allocation134_spill] sm:$0xff] %v20117_v25  ;;  %v20128_v12 = vadd.f32 %v19887_v47, %v10520_v34  ;;  %v20146_v34 = vsub.f32 %v19952_v21, %v10636_v51  ;;  %v21422_v51 = vld [vmem:[#allocation132_spill] sm:$0xff] }
 0xfce   : > { %v14635_v10 = vpop.f32.mrf.mxu1  ;;  %v20158_v6 = vsub.f32 %v19959_v19, %v10637_v61  ;;  %v21423_v61 = vld [vmem:[#allocation53_spill] sm:$0xff] }
 0xfcf   : > { %10731 = vadd.xlane.f32.xlu0 %v10695_v3  ;;  %10609 = vadd.xlane.f32.xlu1 %v20105_v52  ;;  %21416 = vst [vmem:[#allocation86_spill] sm:$0xff] %v20128_v12  ;;  %v10522_v3 = vadd.f32 %v15489_v8, %v10490_v33  ;;  %v10588_v56 = vpop.xlane.xlu0 %10587  ;;  %v10700_v43 = vmul.f32 %v20146_v34, %v20146_v34 }
 0xfd0   : > { %v10451_v14 = vpop.f32.mrf.mxu1 }
 0xfd1   : > { %v10492_v33 = vadd.f32 %v10451_v14, %v8259_v0  ;;  %v20152_v38 = vadd.f32 %v19887_v47, %v10522_v3  ;;  %v10590_v14 = vpop.xlane.xlu1 %10589 }
 0xfd3   : > { %10611 = vadd.xlane.f32.xlu0 %v20117_v25  ;;  %10733 = vadd.xlane.f32.xlu1 %v10696_v50  ;;  %v10491_v50 = vadd.f32 %v10448_v49, %v21419_v23  ;;  %v10699_v49 = vmul.f32 %v20136_v42, %v20136_v42  ;;  %21421 = vst [vmem:[#allocation41_spill] sm:$0xff] %v20152_v38 }
 0xfd4   : > { %v10524_v8 = vadd.f32 %v15491_v11, %v10492_v33  ;;  %v10640_v33 = vmul.f32 0.0078125, %v10590_v14 }
 0xfd5   : > { %v10523_v29 = vadd.f32 %v15490_v60, %v10491_v50  ;;  %v10639_v50 = vmul.f32 0.0078125, %v10588_v56 }
 0xfd6   : > { %v20174_v60 = vadd.f32 %v19887_v47, %v10524_v8  ;;  %v20188_v11 = vsub.f32 %v19975_v16, %v10640_v33 }
 0xfd7   : > { %10735 = vadd.xlane.f32.xlu0 %v10697_v58  ;;  %10613 = vadd.xlane.f32.xlu1 %v20128_v12  ;;  %v10638_v58 = vmul.f32 0.0078125, %v10586_v2  ;;  %v20163_v23 = vadd.f32 %v19887_v47, %v10523_v29  ;;  %v10494_v2 = vadd.f32 %v14635_v10, %v21423_v61  ;;  %v10592_v29 = vpop.xlane.xlu0 %10591 }
 0xfd8   : > { %v10641_v56 = vmul.f32 0.0078125, %v10592_v29 }
 0xfd9   : > { %v20167_v3 = vsub.f32 %v19964_v22, %v10638_v58  ;;  %v20180_v58 = vsub.f32 %v19972_v5, %v10639_v50 }
 0xfda   : > { %v20191_v8 = vsub.f32 %v19980_v18, %v10641_v56 }
 0xfdb   : > { %10615 = vadd.xlane.f32.xlu0 %v20141_v20  ;;  %10737 = vadd.xlane.f32.xlu1 %v10698_v4  ;;  %v10493_v4 = vadd.f32 %v14634_v13, %v21422_v51  ;;  %v10701_v13 = vmul.f32 %v20158_v6, %v20158_v6  ;;  %v10703_v50 = vmul.f32 %v20180_v58, %v20180_v58 }
 0xfdc   : > { %v10705_v61 = vmul.f32 %v20191_v8, %v20191_v8 }
 0xfdd   : > { %v10525_v0 = vadd.f32 %v15492_v62, %v10493_v4  ;;  %v10594_v4 = vpop.xlane.xlu1 %10593 }
 0xfde   : > { %v10642_v14 = vmul.f32 0.0078125, %v10594_v4 }
 0xfdf   : > { %10739 = vadd.xlane.f32.xlu0 %v10699_v49  ;;  %10617 = vadd.xlane.f32.xlu1 %v20152_v38  ;;  %v10702_v49 = vmul.f32 %v20167_v3, %v20167_v3  ;;  %v20184_v51 = vadd.f32 %v19887_v47, %v10525_v0 }
 0xfe0   : > { %v20200_v0 = vsub.f32 %v19983_v40, %v10642_v14 }
 0xfe3   : > { %10619 = vadd.xlane.f32.xlu0 %v20163_v23  ;;  %10741 = vadd.xlane.f32.xlu1 %v10700_v43  ;;  %v15493_v43 = vld [vmem:[%s16073_s14 + $0xf8] sm:$0xff] }
 0xfe4   : > { %v10526_v10 = vadd.f32 %v15493_v43, %v10494_v2  ;;  %v10704_v2 = vmul.f32 %v20188_v11, %v20188_v11 }
 0xfe6   : > { %v20196_v62 = vadd.f32 %v19887_v47, %v10526_v10 }
 0xfe7   : > { %10743 = vadd.xlane.f32.xlu0 %v10701_v13  ;;  %10621 = vadd.xlane.f32.xlu1 %v20174_v60  ;;  %v10706_v13 = vmul.f32 %v20200_v0, %v20200_v0 }
 0xfe8   : > { %21424 = vst [vmem:[#allocation84_spill] sm:$0xff] %v20196_v62 }
 0xfeb   : > { %10623 = vadd.xlane.f32.xlu0 %v20184_v51  ;;  %10745 = vadd.xlane.f32.xlu1 %v10702_v49 }
 0xfef   : > { %10747 = vadd.xlane.f32.xlu0 %v10703_v50  ;;  %10625 = vadd.xlane.f32.xlu1 %v20196_v62 }
 0xff3   : > { %10751 = vadd.xlane.f32.xlu0 %v10705_v61  ;;  %10749 = vadd.xlane.f32.xlu1 %v10704_v2 }
 0xff7   : > { %10753 = vadd.xlane.f32.xlu1 %v10706_v13 }
0x1017   : > { %v10596_v47 = vpop.xlane.xlu0 %10595 }
0x1018   : > { %v10643_v29 = vmul.f32 0.0078125, %v10596_v47 }
0x101a   : > { %v20209_v33 = vsub.f32 %v19996_v36, %v10643_v29 }
0x101b   : > { %v10600_v49 = vpop.xlane.xlu0 %10599  ;;  %v10598_v56 = vpop.xlane.xlu1 %10597 }
0x101c   : > { %v10645_v43 = vmul.f32 0.0078125, %v10600_v49  ;;  %v10644_v10 = vmul.f32 0.0078125, %v10598_v56  ;;  %v10707_v4 = vmul.f32 %v20209_v33, %v20209_v33 }
0x101e   : > { %v20214_v14 = vsub.f32 %v20002_v26, %v10645_v43  ;;  %v20217_v50 = vsub.f32 %v20005_v28, %v10644_v10  ;;  %10755 = vadd.xlane.f32.xlu0 %v10707_v4  ;;  %v20926_v26 = vsub.s32 2, %v21369_v35 }
0x101f   : > { %v10602_v61 = vpop.xlane.xlu1 %10601 }
0x1020   : > { %v10646_v2 = vmul.f32 0.0078125, %v10602_v61  ;;  %v10709_v13 = vmul.f32 %v20214_v14, %v20214_v14  ;;  %v10708_v47 = vmul.f32 %v20217_v50, %v20217_v50 }
0x1022   : > { %v20224_v29 = vsub.f32 %v20010_v7, %v10646_v2  ;;  %10759 = vadd.xlane.f32.xlu0 %v10709_v13  ;;  %10757 = vadd.xlane.f32.xlu1 %v10708_v47  ;;  %v20232_v2 = vrot.slane %v19884_v1, %v20926_v26  ;;  %v20927_v47 = vsub.s32 3, %v21369_v35 }
0x1024   : > { %v10710_v49 = vmul.f32 %v20224_v29, %v20224_v29 }
0x1026   : > { %10761 = vadd.xlane.f32.xlu1 %v10710_v49 }
0x102c   : > { %v10724_v56 = vpop.xlane.xlu0 %10723 }
0x102d   : > { %v10787_v43 = vmul.f32 0.0078125, %v10724_v56 }
0x102f   : > { %v10819_v10 = vadd.f32 1e-05, %v10787_v43 }
0x1030   : > { %v10726_v4 = vpop.xlane.xlu1 %10725 }
0x1031   : > { %15384 = vrsqrt.f32 %v10819_v10  ;;  %v10788_v61 = vmul.f32 0.0078125, %v10726_v4 }
0x1033   : > { %v10820_v32 = vadd.f32 1e-05, %v10788_v61 }
0x1035   : > { %15386 = vrsqrt.f32 %v10820_v32  ;;  %v20241_v32 = vrot.slane %v19884_v1, %v20927_v47 }
0x103e   : > { %v15385_v28 = vpop.eup %15384 }
0x103f   : > { %v10883_v13 = vmul.f32 %v15385_v28, %v20014_v39  ;;  %v21425_v39 = vmov 0  }
0x1041   : > { %v10919_v56 = vmul.f32 %v20232_v2, %v10883_v13 }
0x1042   : > { %v15387_v49 = vpop.eup %15386 }
0x1043   : > { %v10884_v43 = vmul.f32 %v15387_v49, %v20019_v54  ;;  %v10955_v4 = vadd.f32 %v20241_v32, %v10919_v56 }
0x1045   : > { %v10920_v10 = vmul.f32 %v20232_v2, %v10884_v43 }
0x1047   : > { %v10956_v61 = vadd.f32 %v20241_v32, %v10920_v10 }
0x1049   : > { %v10987_v26 = vpack.c.bf16 %v10956_v61, %v10955_v4 }
0x104b   : > { %11218 = vmatmul.mubr.bf16.vlgmr.msra.gmra.mxu1 %v10987_v26  ;;  %11411 = vmatmul.mubr.bf16.vlgmr.msra.gmra.mxu0 %v10987_v26 }
0x104c   : > { %v10604_v28 = vpop.xlane.xlu0 %10603  ;;  %11227 = vmatprep.mubr.bf16.mxu1 %v21425_v39  ;;  %11420 = vmatprep.mubr.bf16.mxu0 %v21425_v39 }
0x104d   : > { %v10647_v54 = vmul.f32 0.0078125, %v10604_v28 }
0x104f   : > { %v20249_v13 = vsub.f32 %v20057_v15, %v10647_v54 }
0x1050   : > { %v10728_v1 = vpop.xlane.xlu0 %10727  ;;  %v10606_v49 = vpop.xlane.xlu1 %10605 }
0x1051   : > { %v10789_v47 = vmul.f32 0.0078125, %v10728_v1  ;;  %v10648_v43 = vmul.f32 0.0078125, %v10606_v49  ;;  %v10711_v56 = vmul.f32 %v20249_v13, %v20249_v13 }
0x1053   : > { %v10821_v10 = vadd.f32 1e-05, %v10789_v47  ;;  %v20254_v4 = vsub.f32 %v20075_v57, %v10648_v43  ;;  %10763 = vadd.xlane.f32.xlu0 %v10711_v56 }
0x1054   : > { %v10608_v26 = vpop.xlane.xlu0 %10607  ;;  %v10730_v61 = vpop.xlane.xlu1 %10729 }
0x1055   : > { %15388 = vrsqrt.f32 %v10821_v10  ;;  %v10649_v7 = vmul.f32 0.0078125, %v10608_v26  ;;  %v10790_v28 = vmul.f32 0.0078125, %v10730_v61  ;;  %v10712_v54 = vmul.f32 %v20254_v4, %v20254_v4 }
0x1057   : > { %v20259_v15 = vsub.f32 %v20090_v45, %v10649_v7  ;;  %v10822_v1 = vadd.f32 1e-05, %v10790_v28  ;;  %10765 = vadd.xlane.f32.xlu1 %v10712_v54 }
0x1058   : > { %v10732_v49 = vpop.xlane.xlu0 %10731  ;;  %v10610_v36 = vpop.xlane.xlu1 %10609 }
0x1059   : > { %15390 = vrsqrt.f32 %v10822_v1  ;;  %v10791_v47 = vmul.f32 0.0078125, %v10732_v49  ;;  %v10650_v43 = vmul.f32 0.0078125, %v10610_v36  ;;  %v10713_v56 = vmul.f32 %v20259_v15, %v20259_v15 }
0x105b   : > { %v10823_v57 = vadd.f32 1e-05, %v10791_v47  ;;  %v20264_v10 = vsub.f32 %v20105_v52, %v10650_v43  ;;  %10767 = vadd.xlane.f32.xlu0 %v10713_v56 }
0x105c   : > { %v10612_v26 = vpop.xlane.xlu0 %10611  ;;  %v10734_v61 = vpop.xlane.xlu1 %10733 }
0x105d   : > { %15392 = vrsqrt.f32 %v10823_v57  ;;  %v10651_v7 = vmul.f32 0.0078125, %v10612_v26  ;;  %v10792_v45 = vmul.f32 0.0078125, %v10734_v61  ;;  %v10714_v28 = vmul.f32 %v20264_v10, %v20264_v10 }
0x105f   : > { %v20269_v54 = vsub.f32 %v20117_v25, %v10651_v7  ;;  %v10824_v36 = vadd.f32 1e-05, %v10792_v45  ;;  %10769 = vadd.xlane.f32.xlu1 %v10714_v28 }
0x1060   : > { %v10736_v1 = vpop.xlane.xlu0 %10735  ;;  %v10614_v49 = vpop.xlane.xlu1 %10613 }
0x1061   : > { %15394 = vrsqrt.f32 %v10824_v36  ;;  %v10793_v47 = vmul.f32 0.0078125, %v10736_v1  ;;  %v10652_v43 = vmul.f32 0.0078125, %v10614_v49  ;;  %v10715_v56 = vmul.f32 %v20269_v54, %v20269_v54 }
0x1062   : > { %v15389_v52 = vpop.eup %15388 }
0x1063   : > { %v10825_v57 = vadd.f32 1e-05, %v10793_v47  ;;  %v20274_v26 = vsub.f32 %v20128_v12, %v10652_v43  ;;  %10771 = vadd.xlane.f32.xlu0 %v10715_v56  ;;  %v10885_v7 = vmul.f32 %v15389_v52, %v20051_v55 }
0x1064   : > { %v10616_v61 = vpop.xlane.xlu0 %10615  ;;  %v10738_v40 = vpop.xlane.xlu1 %10737 }
0x1065   : > { %15396 = vrsqrt.f32 %v10825_v57  ;;  %v10653_v45 = vmul.f32 0.0078125, %v10616_v61  ;;  %v10794_v28 = vmul.f32 0.0078125, %v10738_v40  ;;  %v10716_v36 = vmul.f32 %v20274_v26, %v20274_v26 }
0x1066   : > { %v15391_v1 = vpop.eup %15390  ;;  %v10921_v12 = vmul.f32 %v20232_v2, %v10885_v7 }
0x1067   : > { %v20280_v49 = vsub.f32 %v20141_v20, %v10653_v45  ;;  %v10826_v25 = vadd.f32 1e-05, %v10794_v28  ;;  %10773 = vadd.xlane.f32.xlu1 %v10716_v36  ;;  %v10886_v47 = vmul.f32 %v15391_v1, %v20065_v59 }
0x1068   : > { %v10740_v43 = vpop.xlane.xlu0 %10739  ;;  %v10618_v56 = vpop.xlane.xlu1 %10617  ;;  %v10957_v36 = vadd.f32 %v20241_v32, %v10921_v12 }
0x1069   : > { %15398 = vrsqrt.f32 %v10826_v25  ;;  %v10795_v55 = vmul.f32 0.0078125, %v10740_v43  ;;  %v10654_v52 = vmul.f32 0.0078125, %v10618_v56  ;;  %v10717_v40 = vmul.f32 %v20280_v49, %v20280_v49 }
0x106a   : > { %v15393_v57 = vpop.eup %15392  ;;  %v10922_v61 = vmul.f32 %v20232_v2, %v10886_v47 }
0x106b   : > { %v10827_v18 = vadd.f32 1e-05, %v10795_v55  ;;  %v20288_v45 = vsub.f32 %v20152_v38, %v10654_v52  ;;  %10775 = vadd.xlane.f32.xlu0 %v10717_v40  ;;  %v10887_v25 = vmul.f32 %v15393_v57, %v20084_v63 }
0x106c   : > { %v10620_v28 = vpop.xlane.xlu0 %10619  ;;  %v10742_v59 = vpop.xlane.xlu1 %10741  ;;  %v10958_v7 = vadd.f32 %v20241_v32, %v10922_v61 }
0x106d   : > { %15400 = vrsqrt.f32 %v10827_v18  ;;  %v10655_v1 = vmul.f32 0.0078125, %v10620_v28  ;;  %v10796_v43 = vmul.f32 0.0078125, %v10742_v59  ;;  %v10718_v56 = vmul.f32 %v20288_v45, %v20288_v45 }
0x106e   : > { %v15395_v47 = vpop.eup %15394  ;;  %v10988_v55 = vpack.c.bf16 %v10958_v7, %v10957_v36  ;;  %v10923_v18 = vmul.f32 %v20232_v2, %v10887_v25 }
0x106f   : > { %v20296_v52 = vsub.f32 %v20163_v23, %v10655_v1  ;;  %v10828_v40 = vadd.f32 1e-05, %v10796_v43  ;;  %10777 = vadd.xlane.f32.xlu1 %v10718_v56  ;;  %v10888_v38 = vmul.f32 %v15395_v47, %v20099_v48 }
0x1070   : > { %11228 = vmatmul.mubr.bf16.gmra.mxu1 %v10988_v55  ;;  %11421 = vmatmul.mubr.bf16.gmra.mxu0 %v10988_v55  ;;  %v10744_v12 = vpop.xlane.xlu0 %10743  ;;  %v10622_v61 = vpop.xlane.xlu1 %10621  ;;  %v10959_v43 = vadd.f32 %v20241_v32, %v10923_v18 }
0x1071   : > { %15402 = vrsqrt.f32 %v10828_v40  ;;  %v10797_v63 = vmul.f32 0.0078125, %v10744_v12  ;;  %v10656_v57 = vmul.f32 0.0078125, %v10622_v61  ;;  %v10719_v28 = vmul.f32 %v20296_v52, %v20296_v52  ;;  %11237 = vmatprep.mubr.bf16.mxu1 %v21425_v39  ;;  %11430 = vmatprep.mubr.bf16.mxu0 %v21425_v39 }
0x1072   : > { %v15397_v59 = vpop.eup %15396  ;;  %v10924_v36 = vmul.f32 %v20232_v2, %v10888_v38 }
0x1073   : > { %v10829_v48 = vadd.f32 1e-05, %v10797_v63  ;;  %v20306_v7 = vsub.f32 %v20174_v60, %v10656_v57  ;;  %10779 = vadd.xlane.f32.xlu0 %v10719_v28  ;;  %v10889_v47 = vmul.f32 %v15397_v59, %v20111_v17 }
0x1074   : > { %v10624_v1 = vpop.xlane.xlu0 %10623  ;;  %v10746_v25 = vpop.xlane.xlu1 %10745  ;;  %v10960_v56 = vadd.f32 %v20241_v32, %v10924_v36 }
0x1075   : > { %15404 = vrsqrt.f32 %v10829_v48  ;;  %v10657_v55 = vmul.f32 0.0078125, %v10624_v1  ;;  %v10798_v40 = vmul.f32 0.0078125, %v10746_v25  ;;  %v10720_v12 = vmul.f32 %v20306_v7, %v20306_v7 }
0x1076   : > { %v15399_v38 = vpop.eup %15398  ;;  %v10989_v61 = vpack.c.bf16 %v10960_v56, %v10959_v43  ;;  %v10925_v17 = vmul.f32 %v20232_v2, %v10889_v47 }
0x1077   : > { %v20314_v63 = vsub.f32 %v20184_v51, %v10657_v55  ;;  %v10830_v57 = vadd.f32 1e-05, %v10798_v40  ;;  %10781 = vadd.xlane.f32.xlu1 %v10720_v12  ;;  %v10890_v28 = vmul.f32 %v15399_v38, %v20121_v44 }
0x1078   : > { %11238 = vmatmul.mubr.bf16.gmra.mxu1 %v10989_v61  ;;  %11431 = vmatmul.mubr.bf16.gmra.mxu0 %v10989_v61  ;;  %v10748_v18 = vpop.xlane.xlu0 %10747  ;;  %v10626_v36 = vpop.xlane.xlu1 %10625  ;;  %v10961_v12 = vadd.f32 %v20241_v32, %v10925_v17 }
0x1079   : > { %15406 = vrsqrt.f32 %v10830_v57  ;;  %v10799_v59 = vmul.f32 0.0078125, %v10748_v18  ;;  %v10658_v48 = vmul.f32 0.0078125, %v10626_v36  ;;  %v10721_v1 = vmul.f32 %v20314_v63, %v20314_v63  ;;  %11247 = vmatprep.mubr.bf16.mxu1 %v21425_v39  ;;  %11440 = vmatprep.mubr.bf16.mxu0 %v21425_v39  ;;  %v14776_v18 = vld [vmem:[%s16071_s10 + $0x78] sm:$0xff]  }
0x107a   : > { %v15401_v25 = vpop.eup %15400  ;;  %v10926_v44 = vmul.f32 %v20232_v2, %v10890_v28  ;;  %13356 = vmatprep.subr.bf16.mxu1 %v14776_v18 }
0x107b   : > { %v10831_v43 = vadd.f32 1e-05, %v10799_v59  ;;  %v20324_v56 = vsub.f32 %v20196_v62, %v10658_v48  ;;  %10783 = vadd.xlane.f32.xlu0 %v10721_v1  ;;  %v10891_v47 = vmul.f32 %v15401_v25, %v20136_v42  ;;  %v14777_v48 = vld [vmem:[%s16071_s10 + $0xf8] sm:$0xff]  }
0x107c   : > { %v10752_v55 = vpop.xlane.xlu0 %10751  ;;  %v10750_v40 = vpop.xlane.xlu1 %10749  ;;  %v10962_v38 = vadd.f32 %v20241_v32, %v10926_v44  ;;  %v14778_v1 = vld [vmem:[%s16071_s10 + $0x38] sm:$0xff]   ;;  %13468 = vmatprep.subr.bf16.mxu0 %v14777_v48 }
0x107d   : > { %15408 = vrsqrt.f32 %v10831_v43  ;;  %v10801_v61 = vmul.f32 0.0078125, %v10752_v55  ;;  %v10800_v57 = vmul.f32 0.0078125, %v10750_v40  ;;  %v10722_v28 = vmul.f32 %v20324_v56, %v20324_v56  ;;  %v14779_v25 = vld [vmem:[%s16071_s10 + $0xb8] sm:$0xff]   ;;  %13357 = vmatpush3.bf16.msra.mxu1 %v14778_v1 }
0x107e   : > { %v15403_v36 = vpop.eup %15402  ;;  %v10990_v59 = vpack.c.bf16 %v10962_v38, %v10961_v12  ;;  %v10927_v17 = vmul.f32 %v20232_v2, %v10891_v47  ;;  %13469 = vmatpush3.bf16.msra.mxu0 %v14779_v25  ;;  %v14782_v25 = vld [vmem:[%s16071_s10 + $0x30] sm:$0xff]  }
0x107f   : > { %v10832_v62 = vadd.f32 1e-05, %v10800_v57  ;;  %10785 = vadd.xlane.f32.xlu1 %v10722_v28  ;;  %v10892_v42 = vmul.f32 %v15403_v36, %v20146_v34  ;;  %v10833_v44 = vadd.f32 1e-05, %v10801_v61 }
0x1080   : > { %11248 = vmatmul.mubr.bf16.gmra.mxu1 %v10990_v59  ;;  %11441 = vmatmul.mubr.bf16.gmra.mxu0 %v10990_v59  ;;  %v10754_v43 = vpop.xlane.xlu1 %10753  ;;  %v10963_v47 = vadd.f32 %v20241_v32, %v10927_v17  ;;  %v14780_v17 = vld [vmem:[%s16071_s10 + $0x70] sm:$0xff]  }
0x1081   : > { %v10802_v55 = vmul.f32 0.0078125, %v10754_v43  ;;  %11257 = vmatprep.mubr.bf16.mxu1 %v21425_v39  ;;  %11450 = vmatprep.mubr.bf16.mxu0 %v21425_v39  ;;  %v10928_v40 = vmul.f32 %v20232_v2, %v10892_v42  ;;  %15410 = vrsqrt.f32 %v10832_v62 }
0x1082   : > { %v15405_v12 = vpop.eup %15404  ;;  %15412 = vrsqrt.f32 %v10833_v44  ;;  %v14783_v44 = vld [vmem:[%s16071_s10 + $0xb0] sm:$0xff]   ;;  %13358 = vmatprep.subr.bf16.mxu1 %v14780_v17  ;;  %v14792_v17 = vld [vmem:[%s16071_s10 + $0x58] sm:$0xff]  }
0x1083   : > { %v10834_v34 = vadd.f32 1e-05, %v10802_v55  ;;  %v10964_v38 = vadd.f32 %v20241_v32, %v10928_v40  ;;  %v10893_v61 = vmul.f32 %v15405_v12, %v20158_v6  ;;  %13359 = vmatpush3.bf16.msra.mxu1 %v14782_v25  ;;  %v14794_v25 = vld [vmem:[%s16071_s10 + $0x18] sm:$0xff]  }
0x1085   : > { %15414 = vrsqrt.f32 %v10834_v34  ;;  %v10991_v57 = vpack.c.bf16 %v10964_v38, %v10963_v47  ;;  %v10929_v18 = vmul.f32 %v20232_v2, %v10893_v61  ;;  %v14784_v38 = vld [vmem:[%s16071_s10 + $0x68] sm:$0xff]  }
0x1086   : > { %v15407_v28 = vpop.eup %15406  ;;  %13360 = vmatprep.subr.bf16.mxu1 %v14784_v38  ;;  %v14801_v38 = vld [vmem:[%s16071_s10 + $0xc8] sm:$0xff]  }
0x1087   : > { %v10894_v62 = vmul.f32 %v15407_v28, %v20167_v3  ;;  %v10965_v59 = vadd.f32 %v20241_v32, %v10929_v18  ;;  %v14781_v3 = vld [vmem:[%s16071_s10 + $0xf0] sm:$0xff]   ;;  %v14787_v18 = vld [vmem:[%s16071_s10 + $0xa8] sm:$0xff]  }
0x1088   : > { %11258 = vmatmul.mubr.bf16.gmra.mxu1 %v10991_v57  ;;  %11451 = vmatmul.mubr.bf16.gmra.mxu0 %v10991_v57 }
0x1089   : > { %11267 = vmatprep.mubr.bf16.mxu1 %v21425_v39  ;;  %11460 = vmatprep.mubr.bf16.mxu0 %v21425_v39  ;;  %v10930_v6 = vmul.f32 %v20232_v2, %v10894_v62  ;;  %v14786_v62 = vld [vmem:[%s16071_s10 + $0x28] sm:$0xff]  }
0x108a   : > { %v15409_v36 = vpop.eup %15408  ;;  %13470 = vmatprep.subr.bf16.mxu0 %v14781_v3  ;;  %13361 = vmatpush3.bf16.msra.mxu1 %v14786_v62  ;;  %v14793_v3 = vld [vmem:[%s16071_s10 + $0xd8] sm:$0xff]   ;;  %v14806_v62 = vld [vmem:[%s16071_s10] sm:$0xff]  }
0x108b   : > { %v10966_v48 = vadd.f32 %v20241_v32, %v10930_v6  ;;  %v10895_v1 = vmul.f32 %v15409_v36, %v20180_v58  ;;  %13471 = vmatpush3.bf16.msra.mxu0 %v14783_v44  ;;  %v14788_v6 = vld [vmem:[%s16071_s10 + $0x60] sm:$0xff]  }
0x108c   : > { %v14789_v36 = vld [vmem:[%s16071_s10 + $0xe0] sm:$0xff]   ;;  %13362 = vmatprep.subr.bf16.mxu1 %v14788_v6 }
0x108d   : > { %v10992_v42 = vpack.c.bf16 %v10966_v48, %v10965_v59  ;;  %v10931_v40 = vmul.f32 %v20232_v2, %v10895_v1  ;;  %v14790_v48 = vld [vmem:[%s16071_s10 + $0x20] sm:$0xff]  }
0x108e   : > { %v15411_v43 = vpop.eup %15410  ;;  %v14791_v1 = vld [vmem:[%s16071_s10 + $0xa0] sm:$0xff]   ;;  %13363 = vmatpush3.bf16.msra.mxu1 %v14790_v48 }
0x108f   : > { %v10896_v55 = vmul.f32 %v15411_v43, %v20188_v11  ;;  %v15413_v58 = vpop.eup %15412  ;;  %v14785_v11 = vld [vmem:[%s16071_s10 + $0xe8] sm:$0xff]   ;;  %v10967_v61 = vadd.f32 %v20241_v32, %v10931_v40  ;;  %v14795_v43 = vld [vmem:[%s16071_s10 + $0x98] sm:$0xff]   ;;  %v14797_v40 = vld [vmem:[%s16071_s10 + $0xd0] sm:$0xff]   ;;  %13364 = vmatprep.subr.bf16.mxu1 %v14792_v17 }
0x1090   : > { %11268 = vmatmul.mubr.bf16.gmra.mxu1 %v10992_v42  ;;  %11461 = vmatmul.mubr.bf16.gmra.mxu0 %v10992_v42  ;;  %v10897_v28 = vmul.f32 %v15413_v58, %v20191_v8 }
0x1091   : > { %11277 = vmatprep.mubr.bf16.mxu1 %v21425_v39  ;;  %11470 = vmatprep.mubr.bf16.mxu0 %v21425_v39  ;;  %v10932_v34 = vmul.f32 %v20232_v2, %v10896_v55  ;;  %v14796_v55 = vld [vmem:[%s16071_s10 + $0x50] sm:$0xff]  }
0x1092   : > { %v15415_v12 = vpop.eup %15414  ;;  %13472 = vmatprep.subr.bf16.mxu0 %v14785_v11  ;;  %v10933_v8 = vmul.f32 %v20232_v2, %v10897_v28  ;;  %13365 = vmatpush3.bf16.msra.mxu1 %v14794_v25  ;;  %v14802_v11 = vld [vmem:[%s16071_s10 + $0x8] sm:$0xff]   ;;  %v14805_v28 = vld [vmem:[%s16071_s10 + $0xc0] sm:$0xff]  }
0x1093   : > { %v10898_v47 = vmul.f32 %v15415_v12, %v20200_v0  ;;  %v10968_v57 = vadd.f32 %v20241_v32, %v10932_v34  ;;  %13473 = vmatpush3.bf16.msra.mxu0 %v14787_v18  ;;  %v14798_v12 = vld [vmem:[%s16071_s10 + $0x10] sm:$0xff]   ;;  %13366 = vmatprep.subr.bf16.mxu1 %v14796_v55  ;;  %v14807_v18 = vld [vmem:[%s16071_s10 + $0x80] sm:$0xff]  }
0x1094   : > { %13474 = vmatprep.subr.bf16.mxu0 %v14789_v36  ;;  %v10969_v44 = vadd.f32 %v20241_v32, %v10933_v8  ;;  %v14799_v34 = vld [vmem:[%s16071_s10 + $0x90] sm:$0xff]  }
0x1095   : > { %v10993_v59 = vpack.c.bf16 %v10968_v57, %v10967_v61  ;;  %v10934_v0 = vmul.f32 %v20232_v2, %v10898_v47  ;;  %v14800_v47 = vld [vmem:[%s16071_s10 + $0x48] sm:$0xff]   ;;  %v14804_v57 = vld [vmem:[%s16071_s10 + $0x40] sm:$0xff]  }
0x1096   : > { %13367 = vmatpush3.bf16.msra.mxu1 %v14798_v12  ;;  %v14803_v61 = vld [vmem:[%s16071_s10 + $0x88] sm:$0xff]  }
0x1097   : > { %v10970_v42 = vadd.f32 %v20241_v32, %v10934_v0  ;;  %13475 = vmatpush3.bf16.msra.mxu0 %v14791_v1  ;;  %13368 = vmatprep.subr.bf16.mxu1 %v14800_v47 }
0x1098   : > { %11278 = vmatmul.mubr.bf16.gmra.mxu1 %v10993_v59  ;;  %11471 = vmatmul.mubr.bf16.gmra.mxu0 %v10993_v59 }
0x1099   : > { %11287 = vmatprep.mubr.bf16.mxu1 %v21425_v39  ;;  %11480 = vmatprep.mubr.bf16.mxu0 %v21425_v39  ;;  %v10994_v58 = vpack.c.bf16 %v10970_v42, %v10969_v44 }
0x109a   : > { %13476 = vmatprep.subr.bf16.mxu0 %v14793_v3  ;;  %13369 = vmatpush3.bf16.msra.mxu1 %v14802_v11 }
0x109b   : > { %13477 = vmatpush3.bf16.msra.mxu0 %v14795_v43  ;;  %13370 = vmatprep.subr.bf16.mxu1 %v14804_v57 }
0x109c   : > { %13478 = vmatprep.subr.bf16.mxu0 %v14797_v40 }
0x109e   : > { %13371 = vmatpush3.bf16.msra.mxu1 %v14806_v62 }
0x109f   : > { %13479 = vmatpush3.bf16.msra.mxu0 %v14799_v34 }
0x10a0   : > { %11288 = vmatmul.mubr.bf16.gmra.mxu1 %v10994_v58  ;;  %11481 = vmatmul.mubr.bf16.gmra.mxu0 %v10994_v58 }
0x10a1   : > { %11297 = vmatprep.mubr.bf16.mxu1 %v21425_v39  ;;  %11490 = vmatprep.mubr.bf16.mxu0 %v21425_v39 }
0x10a2   : > { %13480 = vmatprep.subr.bf16.mxu0 %v14801_v38 }
0x10a3   : > { %13481 = vmatpush3.bf16.msra.mxu0 %v14803_v61 }
0x10a4   : > { %13482 = vmatprep.subr.bf16.mxu0 %v14805_v28 }
0x10a7   : > { %v10756_v6 = vpop.xlane.xlu0 %10755  ;;  %13483 = vmatpush3.bf16.msra.mxu0 %v14807_v18 }
0x10a8   : > { %v10803_v36 = vmul.f32 0.0078125, %v10756_v6 }
0x10aa   : > { %v10835_v59 = vadd.f32 1e-05, %v10803_v36 }
0x10ab   : > { %v10760_v0 = vpop.xlane.xlu0 %10759  ;;  %v10758_v48 = vpop.xlane.xlu1 %10757 }
0x10ac   : > { %15416 = vrsqrt.f32 %v10835_v59  ;;  %v10805_v1 = vmul.f32 0.0078125, %v10760_v0  ;;  %v10804_v8 = vmul.f32 0.0078125, %v10758_v48 }
0x10ae   : > { %v10836_v42 = vadd.f32 1e-05, %v10804_v8  ;;  %v10837_v17 = vadd.f32 1e-05, %v10805_v1 }
0x10af   : > { %v10762_v3 = vpop.xlane.xlu1 %10761 }
0x10b0   : > { %v10806_v25 = vmul.f32 0.0078125, %v10762_v3  ;;  %15418 = vrsqrt.f32 %v10836_v42 }
0x10b1   : > { %15420 = vrsqrt.f32 %v10837_v17 }
0x10b2   : > { %v10838_v44 = vadd.f32 1e-05, %v10806_v25 }
0x10b4   : > { %15422 = vrsqrt.f32 %v10838_v44 }
0x10b9   : > { %v15417_v43 = vpop.eup %15416 }
0x10ba   : > { %v10899_v55 = vmul.f32 %v15417_v43, %v20209_v33 }
0x10bc   : > { %v10935_v12 = vmul.f32 %v20232_v2, %v10899_v55 }
0x10bd   : > { %v15419_v40 = vpop.eup %15418 }
0x10be   : > { %v10900_v58 = vmul.f32 %v15419_v40, %v20217_v50  ;;  %v15421_v34 = vpop.eup %15420  ;;  %v10971_v61 = vadd.f32 %v20241_v32, %v10935_v12 }
0x10bf   : > { %v10901_v28 = vmul.f32 %v15421_v34, %v20214_v14 }
0x10c0   : > { %v10936_v38 = vmul.f32 %v20232_v2, %v10900_v58 }
0x10c1   : > { %v15423_v47 = vpop.eup %15422  ;;  %v10937_v50 = vmul.f32 %v20232_v2, %v10901_v28 }
0x10c2   : > { %v10902_v11 = vmul.f32 %v15423_v47, %v20224_v29  ;;  %v10972_v57 = vadd.f32 %v20241_v32, %v10936_v38 }
0x10c3   : > { %v10973_v29 = vadd.f32 %v20241_v32, %v10937_v50 }
0x10c4   : > { %v10995_v62 = vpack.c.bf16 %v10972_v57, %v10971_v61  ;;  %v10938_v33 = vmul.f32 %v20232_v2, %v10902_v11 }
0x10c6   : > { %11298 = vmatmul.mubr.bf16.gmra.mxu1 %v10995_v62  ;;  %11491 = vmatmul.mubr.bf16.gmra.mxu0 %v10995_v62  ;;  %v10974_v18 = vadd.f32 %v20241_v32, %v10938_v33 }
0x10c7   : > { %11307 = vmatprep.mubr.bf16.mxu1 %v21425_v39  ;;  %11500 = vmatprep.mubr.bf16.mxu0 %v21425_v39 }
0x10c8   : > { %v10996_v6 = vpack.c.bf16 %v10974_v18, %v10973_v29 }
0x10ce   : > { %11308 = vmatmul.mubr.bf16.gmra.mxu1 %v10996_v6  ;;  %11501 = vmatmul.mubr.bf16.gmra.mxu0 %v10996_v6 }
0x10cf   : > { %11317 = vmatprep.mubr.bf16.mxu1 %v21425_v39  ;;  %11510 = vmatprep.mubr.bf16.mxu0 %v21425_v39 }
0x10dc   : > { %v10764_v14 = vpop.xlane.xlu0 %10763 }
0x10dd   : > { %v10807_v36 = vmul.f32 0.0078125, %v10764_v14 }
0x10df   : > { %v10839_v59 = vadd.f32 1e-05, %v10807_v36 }
0x10e0   : > { %v10766_v0 = vpop.xlane.xlu1 %10765 }
0x10e1   : > { %15424 = vrsqrt.f32 %v10839_v59  ;;  %v10808_v48 = vmul.f32 0.0078125, %v10766_v0 }
0x10e3   : > { %v10840_v1 = vadd.f32 1e-05, %v10808_v48 }
0x10e4   : > { %v10768_v8 = vpop.xlane.xlu0 %10767 }
0x10e5   : > { %15426 = vrsqrt.f32 %v10840_v1  ;;  %v10809_v42 = vmul.f32 0.0078125, %v10768_v8 }
0x10e7   : > { %v10841_v17 = vadd.f32 1e-05, %v10809_v42 }
0x10e8   : > { %v10770_v3 = vpop.xlane.xlu1 %10769 }
0x10e9   : > { %15428 = vrsqrt.f32 %v10841_v17  ;;  %v10810_v25 = vmul.f32 0.0078125, %v10770_v3 }
0x10eb   : > { %v10842_v44 = vadd.f32 1e-05, %v10810_v25 }
0x10ec   : > { %v10772_v43 = vpop.xlane.xlu0 %10771 }
0x10ed   : > { %15430 = vrsqrt.f32 %v10842_v44  ;;  %v10811_v55 = vmul.f32 0.0078125, %v10772_v43 }
0x10ee   : > { %v15425_v40 = vpop.eup %15424 }
0x10ef   : > { %v10843_v58 = vadd.f32 1e-05, %v10811_v55  ;;  %v10903_v12 = vmul.f32 %v15425_v40, %v20249_v13 }
0x10f0   : > { %v10774_v34 = vpop.xlane.xlu1 %10773 }
0x10f1   : > { %15432 = vrsqrt.f32 %v10843_v58  ;;  %v10812_v47 = vmul.f32 0.0078125, %v10774_v34  ;;  %v10939_v57 = vmul.f32 %v20232_v2, %v10903_v12 }
0x10f2   : > { %v15427_v38 = vpop.eup %15426 }
0x10f3   : > { %v10844_v11 = vadd.f32 1e-05, %v10812_v47  ;;  %v10904_v61 = vmul.f32 %v15427_v38, %v20254_v4  ;;  %v10975_v29 = vadd.f32 %v20241_v32, %v10939_v57 }
0x10f4   : > { %v10776_v28 = vpop.xlane.xlu0 %10775 }
0x10f5   : > { %15434 = vrsqrt.f32 %v10844_v11  ;;  %v10813_v62 = vmul.f32 0.0078125, %v10776_v28  ;;  %v10940_v33 = vmul.f32 %v20232_v2, %v10904_v61 }
0x10f6   : > { %v15429_v50 = vpop.eup %15428 }
0x10f7   : > { %v10845_v18 = vadd.f32 1e-05, %v10813_v62  ;;  %v10976_v13 = vadd.f32 %v20241_v32, %v10940_v33  ;;  %v10905_v6 = vmul.f32 %v15429_v50, %v20259_v15 }
0x10f8   : > { %v10778_v14 = vpop.xlane.xlu1 %10777 }
0x10f9   : > { %15436 = vrsqrt.f32 %v10845_v18  ;;  %v10814_v36 = vmul.f32 0.0078125, %v10778_v14  ;;  %v10997_v59 = vpack.c.bf16 %v10976_v13, %v10975_v29  ;;  %v10941_v1 = vmul.f32 %v20232_v2, %v10905_v6 }
0x10fa   : > { %v15431_v4 = vpop.eup %15430 }
0x10fb   : > { %v10846_v0 = vadd.f32 1e-05, %v10814_v36  ;;  %11318 = vmatmul.mubr.bf16.gmra.mxu1 %v10997_v59  ;;  %11511 = vmatmul.mubr.bf16.gmra.mxu0 %v10997_v59  ;;  %v10906_v48 = vmul.f32 %v15431_v4, %v20264_v10  ;;  %v10977_v25 = vadd.f32 %v20241_v32, %v10941_v1 }
0x10fc   : > { %v10780_v8 = vpop.xlane.xlu0 %10779  ;;  %11327 = vmatprep.mubr.bf16.mxu1 %v21425_v39  ;;  %11520 = vmatprep.mubr.bf16.mxu0 %v21425_v39 }
0x10fd   : > { %15438 = vrsqrt.f32 %v10846_v0  ;;  %v10815_v42 = vmul.f32 0.0078125, %v10780_v8  ;;  %v10942_v15 = vmul.f32 %v20232_v2, %v10906_v48 }
0x10fe   : > { %v15433_v17 = vpop.eup %15432 }
0x10ff   : > { %v10847_v3 = vadd.f32 1e-05, %v10815_v42  ;;  %v10978_v44 = vadd.f32 %v20241_v32, %v10942_v15  ;;  %v10907_v43 = vmul.f32 %v15433_v17, %v20269_v54 }
0x1100   : > { %v10782_v10 = vpop.xlane.xlu1 %10781 }
0x1101   : > { %15440 = vrsqrt.f32 %v10847_v3  ;;  %v10816_v55 = vmul.f32 0.0078125, %v10782_v10  ;;  %v10998_v40 = vpack.c.bf16 %v10978_v44, %v10977_v25  ;;  %v10943_v47 = vmul.f32 %v20232_v2, %v10907_v43 }
0x1102   : > { %v15435_v58 = vpop.eup %15434 }
0x1103   : > { %v10848_v12 = vadd.f32 1e-05, %v10816_v55  ;;  %11328 = vmatmul.mubr.bf16.gmra.mxu1 %v10998_v40  ;;  %11521 = vmatmul.mubr.bf16.gmra.mxu0 %v10998_v40  ;;  %v10908_v34 = vmul.f32 %v15435_v58, %v20274_v26  ;;  %v10979_v28 = vadd.f32 %v20241_v32, %v10943_v47  ;;  %v11003_v55 = vld [vmem:[%s16063_s23] sm:$0xf] }
0x1104   : > { %v10784_v38 = vpop.xlane.xlu0 %10783  ;;  %11337 = vmatprep.mubr.bf16.mxu1 %v21425_v39  ;;  %11530 = vmatprep.mubr.bf16.mxu0 %v21425_v39 }
0x1105   : > { %15442 = vrsqrt.f32 %v10848_v12  ;;  %v10817_v11 = vmul.f32 0.0078125, %v10784_v38  ;;  %v10944_v54 = vmul.f32 %v20232_v2, %v10908_v34  ;;  %v21427_v38 = vsub.s32 3, %v21369_v35 }
0x1106   : > { %v15437_v61 = vpop.eup %15436 }
0x1107   : > { %v10849_v57 = vadd.f32 1e-05, %v10817_v11  ;;  %v10980_v62 = vadd.f32 %v20241_v32, %v10944_v54  ;;  %v10909_v33 = vmul.f32 %v15437_v61, %v20280_v49  ;;  %v20458_v11 = vrot.slane %v11003_v55, %v21427_v38 }
0x1108   : > { %v10786_v26 = vpop.xlane.xlu1 %10785 }
0x1109   : > { %15444 = vrsqrt.f32 %v10849_v57  ;;  %v10818_v50 = vmul.f32 0.0078125, %v10786_v26  ;;  %v10999_v18 = vpack.c.bf16 %v10980_v62, %v10979_v28  ;;  %v10945_v59 = vmul.f32 %v20232_v2, %v10909_v33 }
0x110a   : > { %v15439_v29 = vpop.eup %15438 }
0x110b   : > { %v10850_v13 = vadd.f32 1e-05, %v10818_v50  ;;  %v11219_v6 = vpop.f32.mrf.mxu1  ;;  %11338 = vmatmul.mubr.bf16.gmra.mxu1 %v10999_v18  ;;  %v11412_v14 = vpop.f32.mrf.mxu0  ;;  %11531 = vmatmul.mubr.bf16.gmra.mxu0 %v10999_v18  ;;  %v10910_v36 = vmul.f32 %v15439_v29, %v20288_v45  ;;  %v10981_v1 = vadd.f32 %v20241_v32, %v10945_v59  ;;  %v21429_v59 = vsub.s32 2, %v21369_v35 }
0x110c   : > { %11347 = vmatprep.mubr.bf16.mxu1 %v21425_v39  ;;  %11540 = vmatprep.mubr.bf16.mxu0 %v21425_v39 }
0x110d   : > { %15446 = vrsqrt.f32 %v10850_v13  ;;  %v10946_v49 = vmul.f32 %v20232_v2, %v10910_v36  ;;  %v11221_v0 = vpop.f32.mrf.mxu1  ;;  %v11414_v48 = vpop.f32.mrf.mxu0  ;;  %v21428_v13 = vld [vmem:[#allocation29_spill] sm:$0xff] }
0x110e   : > { %v15441_v4 = vpop.eup %15440  ;;  %v11415_v26 = vadd.f32 %v11414_v48, %v20458_v11  ;;  %v20470_v36 = vrot.slane %v11003_v55, %v21428_v13 }
0x110f   : > { %v10982_v8 = vadd.f32 %v20241_v32, %v10946_v49  ;;  %v10911_v42 = vmul.f32 %v15441_v4, %v20296_v52  ;;  %v11223_v17 = vpop.f32.mrf.mxu1  ;;  %v11416_v3 = vpop.f32.mrf.mxu0 }
0x1110   : > { %v11574_v48 = vmax.f32 %v11415_v26, 0.0 }
0x1111   : > { %v11000_v45 = vpack.c.bf16 %v10982_v8, %v10981_v1  ;;  %v10947_v44 = vmul.f32 %v20232_v2, %v10911_v42  ;;  %v11225_v40 = vpop.f32.mrf.mxu1  ;;  %v11418_v52 = vpop.f32.mrf.mxu0  ;;  %v11224_v1 = vadd.f32 %v11223_v17, %v20470_v36 }
0x1112   : > { %v15443_v15 = vpop.eup %15442  ;;  %v11419_v28 = vadd.f32 %v11418_v52, %v20458_v11 }
0x1113   : > { %11348 = vmatmul.mubr.bf16.gmra.mxu1 %v11000_v45  ;;  %11541 = vmatmul.mubr.bf16.gmra.mxu0 %v11000_v45  ;;  %v10912_v25 = vmul.f32 %v15443_v15, %v20306_v7  ;;  %v10983_v58 = vadd.f32 %v20241_v32, %v10947_v44  ;;  %v21426_v7 = vsub.s32 1, %v21369_v35  ;;  %v11220_v45 = vadd.f32 %v11219_v6, %v20470_v36 }
0x1114   : > { %11357 = vmatprep.mubr.bf16.mxu1 %v21425_v39  ;;  %11550 = vmatprep.mubr.bf16.mxu0 %v21425_v39  ;;  %v11578_v29 = vmax.f32 %v11419_v28, 0.0  ;;  %v11575_v35 = vmax.f32 %v11224_v1, 0.0 }
0x1115   : > { %v10948_v43 = vmul.f32 %v20232_v2, %v10912_v25  ;;  %v20454_v47 = vrot.slane %v11003_v55, %v21426_v7 }
0x1116   : > { %v15445_v10 = vpop.eup %15444  ;;  %v11702_v42 = vpack.c.bf16 %v11578_v29, %v11574_v48 }
0x1117   : > { %v10984_v12 = vadd.f32 %v20241_v32, %v10948_v43  ;;  %v10913_v34 = vmul.f32 %v15445_v10, %v20314_v63  ;;  %v11226_v57 = vadd.f32 %v11225_v40, %v20454_v47  ;;  %v11222_v33 = vadd.f32 %v11221_v0, %v20454_v47 }
0x1119   : > { %v11001_v54 = vpack.c.bf16 %v10984_v12, %v10983_v58  ;;  %v10949_v63 = vmul.f32 %v20232_v2, %v10913_v34  ;;  %v11576_v18 = vmax.f32 %v11226_v57, 0.0  ;;  %v11572_v0 = vmax.f32 %v11222_v33, 0.0 }
0x111a   : > { %v15447_v61 = vpop.eup %15446 }
0x111b   : > { %11358 = vmatmul.mubr.bf16.gmra.mxu1 %v11001_v54  ;;  %11551 = vmatmul.mubr.bf16.gmra.mxu0 %v11001_v54  ;;  %v10914_v62 = vmul.f32 %v15447_v61, %v20324_v56  ;;  %v20474_v56 = vrot.slane %v11003_v55, %v21429_v59  ;;  %v10985_v49 = vadd.f32 %v20241_v32, %v10949_v63 }
0x111c   : > { %11367 = vmatprep.mubr.bf16.mxu1 %v21425_v39  ;;  %11560 = vmatprep.mubr.bf16.mxu0 %v21425_v39  ;;  %v11700_v8 = vpack.c.bf16 %v11576_v18, %v11572_v0 }
0x111d   : > { %v10950_v50 = vmul.f32 %v20232_v2, %v10914_v62  ;;  %v11417_v39 = vadd.f32 %v11416_v3, %v20474_v56  ;;  %v11413_v15 = vadd.f32 %v11412_v14, %v20474_v56 }
0x111f   : > { %v10986_v4 = vadd.f32 %v20241_v32, %v10950_v50  ;;  %v11577_v25 = vmax.f32 %v11417_v39, 0.0  ;;  %v11571_v32 = vmax.f32 %v11220_v45, 0.0  ;;  %v11573_v44 = vmax.f32 %v11413_v15, 0.0 }
0x1121   : > { %v11002_v2 = vpack.c.bf16 %v10986_v4, %v10985_v49  ;;  %v11699_v43 = vpack.c.bf16 %v11575_v35, %v11571_v32  ;;  %v11701_v10 = vpack.c.bf16 %v11577_v25, %v11573_v44 }
0x1123   : > { %11368 = vmatmul.mubr.bf16.gmra.mxu1 %v11002_v2  ;;  %11561 = vmatmul.mubr.bf16.gmra.mxu0 %v11002_v2 }
0x1124   : > { %12051 = vmatprep.mubr.bf16.mxu1 %v11700_v8  ;;  %12212 = vmatprep.mubr.bf16.mxu0 %v11702_v42 }
0x112b   : > { %12052 = vmatmul.mubr.bf16.vlgmr.msra.gmra.mxu1 %v11699_v43  ;;  %12213 = vmatmul.mubr.bf16.vlgmr.msra.gmra.mxu0 %v11701_v10 }
0x1130   : > { %v11229_v17 = vpop.f32.mrf.mxu1  ;;  %v11422_v3 = vpop.f32.mrf.mxu0 }
0x1131   : > { %v11230_v7 = vadd.f32 %v11229_v17, %v20470_v36  ;;  %v11423_v38 = vadd.f32 %v11422_v3, %v20474_v56 }
0x1132   : > { %v11231_v55 = vpop.f32.mrf.mxu1  ;;  %v11424_v40 = vpop.f32.mrf.mxu0 }
0x1133   : > { %v11232_v14 = vadd.f32 %v11231_v55, %v20454_v47  ;;  %v11425_v58 = vadd.f32 %v11424_v40, %v20458_v11  ;;  %v11579_v49 = vmax.f32 %v11230_v7, 0.0  ;;  %v11581_v4 = vmax.f32 %v11423_v38, 0.0 }
0x1134   : > { %v11233_v52 = vpop.f32.mrf.mxu1  ;;  %v11426_v6 = vpop.f32.mrf.mxu0 }
0x1135   : > { %v11234_v12 = vadd.f32 %v11233_v52, %v20470_v36  ;;  %v11427_v34 = vadd.f32 %v11426_v6, %v20474_v56  ;;  %v11580_v50 = vmax.f32 %v11232_v14, 0.0  ;;  %v11582_v18 = vmax.f32 %v11425_v58, 0.0 }
0x1136   : > { %v11235_v54 = vpop.f32.mrf.mxu1  ;;  %v11428_v61 = vpop.f32.mrf.mxu0 }
0x1137   : > { %v11236_v57 = vadd.f32 %v11235_v54, %v20454_v47  ;;  %v11429_v28 = vadd.f32 %v11428_v61, %v20458_v11  ;;  %v11583_v62 = vmax.f32 %v11234_v12, 0.0  ;;  %v11585_v63 = vmax.f32 %v11427_v34, 0.0 }
0x1138   : > { %v11239_v33 = vpop.f32.mrf.mxu1  ;;  %v11432_v26 = vpop.f32.mrf.mxu0 }
0x1139   : > { %v11584_v29 = vmax.f32 %v11236_v57, 0.0  ;;  %v11586_v59 = vmax.f32 %v11429_v28, 0.0  ;;  %v11703_v2 = vpack.c.bf16 %v11583_v62, %v11579_v49  ;;  %v11705_v8 = vpack.c.bf16 %v11585_v63, %v11581_v4 }
0x113a   : > { %v11241_v0 = vpop.f32.mrf.mxu1  ;;  %v11434_v48 = vpop.f32.mrf.mxu0  ;;  %v11240_v44 = vadd.f32 %v11239_v33, %v20470_v36  ;;  %v11433_v43 = vadd.f32 %v11432_v26, %v20474_v56 }
0x113b   : > { %v11704_v1 = vpack.c.bf16 %v11584_v29, %v11580_v50  ;;  %v11706_v39 = vpack.c.bf16 %v11586_v59, %v11582_v18  ;;  %v11242_v42 = vadd.f32 %v11241_v0, %v20454_v47  ;;  %v11435_v35 = vadd.f32 %v11434_v48, %v20458_v11 }
0x113c   : > { %v11243_v45 = vpop.f32.mrf.mxu1  ;;  %v11436_v15 = vpop.f32.mrf.mxu0  ;;  %v11587_v38 = vmax.f32 %v11240_v44, 0.0  ;;  %v11589_v54 = vmax.f32 %v11433_v43, 0.0 }
0x113d   : > { %v11244_v25 = vadd.f32 %v11243_v45, %v20470_v36  ;;  %v11437_v32 = vadd.f32 %v11436_v15, %v20474_v56  ;;  %12059 = vmatprep.mubr.bf16.mxu1 %v11704_v1  ;;  %12220 = vmatprep.mubr.bf16.mxu0 %v11706_v39  ;;  %v11588_v58 = vmax.f32 %v11242_v42, 0.0  ;;  %v11590_v12 = vmax.f32 %v11435_v35, 0.0 }
0x113e   : > { %v11245_v10 = vpop.f32.mrf.mxu1  ;;  %v11438_v17 = vpop.f32.mrf.mxu0  ;;  %12060 = vmatmul.mubr.bf16.gmra.mxu1 %v11703_v2  ;;  %12221 = vmatmul.mubr.bf16.gmra.mxu0 %v11705_v8 }
0x113f   : > { %v11246_v3 = vadd.f32 %v11245_v10, %v20454_v47  ;;  %v11439_v55 = vadd.f32 %v11438_v17, %v20458_v11  ;;  %v11591_v40 = vmax.f32 %v11244_v25, 0.0  ;;  %v11593_v52 = vmax.f32 %v11437_v32, 0.0 }
0x1140   : > { %v11249_v6 = vpop.f32.mrf.mxu1  ;;  %v11442_v14 = vpop.f32.mrf.mxu0 }
0x1141   : > { %v11592_v34 = vmax.f32 %v11246_v3, 0.0  ;;  %v11594_v7 = vmax.f32 %v11439_v55, 0.0  ;;  %v11707_v63 = vpack.c.bf16 %v11591_v40, %v11587_v38  ;;  %v11709_v33 = vpack.c.bf16 %v11593_v52, %v11589_v54 }
0x1142   : > { %v11251_v61 = vpop.f32.mrf.mxu1  ;;  %v11444_v57 = vpop.f32.mrf.mxu0  ;;  %v11250_v4 = vadd.f32 %v11249_v6, %v20470_v36  ;;  %v11443_v0 = vadd.f32 %v11442_v14, %v20474_v56 }
0x1143   : > { %v11708_v28 = vpack.c.bf16 %v11592_v34, %v11588_v58  ;;  %v11710_v62 = vpack.c.bf16 %v11594_v7, %v11590_v12  ;;  %v11252_v26 = vadd.f32 %v11251_v61, %v20454_v47  ;;  %v11445_v29 = vadd.f32 %v11444_v57, %v20458_v11 }
0x1144   : > { %v11253_v50 = vpop.f32.mrf.mxu1  ;;  %v11446_v18 = vpop.f32.mrf.mxu0  ;;  %v11595_v43 = vmax.f32 %v11250_v4, 0.0  ;;  %v11597_v10 = vmax.f32 %v11443_v0, 0.0 }
0x1145   : > { %v11254_v59 = vadd.f32 %v11253_v50, %v20470_v36  ;;  %v11447_v49 = vadd.f32 %v11446_v18, %v20474_v56  ;;  %12067 = vmatprep.mubr.bf16.mxu1 %v11708_v28  ;;  %12228 = vmatprep.mubr.bf16.mxu0 %v11710_v62  ;;  %v11596_v35 = vmax.f32 %v11252_v26, 0.0  ;;  %v11598_v25 = vmax.f32 %v11445_v29, 0.0 }
0x1146   : > { %v11255_v48 = vpop.f32.mrf.mxu1  ;;  %v11448_v1 = vpop.f32.mrf.mxu0  ;;  %12068 = vmatmul.mubr.bf16.gmra.mxu1 %v11707_v63  ;;  %12229 = vmatmul.mubr.bf16.gmra.mxu0 %v11709_v33 }
0x1147   : > { %v11256_v39 = vadd.f32 %v11255_v48, %v20454_v47  ;;  %v11449_v2 = vadd.f32 %v11448_v1, %v20458_v11  ;;  %v11599_v8 = vmax.f32 %v11254_v59, 0.0  ;;  %v11601_v42 = vmax.f32 %v11447_v49, 0.0 }
0x1148   : > { %v11259_v45 = vpop.f32.mrf.mxu1  ;;  %v11452_v15 = vpop.f32.mrf.mxu0 }
0x1149   : > { %v11600_v32 = vmax.f32 %v11256_v39, 0.0  ;;  %v11602_v44 = vmax.f32 %v11449_v2, 0.0  ;;  %v11711_v52 = vpack.c.bf16 %v11599_v8, %v11595_v43  ;;  %v11713_v6 = vpack.c.bf16 %v11601_v42, %v11597_v10 }
0x114a   : > { %v11261_v17 = vpop.f32.mrf.mxu1  ;;  %v11454_v3 = vpop.f32.mrf.mxu0  ;;  %v11260_v54 = vadd.f32 %v11259_v45, %v20470_v36  ;;  %v11453_v61 = vadd.f32 %v11452_v15, %v20474_v56 }
0x114b   : > { %v11712_v55 = vpack.c.bf16 %v11600_v32, %v11596_v35  ;;  %v11714_v40 = vpack.c.bf16 %v11602_v44, %v11598_v25  ;;  %v11262_v14 = vadd.f32 %v11261_v17, %v20454_v47  ;;  %v11455_v34 = vadd.f32 %v11454_v3, %v20458_v11 }
0x114c   : > { %v11263_v58 = vpop.f32.mrf.mxu1  ;;  %v11456_v12 = vpop.f32.mrf.mxu0  ;;  %v11603_v0 = vmax.f32 %v11260_v54, 0.0  ;;  %v11605_v48 = vmax.f32 %v11453_v61, 0.0 }
0x114d   : > { %v11264_v7 = vadd.f32 %v11263_v58, %v20470_v36  ;;  %v11457_v38 = vadd.f32 %v11456_v12, %v20474_v56  ;;  %12075 = vmatprep.mubr.bf16.mxu1 %v11712_v55  ;;  %12236 = vmatprep.mubr.bf16.mxu0 %v11714_v40  ;;  %v11604_v29 = vmax.f32 %v11262_v14, 0.0  ;;  %v11606_v59 = vmax.f32 %v11455_v34, 0.0 }
0x114e   : > { %v11265_v57 = vpop.f32.mrf.mxu1  ;;  %v11458_v28 = vpop.f32.mrf.mxu0  ;;  %12076 = vmatmul.mubr.bf16.gmra.mxu1 %v11711_v52  ;;  %12237 = vmatmul.mubr.bf16.gmra.mxu0 %v11713_v6 }
0x114f   : > { %v11266_v62 = vadd.f32 %v11265_v57, %v20454_v47  ;;  %v11459_v63 = vadd.f32 %v11458_v28, %v20458_v11  ;;  %v11607_v33 = vmax.f32 %v11264_v7, 0.0  ;;  %v11609_v26 = vmax.f32 %v11457_v38, 0.0 }
0x1150   : > { %v11269_v50 = vpop.f32.mrf.mxu1  ;;  %v11462_v18 = vpop.f32.mrf.mxu0 }
0x1151   : > { %v11608_v49 = vmax.f32 %v11266_v62, 0.0  ;;  %v11610_v4 = vmax.f32 %v11459_v63, 0.0  ;;  %v11715_v42 = vpack.c.bf16 %v11607_v33, %v11603_v0  ;;  %v11717_v45 = vpack.c.bf16 %v11609_v26, %v11605_v48 }
0x1152   : > { %v11271_v1 = vpop.f32.mrf.mxu1  ;;  %v11464_v39 = vpop.f32.mrf.mxu0  ;;  %v11270_v10 = vadd.f32 %v11269_v50, %v20470_v36  ;;  %v11463_v17 = vadd.f32 %v11462_v18, %v20474_v56 }
0x1153   : > { %v11716_v2 = vpack.c.bf16 %v11608_v49, %v11604_v29  ;;  %v11718_v8 = vpack.c.bf16 %v11610_v4, %v11606_v59  ;;  %v11272_v15 = vadd.f32 %v11271_v1, %v20454_v47  ;;  %v11465_v32 = vadd.f32 %v11464_v39, %v20458_v11 }
0x1154   : > { %v11273_v35 = vpop.f32.mrf.mxu1  ;;  %v11466_v25 = vpop.f32.mrf.mxu0  ;;  %v11611_v61 = vmax.f32 %v11270_v10, 0.0  ;;  %v11613_v57 = vmax.f32 %v11463_v17, 0.0 }
0x1155   : > { %v11274_v44 = vadd.f32 %v11273_v35, %v20470_v36  ;;  %v11467_v43 = vadd.f32 %v11466_v25, %v20474_v56  ;;  %12083 = vmatprep.mubr.bf16.mxu1 %v11716_v2  ;;  %12244 = vmatprep.mubr.bf16.mxu0 %v11718_v8  ;;  %v11612_v34 = vmax.f32 %v11272_v15, 0.0  ;;  %v11614_v7 = vmax.f32 %v11465_v32, 0.0 }
0x1156   : > { %v11275_v3 = vpop.f32.mrf.mxu1  ;;  %v11468_v55 = vpop.f32.mrf.mxu0  ;;  %12084 = vmatmul.mubr.bf16.gmra.mxu1 %v11715_v42  ;;  %12245 = vmatmul.mubr.bf16.gmra.mxu0 %v11717_v45 }
0x1157   : > { %v11276_v40 = vadd.f32 %v11275_v3, %v20454_v47  ;;  %v11469_v52 = vadd.f32 %v11468_v55, %v20458_v11  ;;  %v11615_v6 = vmax.f32 %v11274_v44, 0.0  ;;  %v11617_v14 = vmax.f32 %v11467_v43, 0.0 }
0x1158   : > { %v11279_v58 = vpop.f32.mrf.mxu1  ;;  %v11472_v12 = vpop.f32.mrf.mxu0 }
0x1159   : > { %v11616_v38 = vmax.f32 %v11276_v40, 0.0  ;;  %v11618_v54 = vmax.f32 %v11469_v52, 0.0  ;;  %v11719_v26 = vpack.c.bf16 %v11615_v6, %v11611_v61  ;;  %v11721_v50 = vpack.c.bf16 %v11617_v14, %v11613_v57 }
0x115a   : > { %v11281_v28 = vpop.f32.mrf.mxu1  ;;  %v11474_v62 = vpop.f32.mrf.mxu0  ;;  %v11280_v48 = vadd.f32 %v11279_v58, %v20470_v36  ;;  %v11473_v1 = vadd.f32 %v11472_v12, %v20474_v56 }
0x115b   : > { %v11720_v63 = vpack.c.bf16 %v11616_v38, %v11612_v34  ;;  %v11722_v33 = vpack.c.bf16 %v11618_v54, %v11614_v7  ;;  %v11282_v18 = vadd.f32 %v11281_v28, %v20454_v47  ;;  %v11475_v49 = vadd.f32 %v11474_v62, %v20458_v11 }
0x115c   : > { %v11283_v29 = vpop.f32.mrf.mxu1  ;;  %v11476_v59 = vpop.f32.mrf.mxu0  ;;  %v11619_v17 = vmax.f32 %v11280_v48, 0.0  ;;  %v11621_v3 = vmax.f32 %v11473_v1, 0.0 }
0x115d   : > { %v11284_v4 = vadd.f32 %v11283_v29, %v20470_v36  ;;  %v11477_v0 = vadd.f32 %v11476_v59, %v20474_v56  ;;  %12091 = vmatprep.mubr.bf16.mxu1 %v11720_v63  ;;  %12252 = vmatprep.mubr.bf16.mxu0 %v11722_v33  ;;  %v11620_v32 = vmax.f32 %v11282_v18, 0.0  ;;  %v11622_v44 = vmax.f32 %v11475_v49, 0.0 }
0x115e   : > { %v11285_v39 = vpop.f32.mrf.mxu1  ;;  %v11478_v2 = vpop.f32.mrf.mxu0  ;;  %12092 = vmatmul.mubr.bf16.gmra.mxu1 %v11719_v26  ;;  %12253 = vmatmul.mubr.bf16.gmra.mxu0 %v11721_v50 }
0x115f   : > { %v11286_v8 = vadd.f32 %v11285_v39, %v20454_v47  ;;  %v11479_v42 = vadd.f32 %v11478_v2, %v20458_v11  ;;  %v11623_v45 = vmax.f32 %v11284_v4, 0.0  ;;  %v11625_v15 = vmax.f32 %v11477_v0, 0.0 }
0x1160   : > { %v11289_v35 = vpop.f32.mrf.mxu1  ;;  %v11482_v25 = vpop.f32.mrf.mxu0 }
0x1161   : > { %v11624_v43 = vmax.f32 %v11286_v8, 0.0  ;;  %v11626_v10 = vmax.f32 %v11479_v42, 0.0  ;;  %v11723_v14 = vpack.c.bf16 %v11623_v45, %v11619_v17  ;;  %v11725_v58 = vpack.c.bf16 %v11625_v15, %v11621_v3 }
0x1162   : > { %v11291_v55 = vpop.f32.mrf.mxu1  ;;  %v11484_v40 = vpop.f32.mrf.mxu0  ;;  %v11290_v57 = vadd.f32 %v11289_v35, %v20470_v36  ;;  %v11483_v28 = vadd.f32 %v11482_v25, %v20474_v56 }
0x1163   : > { %v11724_v52 = vpack.c.bf16 %v11624_v43, %v11620_v32  ;;  %v11726_v6 = vpack.c.bf16 %v11626_v10, %v11622_v44  ;;  %v11292_v12 = vadd.f32 %v11291_v55, %v20454_v47  ;;  %v11485_v38 = vadd.f32 %v11484_v40, %v20458_v11 }
0x1164   : > { %v11293_v34 = vpop.f32.mrf.mxu1  ;;  %v11486_v7 = vpop.f32.mrf.mxu0  ;;  %v11627_v0 = vmax.f32 %v11290_v57, 0.0  ;;  %v11629_v48 = vmax.f32 %v11483_v28, 0.0 }
0x1165   : > { %v11294_v54 = vadd.f32 %v11293_v34, %v20470_v36  ;;  %v11487_v61 = vadd.f32 %v11486_v7, %v20474_v56  ;;  %12099 = vmatprep.mubr.bf16.mxu1 %v11724_v52  ;;  %12260 = vmatprep.mubr.bf16.mxu0 %v11726_v6  ;;  %v11628_v29 = vmax.f32 %v11292_v12, 0.0  ;;  %v11630_v59 = vmax.f32 %v11485_v38, 0.0 }
0x1166   : > { %v11295_v62 = vpop.f32.mrf.mxu1  ;;  %v11488_v63 = vpop.f32.mrf.mxu0  ;;  %12100 = vmatmul.mubr.bf16.gmra.mxu1 %v11723_v14  ;;  %12261 = vmatmul.mubr.bf16.gmra.mxu0 %v11725_v58 }
0x1167   : > { %v11296_v33 = vadd.f32 %v11295_v62, %v20454_v47  ;;  %v11489_v26 = vadd.f32 %v11488_v63, %v20458_v11  ;;  %v11631_v50 = vmax.f32 %v11294_v54, 0.0  ;;  %v11633_v18 = vmax.f32 %v11487_v61, 0.0 }
0x1169   : > { %v11632_v49 = vmax.f32 %v11296_v33, 0.0  ;;  %v11634_v4 = vmax.f32 %v11489_v26, 0.0  ;;  %v11727_v2 = vpack.c.bf16 %v11631_v50, %v11627_v0  ;;  %v11729_v8 = vpack.c.bf16 %v11633_v18, %v11629_v48 }
0x116b   : > { %v11728_v1 = vpack.c.bf16 %v11632_v49, %v11628_v29  ;;  %v11730_v39 = vpack.c.bf16 %v11634_v4, %v11630_v59 }
0x116d   : > { %12107 = vmatprep.mubr.bf16.mxu1 %v11728_v1  ;;  %12268 = vmatprep.mubr.bf16.mxu0 %v11730_v39 }
0x116e   : > { %12108 = vmatmul.mubr.bf16.gmra.mxu1 %v11727_v2  ;;  %12269 = vmatmul.mubr.bf16.gmra.mxu0 %v11729_v8 }
0x1186   : > { %v11299_v42 = vpop.f32.mrf.mxu1  ;;  %v11492_v45 = vpop.f32.mrf.mxu0 }
0x1187   : > { %v11300_v3 = vadd.f32 %v11299_v42, %v20470_v36  ;;  %v11493_v55 = vadd.f32 %v11492_v45, %v20474_v56 }
0x1188   : > { %v11301_v15 = vpop.f32.mrf.mxu1  ;;  %v11494_v35 = vpop.f32.mrf.mxu0 }
0x1189   : > { %v11302_v44 = vadd.f32 %v11301_v15, %v20454_v47  ;;  %v11495_v43 = vadd.f32 %v11494_v35, %v20458_v11  ;;  %v11635_v28 = vmax.f32 %v11300_v3, 0.0  ;;  %v11637_v62 = vmax.f32 %v11493_v55, 0.0 }
0x118a   : > { %v11303_v25 = vpop.f32.mrf.mxu1  ;;  %v11496_v32 = vpop.f32.mrf.mxu0 }
0x118b   : > { %v11304_v10 = vadd.f32 %v11303_v25, %v20470_v36  ;;  %v11497_v17 = vadd.f32 %v11496_v32, %v20474_v56  ;;  %v11636_v38 = vmax.f32 %v11302_v44, 0.0  ;;  %v11638_v54 = vmax.f32 %v11495_v43, 0.0 }
0x118c   : > { %v11305_v40 = vpop.f32.mrf.mxu1  ;;  %v11498_v52 = vpop.f32.mrf.mxu0 }
0x118d   : > { %v11306_v6 = vadd.f32 %v11305_v40, %v20454_v47  ;;  %v11499_v14 = vadd.f32 %v11498_v52, %v20458_v11  ;;  %v11639_v58 = vmax.f32 %v11304_v10, 0.0  ;;  %v11641_v12 = vmax.f32 %v11497_v17, 0.0 }
0x118e   : > { %v11309_v34 = vpop.f32.mrf.mxu1  ;;  %v11502_v7 = vpop.f32.mrf.mxu0 }
0x118f   : > { %v11640_v61 = vmax.f32 %v11306_v6, 0.0  ;;  %v11642_v57 = vmax.f32 %v11499_v14, 0.0  ;;  %v11731_v18 = vpack.c.bf16 %v11639_v58, %v11635_v28  ;;  %v11733_v29 = vpack.c.bf16 %v11641_v12, %v11637_v62 }
0x1190   : > { %v11311_v63 = vpop.f32.mrf.mxu1  ;;  %v11504_v33 = vpop.f32.mrf.mxu0  ;;  %v11310_v39 = vadd.f32 %v11309_v34, %v20470_v36  ;;  %v11503_v2 = vadd.f32 %v11502_v7, %v20474_v56 }
0x1191   : > { %v11732_v26 = vpack.c.bf16 %v11640_v61, %v11636_v38  ;;  %v11734_v50 = vpack.c.bf16 %v11642_v57, %v11638_v54  ;;  %v11312_v59 = vadd.f32 %v11311_v63, %v20454_v47  ;;  %v11505_v0 = vadd.f32 %v11504_v33, %v20458_v11 }
0x1192   : > { %v11313_v49 = vpop.f32.mrf.mxu1  ;;  %v11506_v4 = vpop.f32.mrf.mxu0  ;;  %v11643_v17 = vmax.f32 %v11310_v39, 0.0  ;;  %v11645_v3 = vmax.f32 %v11503_v2, 0.0 }
0x1193   : > { %v11314_v48 = vadd.f32 %v11313_v49, %v20470_v36  ;;  %v11507_v1 = vadd.f32 %v11506_v4, %v20474_v56  ;;  %12115 = vmatprep.mubr.bf16.mxu1 %v11732_v26  ;;  %12276 = vmatprep.mubr.bf16.mxu0 %v11734_v50  ;;  %v11644_v32 = vmax.f32 %v11312_v59, 0.0  ;;  %v11646_v44 = vmax.f32 %v11505_v0, 0.0 }
0x1194   : > { %v11315_v8 = vpop.f32.mrf.mxu1  ;;  %v11508_v42 = vpop.f32.mrf.mxu0  ;;  %12116 = vmatmul.mubr.bf16.gmra.mxu1 %v11731_v18  ;;  %12277 = vmatmul.mubr.bf16.gmra.mxu0 %v11733_v29 }
0x1195   : > { %v11316_v45 = vadd.f32 %v11315_v8, %v20454_v47  ;;  %v11509_v15 = vadd.f32 %v11508_v42, %v20458_v11  ;;  %v11647_v35 = vmax.f32 %v11314_v48, 0.0  ;;  %v11649_v25 = vmax.f32 %v11507_v1, 0.0 }
0x1197   : > { %v11648_v43 = vmax.f32 %v11316_v45, 0.0  ;;  %v11650_v10 = vmax.f32 %v11509_v15, 0.0  ;;  %v11735_v52 = vpack.c.bf16 %v11647_v35, %v11643_v17  ;;  %v11737_v6 = vpack.c.bf16 %v11649_v25, %v11645_v3 }
0x1199   : > { %v11736_v55 = vpack.c.bf16 %v11648_v43, %v11644_v32  ;;  %v11738_v40 = vpack.c.bf16 %v11650_v10, %v11646_v44 }
0x119b   : > { %12123 = vmatprep.mubr.bf16.mxu1 %v11736_v55  ;;  %12284 = vmatprep.mubr.bf16.mxu0 %v11738_v40 }
0x119c   : > { %12124 = vmatmul.mubr.bf16.gmra.mxu1 %v11735_v52  ;;  %12285 = vmatmul.mubr.bf16.gmra.mxu0 %v11737_v6 }
0x11bb   : > { %v11319_v14 = vpop.f32.mrf.mxu1  ;;  %v11512_v58 = vpop.f32.mrf.mxu0 }
0x11bc   : > { %v11320_v62 = vadd.f32 %v11319_v14, %v20470_v36  ;;  %v11513_v63 = vadd.f32 %v11512_v58, %v20474_v56 }
0x11bd   : > { %v11321_v12 = vpop.f32.mrf.mxu1  ;;  %v11514_v34 = vpop.f32.mrf.mxu0 }
0x11be   : > { %v11322_v54 = vadd.f32 %v11321_v12, %v20454_v47  ;;  %v11515_v61 = vadd.f32 %v11514_v34, %v20458_v11  ;;  %v11651_v2 = vmax.f32 %v11320_v62, 0.0  ;;  %v11653_v8 = vmax.f32 %v11513_v63, 0.0 }
0x11bf   : > { %v11323_v7 = vpop.f32.mrf.mxu1  ;;  %v11516_v38 = vpop.f32.mrf.mxu0 }
0x11c0   : > { %v11324_v57 = vadd.f32 %v11323_v7, %v20470_v36  ;;  %v11517_v28 = vadd.f32 %v11516_v38, %v20474_v56  ;;  %v11652_v0 = vmax.f32 %v11322_v54, 0.0  ;;  %v11654_v48 = vmax.f32 %v11515_v61, 0.0 }
0x11c1   : > { %v11325_v33 = vpop.f32.mrf.mxu1  ;;  %v11518_v26 = vpop.f32.mrf.mxu0 }
0x11c2   : > { %v11326_v50 = vadd.f32 %v11325_v33, %v20454_v47  ;;  %v11519_v18 = vadd.f32 %v11518_v26, %v20458_v11  ;;  %v11655_v29 = vmax.f32 %v11324_v57, 0.0  ;;  %v11657_v59 = vmax.f32 %v11517_v28, 0.0 }
0x11c3   : > { %v11329_v49 = vpop.f32.mrf.mxu1  ;;  %v11522_v4 = vpop.f32.mrf.mxu0 }
0x11c4   : > { %v11656_v1 = vmax.f32 %v11326_v50, 0.0  ;;  %v11658_v39 = vmax.f32 %v11519_v18, 0.0  ;;  %v11739_v25 = vpack.c.bf16 %v11655_v29, %v11651_v2  ;;  %v11741_v32 = vpack.c.bf16 %v11657_v59, %v11653_v8 }
0x11c5   : > { %v11331_v42 = vpop.f32.mrf.mxu1  ;;  %v11524_v45 = vpop.f32.mrf.mxu0  ;;  %v11330_v40 = vadd.f32 %v11329_v49, %v20470_v36  ;;  %v11523_v52 = vadd.f32 %v11522_v4, %v20474_v56 }
0x11c6   : > { %v11740_v15 = vpack.c.bf16 %v11656_v1, %v11652_v0  ;;  %v11742_v35 = vpack.c.bf16 %v11658_v39, %v11654_v48  ;;  %v11332_v44 = vadd.f32 %v11331_v42, %v20454_v47  ;;  %v11525_v17 = vadd.f32 %v11524_v45, %v20458_v11 }
0x11c7   : > { %v11333_v43 = vpop.f32.mrf.mxu1  ;;  %v11526_v10 = vpop.f32.mrf.mxu0  ;;  %v11659_v63 = vmax.f32 %v11330_v40, 0.0  ;;  %v11661_v33 = vmax.f32 %v11523_v52, 0.0 }
0x11c8   : > { %v11334_v3 = vadd.f32 %v11333_v43, %v20470_v36  ;;  %v11527_v55 = vadd.f32 %v11526_v10, %v20474_v56  ;;  %12131 = vmatprep.mubr.bf16.mxu1 %v11740_v15  ;;  %12292 = vmatprep.mubr.bf16.mxu0 %v11742_v35  ;;  %v11660_v61 = vmax.f32 %v11332_v44, 0.0  ;;  %v11662_v57 = vmax.f32 %v11525_v17, 0.0 }
0x11c9   : > { %v11335_v6 = vpop.f32.mrf.mxu1  ;;  %v11528_v14 = vpop.f32.mrf.mxu0  ;;  %12132 = vmatmul.mubr.bf16.gmra.mxu1 %v11739_v25  ;;  %12293 = vmatmul.mubr.bf16.gmra.mxu0 %v11741_v32 }
0x11ca   : > { %v11336_v58 = vadd.f32 %v11335_v6, %v20454_v47  ;;  %v11529_v12 = vadd.f32 %v11528_v14, %v20458_v11  ;;  %v11663_v34 = vmax.f32 %v11334_v3, 0.0  ;;  %v11665_v7 = vmax.f32 %v11527_v55, 0.0 }
0x11cb   : > { %v11339_v38 = vpop.f32.mrf.mxu1  ;;  %v11532_v54 = vpop.f32.mrf.mxu0 }
0x11cc   : > { %v11664_v28 = vmax.f32 %v11336_v58, 0.0  ;;  %v11666_v62 = vmax.f32 %v11529_v12, 0.0  ;;  %v11743_v59 = vpack.c.bf16 %v11663_v34, %v11659_v63  ;;  %v11745_v49 = vpack.c.bf16 %v11665_v7, %v11661_v33 }
0x11cd   : > { %v11341_v26 = vpop.f32.mrf.mxu1  ;;  %v11534_v50 = vpop.f32.mrf.mxu0  ;;  %v11340_v8 = vadd.f32 %v11339_v38, %v20470_v36  ;;  %v11533_v42 = vadd.f32 %v11532_v54, %v20474_v56 }
0x11ce   : > { %v11744_v18 = vpack.c.bf16 %v11664_v28, %v11660_v61  ;;  %v11746_v29 = vpack.c.bf16 %v11666_v62, %v11662_v57  ;;  %v11342_v4 = vadd.f32 %v11341_v26, %v20454_v47  ;;  %v11535_v1 = vadd.f32 %v11534_v50, %v20458_v11 }
0x11cf   : > { %v11343_v0 = vpop.f32.mrf.mxu1  ;;  %v11536_v48 = vpop.f32.mrf.mxu0  ;;  %v11667_v52 = vmax.f32 %v11340_v8, 0.0  ;;  %v11669_v6 = vmax.f32 %v11533_v42, 0.0 }
0x11d0   : > { %v11344_v39 = vadd.f32 %v11343_v0, %v20470_v36  ;;  %v11537_v2 = vadd.f32 %v11536_v48, %v20474_v56  ;;  %12139 = vmatprep.mubr.bf16.mxu1 %v11744_v18  ;;  %12300 = vmatprep.mubr.bf16.mxu0 %v11746_v29  ;;  %v11668_v17 = vmax.f32 %v11342_v4, 0.0  ;;  %v11670_v3 = vmax.f32 %v11535_v1, 0.0 }
0x11d1   : > { %v11345_v45 = vpop.f32.mrf.mxu1  ;;  %v11538_v15 = vpop.f32.mrf.mxu0  ;;  %12140 = vmatmul.mubr.bf16.gmra.mxu1 %v11743_v59  ;;  %12301 = vmatmul.mubr.bf16.gmra.mxu0 %v11745_v49 }
0x11d2   : > { %v11346_v35 = vadd.f32 %v11345_v45, %v20454_v47  ;;  %v11539_v25 = vadd.f32 %v11538_v15, %v20458_v11  ;;  %v11671_v32 = vmax.f32 %v11344_v39, 0.0  ;;  %v11673_v44 = vmax.f32 %v11537_v2, 0.0 }
0x11d3   : > { %v11349_v43 = vpop.f32.mrf.mxu1  ;;  %v11542_v10 = vpop.f32.mrf.mxu0 }
0x11d4   : > { %v11672_v55 = vmax.f32 %v11346_v35, 0.0  ;;  %v11674_v40 = vmax.f32 %v11539_v25, 0.0  ;;  %v11747_v7 = vpack.c.bf16 %v11671_v32, %v11667_v52  ;;  %v11749_v38 = vpack.c.bf16 %v11673_v44, %v11669_v6 }
0x11d5   : > { %v11351_v14 = vpop.f32.mrf.mxu1  ;;  %v11544_v58 = vpop.f32.mrf.mxu0  ;;  %v11350_v33 = vadd.f32 %v11349_v43, %v20470_v36  ;;  %v11543_v26 = vadd.f32 %v11542_v10, %v20474_v56 }
0x11d6   : > { %v11748_v12 = vpack.c.bf16 %v11672_v55, %v11668_v17  ;;  %v11750_v34 = vpack.c.bf16 %v11674_v40, %v11670_v3  ;;  %v11352_v54 = vadd.f32 %v11351_v14, %v20454_v47  ;;  %v11545_v28 = vadd.f32 %v11544_v58, %v20458_v11 }
0x11d7   : > { %v11353_v61 = vpop.f32.mrf.mxu1  ;;  %v11546_v57 = vpop.f32.mrf.mxu0  ;;  %v11675_v42 = vmax.f32 %v11350_v33, 0.0  ;;  %v11677_v45 = vmax.f32 %v11543_v26, 0.0 }
0x11d8   : > { %v11354_v62 = vadd.f32 %v11353_v61, %v20470_v36  ;;  %v11547_v63 = vadd.f32 %v11546_v57, %v20474_v56  ;;  %12147 = vmatprep.mubr.bf16.mxu1 %v11748_v12  ;;  %12308 = vmatprep.mubr.bf16.mxu0 %v11750_v34  ;;  %v11676_v1 = vmax.f32 %v11352_v54, 0.0  ;;  %v11678_v39 = vmax.f32 %v11545_v28, 0.0 }
0x11d9   : > { %v11355_v50 = vpop.f32.mrf.mxu1  ;;  %v11548_v18 = vpop.f32.mrf.mxu0  ;;  %12148 = vmatmul.mubr.bf16.gmra.mxu1 %v11747_v7  ;;  %12309 = vmatmul.mubr.bf16.gmra.mxu0 %v11749_v38 }
0x11da   : > { %v11356_v29 = vadd.f32 %v11355_v50, %v20454_v47  ;;  %v11549_v59 = vadd.f32 %v11548_v18, %v20458_v11  ;;  %v11679_v49 = vmax.f32 %v11354_v62, 0.0  ;;  %v11681_v4 = vmax.f32 %v11547_v63, 0.0 }
0x11db   : > { %v11359_v0 = vpop.f32.mrf.mxu1  ;;  %v11552_v48 = vpop.f32.mrf.mxu0 }
0x11dc   : > { %v11680_v2 = vmax.f32 %v11356_v29, 0.0  ;;  %v11682_v8 = vmax.f32 %v11549_v59, 0.0  ;;  %v11751_v44 = vpack.c.bf16 %v11679_v49, %v11675_v42  ;;  %v11753_v43 = vpack.c.bf16 %v11681_v4, %v11677_v45 }
0x11dd   : > { %v11361_v15 = vpop.f32.mrf.mxu1  ;;  %v11554_v35 = vpop.f32.mrf.mxu0  ;;  %v11360_v6 = vadd.f32 %v11359_v0, %v20470_v36  ;;  %v11553_v14 = vadd.f32 %v11552_v48, %v20474_v56 }
0x11de   : > { %v11752_v25 = vpack.c.bf16 %v11680_v2, %v11676_v1  ;;  %v11754_v32 = vpack.c.bf16 %v11682_v8, %v11678_v39  ;;  %v11362_v10 = vadd.f32 %v11361_v15, %v20454_v47  ;;  %v11555_v55 = vadd.f32 %v11554_v35, %v20458_v11 }
0x11df   : > { %v11363_v17 = vpop.f32.mrf.mxu1  ;;  %v11556_v3 = vpop.f32.mrf.mxu0  ;;  %v11683_v26 = vmax.f32 %v11360_v6, 0.0  ;;  %v11685_v50 = vmax.f32 %v11553_v14, 0.0 }
0x11e0   : > { %v11364_v40 = vadd.f32 %v11363_v17, %v20470_v36  ;;  %v11557_v52 = vadd.f32 %v11556_v3, %v20474_v56  ;;  %12155 = vmatprep.mubr.bf16.mxu1 %v11752_v25  ;;  %12316 = vmatprep.mubr.bf16.mxu0 %v11754_v32  ;;  %v11684_v28 = vmax.f32 %v11362_v10, 0.0  ;;  %v11686_v62 = vmax.f32 %v11555_v55, 0.0 }
0x11e1   : > { %v11365_v58 = vpop.f32.mrf.mxu1  ;;  %v11558_v12 = vpop.f32.mrf.mxu0  ;;  %12156 = vmatmul.mubr.bf16.gmra.mxu1 %v11751_v44  ;;  %12317 = vmatmul.mubr.bf16.gmra.mxu0 %v11753_v43 }
0x11e2   : > { %v11366_v34 = vadd.f32 %v11365_v58, %v20454_v47  ;;  %v11559_v7 = vadd.f32 %v11558_v12, %v20458_v11  ;;  %v11687_v38 = vmax.f32 %v11364_v40, 0.0  ;;  %v11689_v54 = vmax.f32 %v11557_v52, 0.0  ;;  %v512_v58 = vld [vmem:[%s16057_s1 + $0x8] sm:$0xff]  ;;  %s15638_s1 = sshll.u32 %s15781_s29, 4  ;;  %s15639_s1 = int_to_ptr.vmem [resolvable:$false] %s15638_s1 }
0x11e3   : > { %v11369_v61 = vpop.f32.mrf.mxu1  ;;  %v11562_v57 = vpop.f32.mrf.mxu0  ;;  %s15640_s13 = scalar_lea.vmem %s15639_s1, 8192  ;;  %p15641_p8 = scmp.lt.s32.totalorder %s20707_s18, %s15639_s1 }
0x11e4   : > { %v11688_v63 = vmax.f32 %v11366_v34, 0.0  ;;  %v11690_v33 = vmax.f32 %v11559_v7, 0.0  ;;  %v11755_v4 = vpack.c.bf16 %v11687_v38, %v11683_v26  ;;  %v11757_v0 = vpack.c.bf16 %v11689_v54, %v11685_v50  ;;  %p15642_p3 = scmp.lt.s32.totalorder %s15640_s13, %s15634_s7 }
0x11e5   : > { %v11371_v18 = vpop.f32.mrf.mxu1  ;;  %v11564_v29 = vpop.f32.mrf.mxu0  ;;  %v11370_v45 = vadd.f32 %v11369_v61, %v20470_v36  ;;  %v11563_v15 = vadd.f32 %v11562_v57, %v20474_v56 }
0x11e6   : > { %v11756_v59 = vpack.c.bf16 %v11688_v63, %v11684_v28  ;;  %v11758_v49 = vpack.c.bf16 %v11690_v33, %v11686_v62  ;;  %v11372_v48 = vadd.f32 %v11371_v18, %v20454_v47  ;;  %v11565_v2 = vadd.f32 %v11564_v29, %v20458_v11  ;;  %p15643_p10 = por %p15642_p3, %p15641_p8 }
0x11e7   : > { %v11373_v1 = vpop.f32.mrf.mxu1  ;;  %v11566_v39 = vpop.f32.mrf.mxu0  ;;  %v11693_v14 = vmax.f32 %v11563_v15, 0.0  ;;  %v20604_v62 = vrot.slane %v512_v58, %v21428_v13 }
0x11e8   : > { %v11374_v8 = vadd.f32 %v11373_v1, %v20470_v36  ;;  %v11567_v42 = vadd.f32 %v11566_v39, %v20474_v56  ;;  %12163 = vmatprep.mubr.bf16.mxu1 %v11756_v59  ;;  %12324 = vmatprep.mubr.bf16.mxu0 %v11758_v49  ;;  %v11692_v55 = vmax.f32 %v11372_v48, 0.0  ;;  %v11694_v40 = vmax.f32 %v11565_v2, 0.0  ;;  %p15644_p5 = pnand %p15643_p10, %p15637_p2 }
0x11e9   : > { %v11375_v35 = vpop.f32.mrf.mxu1  ;;  %v11568_v25 = vpop.f32.mrf.mxu0  ;;  %12164 = vmatmul.mubr.bf16.gmra.mxu1 %v11755_v4  ;;  %12325 = vmatmul.mubr.bf16.gmra.mxu0 %v11757_v0  ;;  %v11691_v36 = vmax.f32 %v11370_v45, 0.0 }
0x11ea   : > { %v11376_v32 = vadd.f32 %v11375_v35, %v20454_v47  ;;  %v11569_v44 = vadd.f32 %v11568_v25, %v20458_v11  ;;  %v11695_v43 = vmax.f32 %v11374_v8, 0.0  ;;  %v11697_v10 = vmax.f32 %v11567_v42, 0.0 }
0x11eb   : > { %v13372_v17 = vpop.f32.mrf.mxu1  ;;  %v13484_v3 = vpop.f32.mrf.mxu0 }
0x11ec   : > { %v11696_v52 = vmax.f32 %v11376_v32, 0.0  ;;  %v11698_v6 = vmax.f32 %v11569_v44, 0.0  ;;  %v11759_v47 = vpack.c.bf16 %v11695_v43, %v11691_v36  ;;  %v11761_v61 = vpack.c.bf16 %v11697_v10, %v11693_v14 }
0x11ed   : > { %v13373_v56 = vpop.f32.mrf.mxu1  ;;  %v13485_v12 = vpop.f32.mrf.mxu0 }
0x11ee   : > { %v11760_v34 = vpack.c.bf16 %v11696_v52, %v11692_v55  ;;  %v11762_v7 = vpack.c.bf16 %v11698_v6, %v11694_v40  ;;  %v13374_v38 = vadd.f32 %v13373_v56, %v13372_v17  ;;  %v13486_v54 = vadd.f32 %v13485_v12, %v13484_v3 }
0x11ef   : > { %v13375_v11 = vpop.f32.mrf.mxu1  ;;  %v13487_v57 = vpop.f32.mrf.mxu0 }
0x11f0   : > { %v12215_v28 = vadd.f32 %v13486_v54, %v13374_v38  ;;  %12171 = vmatprep.mubr.bf16.mxu1 %v11760_v34  ;;  %12332 = vmatprep.mubr.bf16.mxu0 %v11762_v7 }
0x11f1   : > { %v13376_v63 = vpop.f32.mrf.mxu1  ;;  %12172 = vmatmul.mubr.bf16.gmra.mxu1 %v11759_v47  ;;  %v13488_v33 = vpop.f32.mrf.mxu0  ;;  %12333 = vmatmul.mubr.bf16.gmra.mxu0 %v11761_v61 }
0x11f2   : > { %v12341_v26 = vadd.f32 %v12215_v28, %v19892_v31  ;;  %v13377_v50 = vadd.f32 %v13376_v63, %v13375_v11  ;;  %v13489_v18 = vadd.f32 %v13488_v33, %v13487_v57 }
0x11f4   : > { %v12377_v29 = vadd.f32 %v20604_v62, %v12341_v26  ;;  %v12218_v59 = vadd.f32 %v13489_v18, %v13377_v50 }
0x11f6   : > { %12409 = vst [vmem:[%s16073_s14] sm:$0xff] %v12377_v29  ;;  %v12342_v49 = vadd.f32 %v12218_v59, %v19904_v46 }
0x11f8   : > { %v12378_v4 = vadd.f32 %v20604_v62, %v12342_v49 }
0x11fa   : > { %12410 = vst [vmem:[%s16073_s14 + $0x8] sm:$0xff] %v12378_v4 }
0x11fe   : > { %v13378_v13 = vpop.f32.mrf.mxu1  ;;  %v13490_v0 = vpop.f32.mrf.mxu0 }
0x1200   : > { %v13379_v48 = vpop.f32.mrf.mxu1  ;;  %v13491_v1 = vpop.f32.mrf.mxu0 }
0x1201   : > { %v13380_v39 = vadd.f32 %v13379_v48, %v13378_v13  ;;  %v13492_v2 = vadd.f32 %v13491_v1, %v13490_v0 }
0x1202   : > { %v13381_v8 = vpop.f32.mrf.mxu1  ;;  %v13493_v31 = vpop.f32.mrf.mxu0 }
0x1203   : > { %v12223_v42 = vadd.f32 %v13492_v2, %v13380_v39 }
0x1204   : > { %v13382_v45 = vpop.f32.mrf.mxu1  ;;  %v13494_v15 = vpop.f32.mrf.mxu0 }
0x1205   : > { %v12343_v35 = vadd.f32 %v12223_v42, %v19901_v41  ;;  %v13383_v25 = vadd.f32 %v13382_v45, %v13381_v8  ;;  %v13495_v32 = vadd.f32 %v13494_v15, %v13493_v31 }
0x1206   : > { %v13384_v46 = vpop.f32.mrf.mxu1  ;;  %v13496_v44 = vpop.f32.mrf.mxu0 }
0x1207   : > { %v12379_v43 = vadd.f32 %v20604_v62, %v12343_v35  ;;  %v12226_v10 = vadd.f32 %v13495_v32, %v13383_v25 }
0x1208   : > { %v13385_v17 = vpop.f32.mrf.mxu1  ;;  %v13497_v3 = vpop.f32.mrf.mxu0 }
0x1209   : > { %12411 = vst [vmem:[%s16073_s14 + $0x10] sm:$0xff] %v12379_v43  ;;  %v12344_v55 = vadd.f32 %v12226_v10, %v19913_v30  ;;  %v13386_v40 = vadd.f32 %v13385_v17, %v13384_v46  ;;  %v13498_v52 = vadd.f32 %v13497_v3, %v13496_v44 }
0x120a   : > { %v13387_v6 = vpop.f32.mrf.mxu1  ;;  %v13499_v36 = vpop.f32.mrf.mxu0 }
0x120b   : > { %v12380_v41 = vadd.f32 %v20604_v62, %v12344_v55  ;;  %v12231_v14 = vadd.f32 %v13498_v52, %v13386_v40 }
0x120c   : > { %v13388_v56 = vpop.f32.mrf.mxu1  ;;  %v13500_v58 = vpop.f32.mrf.mxu0 }
0x120d   : > { %12412 = vst [vmem:[%s16073_s14 + $0x18] sm:$0xff] %v12380_v41  ;;  %v12345_v12 = vadd.f32 %v12231_v14, %v19923_v9  ;;  %v13389_v34 = vadd.f32 %v13388_v56, %v13387_v6  ;;  %v13501_v7 = vadd.f32 %v13500_v58, %v13499_v36 }
0x120e   : > { %v13390_v38 = vpop.f32.mrf.mxu1  ;;  %v13502_v54 = vpop.f32.mrf.mxu0 }
0x120f   : > { %v12381_v30 = vadd.f32 %v20604_v62, %v12345_v12  ;;  %v12234_v47 = vadd.f32 %v13501_v7, %v13389_v34 }
0x1210   : > { %v13391_v61 = vpop.f32.mrf.mxu1  ;;  %v13503_v11 = vpop.f32.mrf.mxu0 }
0x1211   : > { %12413 = vst [vmem:[%s16073_s14 + $0x20] sm:$0xff] %v12381_v30  ;;  %v12346_v57 = vadd.f32 %v12234_v47, %v19926_v37  ;;  %v13392_v28 = vadd.f32 %v13391_v61, %v13390_v38  ;;  %v13504_v63 = vadd.f32 %v13503_v11, %v13502_v54 }
0x1212   : > { %v13393_v33 = vpop.f32.mrf.mxu1  ;;  %v13505_v26 = vpop.f32.mrf.mxu0 }
0x1213   : > { %v12382_v9 = vadd.f32 %v20604_v62, %v12346_v57  ;;  %v12239_v50 = vadd.f32 %v13504_v63, %v13392_v28 }
0x1214   : > { %v13394_v18 = vpop.f32.mrf.mxu1  ;;  %v13506_v29 = vpop.f32.mrf.mxu0 }
0x1215   : > { %12414 = vst [vmem:[%s16073_s14 + $0x28] sm:$0xff] %v12382_v9  ;;  %v12347_v59 = vadd.f32 %v12239_v50, %v19933_v53  ;;  %v13395_v49 = vadd.f32 %v13394_v18, %v13393_v33  ;;  %v13507_v4 = vadd.f32 %v13506_v29, %v13505_v26 }
0x1216   : > { %v13396_v13 = vpop.f32.mrf.mxu1  ;;  %v13508_v0 = vpop.f32.mrf.mxu0 }
0x1217   : > { %v12383_v37 = vadd.f32 %v20604_v62, %v12347_v59  ;;  %v12242_v48 = vadd.f32 %v13507_v4, %v13395_v49 }
0x1218   : > { %v13397_v1 = vpop.f32.mrf.mxu1  ;;  %v13509_v39 = vpop.f32.mrf.mxu0 }
0x1219   : > { %12415 = vst [vmem:[%s16073_s14 + $0x30] sm:$0xff] %v12383_v37  ;;  %v12348_v2 = vadd.f32 %v12242_v48, %v19938_v24  ;;  %v13398_v8 = vadd.f32 %v13397_v1, %v13396_v13  ;;  %v13510_v31 = vadd.f32 %v13509_v39, %v13508_v0 }
0x121a   : > { %v13399_v42 = vpop.f32.mrf.mxu1  ;;  %v13511_v45 = vpop.f32.mrf.mxu0 }
0x121b   : > { %v12384_v53 = vadd.f32 %v20604_v62, %v12348_v2  ;;  %v12247_v15 = vadd.f32 %v13510_v31, %v13398_v8 }
0x121c   : > { %v13400_v35 = vpop.f32.mrf.mxu1  ;;  %v13512_v25 = vpop.f32.mrf.mxu0 }
0x121d   : > { %12416 = vst [vmem:[%s16073_s14 + $0x38] sm:$0xff] %v12384_v53  ;;  %v12349_v32 = vadd.f32 %v12247_v15, %v19949_v27  ;;  %v13401_v46 = vadd.f32 %v13400_v35, %v13399_v42  ;;  %v13513_v44 = vadd.f32 %v13512_v25, %v13511_v45  ;;  %v21430_v53 = vld [vmem:[#allocation58_spill] sm:$0xff] }
0x121e   : > { %v13402_v43 = vpop.f32.mrf.mxu1  ;;  %v13514_v10 = vpop.f32.mrf.mxu0 }
0x121f   : > { %v12385_v24 = vadd.f32 %v20604_v62, %v12349_v32  ;;  %v12250_v17 = vadd.f32 %v13513_v44, %v13401_v46 }
0x1220   : > { %v13403_v3 = vpop.f32.mrf.mxu1  ;;  %v13515_v55 = vpop.f32.mrf.mxu0 }
0x1221   : > { %12417 = vst [vmem:[%s16073_s14 + $0x40] sm:$0xff] %v12385_v24  ;;  %v12350_v40 = vadd.f32 %v12250_v17, %v19952_v21  ;;  %v13404_v52 = vadd.f32 %v13403_v3, %v13402_v43  ;;  %v13516_v6 = vadd.f32 %v13515_v55, %v13514_v10 }
0x1222   : > { %v13405_v36 = vpop.f32.mrf.mxu1  ;;  %v13517_v41 = vpop.f32.mrf.mxu0 }
0x1223   : > { %v12386_v27 = vadd.f32 %v20604_v62, %v12350_v40  ;;  %v12255_v14 = vadd.f32 %v13516_v6, %v13404_v52 }
0x1224   : > { %v13406_v56 = vpop.f32.mrf.mxu1  ;;  %v13518_v58 = vpop.f32.mrf.mxu0 }
0x1225   : > { %12418 = vst [vmem:[%s16073_s14 + $0x48] sm:$0xff] %v12386_v27  ;;  %v12351_v12 = vadd.f32 %v12255_v14, %v19959_v19  ;;  %v13407_v34 = vadd.f32 %v13406_v56, %v13405_v36  ;;  %v13519_v7 = vadd.f32 %v13518_v58, %v13517_v41  ;;  %v21432_v14 = vld [vmem:[#allocation60_spill] sm:$0xff] }
0x1226   : > { %v13408_v38 = vpop.f32.mrf.mxu1  ;;  %v13520_v54 = vpop.f32.mrf.mxu0 }
0x1227   : > { %v12387_v21 = vadd.f32 %v20604_v62, %v12351_v12  ;;  %v12258_v30 = vadd.f32 %v13519_v7, %v13407_v34 }
0x1228   : > { %v13409_v47 = vpop.f32.mrf.mxu1  ;;  %v13521_v61 = vpop.f32.mrf.mxu0 }
0x1229   : > { %12419 = vst [vmem:[%s16073_s14 + $0x50] sm:$0xff] %v12387_v21  ;;  %v12352_v11 = vadd.f32 %v12258_v30, %v19964_v22  ;;  %v13410_v57 = vadd.f32 %v13409_v47, %v13408_v38  ;;  %v13522_v28 = vadd.f32 %v13521_v61, %v13520_v54  ;;  %v21433_v47 = vld [vmem:[#allocation131_spill] sm:$0xff] }
0x122a   : > { %v13411_v63 = vpop.f32.mrf.mxu1  ;;  %v13523_v33 = vpop.f32.mrf.mxu0 }
0x122b   : > { %v12388_v19 = vadd.f32 %v20604_v62, %v12352_v11  ;;  %v12263_v26 = vadd.f32 %v13522_v28, %v13410_v57 }
0x122c   : > { %v13412_v9 = vpop.f32.mrf.mxu1  ;;  %v13524_v50 = vpop.f32.mrf.mxu0 }
0x122d   : > { %12420 = vst [vmem:[%s16073_s14 + $0x58] sm:$0xff] %v12388_v19  ;;  %v12353_v18 = vadd.f32 %v12263_v26, %v19972_v5  ;;  %v13413_v29 = vadd.f32 %v13412_v9, %v13411_v63  ;;  %v13525_v59 = vadd.f32 %v13524_v50, %v13523_v33  ;;  %v21434_v50 = vld [vmem:[#allocation57_spill] sm:$0xff] }
0x122e   : > { %v13414_v49 = vpop.f32.mrf.mxu1  ;;  %v13526_v4 = vpop.f32.mrf.mxu0 }
0x122f   : > { %v12389_v22 = vadd.f32 %v20604_v62, %v12353_v18  ;;  %v12266_v13 = vadd.f32 %v13525_v59, %v13413_v29 }
0x1230   : > { %v13415_v0 = vpop.f32.mrf.mxu1  ;;  %v13527_v37 = vpop.f32.mrf.mxu0 }
0x1231   : > { %12421 = vst [vmem:[%s16073_s14 + $0x60] sm:$0xff] %v12389_v22  ;;  %v12354_v48 = vadd.f32 %v12266_v13, %v19975_v16  ;;  %v13416_v1 = vadd.f32 %v13415_v0, %v13414_v49  ;;  %v13528_v39 = vadd.f32 %v13527_v37, %v13526_v4  ;;  %v21431_v16 = vld [vmem:[#allocation56_spill] sm:$0xff]  ;;  %v21435_v22 = vld [vmem:[#allocation62_spill] sm:$0xff] }
0x1232   : > { %v13417_v2 = vpop.f32.mrf.mxu1  ;;  %v13529_v8 = vpop.f32.mrf.mxu0 }
0x1233   : > { %v12390_v5 = vadd.f32 %v20604_v62, %v12354_v48  ;;  %v12271_v31 = vadd.f32 %v13528_v39, %v13416_v1 }
0x1234   : > { %v13418_v42 = vpop.f32.mrf.mxu1  ;;  %v13530_v45 = vpop.f32.mrf.mxu0 }
0x1235   : > { %12422 = vst [vmem:[%s16073_s14 + $0x68] sm:$0xff] %v12390_v5  ;;  %v12355_v15 = vadd.f32 %v12271_v31, %v21430_v53  ;;  %v13419_v35 = vadd.f32 %v13418_v42, %v13417_v2  ;;  %v13531_v25 = vadd.f32 %v13530_v45, %v13529_v8 }
0x1237   : > { %v12391_v32 = vadd.f32 %v20604_v62, %v12355_v15  ;;  %v12274_v46 = vadd.f32 %v13531_v25, %v13419_v35  ;;  %v21436_v15 = vld [vmem:[#allocation59_spill] sm:$0xff] }
0x1239   : > { %12423 = vst [vmem:[%s16073_s14 + $0x70] sm:$0xff] %v12391_v32  ;;  %v12356_v44 = vadd.f32 %v12274_v46, %v21431_v16 }
0x123b   : > { %v12392_v43 = vadd.f32 %v20604_v62, %v12356_v44 }
0x123d   : > { %12424 = vst [vmem:[%s16073_s14 + $0x78] sm:$0xff] %v12392_v43 }
0x1254   : > { %v13420_v10 = vpop.f32.mrf.mxu1  ;;  %v13532_v24 = vpop.f32.mrf.mxu0 }
0x1256   : > { %v13421_v17 = vpop.f32.mrf.mxu1  ;;  %v13533_v3 = vpop.f32.mrf.mxu0 }
0x1257   : > { %v13422_v55 = vadd.f32 %v13421_v17, %v13420_v10  ;;  %v13534_v40 = vadd.f32 %v13533_v3, %v13532_v24  ;;  %v21437_v17 = vld [vmem:[#allocation61_spill] sm:$0xff] }
0x1258   : > { %v13423_v52 = vpop.f32.mrf.mxu1  ;;  %v13535_v6 = vpop.f32.mrf.mxu0 }
0x1259   : > { %v12279_v36 = vadd.f32 %v13534_v40, %v13422_v55 }
0x125a   : > { %v13424_v41 = vpop.f32.mrf.mxu1  ;;  %v13536_v27 = vpop.f32.mrf.mxu0 }
0x125b   : > { %v12357_v56 = vadd.f32 %v12279_v36, %v21432_v14  ;;  %v13425_v58 = vadd.f32 %v13424_v41, %v13423_v52  ;;  %v13537_v12 = vadd.f32 %v13536_v27, %v13535_v6 }
0x125c   : > { %v13426_v34 = vpop.f32.mrf.mxu1  ;;  %v13538_v7 = vpop.f32.mrf.mxu0 }
0x125d   : > { %v12393_v38 = vadd.f32 %v20604_v62, %v12357_v56  ;;  %v12282_v54 = vadd.f32 %v13537_v12, %v13425_v58  ;;  %v21438_v56 = vld [vmem:[#allocation63_spill] sm:$0xff] }
0x125e   : > { %v13427_v21 = vpop.f32.mrf.mxu1  ;;  %v13539_v30 = vpop.f32.mrf.mxu0 }
0x125f   : > { %12425 = vst [vmem:[%s16073_s14 + $0x80] sm:$0xff] %v12393_v38  ;;  %v12358_v61 = vadd.f32 %v12282_v54, %v21433_v47  ;;  %v13428_v11 = vadd.f32 %v13427_v21, %v13426_v34  ;;  %v13540_v57 = vadd.f32 %v13539_v30, %v13538_v7 }
0x1260   : > { %v13429_v28 = vpop.f32.mrf.mxu1  ;;  %v13541_v63 = vpop.f32.mrf.mxu0 }
0x1261   : > { %v12394_v33 = vadd.f32 %v20604_v62, %v12358_v61  ;;  %v12287_v19 = vadd.f32 %v13540_v57, %v13428_v11  ;;  %v21439_v61 = vld [vmem:[#allocation135_spill] sm:$0xff] }
0x1262   : > { %v13430_v26 = vpop.f32.mrf.mxu1  ;;  %v13542_v9 = vpop.f32.mrf.mxu0 }
0x1263   : > { %12426 = vst [vmem:[%s16073_s14 + $0x88] sm:$0xff] %v12394_v33  ;;  %v12359_v18 = vadd.f32 %v12287_v19, %v21434_v50  ;;  %v13431_v29 = vadd.f32 %v13430_v26, %v13429_v28  ;;  %v13543_v59 = vadd.f32 %v13542_v9, %v13541_v63 }
0x1265   : > { %v12395_v49 = vadd.f32 %v20604_v62, %v12359_v18  ;;  %v12290_v4 = vadd.f32 %v13543_v59, %v13431_v29  ;;  %v21440_v18 = vld [vmem:[#allocation134_spill] sm:$0xff] }
0x1267   : > { %12427 = vst [vmem:[%s16073_s14 + $0x90] sm:$0xff] %v12395_v49  ;;  %v12360_v13 = vadd.f32 %v12290_v4, %v21435_v22 }
0x1269   : > { %v12396_v0 = vadd.f32 %v20604_v62, %v12360_v13 }
0x126b   : > { %12428 = vst [vmem:[%s16073_s14 + $0x98] sm:$0xff] %v12396_v0 }
0x1289   : > { %v13432_v37 = vpop.f32.mrf.mxu1  ;;  %v13544_v48 = vpop.f32.mrf.mxu0 }
0x128b   : > { %v13433_v1 = vpop.f32.mrf.mxu1  ;;  %v13545_v39 = vpop.f32.mrf.mxu0 }
0x128c   : > { %v13434_v2 = vadd.f32 %v13433_v1, %v13432_v37  ;;  %v13546_v8 = vadd.f32 %v13545_v39, %v13544_v48  ;;  %v21441_v1 = vld [vmem:[#allocation86_spill] sm:$0xff] }
0x128d   : > { %v13435_v5 = vpop.f32.mrf.mxu1  ;;  %v13547_v31 = vpop.f32.mrf.mxu0 }
0x128e   : > { %v12295_v42 = vadd.f32 %v13546_v8, %v13434_v2 }
0x128f   : > { %v13436_v45 = vpop.f32.mrf.mxu1  ;;  %v13548_v53 = vpop.f32.mrf.mxu0 }
0x1290   : > { %v12361_v35 = vadd.f32 %v12295_v42, %v21436_v15  ;;  %v13437_v25 = vadd.f32 %v13436_v45, %v13435_v5  ;;  %v13549_v32 = vadd.f32 %v13548_v53, %v13547_v31 }
0x1291   : > { %v13438_v46 = vpop.f32.mrf.mxu1  ;;  %v13550_v16 = vpop.f32.mrf.mxu0 }
0x1292   : > { %v12397_v44 = vadd.f32 %v20604_v62, %v12361_v35  ;;  %v12298_v43 = vadd.f32 %v13549_v32, %v13437_v25 }
0x1293   : > { %v13439_v10 = vpop.f32.mrf.mxu1  ;;  %v13551_v24 = vpop.f32.mrf.mxu0 }
0x1294   : > { %12429 = vst [vmem:[%s16073_s14 + $0xa0] sm:$0xff] %v12397_v44  ;;  %v12362_v3 = vadd.f32 %v12298_v43, %v21437_v17  ;;  %v13440_v55 = vadd.f32 %v13439_v10, %v13438_v46  ;;  %v13552_v40 = vadd.f32 %v13551_v24, %v13550_v16  ;;  %v21442_v17 = vld [vmem:[#allocation41_spill] sm:$0xff] }
0x1295   : > { %v13441_v52 = vpop.f32.mrf.mxu1  ;;  %v13553_v6 = vpop.f32.mrf.mxu0 }
0x1296   : > { %v12398_v36 = vadd.f32 %v20604_v62, %v12362_v3  ;;  %v12303_v41 = vadd.f32 %v13552_v40, %v13440_v55 }
0x1297   : > { %v13442_v27 = vpop.f32.mrf.mxu1  ;;  %v13554_v14 = vpop.f32.mrf.mxu0 }
0x1298   : > { %12430 = vst [vmem:[%s16073_s14 + $0xa8] sm:$0xff] %v12398_v36  ;;  %v12363_v58 = vadd.f32 %v12303_v41, %v21438_v56  ;;  %v13443_v12 = vadd.f32 %v13442_v27, %v13441_v52  ;;  %v13555_v34 = vadd.f32 %v13554_v14, %v13553_v6 }
0x1299   : > { %v13444_v7 = vpop.f32.mrf.mxu1  ;;  %v13556_v38 = vpop.f32.mrf.mxu0 }
0x129a   : > { %v12399_v54 = vadd.f32 %v20604_v62, %v12363_v58  ;;  %v12306_v21 = vadd.f32 %v13555_v34, %v13443_v12 }
0x129b   : > { %v13445_v30 = vpop.f32.mrf.mxu1  ;;  %v13557_v47 = vpop.f32.mrf.mxu0 }
0x129c   : > { %12431 = vst [vmem:[%s16073_s14 + $0xb0] sm:$0xff] %v12399_v54  ;;  %v12364_v11 = vadd.f32 %v12306_v21, %v21439_v61  ;;  %v13446_v57 = vadd.f32 %v13445_v30, %v13444_v7  ;;  %v13558_v28 = vadd.f32 %v13557_v47, %v13556_v38 }
0x129d   : > { %v13447_v63 = vpop.f32.mrf.mxu1  ;;  %v13559_v33 = vpop.f32.mrf.mxu0 }
0x129e   : > { %v12400_v19 = vadd.f32 %v20604_v62, %v12364_v11  ;;  %v12311_v26 = vadd.f32 %v13558_v28, %v13446_v57 }
0x129f   : > { %v13448_v9 = vpop.f32.mrf.mxu1  ;;  %v13560_v50 = vpop.f32.mrf.mxu0 }
0x12a0   : > { %12432 = vst [vmem:[%s16073_s14 + $0xb8] sm:$0xff] %v12400_v19  ;;  %v12365_v29 = vadd.f32 %v12311_v26, %v21440_v18  ;;  %v13449_v59 = vadd.f32 %v13448_v9, %v13447_v63  ;;  %v13561_v49 = vadd.f32 %v13560_v50, %v13559_v33  ;;  %v21445_v18 = vld [vmem:[#allocation84_spill] sm:$0xff] }
0x12a1   : > { %v13450_v4 = vpop.f32.mrf.mxu1  ;;  %v13562_v22 = vpop.f32.mrf.mxu0 }
0x12a2   : > { %v12401_v13 = vadd.f32 %v20604_v62, %v12365_v29  ;;  %v12314_v0 = vadd.f32 %v13561_v49, %v13449_v59 }
0x12a3   : > { %v13451_v37 = vpop.f32.mrf.mxu1  ;;  %v13563_v48 = vpop.f32.mrf.mxu0 }
0x12a4   : > { %12433 = vst [vmem:[%s16073_s14 + $0xc0] sm:$0xff] %v12401_v13  ;;  %v12366_v39 = vadd.f32 %v12314_v0, %v21441_v1  ;;  %v13452_v2 = vadd.f32 %v13451_v37, %v13450_v4  ;;  %v13564_v8 = vadd.f32 %v13563_v48, %v13562_v22 }
0x12a5   : > { %v13453_v5 = vpop.f32.mrf.mxu1  ;;  %v13565_v31 = vpop.f32.mrf.mxu0 }
0x12a6   : > { %v12402_v42 = vadd.f32 %v20604_v62, %v12366_v39  ;;  %v12319_v45 = vadd.f32 %v13564_v8, %v13452_v2 }
0x12a7   : > { %v13454_v53 = vpop.f32.mrf.mxu1  ;;  %v13566_v15 = vpop.f32.mrf.mxu0 }
0x12a8   : > { %12434 = vst [vmem:[%s16073_s14 + $0xc8] sm:$0xff] %v12402_v42  ;;  %v12367_v35 = vadd.f32 %v12319_v45, %v20141_v20  ;;  %v13455_v25 = vadd.f32 %v13454_v53, %v13453_v5  ;;  %v13567_v32 = vadd.f32 %v13566_v15, %v13565_v31 }
0x12a9   : > { %v13456_v46 = vpop.f32.mrf.mxu1  ;;  %v13568_v16 = vpop.f32.mrf.mxu0 }
0x12aa   : > { %v12403_v44 = vadd.f32 %v20604_v62, %v12367_v35  ;;  %v12322_v43 = vadd.f32 %v13567_v32, %v13455_v25 }
0x12ab   : > { %v13457_v10 = vpop.f32.mrf.mxu1  ;;  %v13569_v24 = vpop.f32.mrf.mxu0 }
0x12ac   : > { %12435 = vst [vmem:[%s16073_s14 + $0xd0] sm:$0xff] %v12403_v44  ;;  %v12368_v3 = vadd.f32 %v12322_v43, %v21442_v17  ;;  %v13458_v55 = vadd.f32 %v13457_v10, %v13456_v46  ;;  %v13570_v40 = vadd.f32 %v13569_v24, %v13568_v16 }
0x12ad   : > { %v13459_v52 = vpop.f32.mrf.mxu1  ;;  %v13571_v6 = vpop.f32.mrf.mxu0 }
0x12ae   : > { %v12404_v20 = vadd.f32 %v20604_v62, %v12368_v3  ;;  %v12327_v36 = vadd.f32 %v13570_v40, %v13458_v55 }
0x12af   : > { %v13460_v41 = vpop.f32.mrf.mxu1  ;;  %v13572_v27 = vpop.f32.mrf.mxu0 }
0x12b0   : > { %12436 = vst [vmem:[%s16073_s14 + $0xd8] sm:$0xff] %v12404_v20  ;;  %v12369_v14 = vadd.f32 %v12327_v36, %v20163_v23  ;;  %v13461_v56 = vadd.f32 %v13460_v41, %v13459_v52  ;;  %v13573_v58 = vadd.f32 %v13572_v27, %v13571_v6 }
0x12b1   : > { %v13462_v12 = vpop.f32.mrf.mxu1  ;;  %v13574_v34 = vpop.f32.mrf.mxu0 }
0x12b2   : > { %v12405_v7 = vadd.f32 %v20604_v62, %v12369_v14  ;;  %v12330_v38 = vadd.f32 %v13573_v58, %v13461_v56 }
0x12b3   : > { %v13463_v54 = vpop.f32.mrf.mxu1  ;;  %v13575_v21 = vpop.f32.mrf.mxu0 }
0x12b4   : > { %12437 = vst [vmem:[%s16073_s14 + $0xe0] sm:$0xff] %v12405_v7  ;;  %v12370_v30 = vadd.f32 %v12330_v38, %v20174_v60  ;;  %v13464_v47 = vadd.f32 %v13463_v54, %v13462_v12  ;;  %v13576_v61 = vadd.f32 %v13575_v21, %v13574_v34 }
0x12b5   : > { %v13465_v11 = vpop.f32.mrf.mxu1  ;;  %v13577_v23 = vpop.f32.mrf.mxu0 }
0x12b6   : > { %v12406_v57 = vadd.f32 %v20604_v62, %v12370_v30  ;;  %v12335_v28 = vadd.f32 %v13576_v61, %v13464_v47 }
0x12b7   : > { %v13466_v63 = vpop.f32.mrf.mxu1  ;;  %v13578_v33 = vpop.f32.mrf.mxu0 }
0x12b8   : > { %12438 = vst [vmem:[%s16073_s14 + $0xe8] sm:$0xff] %v12406_v57  ;;  %v12371_v19 = vadd.f32 %v12335_v28, %v20184_v51  ;;  %v13467_v26 = vadd.f32 %v13466_v63, %v13465_v11  ;;  %v13579_v9 = vadd.f32 %v13578_v33, %v13577_v23 }
0x12ba   : > { %v12407_v60 = vadd.f32 %v20604_v62, %v12371_v19  ;;  %v12338_v50 = vadd.f32 %v13579_v9, %v13467_v26 }
0x12bc   : > { %12439 = vst [vmem:[%s16073_s14 + $0xf0] sm:$0xff] %v12407_v60  ;;  %v12372_v29 = vadd.f32 %v12338_v50, %v21445_v18 }
0x12be   : > { %v12408_v51 = vadd.f32 %v20604_v62, %v12372_v29 }
0x12c0   : > { %12440 = vst [vmem:[%s16073_s14 + $0xf8] sm:$0xff] %v12408_v51 }
0x12c1   : > { %15647 = shalt.err (!%p15644_p5)
}
0x12c2   : > { %s15648_s0 = scalar_lea.hbm %s20705_s5, 4096  ;;  %s15652_s27 = scalar_lea.hbm %s21446_s16, 8192 }
0x12c3   : > { %p15649_p9 = scmp.ne.s32.totalorder %s20705_s5, %s15648_s0  ;;  %p15653_p4 = scmp.lt.s32.totalorder %s20705_s5, %s21446_s16 }
0x12c4   : > { %p15654_p12 = scmp.lt.s32.totalorder %s15652_s27, %s15648_s0 }
0x12c5   : > { %p15650_p13 = pnand %p15649_p9, %p15986_p0 }
0x12c6   : > { %p15655_p7 = por %p15654_p12, %p15653_p4 }
0x12c7   : > { %p15651_p6 = pneg %p15650_p13 }
0x12c9   : > { %p15656_p11 = pnand %p15655_p7, %p15651_p6 }
0x12cb   : > { %15659 = shalt.err (!%p15656_p11)
}
0x12cc   : > { %s15782_s14 = smov 128   ;;  %s15783_s11 = smov 8  }
0x12cd   : > { %14650 = dma.vmem_to_hbm [thread:$0]  (%p15986_p0), %s20707_s18, 4096, %s20705_s5, %s12442_s25, %s15782_s14, %s15782_s14, %s15783_s11  }
0x12ce PF: > { %s21447_s9 = sld [smem:[#allocation17_spill]]  ;;  %p14673_p1 = scmp.ge.s32.totalorder %s15762_s28, 2 }
0x12cf   : > { %s21448_s12 = sld [smem:[#allocation27_spill]] }
0x12d4   : > { %s12471_s21 = sand.u32 1, %s21447_s9  }
0x12d5   : > { %p21449_p2 = scmp.ne.s32.totalorder %s21448_s12, 0  ;;  %s12472_s20 = scalar_lea.sflag [#allocation4], %s12471_s21 }
0x12d7   : > { %p14669_p8 = pnand %p14673_p1, %p21449_p2 }
0x12d9   : > { %p14670_p3 = pneg %p14669_p8 }
0x12db   : > { %15717 = dma.done.wait (%p14670_p3), %s12472_s20, 4096  }
0x12dc   : > { %15719 = vsyncadd (%p14670_p3), %s12472_s20, 4294963200  ;;  %s27_s28 = sadd.s32 1, %s15762_s28   ;;  %s21450_s6 = sld [smem:[#allocation16_spill]] }
0x12dd   : > { %p24_p10 = scmp.ge.s32.totalorder %s27_s28, 6   ;;  %s21451_s20 = sld [smem:[#allocation23_spill]] }
0x12de   : > { %s21452_s15 = sld [smem:[#allocation18_spill]]  ;;  %s21457_s18 = smov %s15726_s19 }
0x12df   : > { %s21453_s23 = sld [smem:[#allocation26_spill]]  ;;  %s21459_s21 = smov %s15738_s22 }
0x12e0   : > { %s21454_s25 = sld [smem:[#allocation21_spill]]  ;;  %s21461_s24 = smov %s15754_s26 }
0x12e1   : > { %s21455_s17 = sld [smem:[#allocation22_spill]] }
0x12e2   : > { %s21456_s27 = sld [smem:[#allocation24_spill]]  ;;  %s21458_s19 = smov %s21450_s6 }
0x12e3   :  { %26 = sbr.rel (!%p24_p10) target bundleno = 18 (0x12), region = 137 }
0x12e4   : > { %s21460_s22 = smov %s21452_s15 }
0x12e7   : > { %s21462_s26 = smov %s21455_s17 }
0x12e8   :  { %12477 = vsyncpa [#allocation3], 1 }
0x12e9   :  { %12479 = vsyncpa [#allocation3 + $0x1], 1 }
0x12ea   :  { %12480 = vsyncpa [#allocation6], 1 }
0x12eb   :  { %12482 = vsyncpa [#allocation6 + $0x1], 1 }
0x12ec   :  { %12483 = vsyncpa [#allocation9], 1 }
0x12ed   :  { %12485 = vsyncpa [#allocation9 + $0x1], 1 }
0x12ee   :  { %12486 = vsyncpa [#allocation4], 1 }
0x12ef   :  { %12488 = vsyncpa [#allocation4 + $0x1], 1 }

</bundles_post_ra>
